<compile_context>
chip_gen: v7x
topology: tpu7x:2x2x1
jax: 0.10.0
libtpu: 0.0.40
codegen_flags: <defaults>
</compile_context>

<pallas_src>
import functools

import numpy as np
import jax
import jax.numpy as jnp
from jax.experimental import pallas as pl
from jax.experimental.pallas import tpu as pltpu

KSIZE = 5
STRIDE = 2


# ----------------------------- shape helpers ---------------------------------

def conv_out_size(size, kernel_size=KSIZE, stride=STRIDE):
    return (size - (kernel_size - 1) - 1) // stride + 1


def round_up(x, m):
    return ((x + m - 1) // m) * m


# ----------------------------- fused Pallas kernel ---------------------------

def _dqn_kernel(x_ref, w1_ref, b1_ref, w2_ref, b2_ref, w3_ref, b3_ref,
                wh_ref, bh_ref, out_ref, a1_ref, a2_ref):
    """Whole DQN forward, everything VMEM-resident.

    x_ref : [N, H*IN_COLS]            bf16  (NHWC rows, each row zero-padded to IN_COLS)
    wL_ref: [KSIZE*INROW, OUTROW]     bf16  (5 kernel rows stacked along K, stride-2 +
                                             BN scale folded into the columns, tail cols zero)
    bL_ref: [1, OUTROW]               f32   (conv bias + BN shift, zero on padded cols)
    wh_ref: [OH3, L3_COLS, OUT_PAD]   bf16
    aL_ref: VMEM scratch [N, OH_L*OUTROW_L] bf16 (flat activations)
    out_ref: [N, OUT_PAD]             f32
    """
    n = x_ref.shape[0]
    in_cols = w1_ref.shape[0] // KSIZE
    l1_cols = w2_ref.shape[0] // KSIZE
    l2_cols = w3_ref.shape[0] // KSIZE
    oh1 = a1_ref.shape[1] // l1_cols
    oh2 = a2_ref.shape[1] // l2_cols
    oh3 = wh_ref.shape[0]

    def conv_layer(in_ref, w_ref, b_ref, out_sref, oh, icols, ocols):
        wmat = w_ref[...]                                     # hoisted: loaded once per layer
        bias = jnp.broadcast_to(b_ref[...], (n, ocols))       # hoisted broadcast
        win = w_ref.shape[0]
        for oy in range(oh):                                  # static unroll (14 / 5)
            xs = in_ref[:, pl.ds(STRIDE * oy * icols, win)]   # static, 128-aligned start
            row = jnp.dot(xs, wmat, preferred_element_type=jnp.float32)
            row = jnp.maximum(row + bias, 0.0)                # folded BN affine + ReLU
            out_sref[:, pl.ds(oy * ocols, ocols)] = row.astype(out_sref.dtype)

    conv_layer(x_ref, w1_ref, b1_ref, a1_ref, oh1, in_cols, l1_cols)
    conv_layer(a1_ref, w2_ref, b2_ref, a2_ref, oh2, l1_cols, l2_cols)

    # conv3 + ReLU + head fused (no a3 scratch): for each conv3 output row y,
    #   a3_y = relu(a2_slice @ W3 + b3)  ;  out += a3_y @ WH[y]
    w3m = w3_ref[...]
    b3 = jnp.broadcast_to(b3_ref[...], (n, w3_ref.shape[1]))
    win3 = w3_ref.shape[0]
    acc = jnp.zeros((n, wh_ref.shape[-1]), jnp.float32)
    for y in range(oh3):                                      # oh3 == 1 at 32x32
        xs = a2_ref[:, pl.ds(STRIDE * y * l2_cols, win3)]
        a3 = jnp.maximum(jnp.dot(xs, w3m, preferred_element_type=jnp.float32) + b3, 0.0)
        acc = acc + jnp.dot(a3.astype(jnp.bfloat16), wh_ref[y],
                            preferred_element_type=jnp.float32)
    out_ref[...] = acc + bh_ref[...]


# ----------------------------- forward wrapper -------------------------------

@functools.partial(jax.jit, static_argnames=("outputs",))
def dqn_forward(prep, x, *, outputs):
    # x: [N, 3, H, W] float32 (NCHW, PyTorch convention)
    n, c, h, w = x.shape
    oh1 = conv_out_size(h)
    oh2 = conv_out_size(oh1)

    w1, b1 = prep["w1"], prep["b1"]
    w2, b2 = prep["w2"], prep["b2"]
    w3, b3 = prep["w3"], prep["b3"]
    wh, bh = prep["wh"], prep["bh"]
    out_pad = wh.shape[-1]

    in_cols = w1.shape[0] // KSIZE
    l1_cols = w2.shape[0] // KSIZE
    l2_cols = w3.shape[0] // KSIZE

    # single layout fix-up of the raw input: NCHW -> NHWC rows, pad row 96->128,
    # flatten, bf16 (one fused XLA op).
    x_nhwc = jnp.transpose(x, (0, 2, 3, 1)).reshape(n, h, w * c)
    x_pad = jnp.pad(x_nhwc, ((0, 0), (0, 0), (0, in_cols - w * c)))
    x_flat = x_pad.reshape(n, h * in_cols).astype(jnp.bfloat16)

    inputs = (x_flat, w1, b1, w2, b2, w3, b3, wh, bh)

    def full_spec(shape):
        return pl.BlockSpec(shape, lambda i, _nd=len(shape): (0,) * _nd)

    # advisory cost estimate for the XLA scheduler
    flops = 2 * n * (oh1 * w1.shape[0] * w1.shape[1]
                     + oh2 * w2.shape[0] * w2.shape[1]
                     + wh.shape[0] * w3.shape[0] * w3.shape[1]
                     + wh.shape[0] * wh.shape[1] * wh.shape[2])
    bytes_accessed = sum(int(np.prod(a.shape)) * np.dtype(a.dtype).itemsize for a in inputs)
    bytes_accessed += n * out_pad * 4

    out = pl.pallas_call(
        _dqn_kernel,
        out_shape=jax.ShapeDtypeStruct((n, out_pad), jnp.float32),
        grid=(1,),
        in_specs=[full_spec(a.shape) for a in inputs],
        out_specs=full_spec((n, out_pad)),
        scratch_shapes=[
            pltpu.VMEM((n, oh1 * l1_cols), jnp.bfloat16),
            pltpu.VMEM((n, oh2 * l2_cols), jnp.bfloat16),
        ],
        compiler_params=pltpu.CompilerParams(dimension_semantics=("arbitrary",)),
        cost_estimate=pl.CostEstimate(flops=flops, transcendentals=0,
                                      bytes_accessed=bytes_accessed),
    )(*inputs)

    return out[:, :outputs]


# ----------------------------- one-time weight prep --------------------------

def prepare_params(params, h, w, outputs):
    """Fold BN, build flat stacked-K, 128-aligned conv matrices + biases (runs once)."""
    OUT_PAD = 128

    oh1, ow1 = conv_out_size(h), conv_out_size(w)
    oh2, ow2 = conv_out_size(oh1), conv_out_size(ow1)
    oh3, ow3 = conv_out_size(oh2), conv_out_size(ow2)

    in_cols = round_up(w * 3, 128)           # 96  -> 128
    l1_cols = round_up(ow1 * 16, 128)        # 224 -> 256
    l2_cols = round_up(ow2 * 32, 128)        # 160 -> 256
    l3_cols = round_up(ow3 * 32, 128)        # 32  -> 128

    def fold(bn, conv_b, eps=1e-5):
        gamma, beta, mean, var = (np.asarray(t, np.float32) for t in bn)
        cb = np.asarray(conv_b, np.float32)
        s = gamma / np.sqrt(var + eps)
        return s, s * cb + beta - s * mean        # scale, effective bias

    def build_conv(w_conv, s, b_eff, w_in, in_row_cols, ic, oc, out_row_cols):
        # w_conv: [OC, IC, k, k] (PyTorch OIHW).  Produces W : [KSIZE*in_row_cols, out_row_cols]
        # with W[ki*in_row_cols + wi*ic + c, ox*oc + o] = w[o, c, ki, wi-2*ox] * s[o],
        # so each conv output row is ONE matmul of a contiguous flat input slice.
        wc = np.asarray(w_conv, np.float32)
        ow = conv_out_size(w_in)
        assert w_in * ic <= in_row_cols and ow * oc <= out_row_cols
        W = np.zeros((KSIZE * in_row_cols, out_row_cols), np.float32)
        for ki in range(KSIZE):
            for ox in range(ow):
                for kj in range(KSIZE):
                    wi = STRIDE * ox + kj
                    blk = (wc[:, :, ki, kj] * s[:, None]).T          # [ic, oc]
                    r0 = ki * in_row_cols + wi * ic
                    W[r0:r0 + ic, ox * oc:ox * oc + oc] = blk
        b = np.zeros((1, out_row_cols), np.float32)
        for ox in range(ow):
            b[0, ox * oc:(ox + 1) * oc] = b_eff
        return W, b

    (w1c, b1c), (w2c, b2c), (w3c, b3c) = params["conv1"], params["conv2"], params["conv3"]
    s1, e1 = fold(params["bn1"], b1c)
    s2, e2 = fold(params["bn2"], b2c)
    s3, e3 = fold(params["bn3"], b3c)

    W1, B1 = build_conv(w1c, s1, e1, w_in=w,   in_row_cols=in_cols, ic=3,  oc=16, out_row_cols=l1_cols)
    W2, B2 = build_conv(w2c, s2, e2, w_in=ow1, in_row_cols=l1_cols, ic=16, oc=32, out_row_cols=l2_cols)
    W3, B3 = build_conv(w3c, s3, e3, w_in=ow2, in_row_cols=l2_cols, ic=32, oc=32, out_row_cols=l3_cols)

    # Head: PyTorch flatten order on NCHW is (c, y, x); remap to our (y, x*32+c) layout.
    hw = np.asarray(params["head_w"], np.float32).reshape(outputs, 32, oh3, ow3)
    hb = np.asarray(params["head_b"], np.float32)
    WH = np.zeros((oh3, l3_cols, OUT_PAD), np.float32)
    for y in range(oh3):
        for xx in range(ow3):
            WH[y, xx * 32:(xx + 1) * 32, :outputs] = hw[:, :, y, xx].T
    BH = np.zeros((1, OUT_PAD), np.float32)
    BH[0, :outputs] = hb

    # Invariant: padded conv3 output channels are exact zeros after ReLU and hit
    # zero head-weight rows (and padded head outputs are never read back).
    assert not np.any(W3[:, ow3 * 32:]) and not np.any(B3[:, ow3 * 32:])
    assert not np.any(WH[:, ow3 * 32:, :]) and not np.any(WH[:, :, outputs:])

    bf = lambda a: jnp.asarray(a, dtype=jnp.bfloat16)
    f32 = lambda a: jnp.asarray(a, dtype=jnp.float32)
    return {"w1": bf(W1), "b1": f32(B1),
            "w2": bf(W2), "b2": f32(B2),
            "w3": bf(W3), "b3": f32(B3),
            "wh": bf(WH), "bh": f32(BH)}


# ----------------------------- parameter init (PyTorch-like) -----------------

def init_params(key, h, w, outputs):
    ks = jax.random.split(key, 16)

    def u(k, shape, fan_in):
        bound = 1.0 / jnp.sqrt(fan_in)
        return jax.random.uniform(k, shape, jnp.float32, -bound, bound)

    def conv_params(k1, k2, ic, oc):
        fan_in = ic * 25
        return u(k1, (oc, ic, 5, 5), fan_in), u(k2, (oc,), fan_in)

    def bn_params(k1, k2, c):
        gamma = 1.0 + 0.1 * jax.random.normal(k1, (c,), jnp.float32)
        beta = 0.1 * jax.random.normal(k2, (c,), jnp.float32)
        return gamma, beta, jnp.zeros((c,), jnp.float32), jnp.ones((c,), jnp.float32)

    convw = conv_out_size(conv_out_size(conv_out_size(w)))
    convh = conv_out_size(conv_out_size(conv_out_size(h)))
    lin_in = convw * convh * 32

    return {
        "conv1": conv_params(ks[0], ks[1], 3, 16),
        "bn1": bn_params(ks[2], ks[3], 16),
        "conv2": conv_params(ks[4], ks[5], 16, 32),
        "bn2": bn_params(ks[6], ks[7], 32),
        "conv3": conv_params(ks[8], ks[9], 32, 32),
        "bn3": bn_params(ks[10], ks[11], 32),
        "head_w": u(ks[12], (outputs, lin_in), lin_in),
        "head_b": u(ks[13], (outputs,), lin_in),
    }


# ----------------------------- pure-JAX f32 reference ------------------------

@jax.jit
def reference_forward(params, x):
    def conv_bn_relu(x, conv_w, conv_b, bn, eps=1e-5):
        gamma, beta, mean, var = bn
        y = jax.lax.conv_general_dilated(
            x, conv_w, window_strides=(2, 2), padding="VALID",
            dimension_numbers=("NCHW", "OIHW", "NCHW"))
        y = y + conv_b[None, :, None, None]
        s = gamma / jnp.sqrt(var + eps)
        y = s[None, :, None, None] * (y - mean[None, :, None, None]) + beta[None, :, None, None]
        return jnp.maximum(y, 0.0)

    x = conv_bn_relu(x, *params["conv1"], params["bn1"])
    x = conv_bn_relu(x, *params["conv2"], params["bn2"])
    x = conv_bn_relu(x, *params["conv3"], params["bn3"])
    flat = x.reshape(x.shape[0], -1)
    return flat @ params["head_w"].T + params["head_b"][None, :]


# ----------------------------- main -------------------------------------------

if __name__ == "__main__":
    key = jax.random.PRNGKey(0)
    batch, h, w, outputs = 2, 32, 32, 4
    k_params, k_x = jax.random.split(key)
    params = init_params(k_params, h, w, outputs)
    x = jax.random.normal(k_x, (batch, 3, h, w), jnp.float32)

    prep = prepare_params(params, h, w, outputs)          # one-time weight prep
    q_values = dqn_forward(prep, x, outputs=outputs)
    q_values = jax.block_until_ready(q_values)
    assert q_values.shape == (batch, outputs), q_values.shape

    # sanity check against an f32 XLA reference (bf16 matmuls -> loose tolerance)
    q_ref = jax.block_until_ready(reference_forward(params, x))
    max_err = float(jnp.max(jnp.abs(q_values - q_ref)))
    assert max_err < 5e-2, f"max abs error {max_err}"

    print("KERNEL_OK")
</pallas_src>

<mosaic_0001>
module attributes {stable_mosaic.version = 11 : i64} {
  func.func @_dqn_kernel(%arg0: i32, %arg1: memref<2x4096xbf16, #tpu.memory_space<vmem>>, %arg2: memref<640x256xbf16, #tpu.memory_space<vmem>>, %arg3: memref<1x256xf32, #tpu.memory_space<vmem>>, %arg4: memref<1280x256xbf16, #tpu.memory_space<vmem>>, %arg5: memref<1x256xf32, #tpu.memory_space<vmem>>, %arg6: memref<1280x128xbf16, #tpu.memory_space<vmem>>, %arg7: memref<1x128xf32, #tpu.memory_space<vmem>>, %arg8: memref<1x128x128xbf16, #tpu.memory_space<vmem>>, %arg9: memref<1x128xf32, #tpu.memory_space<vmem>>, %arg10: memref<2x128xf32, #tpu.memory_space<vmem>>, %arg11: memref<2x3584xbf16, #tpu.memory_space<vmem>>, %arg12: memref<2x1280xbf16, #tpu.memory_space<vmem>>) attributes {dimension_semantics = [#tpu.dimension_semantics<arbitrary>], iteration_bounds = array<i64: 1>, scalar_prefetch = 0 : i64, scratch_operands = 2 : i64, tpu.core_type = #tpu.core_type<tc>, window_params = [{pipeline_mode = #tpu.pipeline_mode<synchronous>, transform_indices = @transform_0, window_bounds = array<i64: 2, 4096>}, {pipeline_mode = #tpu.pipeline_mode<synchronous>, transform_indices = @transform_1, window_bounds = array<i64: 640, 256>}, {pipeline_mode = #tpu.pipeline_mode<synchronous>, transform_indices = @transform_2, window_bounds = array<i64: 1, 256>}, {pipeline_mode = #tpu.pipeline_mode<synchronous>, transform_indices = @transform_3, window_bounds = array<i64: 1280, 256>}, {pipeline_mode = #tpu.pipeline_mode<synchronous>, transform_indices = @transform_4, window_bounds = array<i64: 1, 256>}, {pipeline_mode = #tpu.pipeline_mode<synchronous>, transform_indices = @transform_5, window_bounds = array<i64: 1280, 128>}, {pipeline_mode = #tpu.pipeline_mode<synchronous>, transform_indices = @transform_6, window_bounds = array<i64: 1, 128>}, {pipeline_mode = #tpu.pipeline_mode<synchronous>, transform_indices = @transform_7, window_bounds = array<i64: 1, 128, 128>}, {pipeline_mode = #tpu.pipeline_mode<synchronous>, transform_indices = @transform_8, window_bounds = array<i64: 1, 128>}, {pipeline_mode = #tpu.pipeline_mode<synchronous>, transform_indices = @transform_9, window_bounds = array<i64: 2, 128>}]} {
    %c0 = arith.constant 0 : index
    %c0_0 = arith.constant 0 : index
    %0 = vector.load %arg2[%c0, %c0_0] : memref<640x256xbf16, #tpu.memory_space<vmem>>, vector<640x256xbf16>
    %c0_1 = arith.constant 0 : index
    %c0_2 = arith.constant 0 : index
    %1 = vector.load %arg3[%c0_1, %c0_2] : memref<1x256xf32, #tpu.memory_space<vmem>>, vector<1x256xf32>
    %2 = vector.shape_cast %1 : vector<1x256xf32> to vector<1x256xf32>
    %3 = vector.broadcast %2 : vector<1x256xf32> to vector<2x256xf32>
    %c0_3 = arith.constant 0 : index
    %c0_4 = arith.constant 0 : index
    %4 = vector.load %arg1[%c0_3, %c0_4] : memref<2x4096xbf16, #tpu.memory_space<vmem>>, vector<2x640xbf16>
    %cst = arith.constant dense<0.000000e+00> : vector<2x256xf32>
    %5 = tpu.matmul %4, %0, %cst {dimension_numbers = #tpu.dot_dimension_numbers<[1], [0], [0], [1], [0, 0, 1, 1], [], []>} : vector<2x640xbf16>, vector<640x256xbf16>, vector<2x256xf32> -> vector<2x256xf32>
    %6 = arith.addf %5, %3 : vector<2x256xf32>
    %cst_5 = arith.constant 0.000000e+00 : f32
    %7 = vector.broadcast %cst_5 : f32 to vector<2x256xf32>
    %8 = arith.maximumf %6, %7 : vector<2x256xf32>
    %9 = arith.truncf %8 : vector<2x256xf32> to vector<2x256xbf16>
    %c0_6 = arith.constant 0 : index
    %c0_7 = arith.constant 0 : index
    %10 = vector.load %arg11[%c0_6, %c0_7] : memref<2x3584xbf16, #tpu.memory_space<vmem>>, vector<2x256xbf16>
    tpu.vector_store %arg11[%c0_6, %c0_7], %9 {strides = array<i32>} : memref<2x3584xbf16, #tpu.memory_space<vmem>>, vector<2x256xbf16>,
    %c0_8 = arith.constant 0 : index
    %c256 = arith.constant 256 : index
    %11 = vector.load %arg1[%c0_8, %c256] : memref<2x4096xbf16, #tpu.memory_space<vmem>>, vector<2x640xbf16>
    %cst_9 = arith.constant dense<0.000000e+00> : vector<2x256xf32>
    %12 = tpu.matmul %11, %0, %cst_9 {dimension_numbers = #tpu.dot_dimension_numbers<[1], [0], [0], [1], [0, 0, 1, 1], [], []>} : vector<2x640xbf16>, vector<640x256xbf16>, vector<2x256xf32> -> vector<2x256xf32>
    %13 = arith.addf %12, %3 : vector<2x256xf32>
    %cst_10 = arith.constant 0.000000e+00 : f32
    %14 = vector.broadcast %cst_10 : f32 to vector<2x256xf32>
    %15 = arith.maximumf %13, %14 : vector<2x256xf32>
    %16 = arith.truncf %15 : vector<2x256xf32> to vector<2x256xbf16>
    %c0_11 = arith.constant 0 : index
    %c256_12 = arith.constant 256 : index
    %17 = vector.load %arg11[%c0_11, %c256_12] : memref<2x3584xbf16, #tpu.memory_space<vmem>>, vector<2x256xbf16>
    tpu.vector_store %arg11[%c0_11, %c256_12], %16 {strides = array<i32>} : memref<2x3584xbf16, #tpu.memory_space<vmem>>, vector<2x256xbf16>,
    %c0_13 = arith.constant 0 : index
    %c512 = arith.constant 512 : index
    %18 = vector.load %arg1[%c0_13, %c512] : memref<2x4096xbf16, #tpu.memory_space<vmem>>, vector<2x640xbf16>
    %cst_14 = arith.constant dense<0.000000e+00> : vector<2x256xf32>
    %19 = tpu.matmul %18, %0, %cst_14 {dimension_numbers = #tpu.dot_dimension_numbers<[1], [0], [0], [1], [0, 0, 1, 1], [], []>} : vector<2x640xbf16>, vector<640x256xbf16>, vector<2x256xf32> -> vector<2x256xf32>
    %20 = arith.addf %19, %3 : vector<2x256xf32>
    %cst_15 = arith.constant 0.000000e+00 : f32
    %21 = vector.broadcast %cst_15 : f32 to vector<2x256xf32>
    %22 = arith.maximumf %20, %21 : vector<2x256xf32>
    %23 = arith.truncf %22 : vector<2x256xf32> to vector<2x256xbf16>
    %c0_16 = arith.constant 0 : index
    %c512_17 = arith.constant 512 : index
    %24 = vector.load %arg11[%c0_16, %c512_17] : memref<2x3584xbf16, #tpu.memory_space<vmem>>, vector<2x256xbf16>
    tpu.vector_store %arg11[%c0_16, %c512_17], %23 {strides = array<i32>} : memref<2x3584xbf16, #tpu.memory_space<vmem>>, vector<2x256xbf16>,
    %c0_18 = arith.constant 0 : index
    %c768 = arith.constant 768 : index
    %25 = vector.load %arg1[%c0_18, %c768] : memref<2x4096xbf16, #tpu.memory_space<vmem>>, vector<2x640xbf16>
    %cst_19 = arith.constant dense<0.000000e+00> : vector<2x256xf32>
    %26 = tpu.matmul %25, %0, %cst_19 {dimension_numbers = #tpu.dot_dimension_numbers<[1], [0], [0], [1], [0, 0, 1, 1], [], []>} : vector<2x640xbf16>, vector<640x256xbf16>, vector<2x256xf32> -> vector<2x256xf32>
    %27 = arith.addf %26, %3 : vector<2x256xf32>
    %cst_20 = arith.constant 0.000000e+00 : f32
    %28 = vector.broadcast %cst_20 : f32 to vector<2x256xf32>
    %29 = arith.maximumf %27, %28 : vector<2x256xf32>
    %30 = arith.truncf %29 : vector<2x256xf32> to vector<2x256xbf16>
    %c0_21 = arith.constant 0 : index
    %c768_22 = arith.constant 768 : index
    %31 = vector.load %arg11[%c0_21, %c768_22] : memref<2x3584xbf16, #tpu.memory_space<vmem>>, vector<2x256xbf16>
    tpu.vector_store %arg11[%c0_21, %c768_22], %30 {strides = array<i32>} : memref<2x3584xbf16, #tpu.memory_space<vmem>>, vector<2x256xbf16>,
    %c0_23 = arith.constant 0 : index
    %c1024 = arith.constant 1024 : index
    %32 = vector.load %arg1[%c0_23, %c1024] : memref<2x4096xbf16, #tpu.memory_space<vmem>>, vector<2x640xbf16>
    %cst_24 = arith.constant dense<0.000000e+00> : vector<2x256xf32>
    %33 = tpu.matmul %32, %0, %cst_24 {dimension_numbers = #tpu.dot_dimension_numbers<[1], [0], [0], [1], [0, 0, 1, 1], [], []>} : vector<2x640xbf16>, vector<640x256xbf16>, vector<2x256xf32> -> vector<2x256xf32>
    %34 = arith.addf %33, %3 : vector<2x256xf32>
    %cst_25 = arith.constant 0.000000e+00 : f32
    %35 = vector.broadcast %cst_25 : f32 to vector<2x256xf32>
    %36 = arith.maximumf %34, %35 : vector<2x256xf32>
    %37 = arith.truncf %36 : vector<2x256xf32> to vector<2x256xbf16>
    %c0_26 = arith.constant 0 : index
    %c1024_27 = arith.constant 1024 : index
    %38 = vector.load %arg11[%c0_26, %c1024_27] : memref<2x3584xbf16, #tpu.memory_space<vmem>>, vector<2x256xbf16>
    tpu.vector_store %arg11[%c0_26, %c1024_27], %37 {strides = array<i32>} : memref<2x3584xbf16, #tpu.memory_space<vmem>>, vector<2x256xbf16>,
    %c0_28 = arith.constant 0 : index
    %c1280 = arith.constant 1280 : index
    %39 = vector.load %arg1[%c0_28, %c1280] : memref<2x4096xbf16, #tpu.memory_space<vmem>>, vector<2x640xbf16>
    %cst_29 = arith.constant dense<0.000000e+00> : vector<2x256xf32>
    %40 = tpu.matmul %39, %0, %cst_29 {dimension_numbers = #tpu.dot_dimension_numbers<[1], [0], [0], [1], [0, 0, 1, 1], [], []>} : vector<2x640xbf16>, vector<640x256xbf16>, vector<2x256xf32> -> vector<2x256xf32>
    %41 = arith.addf %40, %3 : vector<2x256xf32>
    %cst_30 = arith.constant 0.000000e+00 : f32
    %42 = vector.broadcast %cst_30 : f32 to vector<2x256xf32>
    %43 = arith.maximumf %41, %42 : vector<2x256xf32>
    %44 = arith.truncf %43 : vector<2x256xf32> to vector<2x256xbf16>
    %c0_31 = arith.constant 0 : index
    %c1280_32 = arith.constant 1280 : index
    %45 = vector.load %arg11[%c0_31, %c1280_32] : memref<2x3584xbf16, #tpu.memory_space<vmem>>, vector<2x256xbf16>
    tpu.vector_store %arg11[%c0_31, %c1280_32], %44 {strides = array<i32>} : memref<2x3584xbf16, #tpu.memory_space<vmem>>, vector<2x256xbf16>,
    %c0_33 = arith.constant 0 : index
    %c1536 = arith.constant 1536 : index
    %46 = vector.load %arg1[%c0_33, %c1536] : memref<2x4096xbf16, #tpu.memory_space<vmem>>, vector<2x640xbf16>
    %cst_34 = arith.constant dense<0.000000e+00> : vector<2x256xf32>
    %47 = tpu.matmul %46, %0, %cst_34 {dimension_numbers = #tpu.dot_dimension_numbers<[1], [0], [0], [1], [0, 0, 1, 1], [], []>} : vector<2x640xbf16>, vector<640x256xbf16>, vector<2x256xf32> -> vector<2x256xf32>
    %48 = arith.addf %47, %3 : vector<2x256xf32>
    %cst_35 = arith.constant 0.000000e+00 : f32
    %49 = vector.broadcast %cst_35 : f32 to vector<2x256xf32>
    %50 = arith.maximumf %48, %49 : vector<2x256xf32>
    %51 = arith.truncf %50 : vector<2x256xf32> to vector<2x256xbf16>
    %c0_36 = arith.constant 0 : index
    %c1536_37 = arith.constant 1536 : index
    %52 = vector.load %arg11[%c0_36, %c1536_37] : memref<2x3584xbf16, #tpu.memory_space<vmem>>, vector<2x256xbf16>
    tpu.vector_store %arg11[%c0_36, %c1536_37], %51 {strides = array<i32>} : memref<2x3584xbf16, #tpu.memory_space<vmem>>, vector<2x256xbf16>,
    %c0_38 = arith.constant 0 : index
    %c1792 = arith.constant 1792 : index
    %53 = vector.load %arg1[%c0_38, %c1792] : memref<2x4096xbf16, #tpu.memory_space<vmem>>, vector<2x640xbf16>
    %cst_39 = arith.constant dense<0.000000e+00> : vector<2x256xf32>
    %54 = tpu.matmul %53, %0, %cst_39 {dimension_numbers = #tpu.dot_dimension_numbers<[1], [0], [0], [1], [0, 0, 1, 1], [], []>} : vector<2x640xbf16>, vector<640x256xbf16>, vector<2x256xf32> -> vector<2x256xf32>
    %55 = arith.addf %54, %3 : vector<2x256xf32>
    %cst_40 = arith.constant 0.000000e+00 : f32
    %56 = vector.broadcast %cst_40 : f32 to vector<2x256xf32>
    %57 = arith.maximumf %55, %56 : vector<2x256xf32>
    %58 = arith.truncf %57 : vector<2x256xf32> to vector<2x256xbf16>
    %c0_41 = arith.constant 0 : index
    %c1792_42 = arith.constant 1792 : index
    %59 = vector.load %arg11[%c0_41, %c1792_42] : memref<2x3584xbf16, #tpu.memory_space<vmem>>, vector<2x256xbf16>
    tpu.vector_store %arg11[%c0_41, %c1792_42], %58 {strides = array<i32>} : memref<2x3584xbf16, #tpu.memory_space<vmem>>, vector<2x256xbf16>,
    %c0_43 = arith.constant 0 : index
    %c2048 = arith.constant 2048 : index
    %60 = vector.load %arg1[%c0_43, %c2048] : memref<2x4096xbf16, #tpu.memory_space<vmem>>, vector<2x640xbf16>
    %cst_44 = arith.constant dense<0.000000e+00> : vector<2x256xf32>
    %61 = tpu.matmul %60, %0, %cst_44 {dimension_numbers = #tpu.dot_dimension_numbers<[1], [0], [0], [1], [0, 0, 1, 1], [], []>} : vector<2x640xbf16>, vector<640x256xbf16>, vector<2x256xf32> -> vector<2x256xf32>
    %62 = arith.addf %61, %3 : vector<2x256xf32>
    %cst_45 = arith.constant 0.000000e+00 : f32
    %63 = vector.broadcast %cst_45 : f32 to vector<2x256xf32>
    %64 = arith.maximumf %62, %63 : vector<2x256xf32>
    %65 = arith.truncf %64 : vector<2x256xf32> to vector<2x256xbf16>
    %c0_46 = arith.constant 0 : index
    %c2048_47 = arith.constant 2048 : index
    %66 = vector.load %arg11[%c0_46, %c2048_47] : memref<2x3584xbf16, #tpu.memory_space<vmem>>, vector<2x256xbf16>
    tpu.vector_store %arg11[%c0_46, %c2048_47], %65 {strides = array<i32>} : memref<2x3584xbf16, #tpu.memory_space<vmem>>, vector<2x256xbf16>,
    %c0_48 = arith.constant 0 : index
    %c2304 = arith.constant 2304 : index
    %67 = vector.load %arg1[%c0_48, %c2304] : memref<2x4096xbf16, #tpu.memory_space<vmem>>, vector<2x640xbf16>
    %cst_49 = arith.constant dense<0.000000e+00> : vector<2x256xf32>
    %68 = tpu.matmul %67, %0, %cst_49 {dimension_numbers = #tpu.dot_dimension_numbers<[1], [0], [0], [1], [0, 0, 1, 1], [], []>} : vector<2x640xbf16>, vector<640x256xbf16>, vector<2x256xf32> -> vector<2x256xf32>
    %69 = arith.addf %68, %3 : vector<2x256xf32>
    %cst_50 = arith.constant 0.000000e+00 : f32
    %70 = vector.broadcast %cst_50 : f32 to vector<2x256xf32>
    %71 = arith.maximumf %69, %70 : vector<2x256xf32>
    %72 = arith.truncf %71 : vector<2x256xf32> to vector<2x256xbf16>
    %c0_51 = arith.constant 0 : index
    %c2304_52 = arith.constant 2304 : index
    %73 = vector.load %arg11[%c0_51, %c2304_52] : memref<2x3584xbf16, #tpu.memory_space<vmem>>, vector<2x256xbf16>
    tpu.vector_store %arg11[%c0_51, %c2304_52], %72 {strides = array<i32>} : memref<2x3584xbf16, #tpu.memory_space<vmem>>, vector<2x256xbf16>,
    %c0_53 = arith.constant 0 : index
    %c2560 = arith.constant 2560 : index
    %74 = vector.load %arg1[%c0_53, %c2560] : memref<2x4096xbf16, #tpu.memory_space<vmem>>, vector<2x640xbf16>
    %cst_54 = arith.constant dense<0.000000e+00> : vector<2x256xf32>
    %75 = tpu.matmul %74, %0, %cst_54 {dimension_numbers = #tpu.dot_dimension_numbers<[1], [0], [0], [1], [0, 0, 1, 1], [], []>} : vector<2x640xbf16>, vector<640x256xbf16>, vector<2x256xf32> -> vector<2x256xf32>
    %76 = arith.addf %75, %3 : vector<2x256xf32>
    %cst_55 = arith.constant 0.000000e+00 : f32
    %77 = vector.broadcast %cst_55 : f32 to vector<2x256xf32>
    %78 = arith.maximumf %76, %77 : vector<2x256xf32>
    %79 = arith.truncf %78 : vector<2x256xf32> to vector<2x256xbf16>
    %c0_56 = arith.constant 0 : index
    %c2560_57 = arith.constant 2560 : index
    %80 = vector.load %arg11[%c0_56, %c2560_57] : memref<2x3584xbf16, #tpu.memory_space<vmem>>, vector<2x256xbf16>
    tpu.vector_store %arg11[%c0_56, %c2560_57], %79 {strides = array<i32>} : memref<2x3584xbf16, #tpu.memory_space<vmem>>, vector<2x256xbf16>,
    %c0_58 = arith.constant 0 : index
    %c2816 = arith.constant 2816 : index
    %81 = vector.load %arg1[%c0_58, %c2816] : memref<2x4096xbf16, #tpu.memory_space<vmem>>, vector<2x640xbf16>
    %cst_59 = arith.constant dense<0.000000e+00> : vector<2x256xf32>
    %82 = tpu.matmul %81, %0, %cst_59 {dimension_numbers = #tpu.dot_dimension_numbers<[1], [0], [0], [1], [0, 0, 1, 1], [], []>} : vector<2x640xbf16>, vector<640x256xbf16>, vector<2x256xf32> -> vector<2x256xf32>
    %83 = arith.addf %82, %3 : vector<2x256xf32>
    %cst_60 = arith.constant 0.000000e+00 : f32
    %84 = vector.broadcast %cst_60 : f32 to vector<2x256xf32>
    %85 = arith.maximumf %83, %84 : vector<2x256xf32>
    %86 = arith.truncf %85 : vector<2x256xf32> to vector<2x256xbf16>
    %c0_61 = arith.constant 0 : index
    %c2816_62 = arith.constant 2816 : index
    %87 = vector.load %arg11[%c0_61, %c2816_62] : memref<2x3584xbf16, #tpu.memory_space<vmem>>, vector<2x256xbf16>
    tpu.vector_store %arg11[%c0_61, %c2816_62], %86 {strides = array<i32>} : memref<2x3584xbf16, #tpu.memory_space<vmem>>, vector<2x256xbf16>,
    %c0_63 = arith.constant 0 : index
    %c3072 = arith.constant 3072 : index
    %88 = vector.load %arg1[%c0_63, %c3072] : memref<2x4096xbf16, #tpu.memory_space<vmem>>, vector<2x640xbf16>
    %cst_64 = arith.constant dense<0.000000e+00> : vector<2x256xf32>
    %89 = tpu.matmul %88, %0, %cst_64 {dimension_numbers = #tpu.dot_dimension_numbers<[1], [0], [0], [1], [0, 0, 1, 1], [], []>} : vector<2x640xbf16>, vector<640x256xbf16>, vector<2x256xf32> -> vector<2x256xf32>
    %90 = arith.addf %89, %3 : vector<2x256xf32>
    %cst_65 = arith.constant 0.000000e+00 : f32
    %91 = vector.broadcast %cst_65 : f32 to vector<2x256xf32>
    %92 = arith.maximumf %90, %91 : vector<2x256xf32>
    %93 = arith.truncf %92 : vector<2x256xf32> to vector<2x256xbf16>
    %c0_66 = arith.constant 0 : index
    %c3072_67 = arith.constant 3072 : index
    %94 = vector.load %arg11[%c0_66, %c3072_67] : memref<2x3584xbf16, #tpu.memory_space<vmem>>, vector<2x256xbf16>
    tpu.vector_store %arg11[%c0_66, %c3072_67], %93 {strides = array<i32>} : memref<2x3584xbf16, #tpu.memory_space<vmem>>, vector<2x256xbf16>,
    %c0_68 = arith.constant 0 : index
    %c3328 = arith.constant 3328 : index
    %95 = vector.load %arg1[%c0_68, %c3328] : memref<2x4096xbf16, #tpu.memory_space<vmem>>, vector<2x640xbf16>
    %cst_69 = arith.constant dense<0.000000e+00> : vector<2x256xf32>
    %96 = tpu.matmul %95, %0, %cst_69 {dimension_numbers = #tpu.dot_dimension_numbers<[1], [0], [0], [1], [0, 0, 1, 1], [], []>} : vector<2x640xbf16>, vector<640x256xbf16>, vector<2x256xf32> -> vector<2x256xf32>
    %97 = arith.addf %96, %3 : vector<2x256xf32>
    %cst_70 = arith.constant 0.000000e+00 : f32
    %98 = vector.broadcast %cst_70 : f32 to vector<2x256xf32>
    %99 = arith.maximumf %97, %98 : vector<2x256xf32>
    %100 = arith.truncf %99 : vector<2x256xf32> to vector<2x256xbf16>
    %c0_71 = arith.constant 0 : index
    %c3328_72 = arith.constant 3328 : index
    %101 = vector.load %arg11[%c0_71, %c3328_72] : memref<2x3584xbf16, #tpu.memory_space<vmem>>, vector<2x256xbf16>
    tpu.vector_store %arg11[%c0_71, %c3328_72], %100 {strides = array<i32>} : memref<2x3584xbf16, #tpu.memory_space<vmem>>, vector<2x256xbf16>,
    %c0_73 = arith.constant 0 : index
    %c0_74 = arith.constant 0 : index
    %102 = vector.load %arg4[%c0_73, %c0_74] : memref<1280x256xbf16, #tpu.memory_space<vmem>>, vector<1280x256xbf16>
    %c0_75 = arith.constant 0 : index
    %c0_76 = arith.constant 0 : index
    %103 = vector.load %arg5[%c0_75, %c0_76] : memref<1x256xf32, #tpu.memory_space<vmem>>, vector<1x256xf32>
    %104 = vector.shape_cast %103 : vector<1x256xf32> to vector<1x256xf32>
    %105 = vector.broadcast %104 : vector<1x256xf32> to vector<2x256xf32>
    %c0_77 = arith.constant 0 : index
    %c0_78 = arith.constant 0 : index
    %106 = vector.load %arg11[%c0_77, %c0_78] : memref<2x3584xbf16, #tpu.memory_space<vmem>>, vector<2x1280xbf16>
    %cst_79 = arith.constant dense<0.000000e+00> : vector<2x256xf32>
    %107 = tpu.matmul %106, %102, %cst_79 {dimension_numbers = #tpu.dot_dimension_numbers<[1], [0], [0], [1], [0, 0, 1, 1], [], []>} : vector<2x1280xbf16>, vector<1280x256xbf16>, vector<2x256xf32> -> vector<2x256xf32>
    %108 = arith.addf %107, %105 : vector<2x256xf32>
    %cst_80 = arith.constant 0.000000e+00 : f32
    %109 = vector.broadcast %cst_80 : f32 to vector<2x256xf32>
    %110 = arith.maximumf %108, %109 : vector<2x256xf32>
    %111 = arith.truncf %110 : vector<2x256xf32> to vector<2x256xbf16>
    %c0_81 = arith.constant 0 : index
    %c0_82 = arith.constant 0 : index
    %112 = vector.load %arg12[%c0_81, %c0_82] : memref<2x1280xbf16, #tpu.memory_space<vmem>>, vector<2x256xbf16>
    tpu.vector_store %arg12[%c0_81, %c0_82], %111 {strides = array<i32>} : memref<2x1280xbf16, #tpu.memory_space<vmem>>, vector<2x256xbf16>,
    %c0_83 = arith.constant 0 : index
    %c512_84 = arith.constant 512 : index
    %113 = vector.load %arg11[%c0_83, %c512_84] : memref<2x3584xbf16, #tpu.memory_space<vmem>>, vector<2x1280xbf16>
    %cst_85 = arith.constant dense<0.000000e+00> : vector<2x256xf32>
    %114 = tpu.matmul %113, %102, %cst_85 {dimension_numbers = #tpu.dot_dimension_numbers<[1], [0], [0], [1], [0, 0, 1, 1], [], []>} : vector<2x1280xbf16>, vector<1280x256xbf16>, vector<2x256xf32> -> vector<2x256xf32>
    %115 = arith.addf %114, %105 : vector<2x256xf32>
    %cst_86 = arith.constant 0.000000e+00 : f32
    %116 = vector.broadcast %cst_86 : f32 to vector<2x256xf32>
    %117 = arith.maximumf %115, %116 : vector<2x256xf32>
    %118 = arith.truncf %117 : vector<2x256xf32> to vector<2x256xbf16>
    %c0_87 = arith.constant 0 : index
    %c256_88 = arith.constant 256 : index
    %119 = vector.load %arg12[%c0_87, %c256_88] : memref<2x1280xbf16, #tpu.memory_space<vmem>>, vector<2x256xbf16>
    tpu.vector_store %arg12[%c0_87, %c256_88], %118 {strides = array<i32>} : memref<2x1280xbf16, #tpu.memory_space<vmem>>, vector<2x256xbf16>,
    %c0_89 = arith.constant 0 : index
    %c1024_90 = arith.constant 1024 : index
    %120 = vector.load %arg11[%c0_89, %c1024_90] : memref<2x3584xbf16, #tpu.memory_space<vmem>>, vector<2x1280xbf16>
    %cst_91 = arith.constant dense<0.000000e+00> : vector<2x256xf32>
    %121 = tpu.matmul %120, %102, %cst_91 {dimension_numbers = #tpu.dot_dimension_numbers<[1], [0], [0], [1], [0, 0, 1, 1], [], []>} : vector<2x1280xbf16>, vector<1280x256xbf16>, vector<2x256xf32> -> vector<2x256xf32>
    %122 = arith.addf %121, %105 : vector<2x256xf32>
    %cst_92 = arith.constant 0.000000e+00 : f32
    %123 = vector.broadcast %cst_92 : f32 to vector<2x256xf32>
    %124 = arith.maximumf %122, %123 : vector<2x256xf32>
    %125 = arith.truncf %124 : vector<2x256xf32> to vector<2x256xbf16>
    %c0_93 = arith.constant 0 : index
    %c512_94 = arith.constant 512 : index
    %126 = vector.load %arg12[%c0_93, %c512_94] : memref<2x1280xbf16, #tpu.memory_space<vmem>>, vector<2x256xbf16>
    tpu.vector_store %arg12[%c0_93, %c512_94], %125 {strides = array<i32>} : memref<2x1280xbf16, #tpu.memory_space<vmem>>, vector<2x256xbf16>,
    %c0_95 = arith.constant 0 : index
    %c1536_96 = arith.constant 1536 : index
    %127 = vector.load %arg11[%c0_95, %c1536_96] : memref<2x3584xbf16, #tpu.memory_space<vmem>>, vector<2x1280xbf16>
    %cst_97 = arith.constant dense<0.000000e+00> : vector<2x256xf32>
    %128 = tpu.matmul %127, %102, %cst_97 {dimension_numbers = #tpu.dot_dimension_numbers<[1], [0], [0], [1], [0, 0, 1, 1], [], []>} : vector<2x1280xbf16>, vector<1280x256xbf16>, vector<2x256xf32> -> vector<2x256xf32>
    %129 = arith.addf %128, %105 : vector<2x256xf32>
    %cst_98 = arith.constant 0.000000e+00 : f32
    %130 = vector.broadcast %cst_98 : f32 to vector<2x256xf32>
    %131 = arith.maximumf %129, %130 : vector<2x256xf32>
    %132 = arith.truncf %131 : vector<2x256xf32> to vector<2x256xbf16>
    %c0_99 = arith.constant 0 : index
    %c768_100 = arith.constant 768 : index
    %133 = vector.load %arg12[%c0_99, %c768_100] : memref<2x1280xbf16, #tpu.memory_space<vmem>>, vector<2x256xbf16>
    tpu.vector_store %arg12[%c0_99, %c768_100], %132 {strides = array<i32>} : memref<2x1280xbf16, #tpu.memory_space<vmem>>, vector<2x256xbf16>,
    %c0_101 = arith.constant 0 : index
    %c2048_102 = arith.constant 2048 : index
    %134 = vector.load %arg11[%c0_101, %c2048_102] : memref<2x3584xbf16, #tpu.memory_space<vmem>>, vector<2x1280xbf16>
    %cst_103 = arith.constant dense<0.000000e+00> : vector<2x256xf32>
    %135 = tpu.matmul %134, %102, %cst_103 {dimension_numbers = #tpu.dot_dimension_numbers<[1], [0], [0], [1], [0, 0, 1, 1], [], []>} : vector<2x1280xbf16>, vector<1280x256xbf16>, vector<2x256xf32> -> vector<2x256xf32>
    %136 = arith.addf %135, %105 : vector<2x256xf32>
    %cst_104 = arith.constant 0.000000e+00 : f32
    %137 = vector.broadcast %cst_104 : f32 to vector<2x256xf32>
    %138 = arith.maximumf %136, %137 : vector<2x256xf32>
    %139 = arith.truncf %138 : vector<2x256xf32> to vector<2x256xbf16>
    %c0_105 = arith.constant 0 : index
    %c1024_106 = arith.constant 1024 : index
    %140 = vector.load %arg12[%c0_105, %c1024_106] : memref<2x1280xbf16, #tpu.memory_space<vmem>>, vector<2x256xbf16>
    tpu.vector_store %arg12[%c0_105, %c1024_106], %139 {strides = array<i32>} : memref<2x1280xbf16, #tpu.memory_space<vmem>>, vector<2x256xbf16>,
    %c0_107 = arith.constant 0 : index
    %c0_108 = arith.constant 0 : index
    %141 = vector.load %arg6[%c0_107, %c0_108] : memref<1280x128xbf16, #tpu.memory_space<vmem>>, vector<1280x128xbf16>
    %c0_109 = arith.constant 0 : index
    %c0_110 = arith.constant 0 : index
    %142 = vector.load %arg7[%c0_109, %c0_110] : memref<1x128xf32, #tpu.memory_space<vmem>>, vector<1x128xf32>
    %143 = vector.shape_cast %142 : vector<1x128xf32> to vector<1x128xf32>
    %144 = vector.broadcast %143 : vector<1x128xf32> to vector<2x128xf32>
    %cst_111 = arith.constant 0.000000e+00 : f32
    %145 = vector.broadcast %cst_111 : f32 to vector<2x128xf32>
    %c0_112 = arith.constant 0 : index
    %c0_113 = arith.constant 0 : index
    %146 = vector.load %arg12[%c0_112, %c0_113] : memref<2x1280xbf16, #tpu.memory_space<vmem>>, vector<2x1280xbf16>
    %cst_114 = arith.constant dense<0.000000e+00> : vector<2x128xf32>
    %147 = tpu.matmul %146, %141, %cst_114 {dimension_numbers = #tpu.dot_dimension_numbers<[1], [0], [0], [1], [0, 0, 1, 1], [], []>} : vector<2x1280xbf16>, vector<1280x128xbf16>, vector<2x128xf32> -> vector<2x128xf32>
    %148 = arith.addf %147, %144 : vector<2x128xf32>
    %cst_115 = arith.constant 0.000000e+00 : f32
    %149 = vector.broadcast %cst_115 : f32 to vector<2x128xf32>
    %150 = arith.maximumf %148, %149 : vector<2x128xf32>
    %151 = arith.truncf %150 : vector<2x128xf32> to vector<2x128xbf16>
    %c0_116 = arith.constant 0 : index
    %c0_117 = arith.constant 0 : index
    %c0_118 = arith.constant 0 : index
    %152 = vector.load %arg8[%c0_116, %c0_117, %c0_118] : memref<1x128x128xbf16, #tpu.memory_space<vmem>>, vector<1x128x128xbf16>
    %153 = vector.shape_cast %152 : vector<1x128x128xbf16> to vector<128x128xbf16>
    %cst_119 = arith.constant dense<0.000000e+00> : vector<2x128xf32>
    %154 = tpu.matmul %151, %153, %cst_119 {dimension_numbers = #tpu.dot_dimension_numbers<[1], [0], [0], [1], [0, 0, 1, 1], [], []>} : vector<2x128xbf16>, vector<128x128xbf16>, vector<2x128xf32> -> vector<2x128xf32>
    %155 = arith.addf %145, %154 : vector<2x128xf32>
    %c0_120 = arith.constant 0 : index
    %c0_121 = arith.constant 0 : index
    %156 = vector.load %arg9[%c0_120, %c0_121] : memref<1x128xf32, #tpu.memory_space<vmem>>, vector<1x128xf32>
    %157 = vector.broadcast %156 : vector<1x128xf32> to vector<2x128xf32>
    %158 = arith.addf %155, %157 : vector<2x128xf32>
    %c0_122 = arith.constant 0 : index
    %c0_123 = arith.constant 0 : index
    %159 = vector.load %arg10[%c0_122, %c0_123] : memref<2x128xf32, #tpu.memory_space<vmem>>, vector<2x128xf32>
    tpu.vector_store %arg10[%c0_122, %c0_123], %158 {strides = array<i32>} : memref<2x128xf32, #tpu.memory_space<vmem>>, vector<2x128xf32>,
    return
  }
  func.func @transform_0(%arg0: i32) -> (i32, i32) {
    %c0_i32 = arith.constant 0 : i32
    %c0_i32_0 = arith.constant 0 : i32
    %c0_i32_1 = arith.constant 0 : i32
    return %c0_i32, %c0_i32_0 : i32, i32
  }
  func.func @transform_1(%arg0: i32) -> (i32, i32) {
    %c0_i32 = arith.constant 0 : i32
    %c0_i32_0 = arith.constant 0 : i32
    %c0_i32_1 = arith.constant 0 : i32
    return %c0_i32, %c0_i32_0 : i32, i32
  }
  func.func @transform_2(%arg0: i32) -> (i32, i32) {
    %c0_i32 = arith.constant 0 : i32
    %c0_i32_0 = arith.constant 0 : i32
    %c0_i32_1 = arith.constant 0 : i32
    return %c0_i32, %c0_i32_0 : i32, i32
  }
  func.func @transform_3(%arg0: i32) -> (i32, i32) {
    %c0_i32 = arith.constant 0 : i32
    %c0_i32_0 = arith.constant 0 : i32
    %c0_i32_1 = arith.constant 0 : i32
    return %c0_i32, %c0_i32_0 : i32, i32
  }
  func.func @transform_4(%arg0: i32) -> (i32, i32) {
    %c0_i32 = arith.constant 0 : i32
    %c0_i32_0 = arith.constant 0 : i32
    %c0_i32_1 = arith.constant 0 : i32
    return %c0_i32, %c0_i32_0 : i32, i32
  }
  func.func @transform_5(%arg0: i32) -> (i32, i32) {
    %c0_i32 = arith.constant 0 : i32
    %c0_i32_0 = arith.constant 0 : i32
    %c0_i32_1 = arith.constant 0 : i32
    return %c0_i32, %c0_i32_0 : i32, i32
  }
  func.func @transform_6(%arg0: i32) -> (i32, i32) {
    %c0_i32 = arith.constant 0 : i32
    %c0_i32_0 = arith.constant 0 : i32
    %c0_i32_1 = arith.constant 0 : i32
    return %c0_i32, %c0_i32_0 : i32, i32
  }
  func.func @transform_7(%arg0: i32) -> (i32, i32, i32) {
    %c0_i32 = arith.constant 0 : i32
    %c0_i32_0 = arith.constant 0 : i32
    %c0_i32_1 = arith.constant 0 : i32
    %c0_i32_2 = arith.constant 0 : i32
    return %c0_i32, %c0_i32_0, %c0_i32_1 : i32, i32, i32
  }
  func.func @transform_8(%arg0: i32) -> (i32, i32) {
    %c0_i32 = arith.constant 0 : i32
    %c0_i32_0 = arith.constant 0 : i32
    %c0_i32_1 = arith.constant 0 : i32
    return %c0_i32, %c0_i32_0 : i32, i32
  }
  func.func @transform_9(%arg0: i32) -> (i32, i32) {
    %c0_i32 = arith.constant 0 : i32
    %c0_i32_0 = arith.constant 0 : i32
    %c0_i32_1 = arith.constant 0 : i32
    return %c0_i32, %c0_i32_0 : i32, i32
  }
}

</mosaic_0001>

<bundles_post_ra>
// kernel: dqn_forward.1
= control target key start
LH: loop header
LB: loop body
LE: loop exit
PB: predicated region body
PF: predicated region fallthrough
CT: control target
= control target key end

     0   :  { %14 = vsyncpa [#allocation5], 0  ;;  %s13089_s0 = inlined_call_operand.vmem [shape: bf16[2,4096], index: 0, kind: input, shape index: {}]   ;;  %s13090_s1 = inlined_call_operand.vmem [shape: bf16[640,256], index: 1, kind: input, shape index: {}]   ;;  %s13091_s2 = inlined_call_operand.vmem [shape: f32[1,256], index: 2, kind: input, shape index: {}]   ;;  %s13092_s3 = inlined_call_operand.hbm [shape: bf16[1280,256], index: 3, kind: input, shape index: {}]   ;;  %s13093_s4 = inlined_call_operand.vmem [shape: f32[1,256], index: 4, kind: input, shape index: {}]   ;;  %s13094_s5 = inlined_call_operand.hbm [shape: bf16[1280,128], index: 5, kind: input, shape index: {}]   ;;  %s13095_s6 = inlined_call_operand.vmem [shape: f32[1,128], index: 6, kind: input, shape index: {}]   ;;  %s13096_s7 = inlined_call_operand.vmem [shape: bf16[1,128,128], index: 7, kind: input, shape index: {}]   ;;  %s13097_s8 = inlined_call_operand.vmem [shape: f32[1,128], index: 8, kind: input, shape index: {}]   ;;  %s13098_s9 = inlined_call_operand.hbm [shape: f32[2,128], index: 9, kind: output, shape index: {}]  }
   0x1   :  { %15 = vsyncpa [#allocation8], 0 }
   0x2   :  { %16 = vsyncpa [#allocation6], 0  ;;  %s8486_s30 = smov [#allocation4]   ;;  %s8414_s13 = scalar_lea.hbm %s13092_s3, 20480 }
   0x3   :  { %s28_s10 = sshll.u32 %s8486_s30, 4  ;;  %p8415_p0 = scmp.ne.s32.totalorder %s13092_s3, %s8414_s13  ;;  %s29_s10 = int_to_ptr.vmem [resolvable:$true] %s28_s10 }
   0x4   :  { %p8418_p1 = scmp.lt.u32.totalorder %s8414_s13, %s13092_s3 }
   0x6   :  { %p8420_p2 = pnand %p8418_p1, %p8415_p0 }
   0x8   :  { %8423 = shalt.err (!%p8420_p2)
}
   0x9   :  { %s8424_s18 = scalar_lea.vmem %s29_s10, 20480  ;;  %p8429_p4 = scmp.lt.s32.totalorder %s29_s10, %s29_s10 }
   0xa   :  { %p8425_p3 = scmp.ne.s32.totalorder %s29_s10, %s8424_s18  ;;  %p8430_p5 = scmp.lt.s32.totalorder %s8424_s18, %s8424_s18 }
   0xc   :  { %p8431_p6 = por %p8430_p5, %p8429_p4 }
   0xe   :  { %p8432_p7 = pnand %p8431_p6, %p8425_p3 }
  0x10   :  { %8435 = shalt.err (!%p8432_p7)
}
  0x11   :  { %s8487_s19 = smov 128   ;;  %s8488_s20 = smov 8  }
  0x12   :  { %34 = dma.hbm_to_vmem [thread:$0]  %s13092_s3, 20480, %s29_s10, [#allocation5], %s8487_s19, %s8487_s19, %s8488_s20  }
  0x13   :  { %s8489_s23 = smov [#allocation7]   ;;  %s8436_s27 = scalar_lea.hbm %s13094_s5, 10240 }
  0x14   :  { %s42_s24 = sshll.u32 %s8489_s23, 4  ;;  %p8437_p8 = scmp.ne.s32.totalorder %s13094_s5, %s8436_s27  ;;  %s43_s24 = int_to_ptr.vmem [resolvable:$true] %s42_s24 }
  0x15   :  { %p8440_p9 = scmp.lt.u32.totalorder %s8436_s27, %s13094_s5 }
  0x17   :  { %p8442_p10 = pnand %p8440_p9, %p8437_p8 }
  0x19   :  { %8445 = shalt.err (!%p8442_p10)
}
  0x1a   :  { %s8446_s12 = scalar_lea.vmem %s43_s24, 10240  ;;  %p8451_p12 = scmp.lt.s32.totalorder %s43_s24, %s43_s24 }
  0x1b   :  { %p8447_p11 = scmp.ne.s32.totalorder %s43_s24, %s8446_s12  ;;  %p8452_p13 = scmp.lt.s32.totalorder %s8446_s12, %s8446_s12 }
  0x1d   :  { %p8453_p0 = por %p8452_p13, %p8451_p12 }
  0x1f   :  { %p8454_p1 = pnand %p8453_p0, %p8447_p11 }
  0x21   :  { %8457 = shalt.err (!%p8454_p1)
}
  0x22   :  { %s8490_s3 = smov 64   ;;  %s8491_s10 = smov 4  }
  0x23   :  { %48 = dma.hbm_to_vmem [thread:$0]  %s13094_s5, 10240, %s43_s24, [#allocation8], %s8490_s3, %s8490_s3, %s8491_s10  }
  0x24   :  { %8480 = dma.done.wait [#allocation5], 20480  }
  0x25   :  { %8481 = vsyncadd [#allocation5], 4294946816 }
  0x26   :  { %8482 = dma.done.wait [#allocation8], 10240  }
  0x27   :  { %8483 = vsyncadd [#allocation8], 4294957056  ;;  %v8574_v0 = vld [vmem:[%s13090_s1 + $0x4] ss:$8 sps:$4 sm:$0xff]   ;;  %v8583_v2 = vld [vmem:[%s13090_s1] ss:$8 sps:$4 sm:$0xff]   ;;  %v144_v36 = vlaneseq }
  0x28   :  { %v7595_v1 = vld [vmem:[%s13090_s1 + $0x104] ss:$8 sps:$4 sm:$0xff]   ;;  %600 = vmatprep.subr.bf16.mxu1 %v8574_v0  ;;  %v7598_v3 = vld [vmem:[%s13090_s1 + $0x100] ss:$8 sps:$4 sm:$0xff]   ;;  %v8591_v4 = vld [vmem:[%s13090_s1 + $0x14] ss:$8 sps:$4 sm:$0xff]  }
  0x29   :  { %641 = vmatprep.subr.bf16.mxu0 %v7595_v1  ;;  %601 = vmatpush1.bf16.msra.mxu1 %v8583_v2  ;;  %v7601_v5 = vld [vmem:[%s13090_s1 + $0x114] ss:$8 sps:$4 sm:$0xff]   ;;  %v8600_v6 = vld [vmem:[%s13090_s1 + $0x10] ss:$8 sps:$4 sm:$0xff]   ;;  %v8609_v8 = vld [vmem:[%s13090_s1 + $0x24] ss:$8 sps:$4 sm:$0xff]  }
  0x2a   :  { %642 = vmatpush1.bf16.msra.mxu0 %v7598_v3  ;;  %602 = vmatprep.subr.bf16.mxu1 %v8591_v4  ;;  %v7604_v7 = vld [vmem:[%s13090_s1 + $0x110] ss:$8 sps:$4 sm:$0xff]   ;;  %v7607_v9 = vld [vmem:[%s13090_s1 + $0x124] ss:$8 sps:$4 sm:$0xff]   ;;  %v8617_v10 = vld [vmem:[%s13090_s1 + $0x20] ss:$8 sps:$4 sm:$0xff]  }
  0x2b   :  { %643 = vmatprep.subr.bf16.mxu0 %v7601_v5  ;;  %v7610_v11 = vld [vmem:[%s13090_s1 + $0x120] ss:$8 sps:$4 sm:$0xff]   ;;  %v8626_v12 = vld [vmem:[%s13090_s1 + $0x34] ss:$8 sps:$4 sm:$0xff]   ;;  %v8635_v14 = vld [vmem:[%s13090_s1 + $0x30] ss:$8 sps:$4 sm:$0xff]  }
  0x2c   :  { %v7613_v13 = vld [vmem:[%s13090_s1 + $0x134] ss:$8 sps:$4 sm:$0xff]   ;;  %v7616_v15 = vld [vmem:[%s13090_s1 + $0x130] ss:$8 sps:$4 sm:$0xff]   ;;  %v8644_v16 = vld [vmem:[%s13090_s1 + $0x44] ss:$8 sps:$4 sm:$0xff]  }
  0x2d   :  { %603 = vmatpush1.bf16.msra.mxu1 %v8600_v6  ;;  %v7619_v17 = vld [vmem:[%s13090_s1 + $0x144] ss:$8 sps:$4 sm:$0xff]   ;;  %v8653_v18 = vld [vmem:[%s13090_s1 + $0x40] ss:$8 sps:$4 sm:$0xff]   ;;  %v8662_v20 = vld [vmem:[%s13090_s1 + $0x54] ss:$8 sps:$4 sm:$0xff]  }
  0x2e   :  { %644 = vmatpush1.bf16.msra.mxu0 %v7604_v7  ;;  %604 = vmatprep.subr.bf16.mxu1 %v8609_v8  ;;  %v7622_v19 = vld [vmem:[%s13090_s1 + $0x140] ss:$8 sps:$4 sm:$0xff]   ;;  %v7625_v21 = vld [vmem:[%s13090_s1 + $0x154] ss:$8 sps:$4 sm:$0xff]   ;;  %v8671_v22 = vld [vmem:[%s13090_s1 + $0x50] ss:$8 sps:$4 sm:$0xff]  }
  0x2f   :  { %645 = vmatprep.subr.bf16.mxu0 %v7607_v9  ;;  %v7628_v23 = vld [vmem:[%s13090_s1 + $0x150] ss:$8 sps:$4 sm:$0xff]   ;;  %v8680_v24 = vld [vmem:[%s13090_s1 + $0x64] ss:$8 sps:$4 sm:$0xff]   ;;  %v8689_v26 = vld [vmem:[%s13090_s1 + $0x60] ss:$8 sps:$4 sm:$0xff]  }
  0x30   :  { %v7631_v25 = vld [vmem:[%s13090_s1 + $0x164] ss:$8 sps:$4 sm:$0xff]   ;;  %v7634_v27 = vld [vmem:[%s13090_s1 + $0x160] ss:$8 sps:$4 sm:$0xff]   ;;  %v8698_v28 = vld [vmem:[%s13090_s1 + $0x74] ss:$8 sps:$4 sm:$0xff]  }
  0x31   :  { %605 = vmatpush1.bf16.msra.mxu1 %v8617_v10  ;;  %v7637_v29 = vld [vmem:[%s13090_s1 + $0x174] ss:$8 sps:$4 sm:$0xff]   ;;  %v8707_v30 = vld [vmem:[%s13090_s1 + $0x70] ss:$8 sps:$4 sm:$0xff]   ;;  %v8716_v32 = vld [vmem:[%s13090_s1 + $0x84] ss:$8 sps:$4 sm:$0xff]  }
  0x32   :  { %646 = vmatpush1.bf16.msra.mxu0 %v7610_v11  ;;  %606 = vmatprep.subr.bf16.mxu1 %v8626_v12  ;;  %v7640_v31 = vld [vmem:[%s13090_s1 + $0x170] ss:$8 sps:$4 sm:$0xff]   ;;  %v7643_v33 = vld [vmem:[%s13090_s1 + $0x184] ss:$8 sps:$4 sm:$0xff]   ;;  %v8725_v34 = vld [vmem:[%s13090_s1 + $0x80] ss:$8 sps:$4 sm:$0xff]  }
  0x33   :  { %647 = vmatprep.subr.bf16.mxu0 %v7613_v13  ;;  %v7646_v35 = vld [vmem:[%s13090_s1 + $0x180] ss:$8 sps:$4 sm:$0xff]   ;;  %v8492_v37 = vmov 1966171168   ;;  %v8734_v39 = vld [vmem:[%s13090_s1 + $0x94] ss:$8 sps:$4 sm:$0xff]  }
  0x34   :  { %v158_v38 = vunpack.c.l.s4 %v8492_v37  ;;  %v7649_v40 = vld [vmem:[%s13090_s1 + $0x194] ss:$8 sps:$4 sm:$0xff]   ;;  %v8743_v41 = vld [vmem:[%s13090_s1 + $0x90] ss:$8 sps:$4 sm:$0xff]   ;;  %v8745_v42 = vshrl.u32 %v144_v36, 7  ;;  %vm8495_vm0 = vmmov 0  }
  0x35   :  { %607 = vmatpush1.bf16.msra.mxu1 %v8635_v14  ;;  %v7652_v44 = vld [vmem:[%s13090_s1 + $0x190] ss:$8 sps:$4 sm:$0xff]   ;;  %v8754_v45 = vld [vmem:[%s13090_s1 + $0xa4] ss:$8 sps:$4 sm:$0xff]   ;;  %v8763_v47 = vld [vmem:[%s13090_s1 + $0xa0] ss:$8 sps:$4 sm:$0xff]  }
  0x36   :  { %648 = vmatpush1.bf16.msra.mxu0 %v7616_v15  ;;  %608 = vmatprep.subr.bf16.mxu1 %v8644_v16  ;;  %13506 = vst [vmem:[#allocation13_spill] sm:$0xff] %v8745_v42  ;;  %v159_v43 = vunpack.c.0.s8 %v158_v38  ;;  %v7655_v46 = vld [vmem:[%s13090_s1 + $0x1a4] ss:$8 sps:$4 sm:$0xff]   ;;  %v7658_v48 = vld [vmem:[%s13090_s1 + $0x1a0] ss:$8 sps:$4 sm:$0xff]   ;;  %s8496_s25 = smov [#allocation9]  }
  0x37   :  { %649 = vmatprep.subr.bf16.mxu0 %v7619_v17  ;;  %v8775_v50 = vld [vmem:[%s13090_s1 + $0xb4] ss:$8 sps:$4 sm:$0xff]   ;;  %v8784_v52 = vld [vmem:[%s13089_s0] sm:$0x1f]  ;;  %v8789_v53 = vld [vmem:[%s13090_s1 + $0xb0] ss:$8 sps:$4 sm:$0xff]  }
  0x38   :  { %v8769_v49 = vsub.s32 %v159_v43, %v8745_v42  ;;  %v7661_v51 = vld [vmem:[%s13090_s1 + $0x1b4] ss:$8 sps:$4 sm:$0xff]   ;;  %v7664_v55 = vld [vmem:[%s13090_s1 + $0x1b0] ss:$8 sps:$4 sm:$0xff]   ;;  %v8801_v56 = vld [vmem:[%s13090_s1 + $0xc4] ss:$8 sps:$4 sm:$0xff]  }
  0x39   :  { %609 = vmatpush1.bf16.msra.mxu1 %v8653_v18  ;;  %v7667_v57 = vld [vmem:[%s13090_s1 + $0x1c4] ss:$8 sps:$4 sm:$0xff]   ;;  %v8809_v59 = vld [vmem:[%s13090_s1 + $0xc0] ss:$8 sps:$4 sm:$0xff]   ;;  %v8820_v62 = vld [vmem:[%s13090_s1 + $0xd4] ss:$8 sps:$4 sm:$0xff]  }
  0x3a   :  { %650 = vmatpush1.bf16.msra.mxu0 %v7622_v19  ;;  %610 = vmatprep.subr.bf16.mxu1 %v8662_v20  ;;  %v163_v54 = vrot.slane %v8784_v52, %v8769_v49  ;;  %v7670_v61 = vld [vmem:[%s13090_s1 + $0x1c0] ss:$8 sps:$4 sm:$0xff]   ;;  %v7673_v63 = vld [vmem:[%s13090_s1 + $0x1d4] ss:$8 sps:$4 sm:$0xff]   ;;  %v8828_v3 = vld [vmem:[%s13090_s1 + $0xd0] ss:$8 sps:$4 sm:$0xff]  }
  0x3b   :  { %651 = vmatprep.subr.bf16.mxu0 %v7625_v21  ;;  %v7676_v5 = vld [vmem:[%s13090_s1 + $0x1d0] ss:$8 sps:$4 sm:$0xff]   ;;  %v8838_v7 = vld [vmem:[%s13090_s1 + $0xe4] ss:$8 sps:$4 sm:$0xff]   ;;  %v8846_v11 = vld [vmem:[%s13090_s1 + $0xe0] ss:$8 sps:$4 sm:$0xff]  }
  0x3c   :  { %v171_v58 = vcombine.high %v163_v54, %v163_v54  ;;  %v7679_v9 = vld [vmem:[%s13090_s1 + $0x1e4] ss:$8 sps:$4 sm:$0xff]   ;;  %v7682_v13 = vld [vmem:[%s13090_s1 + $0x1e0] ss:$8 sps:$4 sm:$0xff]   ;;  %v8859_v17 = vld [vmem:[%s13090_s1 + $0xf4] ss:$8 sps:$4 sm:$0xff]  }
  0x3d   :  { %611 = vmatpush1.bf16.msra.mxu1 %v8671_v22  ;;  %v8854_v15 = vld.sshfl [vmem:[%s13089_s0 + $0x2] sm:$0x37 pattern:$0x75316420]  ;;  %v7685_v19 = vld [vmem:[%s13090_s1 + $0x1f4] ss:$8 sps:$4 sm:$0xff]  }
  0x3e   :  { %652 = vmatpush1.bf16.msra.mxu0 %v7628_v23  ;;  %612 = vmatprep.subr.bf16.mxu1 %v8680_v24  ;;  %v192_v60 = vrot.slane %v171_v58, %v8769_v49  ;;  %v8869_v21 = vld [vmem:[%s13090_s1 + $0xf0] ss:$8 sps:$4 sm:$0xff]   ;;  %v8911_v38 = vld [vmem:[%s13090_s1 + $0x224] ss:$8 sps:$4 sm:$0xff]   ;;  %v13099_v43 = vmov 0   ;;  %s6831_s26 = sshll.u32 %s8496_s25, 4  ;;  %s6832_s26 = int_to_ptr.vmem [resolvable:$true] %s6831_s26 }
  0x3f   :  { %653 = vmatprep.subr.bf16.mxu0 %v7631_v25  ;;  %v8874_v23 = vld [vmem:[%s13090_s1 + $0x1f0] ss:$8 sps:$4 sm:$0xff]   ;;  %v8879_v25 = vld [vmem:[%s13090_s1 + $0x204] ss:$8 sps:$4 sm:$0xff]   ;;  %s8458_s27 = scalar_lea.vmem %s6832_s26, 32  ;;  %p8463_p3 = scmp.lt.s32.totalorder %s6832_s26, %s6832_s26 }
  0x40   :  { %v194_v1 = vcombine.high %v192_v60, %v192_v60  ;;  %632 = vmatprep.mubr.bf16.mxu1 %v192_v60  ;;  %v8903_v36 = vld [vmem:[%s13090_s1 + $0x210] ss:$8 sps:$4 sm:$0xff]   ;;  %v8978_v58 = vld [vmem:[%s13089_s0 + $0x4] sm:$0x1f]  ;;  %p8459_p2 = scmp.ne.s32.totalorder %s6832_s26, %s8458_s27  ;;  %p8464_p4 = scmp.lt.s32.totalorder %s8458_s27, %s8458_s27 }
  0x41   :  { %613 = vmatpush1.bf16.msra.mxu1 %v8689_v26  ;;  %v8983_v60 = vld [vmem:[%s13090_s1 + $0x260] ss:$8 sps:$4 sm:$0xff]  }
  0x42   :  { %654 = vmatpush1.bf16.msra.mxu0 %v7634_v27  ;;  %614 = vmatprep.subr.bf16.mxu1 %v8698_v28  ;;  %v178_v27 = vrot.slane %v163_v54, %v8769_v49  ;;  %v8955_v54 = vld [vmem:[%s13090_s1 + $0x254] ss:$8 sps:$4 sm:$0xff]   ;;  %p8465_p5 = por %p8464_p4, %p8463_p3 }
  0x43   :  { %655 = vmatprep.subr.bf16.mxu0 %v7637_v29  ;;  %673 = vmatprep.mubr.bf16.mxu0 %v194_v1  ;;  %v8887_v29 = vld [vmem:[%s13090_s1 + $0x200] ss:$8 sps:$4 sm:$0xff]   ;;  %v8999_v1 = vld [vmem:[%s13090_s1 + $0x270] ss:$8 sps:$4 sm:$0xff]  }
  0x44   :  { %p8466_p6 = pnand %p8465_p5, %p8459_p2 }
  0x45   :  { %615 = vmatpush1.bf16.msra.mxu1 %v8707_v30 }
  0x46   :  { %656 = vmatpush1.bf16.msra.mxu0 %v7640_v31  ;;  %616 = vmatprep.subr.bf16.mxu1 %v8716_v32  ;;  %v763_v31 = vcombine.high %v8854_v15, %v8854_v15 }
  0x47   :  { %657 = vmatprep.subr.bf16.mxu0 %v7643_v33  ;;  %v193_v33 = vcombine.high %v178_v27, %v178_v27 }
  0x48   :  { %v8906_v37 = vrot.slane %v763_v31, %v8769_v49  ;;  %v9278_v31 = vld [vmem:[%s13090_s1 + $0x1f4] ss:$8 sps:$4 sm:$0xff]  }
  0x49   :  { %617 = vmatpush1.bf16.msra.mxu1 %v8725_v34  ;;  %13511 = vst [vmem:[#allocation18_spill] sm:$0xff] %v9278_v31 }
  0x4a   :  { %658 = vmatpush1.bf16.msra.mxu0 %v7646_v35  ;;  %618 = vmatprep.subr.bf16.mxu1 %v8734_v39  ;;  %v8894_v35 = vld [vmem:[%s13090_s1 + $0x214] ss:$8 sps:$4 sm:$0xff]  }
  0x4b   :  { %659 = vmatprep.subr.bf16.mxu0 %v7649_v40  ;;  %v8920_v40 = vld [vmem:[%s13090_s1 + $0x220] ss:$8 sps:$4 sm:$0xff]  }
  0x4d   :  { %619 = vmatpush1.bf16.msra.mxu1 %v8743_v41 }
  0x4e   :  { %660 = vmatpush1.bf16.msra.mxu0 %v7652_v44  ;;  %620 = vmatprep.subr.bf16.mxu1 %v8754_v45  ;;  %v8927_v44 = vld [vmem:[%s13090_s1 + $0x234] ss:$8 sps:$4 sm:$0xff]  }
  0x4f   :  { %661 = vmatprep.subr.bf16.mxu0 %v7655_v46  ;;  %v8936_v46 = vld [vmem:[%s13090_s1 + $0x230] ss:$8 sps:$4 sm:$0xff]  }
  0x51   :  { %621 = vmatpush1.bf16.msra.mxu1 %v8763_v47 }
  0x52   :  { %662 = vmatpush1.bf16.msra.mxu0 %v7658_v48  ;;  %622 = vmatprep.subr.bf16.mxu1 %v8775_v50  ;;  %v8941_v48 = vld [vmem:[%s13090_s1 + $0x244] ss:$8 sps:$4 sm:$0xff]  }
  0x53   :  { %663 = vmatprep.subr.bf16.mxu0 %v7661_v51  ;;  %v8950_v51 = vld [vmem:[%s13090_s1 + $0x240] ss:$8 sps:$4 sm:$0xff]  }
  0x55   :  { %623 = vmatpush1.bf16.msra.mxu1 %v8789_v53 }
  0x56   :  { %664 = vmatpush1.bf16.msra.mxu0 %v7664_v55  ;;  %624 = vmatprep.subr.bf16.mxu1 %v8801_v56  ;;  %v8964_v55 = vld [vmem:[%s13090_s1 + $0x250] ss:$8 sps:$4 sm:$0xff]  }
  0x57   :  { %665 = vmatprep.subr.bf16.mxu0 %v7667_v57  ;;  %v8969_v57 = vld [vmem:[%s13090_s1 + $0x264] ss:$8 sps:$4 sm:$0xff]  }
  0x59   :  { %625 = vmatpush1.bf16.msra.mxu1 %v8809_v59 }
  0x5a   :  { %666 = vmatpush1.bf16.msra.mxu0 %v7670_v61  ;;  %626 = vmatprep.subr.bf16.mxu1 %v8820_v62  ;;  %v156_v61 = vcombine.high %v8784_v52, %v8784_v52  ;;  %v9003_v52 = vrot.slane %v8978_v58, %v8769_v49 }
  0x5b   :  { %667 = vmatprep.subr.bf16.mxu0 %v7673_v63  ;;  %v8990_v63 = vld [vmem:[%s13090_s1 + $0x274] ss:$8 sps:$4 sm:$0xff]  }
  0x5d   :  { %627 = vmatpush1.bf16.msra.mxu1 %v8828_v3 }
  0x5e   :  { %668 = vmatpush1.bf16.msra.mxu0 %v7676_v5  ;;  %628 = vmatprep.subr.bf16.mxu1 %v8838_v7  ;;  %v170_v5 = vrot.slane %v156_v61, %v8769_v49 }
  0x5f   :  { %669 = vmatprep.subr.bf16.mxu0 %v7679_v9  ;;  %v955_v9 = vcombine.high %v9003_v52, %v9003_v52 }
  0x61   :  { %629 = vmatpush1.bf16.msra.mxu1 %v8846_v11 }
  0x62   :  { %670 = vmatpush1.bf16.msra.mxu0 %v7682_v13  ;;  %630 = vmatprep.subr.bf16.mxu1 %v8859_v17  ;;  %v185_v13 = vrot.slane %v170_v5, %v8769_v49  ;;  %v9339_v5 = vld [vmem:[%s13090_s1 + $0x1f0] ss:$8 sps:$4 sm:$0xff]  }
  0x63   :  { %671 = vmatprep.subr.bf16.mxu0 %v7685_v19  ;;  %v9018_v19 = vrot.slane %v955_v9, %v8769_v49  ;;  %v9345_v9 = vld [vmem:[%s13090_s1 + $0x204] ss:$8 sps:$4 sm:$0xff]  }
  0x64   :  { %13513 = vst [vmem:[#allocation20_spill] sm:$0xff] %v9345_v9 }
  0x65   :  { %631 = vmatpush1.bf16.msra.mxu1 %v8869_v21 }
  0x66   :  { %672 = vmatpush1.bf16.msra.mxu0 %v8874_v23  ;;  %792 = vmatprep.subr.bf16.mxu1 %v8574_v0 }
  0x67   :  { %682 = vmatprep.subr.bf16.mxu0 %v8879_v25 }
  0x68   :  { %633 = vmatmul.mubr.bf16.vlgmr.msra.gmra.mrb[0].mxu1 %v178_v27  ;;  %v9271_v27 = vld [vmem:[%s13090_s1 + $0x1e0] ss:$8 sps:$4 sm:$0xff]  }
  0x69   :  { %674 = vmatmul.mubr.bf16.vlgmr.msra.gmra.mrb[0].mxu0 %v193_v33  ;;  %793 = vmatpush1.bf16.msra.mxu1 %v8583_v2  ;;  %13510 = vst [vmem:[#allocation17_spill] sm:$0xff] %v9271_v27 }
  0x6a   :  { %683 = vmatpush1.bf16.msra.mxu0 %v8887_v29  ;;  %794 = vmatprep.subr.bf16.mxu1 %v8591_v4 }
  0x6b   :  { %684 = vmatprep.subr.bf16.mxu0 %v8894_v35  ;;  %714 = vmatprep.mubr.bf16.mxu0 %v13099_v43 }
  0x6c   :  { %824 = vmatprep.mubr.bf16.mxu1 %v8906_v37 }
  0x6d   :  { %795 = vmatpush1.bf16.msra.mxu1 %v8600_v6 }
  0x6e   :  { %685 = vmatpush1.bf16.msra.mxu0 %v8903_v36  ;;  %796 = vmatprep.subr.bf16.mxu1 %v8609_v8 }
  0x6f   :  { %686 = vmatprep.subr.bf16.mxu0 %v8911_v38 }
  0x71   :  { %797 = vmatpush1.bf16.msra.mxu1 %v8617_v10 }
  0x72   :  { %687 = vmatpush1.bf16.msra.mxu0 %v8920_v40  ;;  %798 = vmatprep.subr.bf16.mxu1 %v8626_v12 }
  0x73   :  { %688 = vmatprep.subr.bf16.mxu0 %v8927_v44 }
  0x75   :  { %799 = vmatpush1.bf16.msra.mxu1 %v8635_v14 }
  0x76   :  { %689 = vmatpush1.bf16.msra.mxu0 %v8936_v46  ;;  %800 = vmatprep.subr.bf16.mxu1 %v8644_v16 }
  0x77   :  { %690 = vmatprep.subr.bf16.mxu0 %v8941_v48 }
  0x79   :  { %801 = vmatpush1.bf16.msra.mxu1 %v8653_v18 }
  0x7a   :  { %691 = vmatpush1.bf16.msra.mxu0 %v8950_v51  ;;  %802 = vmatprep.subr.bf16.mxu1 %v8662_v20 }
  0x7b   :  { %692 = vmatprep.subr.bf16.mxu0 %v8955_v54 }
  0x7d   :  { %803 = vmatpush1.bf16.msra.mxu1 %v8671_v22 }
  0x7e   :  { %693 = vmatpush1.bf16.msra.mxu0 %v8964_v55  ;;  %804 = vmatprep.subr.bf16.mxu1 %v8680_v24 }
  0x7f   :  { %694 = vmatprep.subr.bf16.mxu0 %v8969_v57 }
  0x81   :  { %805 = vmatpush1.bf16.msra.mxu1 %v8689_v26 }
  0x82   :  { %695 = vmatpush1.bf16.msra.mxu0 %v8983_v60  ;;  %806 = vmatprep.subr.bf16.mxu1 %v8698_v28 }
  0x83   :  { %696 = vmatprep.subr.bf16.mxu0 %v8990_v63 }
  0x85   :  { %807 = vmatpush1.bf16.msra.mxu1 %v8707_v30 }
  0x86   :  { %697 = vmatpush1.bf16.msra.mxu0 %v8999_v1  ;;  %808 = vmatprep.subr.bf16.mxu1 %v8716_v32 }
  0x87   :  { %984 = vmatprep.subr.bf16.mxu0 %v8574_v0  ;;  %v9051_v0 = vrot.slane %v8854_v15, %v8769_v49  ;;  %v9250_v15 = vld [vmem:[%s13090_s1 + $0x1d4] ss:$8 sps:$4 sm:$0xff]  }
  0x88   :  { %13507 = vst [vmem:[#allocation14_spill] sm:$0xff] %v9250_v15 }
  0x89   :  { %715 = vmatmul.mubr.bf16.vlgmr.msra.gmra.mrb[0].mxu0 %v185_v13  ;;  %809 = vmatpush1.bf16.msra.mxu1 %v8725_v34  ;;  %v785_v33 = vcombine.high %v9051_v0, %v9051_v0  ;;  %v9351_v13 = vld [vmem:[%s13090_s1 + $0x4] ss:$8 sps:$4 sm:$0xff]  }
  0x8a   :  { %985 = vmatpush1.bf16.msra.mxu0 %v8583_v2  ;;  %810 = vmatprep.subr.bf16.mxu1 %v8734_v39  ;;  %v9058_v2 = vld [vmem:[%s13090_s1 + $0x104] ss:$8 sps:$4 sm:$0xff]   ;;  %13514 = vst [vmem:[#allocation21_spill] sm:$0xff] %v9351_v13 }
  0x8b   :  { %986 = vmatprep.subr.bf16.mxu0 %v8591_v4  ;;  %1016 = vmatprep.mubr.bf16.mxu0 %v9018_v19  ;;  %v786_v4 = vcombine.high %v8906_v37, %v8906_v37 }
  0x8d   :  { %811 = vmatpush1.bf16.msra.mxu1 %v8743_v41 }
  0x8e   :  { %987 = vmatpush1.bf16.msra.mxu0 %v8600_v6  ;;  %812 = vmatprep.subr.bf16.mxu1 %v8754_v45  ;;  %v9068_v6 = vld [vmem:[%s13090_s1 + $0x100] ss:$8 sps:$4 sm:$0xff]  }
  0x8f   :  { %988 = vmatprep.subr.bf16.mxu0 %v8609_v8  ;;  %v9075_v8 = vld [vmem:[%s13090_s1 + $0x114] ss:$8 sps:$4 sm:$0xff]  }
  0x91   :  { %813 = vmatpush1.bf16.msra.mxu1 %v8763_v47 }
  0x92   :  { %989 = vmatpush1.bf16.msra.mxu0 %v8617_v10  ;;  %814 = vmatprep.subr.bf16.mxu1 %v8775_v50  ;;  %v9082_v10 = vld [vmem:[%s13090_s1 + $0x110] ss:$8 sps:$4 sm:$0xff]  }
  0x93   :  { %990 = vmatprep.subr.bf16.mxu0 %v8626_v12  ;;  %v9089_v12 = vld [vmem:[%s13090_s1 + $0x124] ss:$8 sps:$4 sm:$0xff]  }
  0x95   :  { %815 = vmatpush1.bf16.msra.mxu1 %v8789_v53 }
  0x96   :  { %991 = vmatpush1.bf16.msra.mxu0 %v8635_v14  ;;  %816 = vmatprep.subr.bf16.mxu1 %v8801_v56  ;;  %v9096_v14 = vld [vmem:[%s13090_s1 + $0x120] ss:$8 sps:$4 sm:$0xff]  }
  0x97   :  { %992 = vmatprep.subr.bf16.mxu0 %v8644_v16  ;;  %v9103_v16 = vld [vmem:[%s13090_s1 + $0x134] ss:$8 sps:$4 sm:$0xff]  }
  0x99   :  { %817 = vmatpush1.bf16.msra.mxu1 %v8809_v59 }
  0x9a   :  { %993 = vmatpush1.bf16.msra.mxu0 %v8653_v18  ;;  %818 = vmatprep.subr.bf16.mxu1 %v8820_v62  ;;  %v9110_v18 = vld [vmem:[%s13090_s1 + $0x130] ss:$8 sps:$4 sm:$0xff]  }
  0x9b   :  { %994 = vmatprep.subr.bf16.mxu0 %v8662_v20  ;;  %v9117_v20 = vld [vmem:[%s13090_s1 + $0x144] ss:$8 sps:$4 sm:$0xff]  }
  0x9d   :  { %819 = vmatpush1.bf16.msra.mxu1 %v8828_v3 }
  0x9e   :  { %995 = vmatpush1.bf16.msra.mxu0 %v8671_v22  ;;  %820 = vmatprep.subr.bf16.mxu1 %v8838_v7  ;;  %v9124_v22 = vld [vmem:[%s13090_s1 + $0x140] ss:$8 sps:$4 sm:$0xff]  }
  0x9f   :  { %996 = vmatprep.subr.bf16.mxu0 %v8680_v24  ;;  %v9131_v24 = vld [vmem:[%s13090_s1 + $0x154] ss:$8 sps:$4 sm:$0xff]  }
  0xa1   :  { %821 = vmatpush1.bf16.msra.mxu1 %v8846_v11 }
  0xa2   :  { %997 = vmatpush1.bf16.msra.mxu0 %v8689_v26  ;;  %822 = vmatprep.subr.bf16.mxu1 %v8859_v17  ;;  %v9138_v26 = vld [vmem:[%s13090_s1 + $0x150] ss:$8 sps:$4 sm:$0xff]  }
  0xa3   :  { %998 = vmatprep.subr.bf16.mxu0 %v8698_v28  ;;  %v9145_v28 = vld [vmem:[%s13090_s1 + $0x164] ss:$8 sps:$4 sm:$0xff]  }
  0xa5   :  { %823 = vmatpush1.bf16.msra.mxu1 %v8869_v21 }
  0xa6   :  { %999 = vmatpush1.bf16.msra.mxu0 %v8707_v30  ;;  %833 = vmatprep.subr.bf16.mxu1 %v9058_v2  ;;  %v9152_v30 = vld [vmem:[%s13090_s1 + $0x160] ss:$8 sps:$4 sm:$0xff]  }
  0xa7   :  { %1000 = vmatprep.subr.bf16.mxu0 %v8716_v32  ;;  %v9159_v32 = vld [vmem:[%s13090_s1 + $0x174] ss:$8 sps:$4 sm:$0xff]  }
  0xa8   :  { %825 = vmatmul.mubr.bf16.vlgmr.msra.gmra.mrb[4].mxu1 %v9051_v0  ;;  %v9360_v0 = vld [vmem:[%s13090_s1 + $0x200] ss:$8 sps:$4 sm:$0xff]  }
  0xa9   :  { %834 = vmatpush1.bf16.msra.mxu1 %v9068_v6  ;;  %865 = vmatprep.mubr.bf16.mxu1 %v786_v4  ;;  %v9366_v4 = vld [vmem:[%s13090_s1] ss:$8 sps:$4 sm:$0xff]  }
  0xaa   :  { %1001 = vmatpush1.bf16.msra.mxu0 %v8725_v34  ;;  %835 = vmatprep.subr.bf16.mxu1 %v9075_v8  ;;  %v9165_v34 = vrot.slane %v9003_v52, %v8769_v49  ;;  %13515 = vst [vmem:[#allocation22_spill] sm:$0xff] %v9366_v4 }
  0xab   :  { %1002 = vmatprep.subr.bf16.mxu0 %v8734_v39  ;;  %v9170_v39 = vld [vmem:[%s13090_s1 + $0x170] ss:$8 sps:$4 sm:$0xff]  }
  0xac   :  { %v977_v52 = vcombine.high %v9165_v34, %v9165_v34 }
  0xad   :  { %836 = vmatpush1.bf16.msra.mxu1 %v9082_v10 }
  0xae   :  { %1003 = vmatpush1.bf16.msra.mxu0 %v8743_v41  ;;  %837 = vmatprep.subr.bf16.mxu1 %v9089_v12  ;;  %v9177_v41 = vld [vmem:[%s13090_s1 + $0x184] ss:$8 sps:$4 sm:$0xff]  }
  0xaf   :  { %1004 = vmatprep.subr.bf16.mxu0 %v8754_v45  ;;  %v978_v45 = vcombine.high %v9018_v19, %v9018_v19 }
  0xb1   :  { %838 = vmatpush1.bf16.msra.mxu1 %v9096_v14 }
  0xb2   :  { %1005 = vmatpush1.bf16.msra.mxu0 %v8763_v47  ;;  %839 = vmatprep.subr.bf16.mxu1 %v9103_v16  ;;  %v9187_v47 = vld [vmem:[%s13090_s1 + $0x180] ss:$8 sps:$4 sm:$0xff]  }
  0xb3   :  { %1006 = vmatprep.subr.bf16.mxu0 %v8775_v50  ;;  %v9194_v50 = vld [vmem:[%s13090_s1 + $0x194] ss:$8 sps:$4 sm:$0xff]  }
  0xb5   :  { %840 = vmatpush1.bf16.msra.mxu1 %v9110_v18 }
  0xb6   :  { %1007 = vmatpush1.bf16.msra.mxu0 %v8789_v53  ;;  %841 = vmatprep.subr.bf16.mxu1 %v9117_v20  ;;  %v9201_v53 = vld [vmem:[%s13090_s1 + $0x190] ss:$8 sps:$4 sm:$0xff]  }
  0xb7   :  { %1008 = vmatprep.subr.bf16.mxu0 %v8801_v56  ;;  %v9208_v56 = vld [vmem:[%s13090_s1 + $0x1a4] ss:$8 sps:$4 sm:$0xff]  }
  0xb9   :  { %842 = vmatpush1.bf16.msra.mxu1 %v9124_v22 }
  0xba   :  { %1009 = vmatpush1.bf16.msra.mxu0 %v8809_v59  ;;  %843 = vmatprep.subr.bf16.mxu1 %v9131_v24  ;;  %v9215_v59 = vld [vmem:[%s13090_s1 + $0x1a0] ss:$8 sps:$4 sm:$0xff]  }
  0xbb   :  { %1010 = vmatprep.subr.bf16.mxu0 %v8820_v62  ;;  %v9222_v62 = vld [vmem:[%s13090_s1 + $0x1b4] ss:$8 sps:$4 sm:$0xff]  }
  0xbd   :  { %844 = vmatpush1.bf16.msra.mxu1 %v9138_v26 }
  0xbe   :  { %1011 = vmatpush1.bf16.msra.mxu0 %v8828_v3  ;;  %845 = vmatprep.subr.bf16.mxu1 %v9145_v28  ;;  %v9229_v3 = vld [vmem:[%s13090_s1 + $0x1b0] ss:$8 sps:$4 sm:$0xff]  }
  0xbf   :  { %1012 = vmatprep.subr.bf16.mxu0 %v8838_v7  ;;  %v9236_v7 = vld [vmem:[%s13090_s1 + $0x1c4] ss:$8 sps:$4 sm:$0xff]  }
  0xc1   :  { %846 = vmatpush1.bf16.msra.mxu1 %v9152_v30 }
  0xc2   :  { %1013 = vmatpush1.bf16.msra.mxu0 %v8846_v11  ;;  %847 = vmatprep.subr.bf16.mxu1 %v9159_v32  ;;  %v9243_v11 = vld [vmem:[%s13090_s1 + $0x1c0] ss:$8 sps:$4 sm:$0xff]  }
  0xc3   :  { %1014 = vmatprep.subr.bf16.mxu0 %v8859_v17  ;;  %v9257_v17 = vld [vmem:[%s13090_s1 + $0x1d0] ss:$8 sps:$4 sm:$0xff]  }
  0xc4   :  { %13508 = vst [vmem:[#allocation15_spill] sm:$0xff] %v9257_v17 }
  0xc5   :  { %848 = vmatpush1.bf16.msra.mxu1 %v9170_v39 }
  0xc6   :  { %1015 = vmatpush1.bf16.msra.mxu0 %v8869_v21  ;;  %849 = vmatprep.subr.bf16.mxu1 %v9177_v41  ;;  %v9264_v21 = vld [vmem:[%s13090_s1 + $0x1e4] ss:$8 sps:$4 sm:$0xff]  }
  0xc7   :  { %1025 = vmatprep.subr.bf16.mxu0 %v9058_v2  ;;  %13509 = vst [vmem:[#allocation16_spill] sm:$0xff] %v9264_v21 }
  0xc9   :  { %1017 = vmatmul.mubr.bf16.vlgmr.msra.gmra.mrb[4].mxu0 %v9165_v34  ;;  %850 = vmatpush1.bf16.msra.mxu1 %v9187_v47  ;;  %v9372_v34 = vld [vmem:[%s13090_s1 + $0x214] ss:$8 sps:$4 sm:$0xff]  }
  0xca   :  { %1026 = vmatpush1.bf16.msra.mxu0 %v9068_v6  ;;  %851 = vmatprep.subr.bf16.mxu1 %v9194_v50  ;;  %13516 = vst [vmem:[#allocation23_spill] sm:$0xff] %v9372_v34 }
  0xcb   :  { %1027 = vmatprep.subr.bf16.mxu0 %v9075_v8  ;;  %1057 = vmatprep.mubr.bf16.mxu0 %v978_v45  ;;  %v9378_v45 = vld [vmem:[%s13090_s1 + $0x14] ss:$8 sps:$4 sm:$0xff]  }
  0xcc   :  { %13517 = vst [vmem:[#allocation24_spill] sm:$0xff] %v9378_v45 }
  0xcd   :  { %852 = vmatpush1.bf16.msra.mxu1 %v9201_v53 }
  0xce   :  { %1028 = vmatpush1.bf16.msra.mxu0 %v9082_v10  ;;  %853 = vmatprep.subr.bf16.mxu1 %v9208_v56 }
  0xcf   :  { %1029 = vmatprep.subr.bf16.mxu0 %v9089_v12 }
  0xd1   :  { %854 = vmatpush1.bf16.msra.mxu1 %v9215_v59 }
  0xd2   :  { %1030 = vmatpush1.bf16.msra.mxu0 %v9096_v14  ;;  %855 = vmatprep.subr.bf16.mxu1 %v9222_v62 }
  0xd3   :  { %1031 = vmatprep.subr.bf16.mxu0 %v9103_v16 }
  0xd5   :  { %856 = vmatpush1.bf16.msra.mxu1 %v9229_v3 }
  0xd6   :  { %1032 = vmatpush1.bf16.msra.mxu0 %v9110_v18  ;;  %857 = vmatprep.subr.bf16.mxu1 %v9236_v7 }
  0xd7   :  { %1033 = vmatprep.subr.bf16.mxu0 %v9117_v20 }
  0xd9   :  { %858 = vmatpush1.bf16.msra.mxu1 %v9243_v11 }
  0xda   :  { %1034 = vmatpush1.bf16.msra.mxu0 %v9124_v22  ;;  %859 = vmatprep.subr.bf16.mxu1 %v9250_v15 }
  0xdb   :  { %1035 = vmatprep.subr.bf16.mxu0 %v9131_v24 }
  0xdd   :  { %860 = vmatpush1.bf16.msra.mxu1 %v9257_v17 }
  0xde   :  { %1036 = vmatpush1.bf16.msra.mxu0 %v9138_v26  ;;  %861 = vmatprep.subr.bf16.mxu1 %v9264_v21 }
  0xdf   :  { %1037 = vmatprep.subr.bf16.mxu0 %v9145_v28 }
  0xe1   :  { %862 = vmatpush1.bf16.msra.mxu1 %v9271_v27 }
  0xe2   :  { %1038 = vmatpush1.bf16.msra.mxu0 %v9152_v30  ;;  %863 = vmatprep.subr.bf16.mxu1 %v9278_v31 }
  0xe3   :  { %1039 = vmatprep.subr.bf16.mxu0 %v9159_v32 }
  0xe5   :  { %864 = vmatpush1.bf16.msra.mxu1 %v8874_v23  ;;  %v8087_v23 = vld [vmem:[%s13089_s0 + $0x2] sm:$0x1f] }
  0xe6   :  { %1040 = vmatpush1.bf16.msra.mxu0 %v9170_v39  ;;  %874 = vmatprep.subr.bf16.mxu1 %v8879_v25  ;;  %v748_v25 = vcombine.high %v8087_v23, %v8087_v23  ;;  %v9392_v23 = vld [vmem:[%s13090_s1 + $0x10] ss:$8 sps:$4 sm:$0xff]  }
  0xe7   :  { %1041 = vmatprep.subr.bf16.mxu0 %v9177_v41  ;;  %13519 = vst [vmem:[#allocation26_spill] sm:$0xff] %v9392_v23 }
  0xe8   :  { %866 = vmatmul.mubr.bf16.vlgmr.msra.gmra.mrb[4].mxu1 %v785_v33  ;;  %v9386_v33 = vld [vmem:[%s13090_s1 + $0x210] ss:$8 sps:$4 sm:$0xff]  }
  0xe9   :  { %875 = vmatpush1.bf16.msra.mxu1 %v8887_v29  ;;  %906 = vmatprep.mubr.bf16.mxu1 %v13099_v43  ;;  %v9315_v29 = vld [vmem:[%s13089_s0 + $0x6] sm:$0x1f]  ;;  %13518 = vst [vmem:[#allocation25_spill] sm:$0xff] %v9386_v33 }
  0xea   :  { %1042 = vmatpush1.bf16.msra.mxu0 %v9187_v47  ;;  %876 = vmatprep.subr.bf16.mxu1 %v8894_v35  ;;  %13512 = vst [vmem:[#allocation19_spill] sm:$0xff] %v9315_v29  ;;  %v9323_v35 = vrot.slane %v9315_v29, %v8769_v49  ;;  %v9585_v29 = vld [vmem:[%s13090_s1 + $0xe4] ss:$8 sps:$4 sm:$0xff]  }
  0xeb   :  { %1043 = vmatprep.subr.bf16.mxu0 %v9194_v50 }
  0xec   :  { %v1147_v37 = vcombine.high %v9323_v35, %v9323_v35 }
  0xed   :  { %877 = vmatpush1.bf16.msra.mxu1 %v8903_v36  ;;  %v762_v36 = vrot.slane %v748_v25, %v8769_v49  ;;  %v9399_v25 = vld [vmem:[%s13090_s1 + $0x24] ss:$8 sps:$4 sm:$0xff]  }
  0xee   :  { %1044 = vmatpush1.bf16.msra.mxu0 %v9201_v53  ;;  %878 = vmatprep.subr.bf16.mxu1 %v8911_v38  ;;  %v9355_v19 = vrot.slane %v1147_v37, %v8769_v49  ;;  %13520 = vst [vmem:[#allocation27_spill] sm:$0xff] %v9399_v25  ;;  %v940_v37 = vcombine.high %v8978_v58, %v8978_v58  ;;  %v9462_v58 = vld [vmem:[%s13090_s1 + $0x64] ss:$8 sps:$4 sm:$0xff]  }
  0xef   :  { %1045 = vmatprep.subr.bf16.mxu0 %v9208_v56  ;;  %v777_v61 = vrot.slane %v762_v36, %v8769_v49  ;;  %v9406_v36 = vld [vmem:[%s13090_s1 + $0x20] ss:$8 sps:$4 sm:$0xff]   ;;  %13528 = vst [vmem:[#allocation35_spill] sm:$0xff] %v9462_v58 }
  0xf0   :  { %13521 = vst [vmem:[#allocation28_spill] sm:$0xff] %v9406_v36 }
  0xf1   :  { %879 = vmatpush1.bf16.msra.mxu1 %v8920_v40 }
  0xf2   :  { %1046 = vmatpush1.bf16.msra.mxu0 %v9215_v59  ;;  %880 = vmatprep.subr.bf16.mxu1 %v8927_v44 }
  0xf3   :  { %1047 = vmatprep.subr.bf16.mxu0 %v9222_v62 }
  0xf5   :  { %881 = vmatpush1.bf16.msra.mxu1 %v8936_v46 }
  0xf6   :  { %1048 = vmatpush1.bf16.msra.mxu0 %v9229_v3  ;;  %882 = vmatprep.subr.bf16.mxu1 %v8941_v48 }
  0xf7   :  { %1049 = vmatprep.subr.bf16.mxu0 %v9236_v7 }
  0xf9   :  { %883 = vmatpush1.bf16.msra.mxu1 %v8950_v51 }
  0xfa   :  { %1050 = vmatpush1.bf16.msra.mxu0 %v9243_v11  ;;  %884 = vmatprep.subr.bf16.mxu1 %v8955_v54 }
  0xfb   :  { %1051 = vmatprep.subr.bf16.mxu0 %v9250_v15 }
  0xfd   :  { %885 = vmatpush1.bf16.msra.mxu1 %v8964_v55 }
  0xfe   :  { %1052 = vmatpush1.bf16.msra.mxu0 %v9257_v17  ;;  %886 = vmatprep.subr.bf16.mxu1 %v8969_v57 }
  0xff   :  { %1053 = vmatprep.subr.bf16.mxu0 %v9264_v21 }
 0x101   :  { %887 = vmatpush1.bf16.msra.mxu1 %v8983_v60 }
 0x102   :  { %1054 = vmatpush1.bf16.msra.mxu0 %v9271_v27  ;;  %888 = vmatprep.subr.bf16.mxu1 %v8990_v63 }
 0x103   :  { %1055 = vmatprep.subr.bf16.mxu0 %v9278_v31 }
 0x105   :  { %889 = vmatpush1.bf16.msra.mxu1 %v8999_v1 }
 0x106   :  { %1056 = vmatpush1.bf16.msra.mxu0 %v9339_v5  ;;  %1176 = vmatprep.subr.bf16.mxu1 %v9351_v13 }
 0x107   :  { %1066 = vmatprep.subr.bf16.mxu0 %v9345_v9 }
 0x108   :  { %907 = vmatmul.mubr.bf16.vlgmr.msra.gmra.mrb[4].mxu1 %v777_v61 }
 0x109   :  { %1058 = vmatmul.mubr.bf16.vlgmr.msra.gmra.mrb[4].mxu0 %v977_v52  ;;  %1177 = vmatpush1.bf16.msra.mxu1 %v9366_v4  ;;  %v9474_v52 = vld [vmem:[%s13090_s1 + $0x60] ss:$8 sps:$4 sm:$0xff]  }
 0x10a   :  { %1067 = vmatpush1.bf16.msra.mxu0 %v9360_v0  ;;  %1178 = vmatprep.subr.bf16.mxu1 %v9378_v45 }
 0x10b   :  { %1068 = vmatprep.subr.bf16.mxu0 %v9372_v34  ;;  %1098 = vmatprep.mubr.bf16.mxu0 %v13099_v43  ;;  %v9491_v43 = vld [vmem:[%s13090_s1 + $0x70] ss:$8 sps:$4 sm:$0xff]  }
 0x10c   :  { %1208 = vmatprep.mubr.bf16.mxu1 %v9355_v19 }
 0x10d   :  { %1179 = vmatpush1.bf16.msra.mxu1 %v9392_v23 }
 0x10e   :  { %1069 = vmatpush1.bf16.msra.mxu0 %v9386_v33  ;;  %1180 = vmatprep.subr.bf16.mxu1 %v9399_v25  ;;  %v9592_v33 = vld [vmem:[%s13090_s1 + $0xe0] ss:$8 sps:$4 sm:$0xff]  }
 0x10f   :  { %1070 = vmatprep.subr.bf16.mxu0 %v8911_v38  ;;  %v9413_v38 = vld [vmem:[%s13090_s1 + $0x34] ss:$8 sps:$4 sm:$0xff]  }
 0x110   :  { %13522 = vst [vmem:[#allocation29_spill] sm:$0xff] %v9413_v38 }
 0x111   :  { %1181 = vmatpush1.bf16.msra.mxu1 %v9406_v36 }
 0x112   :  { %1071 = vmatpush1.bf16.msra.mxu0 %v8920_v40  ;;  %1182 = vmatprep.subr.bf16.mxu1 %v9413_v38  ;;  %v9420_v40 = vld [vmem:[%s13090_s1 + $0x30] ss:$8 sps:$4 sm:$0xff]  }
 0x113   :  { %1072 = vmatprep.subr.bf16.mxu0 %v8927_v44  ;;  %13523 = vst [vmem:[#allocation30_spill] sm:$0xff] %v9420_v40  ;;  %v9427_v44 = vld [vmem:[%s13090_s1 + $0x44] ss:$8 sps:$4 sm:$0xff]  }
 0x114   :  { %13524 = vst [vmem:[#allocation31_spill] sm:$0xff] %v9427_v44 }
 0x115   :  { %1183 = vmatpush1.bf16.msra.mxu1 %v9420_v40 }
 0x116   :  { %1073 = vmatpush1.bf16.msra.mxu0 %v8936_v46  ;;  %1184 = vmatprep.subr.bf16.mxu1 %v9427_v44  ;;  %v9434_v46 = vld [vmem:[%s13090_s1 + $0x40] ss:$8 sps:$4 sm:$0xff]  }
 0x117   :  { %1074 = vmatprep.subr.bf16.mxu0 %v8941_v48  ;;  %13525 = vst [vmem:[#allocation32_spill] sm:$0xff] %v9434_v46  ;;  %v9441_v48 = vld [vmem:[%s13090_s1 + $0x54] ss:$8 sps:$4 sm:$0xff]  }
 0x118   :  { %13526 = vst [vmem:[#allocation33_spill] sm:$0xff] %v9441_v48 }
 0x119   :  { %1185 = vmatpush1.bf16.msra.mxu1 %v9434_v46 }
 0x11a   :  { %1075 = vmatpush1.bf16.msra.mxu0 %v8950_v51  ;;  %1186 = vmatprep.subr.bf16.mxu1 %v9441_v48  ;;  %v9449_v51 = vld [vmem:[%s13089_s0 + $0x8] sm:$0x1f] }
 0x11b   :  { %1076 = vmatprep.subr.bf16.mxu0 %v8955_v54  ;;  %13527 = vst [vmem:[#allocation34_spill] sm:$0xff] %v9449_v51  ;;  %v9455_v54 = vld [vmem:[%s13090_s1 + $0x50] ss:$8 sps:$4 sm:$0xff]   ;;  %v9467_v61 = vrot.slane %v9449_v51, %v8769_v49  ;;  %v9514_v51 = vld [vmem:[%s13090_s1 + $0x94] ss:$8 sps:$4 sm:$0xff]  }
 0x11d   :  { %1187 = vmatpush1.bf16.msra.mxu1 %v9455_v54 }
 0x11e   :  { %1077 = vmatpush1.bf16.msra.mxu0 %v8964_v55  ;;  %1188 = vmatprep.subr.bf16.mxu1 %v9462_v58  ;;  %v954_v55 = vrot.slane %v940_v37, %v8769_v49  ;;  %v1339_v37 = vcombine.high %v9467_v61, %v9467_v61 }
 0x11f   :  { %1078 = vmatprep.subr.bf16.mxu0 %v8969_v57  ;;  %v9481_v57 = vld [vmem:[%s13090_s1 + $0x74] ss:$8 sps:$4 sm:$0xff]  }
 0x120   :  { %13529 = vst [vmem:[#allocation36_spill] sm:$0xff] %v9481_v57 }
 0x121   :  { %1189 = vmatpush1.bf16.msra.mxu1 %v9474_v52 }
 0x122   :  { %1079 = vmatpush1.bf16.msra.mxu0 %v8983_v60  ;;  %1190 = vmatprep.subr.bf16.mxu1 %v9481_v57  ;;  %v969_v60 = vrot.slane %v954_v55, %v8769_v49  ;;  %v9502_v55 = vrot.slane %v1339_v37, %v8769_v49  ;;  %v9522_v37 = vld [vmem:[%s13090_s1 + $0x90] ss:$8 sps:$4 sm:$0xff]  }
 0x123   :  { %1080 = vmatprep.subr.bf16.mxu0 %v8990_v63  ;;  %v9497_v63 = vld [vmem:[%s13090_s1 + $0x84] ss:$8 sps:$4 sm:$0xff]   ;;  %13530 = vst [vmem:[#allocation37_spill] sm:$0xff] %v9522_v37 }
 0x125   :  { %1191 = vmatpush1.bf16.msra.mxu1 %v9491_v43 }
 0x126   :  { %1081 = vmatpush1.bf16.msra.mxu0 %v8999_v1  ;;  %1192 = vmatprep.subr.bf16.mxu1 %v9497_v63  ;;  %v9507_v1 = vld [vmem:[%s13090_s1 + $0x80] ss:$8 sps:$4 sm:$0xff]  }
 0x127   :  { %1368 = vmatprep.subr.bf16.mxu0 %v9351_v13  ;;  %v9578_v13 = vld [vmem:[%s13090_s1 + $0xd0] ss:$8 sps:$4 sm:$0xff]  }
 0x129   :  { %1099 = vmatmul.mubr.bf16.vlgmr.msra.gmra.mrb[4].mxu0 %v969_v60  ;;  %1193 = vmatpush1.bf16.msra.mxu1 %v9507_v1  ;;  %v9529_v60 = vld [vmem:[%s13090_s1 + $0xa4] ss:$8 sps:$4 sm:$0xff]  }
 0x12a   :  { %1369 = vmatpush1.bf16.msra.mxu0 %v9366_v4  ;;  %1194 = vmatprep.subr.bf16.mxu1 %v9514_v51  ;;  %13531 = vst [vmem:[#allocation38_spill] sm:$0xff] %v9529_v60 }
 0x12b   :  { %1370 = vmatprep.subr.bf16.mxu0 %v9378_v45  ;;  %1400 = vmatprep.mubr.bf16.mxu0 %v9502_v55  ;;  %v9536_v45 = vld [vmem:[%s13090_s1 + $0xa0] ss:$8 sps:$4 sm:$0xff]  }
 0x12c   :  { %13532 = vst [vmem:[#allocation39_spill] sm:$0xff] %v9536_v45 }
 0x12d   :  { %1195 = vmatpush1.bf16.msra.mxu1 %v9522_v37 }
 0x12e   :  { %1371 = vmatpush1.bf16.msra.mxu0 %v9392_v23  ;;  %1196 = vmatprep.subr.bf16.mxu1 %v9529_v60  ;;  %v9543_v23 = vld [vmem:[%s13090_s1 + $0xb4] ss:$8 sps:$4 sm:$0xff]  }
 0x12f   :  { %1372 = vmatprep.subr.bf16.mxu0 %v9399_v25  ;;  %13533 = vst [vmem:[#allocation40_spill] sm:$0xff] %v9543_v23  ;;  %v9550_v25 = vld [vmem:[%s13090_s1 + $0xb0] ss:$8 sps:$4 sm:$0xff]  }
 0x130   :  { %13534 = vst [vmem:[#allocation41_spill] sm:$0xff] %v9550_v25 }
 0x131   :  { %1197 = vmatpush1.bf16.msra.mxu1 %v9536_v45 }
 0x132   :  { %1373 = vmatpush1.bf16.msra.mxu0 %v9406_v36  ;;  %1198 = vmatprep.subr.bf16.mxu1 %v9543_v23  ;;  %v9557_v36 = vld [vmem:[%s13090_s1 + $0xc4] ss:$8 sps:$4 sm:$0xff]  }
 0x133   :  { %1374 = vmatprep.subr.bf16.mxu0 %v9413_v38  ;;  %v9564_v38 = vld [vmem:[%s13090_s1 + $0xc0] ss:$8 sps:$4 sm:$0xff]  }
 0x135   :  { %1199 = vmatpush1.bf16.msra.mxu1 %v9550_v25 }
 0x136   :  { %1375 = vmatpush1.bf16.msra.mxu0 %v9420_v40  ;;  %1200 = vmatprep.subr.bf16.mxu1 %v9557_v36  ;;  %v9571_v40 = vld [vmem:[%s13090_s1 + $0xd4] ss:$8 sps:$4 sm:$0xff]  }
 0x137   :  { %1376 = vmatprep.subr.bf16.mxu0 %v9427_v44 }
 0x139   :  { %1201 = vmatpush1.bf16.msra.mxu1 %v9564_v38 }
 0x13a   :  { %1377 = vmatpush1.bf16.msra.mxu0 %v9434_v46  ;;  %1202 = vmatprep.subr.bf16.mxu1 %v9571_v40 }
 0x13b   :  { %1378 = vmatprep.subr.bf16.mxu0 %v9441_v48  ;;  %v634_v4 = vpop.f32.mrb[0].mxu1 }
 0x13c   :  { %v636_v44 = vpop.f32.mrb[1].mxu1 }
 0x13d   :  { %1203 = vmatpush1.bf16.msra.mxu1 %v9578_v13  ;;  %v638_v46 = vpop.f32.mrb[2].mxu1 }
 0x13e   :  { %1379 = vmatpush1.bf16.msra.mxu0 %v9455_v54  ;;  %1204 = vmatprep.subr.bf16.mxu1 %v9585_v29  ;;  %v639_v48 = vpop.f32.mrb[3].mxu1  ;;  %v9599_v46 = vld [vmem:[%s13090_s1 + $0xf4] ss:$8 sps:$4 sm:$0xff]  }
 0x13f   :  { %1380 = vmatprep.subr.bf16.mxu0 %v9462_v58  ;;  %v9605_v48 = vrot.slane %v9323_v35, %v8769_v49  ;;  %v9610_v58 = vld [vmem:[%s13090_s1 + $0xf0] ss:$8 sps:$4 sm:$0xff]   ;;  %v13137_v35 = vsub.s32 0, %v8745_v42 }
 0x141   :  { %1205 = vmatpush1.bf16.msra.mxu1 %v9592_v33 }
 0x142   :  { %1381 = vmatpush1.bf16.msra.mxu0 %v9474_v52  ;;  %1206 = vmatprep.subr.bf16.mxu1 %v9599_v46 }
 0x143   :  { %1382 = vmatprep.subr.bf16.mxu0 %v9481_v57  ;;  %v1170_v57 = vcombine.high %v9355_v19, %v9355_v19  ;;  %v142_v19 = vld [vmem:[%s13091_s2] sm:$0x3] }
 0x145   :  { %1207 = vmatpush1.bf16.msra.mxu1 %v9610_v58 }
 0x146   :  { %1383 = vmatpush1.bf16.msra.mxu0 %v9491_v43  ;;  %1217 = vmatprep.subr.bf16.mxu1 %v9058_v2 }
 0x147   :  { %1384 = vmatprep.subr.bf16.mxu0 %v9497_v63 }
 0x148   :  { %1209 = vmatmul.mubr.bf16.vlgmr.msra.gmra.mrb[8].mxu1 %v9605_v48 }
 0x149   :  { %1218 = vmatpush1.bf16.msra.mxu1 %v9068_v6  ;;  %1249 = vmatprep.mubr.bf16.mxu1 %v1170_v57  ;;  %v13142_v57 = vsub.s32 1, %v8745_v42 }
 0x14a   :  { %1385 = vmatpush1.bf16.msra.mxu0 %v9507_v1  ;;  %1219 = vmatprep.subr.bf16.mxu1 %v9075_v8 }
 0x14b   :  { %1386 = vmatprep.subr.bf16.mxu0 %v9514_v51 }
 0x14d   :  { %1220 = vmatpush1.bf16.msra.mxu1 %v9082_v10 }
 0x14e   :  { %1387 = vmatpush1.bf16.msra.mxu0 %v9522_v37  ;;  %1221 = vmatprep.subr.bf16.mxu1 %v9089_v12  ;;  %v9638_v37 = vrot.slane %v142_v19, %v13137_v35 }
 0x14f   :  { %1388 = vmatprep.subr.bf16.mxu0 %v9529_v60 }
 0x150   :  { %13535 = vst [vmem:[#allocation42_spill] sm:$0xff] %v9638_v37  ;;  %v635_v60 = vadd.f32 %v634_v4, %v9638_v37 }
 0x151   :  { %1222 = vmatpush1.bf16.msra.mxu1 %v9096_v14 }
 0x152   :  { %1389 = vmatpush1.bf16.msra.mxu0 %v9536_v45  ;;  %1223 = vmatprep.subr.bf16.mxu1 %v9103_v16  ;;  %v9644_v45 = vrot.slane %v142_v19, %v13142_v57 }
 0x153   :  { %1390 = vmatprep.subr.bf16.mxu0 %v9543_v23 }
 0x154   :  { %13536 = vst [vmem:[#allocation43_spill] sm:$0xff] %v9644_v45  ;;  %v637_v35 = vadd.f32 %v636_v44, %v9644_v45 }
 0x155   :  { %1224 = vmatpush1.bf16.msra.mxu1 %v9110_v18 }
 0x156   :  { %1391 = vmatpush1.bf16.msra.mxu0 %v9550_v25  ;;  %1225 = vmatprep.subr.bf16.mxu1 %v9117_v20 }
 0x157   :  { %1392 = vmatprep.subr.bf16.mxu0 %v9557_v36 }
 0x159   :  { %1226 = vmatpush1.bf16.msra.mxu1 %v9124_v22 }
 0x15a   :  { %1393 = vmatpush1.bf16.msra.mxu0 %v9564_v38  ;;  %1227 = vmatprep.subr.bf16.mxu1 %v9131_v24 }
 0x15b   :  { %1394 = vmatprep.subr.bf16.mxu0 %v9571_v40 }
 0x15c   :  { %v716_v25 = vpop.f32.mrb[0].mxu0 }
 0x15d   :  { %v7355_v42 = vadd.f32 %v716_v25, %v635_v60  ;;  %v718_v19 = vpop.f32.mrb[1].mxu0  ;;  %1228 = vmatpush1.bf16.msra.mxu1 %v9138_v26  ;;  %v1362_v25 = vcombine.high %v9502_v55, %v9502_v55  ;;  %v9732_v55 = vld [vmem:[%s13090_s1 + $0x234] ss:$8 sps:$4 sm:$0xff]   ;;  %v9746_v60 = vld [vmem:[%s13090_s1 + $0x244] ss:$8 sps:$4 sm:$0xff]  }
 0x15e   :  { %v7357_v57 = vadd.f32 %v718_v19, %v637_v35  ;;  %v720_v23 = vpop.f32.mrb[2].mxu0  ;;  %1395 = vmatpush1.bf16.msra.mxu0 %v9578_v13  ;;  %1229 = vmatprep.subr.bf16.mxu1 %v9145_v28  ;;  %13541 = vst [vmem:[#allocation46_spill] sm:$0xff] %v9732_v55  ;;  %13543 = vst [vmem:[#allocation48_spill] sm:$0xff] %v9746_v60  ;;  %v9760_v35 = vld [vmem:[%s13090_s1 + $0x254] ss:$8 sps:$4 sm:$0xff]  }
 0x15f   :  { %v723_v4 = vmax.f32 %v7355_v42, 0.0  ;;  %v721_v37 = vpop.f32.mrb[3].mxu0  ;;  %1396 = vmatprep.subr.bf16.mxu0 %v9585_v29  ;;  %v9665_v42 = vrot.slane %v9467_v61, %v8769_v49  ;;  %v9725_v61 = vld [vmem:[%s13090_s1 + $0x220] ss:$8 sps:$4 sm:$0xff]   ;;  %13545 = vst [vmem:[#allocation50_spill] sm:$0xff] %v9760_v35 }
 0x160   :  { %v724_v44 = vmax.f32 %v7357_v57, 0.0  ;;  %13540 = vst [vmem:[#allocation45_spill] sm:$0xff] %v9725_v61  ;;  %v9739_v37 = vld [vmem:[%s13090_s1 + $0x230] ss:$8 sps:$4 sm:$0xff]  }
 0x161   :  { %1230 = vmatpush1.bf16.msra.mxu1 %v9152_v30  ;;  %13542 = vst [vmem:[#allocation47_spill] sm:$0xff] %v9739_v37  ;;  %v13546_v57 = vld [vmem:[#allocation19_spill] sm:$0xff] }
 0x162   :  { %v6921_v45 = vpack.c.bf16 %v724_v44, %v723_v4  ;;  %1397 = vmatpush1.bf16.msra.mxu0 %v9592_v33  ;;  %1231 = vmatprep.subr.bf16.mxu1 %v9159_v32  ;;  %v1132_v19 = vcombine.high %v13546_v57, %v13546_v57  ;;  %v9769_v4 = vld [vmem:[%s13089_s0 + $0xa] sm:$0x1f]  ;;  %v9774_v44 = vld [vmem:[%s13090_s1 + $0x250] ss:$8 sps:$4 sm:$0xff]  }
 0x163   :  { %1398 = vmatprep.subr.bf16.mxu0 %v9599_v46  ;;  %13547 = vst [vmem:[#allocation19_spill] sm:$0xff] %v9769_v4  ;;  %13548 = vst [vmem:[#allocation51_spill] sm:$0xff] %v9774_v44  ;;  %v9793_v57 = vld [vmem:[%s13090_s1 + $0x260] ss:$8 sps:$4 sm:$0xff]  }
 0x164   :  { %v736_v23 = vrot.slane %v6921_v45, %v8769_v49  ;;  %v9718_v45 = vld [vmem:[%s13090_s1 + $0x224] ss:$8 sps:$4 sm:$0xff]  }
 0x165   :  { %1232 = vmatpush1.bf16.msra.mxu1 %v9170_v39  ;;  %13539 = vst [vmem:[#allocation44_spill] sm:$0xff] %v9718_v45 }
 0x166   :  { %6922 = vst.sshfl [vmem:[#allocation2] sm:$0x5 pattern:$0x73625140] %v736_v23  ;;  %1399 = vmatpush1.bf16.msra.mxu0 %v9610_v58  ;;  %1233 = vmatprep.subr.bf16.mxu1 %v9177_v41  ;;  %v9781_v23 = vld [vmem:[%s13090_s1 + $0x264] ss:$8 sps:$4 sm:$0xff]  }
 0x167   :  { %1409 = vmatprep.subr.bf16.mxu0 %v9058_v2  ;;  %v1169_v2 = vcombine.high %v9605_v48, %v9605_v48  ;;  %v9753_v48 = vld [vmem:[%s13090_s1 + $0x240] ss:$8 sps:$4 sm:$0xff]   ;;  %13549 = vst [vmem:[#allocation52_spill] sm:$0xff] %v9781_v23 }
 0x168   :  { %13544 = vst [vmem:[#allocation49_spill] sm:$0xff] %v9753_v48 }
 0x169   :  { %1401 = vmatmul.mubr.bf16.vlgmr.msra.gmra.mrb[8].mxu0 %v9665_v42  ;;  %1234 = vmatpush1.bf16.msra.mxu1 %v9187_v47 }
 0x16a   :  { %1410 = vmatpush1.bf16.msra.mxu0 %v9068_v6  ;;  %1235 = vmatprep.subr.bf16.mxu1 %v9194_v50  ;;  %v13537_v6 = vmov 0  }
 0x16b   :  { %1411 = vmatprep.subr.bf16.mxu0 %v9075_v8  ;;  %1441 = vmatprep.mubr.bf16.mxu0 %v1362_v25  ;;  %v13538_v8 = vld [vmem:[#allocation25_spill] sm:$0xff]  ;;  %v9787_v25 = vrot.slane %v9769_v4, %v8769_v49 }
 0x16d   :  { %1236 = vmatpush1.bf16.msra.mxu1 %v9201_v53 }
 0x16e   :  { %1412 = vmatpush1.bf16.msra.mxu0 %v9082_v10  ;;  %1237 = vmatprep.subr.bf16.mxu1 %v9208_v56 }
 0x16f   :  { %1413 = vmatprep.subr.bf16.mxu0 %v9089_v12 }
 0x171   :  { %1238 = vmatpush1.bf16.msra.mxu1 %v9215_v59 }
 0x172   :  { %1414 = vmatpush1.bf16.msra.mxu0 %v9096_v14  ;;  %1239 = vmatprep.subr.bf16.mxu1 %v9222_v62 }
 0x173   :  { %1415 = vmatprep.subr.bf16.mxu0 %v9103_v16 }
 0x175   :  { %1240 = vmatpush1.bf16.msra.mxu1 %v9229_v3 }
 0x176   :  { %1416 = vmatpush1.bf16.msra.mxu0 %v9110_v18  ;;  %1241 = vmatprep.subr.bf16.mxu1 %v9236_v7 }
 0x177   :  { %1417 = vmatprep.subr.bf16.mxu0 %v9117_v20 }
 0x179   :  { %1242 = vmatpush1.bf16.msra.mxu1 %v9243_v11 }
 0x17a   :  { %1418 = vmatpush1.bf16.msra.mxu0 %v9124_v22  ;;  %1243 = vmatprep.subr.bf16.mxu1 %v9250_v15 }
 0x17b   :  { %1419 = vmatprep.subr.bf16.mxu0 %v9131_v24 }
 0x17d   :  { %1244 = vmatpush1.bf16.msra.mxu1 %v9257_v17 }
 0x17e   :  { %1420 = vmatpush1.bf16.msra.mxu0 %v9138_v26  ;;  %1245 = vmatprep.subr.bf16.mxu1 %v9264_v21 }
 0x17f   :  { %1421 = vmatprep.subr.bf16.mxu0 %v9145_v28 }
 0x181   :  { %1246 = vmatpush1.bf16.msra.mxu1 %v9271_v27 }
 0x182   :  { %1422 = vmatpush1.bf16.msra.mxu0 %v9152_v30  ;;  %1247 = vmatprep.subr.bf16.mxu1 %v9278_v31 }
 0x183   :  { %1423 = vmatprep.subr.bf16.mxu0 %v9159_v32 }
 0x185   :  { %1248 = vmatpush1.bf16.msra.mxu1 %v9339_v5 }
 0x186   :  { %1424 = vmatpush1.bf16.msra.mxu0 %v9170_v39  ;;  %1258 = vmatprep.subr.bf16.mxu1 %v9345_v9 }
 0x187   :  { %1425 = vmatprep.subr.bf16.mxu0 %v9177_v41 }
 0x188   :  { %1250 = vmatmul.mubr.bf16.vlgmr.msra.gmra.mrb[8].mxu1 %v1169_v2  ;;  %v1146_v2 = vrot.slane %v1132_v19, %v8769_v49  ;;  %v1531_v19 = vcombine.high %v9787_v25, %v9787_v25 }
 0x189   :  { %1259 = vmatpush1.bf16.msra.mxu1 %v9360_v0  ;;  %1290 = vmatprep.mubr.bf16.mxu1 %v13537_v6 }
 0x18a   :  { %1426 = vmatpush1.bf16.msra.mxu0 %v9187_v47  ;;  %1260 = vmatprep.subr.bf16.mxu1 %v9372_v34  ;;  %v1161_v4 = vrot.slane %v1146_v2, %v8769_v49  ;;  %v13554_v2 = vld [vmem:[#allocation24_spill] sm:$0xff] }
 0x18b   :  { %1427 = vmatprep.subr.bf16.mxu0 %v9194_v50 }
 0x18d   :  { %1261 = vmatpush1.bf16.msra.mxu1 %v13538_v8 }
 0x18e   :  { %1428 = vmatpush1.bf16.msra.mxu0 %v9201_v53  ;;  %1262 = vmatprep.subr.bf16.mxu1 %v9718_v45 }
 0x18f   :  { %1429 = vmatprep.subr.bf16.mxu0 %v9208_v56 }
 0x191   :  { %1263 = vmatpush1.bf16.msra.mxu1 %v9725_v61 }
 0x192   :  { %1430 = vmatpush1.bf16.msra.mxu0 %v9215_v59  ;;  %1264 = vmatprep.subr.bf16.mxu1 %v9732_v55 }
 0x193   :  { %1431 = vmatprep.subr.bf16.mxu0 %v9222_v62 }
 0x195   :  { %1265 = vmatpush1.bf16.msra.mxu1 %v9739_v37 }
 0x196   :  { %1432 = vmatpush1.bf16.msra.mxu0 %v9229_v3  ;;  %1266 = vmatprep.subr.bf16.mxu1 %v9746_v60 }
 0x197   :  { %1433 = vmatprep.subr.bf16.mxu0 %v9236_v7 }
 0x199   :  { %1267 = vmatpush1.bf16.msra.mxu1 %v9753_v48 }
 0x19a   :  { %1434 = vmatpush1.bf16.msra.mxu0 %v9243_v11  ;;  %1268 = vmatprep.subr.bf16.mxu1 %v9760_v35 }
 0x19b   :  { %1435 = vmatprep.subr.bf16.mxu0 %v9250_v15  ;;  %v9819_v15 = vrot.slane %v1531_v19, %v8769_v49  ;;  %v13558_v19 = vld [vmem:[#allocation29_spill] sm:$0xff] }
 0x19d   :  { %1269 = vmatpush1.bf16.msra.mxu1 %v9774_v44 }
 0x19e   :  { %1436 = vmatpush1.bf16.msra.mxu0 %v9257_v17  ;;  %1270 = vmatprep.subr.bf16.mxu1 %v9781_v23  ;;  %v9800_v17 = vld [vmem:[%s13090_s1 + $0x274] ss:$8 sps:$4 sm:$0xff]  }
 0x19f   :  { %1437 = vmatprep.subr.bf16.mxu0 %v9264_v21  ;;  %13550 = vst [vmem:[#allocation53_spill] sm:$0xff] %v9800_v17  ;;  %v1361_v21 = vcombine.high %v9665_v42, %v9665_v42  ;;  %v13553_v42 = vld [vmem:[#allocation22_spill] sm:$0xff] }
 0x1a1   :  { %1271 = vmatpush1.bf16.msra.mxu1 %v9793_v57 }
 0x1a2   :  { %1438 = vmatpush1.bf16.msra.mxu0 %v9271_v27  ;;  %1272 = vmatprep.subr.bf16.mxu1 %v9800_v17  ;;  %v9812_v27 = vld [vmem:[%s13090_s1 + $0x270] ss:$8 sps:$4 sm:$0xff]  }
 0x1a3   :  { %1439 = vmatprep.subr.bf16.mxu0 %v9278_v31  ;;  %13551 = vst [vmem:[#allocation54_spill] sm:$0xff] %v9812_v27  ;;  %v13552_v31 = vld [vmem:[#allocation21_spill] sm:$0xff] }
 0x1a5   :  { %1273 = vmatpush1.bf16.msra.mxu1 %v9812_v27 }
 0x1a6   :  { %1440 = vmatpush1.bf16.msra.mxu0 %v9339_v5  ;;  %1560 = vmatprep.subr.bf16.mxu1 %v13552_v31 }
 0x1a7   :  { %1450 = vmatprep.subr.bf16.mxu0 %v9345_v9  ;;  %v13555_v9 = vld [vmem:[#allocation26_spill] sm:$0xff] }
 0x1a8   :  { %1291 = vmatmul.mubr.bf16.vlgmr.msra.gmra.mrb[8].mxu1 %v1161_v4  ;;  %v13556_v4 = vld [vmem:[#allocation27_spill] sm:$0xff] }
 0x1a9   :  { %1442 = vmatmul.mubr.bf16.vlgmr.msra.gmra.mrb[8].mxu0 %v1361_v21  ;;  %1561 = vmatpush1.bf16.msra.mxu1 %v13553_v42  ;;  %v13557_v21 = vld [vmem:[#allocation28_spill] sm:$0xff] }
 0x1aa   :  { %1451 = vmatpush1.bf16.msra.mxu0 %v9360_v0  ;;  %1562 = vmatprep.subr.bf16.mxu1 %v13554_v2 }
 0x1ab   :  { %1452 = vmatprep.subr.bf16.mxu0 %v9372_v34  ;;  %1482 = vmatprep.mubr.bf16.mxu0 %v13537_v6  ;;  %v13559_v6 = vld [vmem:[#allocation30_spill] sm:$0xff] }
 0x1ac   :  { %1592 = vmatprep.mubr.bf16.mxu1 %v9819_v15  ;;  %v13563_v34 = vld [vmem:[#allocation34_spill] sm:$0xff] }
 0x1ad   :  { %1563 = vmatpush1.bf16.msra.mxu1 %v13555_v9 }
 0x1ae   :  { %1453 = vmatpush1.bf16.msra.mxu0 %v13538_v8  ;;  %1564 = vmatprep.subr.bf16.mxu1 %v13556_v4  ;;  %v13560_v8 = vld [vmem:[#allocation31_spill] sm:$0xff] }
 0x1af   :  { %1454 = vmatprep.subr.bf16.mxu0 %v9718_v45  ;;  %v13561_v45 = vld [vmem:[#allocation32_spill] sm:$0xff] }
 0x1b1   :  { %1565 = vmatpush1.bf16.msra.mxu1 %v13557_v21 }
 0x1b2   :  { %1455 = vmatpush1.bf16.msra.mxu0 %v9725_v61  ;;  %1566 = vmatprep.subr.bf16.mxu1 %v13558_v19  ;;  %v13562_v61 = vld [vmem:[#allocation33_spill] sm:$0xff] }
 0x1b3   :  { %1456 = vmatprep.subr.bf16.mxu0 %v9732_v55  ;;  %v1324_v55 = vcombine.high %v13563_v34, %v13563_v34  ;;  %v13566_v34 = vld [vmem:[#allocation36_spill] sm:$0xff] }
 0x1b5   :  { %1567 = vmatpush1.bf16.msra.mxu1 %v13559_v6 }
 0x1b6   :  { %1457 = vmatpush1.bf16.msra.mxu0 %v9739_v37  ;;  %1568 = vmatprep.subr.bf16.mxu1 %v13560_v8  ;;  %v9848_v37 = vld [vmem:[%s13089_s0 + $0xc] sm:$0x1f] }
 0x1b7   :  { %1458 = vmatprep.subr.bf16.mxu0 %v9746_v60  ;;  %13564 = vst [vmem:[#allocation33_spill] sm:$0xff] %v9848_v37  ;;  %v1338_v60 = vrot.slane %v1324_v55, %v8769_v49 }
 0x1b9   :  { %1569 = vmatpush1.bf16.msra.mxu1 %v13561_v45 }
 0x1ba   :  { %1459 = vmatpush1.bf16.msra.mxu0 %v9753_v48  ;;  %1570 = vmatprep.subr.bf16.mxu1 %v13562_v61  ;;  %v13565_v48 = vld [vmem:[#allocation35_spill] sm:$0xff] }
 0x1bb   :  { %1460 = vmatprep.subr.bf16.mxu0 %v9760_v35  ;;  %v9856_v35 = vrot.slane %v9848_v37, %v8769_v49  ;;  %v13568_v37 = vld [vmem:[#allocation38_spill] sm:$0xff] }
 0x1bd   :  { %1571 = vmatpush1.bf16.msra.mxu1 %v9455_v54 }
 0x1be   :  { %1461 = vmatpush1.bf16.msra.mxu0 %v9774_v44  ;;  %1572 = vmatprep.subr.bf16.mxu1 %v13565_v48  ;;  %v1723_v44 = vcombine.high %v9856_v35, %v9856_v35 }
 0x1bf   :  { %1462 = vmatprep.subr.bf16.mxu0 %v9781_v23  ;;  %v1353_v23 = vrot.slane %v1338_v60, %v8769_v49  ;;  %v13567_v60 = vld [vmem:[#allocation37_spill] sm:$0xff] }
 0x1c0   :  { %v9871_v55 = vrot.slane %v1723_v44, %v8769_v49  ;;  %v13569_v44 = vld [vmem:[#allocation39_spill] sm:$0xff] }
 0x1c1   :  { %1573 = vmatpush1.bf16.msra.mxu1 %v9474_v52 }
 0x1c2   :  { %1463 = vmatpush1.bf16.msra.mxu0 %v9793_v57  ;;  %1574 = vmatprep.subr.bf16.mxu1 %v13566_v34 }
 0x1c3   :  { %1464 = vmatprep.subr.bf16.mxu0 %v9800_v17 }
 0x1c5   :  { %1575 = vmatpush1.bf16.msra.mxu1 %v9491_v43 }
 0x1c6   :  { %1465 = vmatpush1.bf16.msra.mxu0 %v9812_v27  ;;  %1576 = vmatprep.subr.bf16.mxu1 %v9497_v63 }
 0x1c7   :  { %1752 = vmatprep.subr.bf16.mxu0 %v13552_v31 }
 0x1c9   :  { %1483 = vmatmul.mubr.bf16.vlgmr.msra.gmra.mrb[8].mxu0 %v1353_v23  ;;  %1577 = vmatpush1.bf16.msra.mxu1 %v9507_v1  ;;  %v13570_v23 = vld [vmem:[#allocation40_spill] sm:$0xff] }
 0x1ca   :  { %1753 = vmatpush1.bf16.msra.mxu0 %v13553_v42  ;;  %1578 = vmatprep.subr.bf16.mxu1 %v9514_v51  ;;  %v13571_v42 = vld [vmem:[#allocation41_spill] sm:$0xff] }
 0x1cb   :  { %1754 = vmatprep.subr.bf16.mxu0 %v13554_v2  ;;  %1784 = vmatprep.mubr.bf16.mxu0 %v9871_v55  ;;  %v13573_v2 = vld [vmem:[#allocation43_spill] sm:$0xff] }
 0x1cd   :  { %1579 = vmatpush1.bf16.msra.mxu1 %v13567_v60 }
 0x1ce   :  { %1755 = vmatpush1.bf16.msra.mxu0 %v13555_v9  ;;  %1580 = vmatprep.subr.bf16.mxu1 %v13568_v37 }
 0x1cf   :  { %1756 = vmatprep.subr.bf16.mxu0 %v13556_v4  ;;  %v13572_v4 = vld [vmem:[#allocation42_spill] sm:$0xff] }
 0x1d1   :  { %1581 = vmatpush1.bf16.msra.mxu1 %v13569_v44 }
 0x1d2   :  { %1757 = vmatpush1.bf16.msra.mxu0 %v13557_v21  ;;  %1582 = vmatprep.subr.bf16.mxu1 %v13570_v23 }
 0x1d3   :  { %1758 = vmatprep.subr.bf16.mxu0 %v13558_v19 }
 0x1d5   :  { %1583 = vmatpush1.bf16.msra.mxu1 %v13571_v42 }
 0x1d6   :  { %1759 = vmatpush1.bf16.msra.mxu0 %v13559_v6  ;;  %1584 = vmatprep.subr.bf16.mxu1 %v9557_v36 }
 0x1d7   :  { %1760 = vmatprep.subr.bf16.mxu0 %v13560_v8 }
 0x1d9   :  { %1585 = vmatpush1.bf16.msra.mxu1 %v9564_v38 }
 0x1da   :  { %1761 = vmatpush1.bf16.msra.mxu0 %v13561_v45  ;;  %1586 = vmatprep.subr.bf16.mxu1 %v9571_v40 }
 0x1db   :  { %1762 = vmatprep.subr.bf16.mxu0 %v13562_v61  ;;  %v908_v21 = vpop.f32.mrb[4].mxu1 }
 0x1dc   :  { %v7358_v9 = vadd.f32 %v908_v21, %v13572_v4  ;;  %v910_v19 = vpop.f32.mrb[5].mxu1  ;;  %v1746_v21 = vcombine.high %v9871_v55, %v9871_v55  ;;  %v9995_v55 = vld [vmem:[%s13090_s1 + $0x120] ss:$8 sps:$4 sm:$0xff]  }
 0x1dd   :  { %v7359_v31 = vadd.f32 %v910_v19, %v13573_v2  ;;  %v912_v27 = vpop.f32.mrb[6].mxu1  ;;  %1587 = vmatpush1.bf16.msra.mxu1 %v9578_v13  ;;  %v9988_v19 = vld [vmem:[%s13090_s1 + $0x124] ss:$8 sps:$4 sm:$0xff]  }
 0x1de   :  { %1763 = vmatpush1.bf16.msra.mxu0 %v9455_v54  ;;  %v915_v8 = vmax.f32 %v7358_v9, 0.0  ;;  %v913_v6 = vpop.f32.mrb[7].mxu1  ;;  %1588 = vmatprep.subr.bf16.mxu1 %v9585_v29  ;;  %v9907_v9 = vrot.slane %v9787_v25, %v8769_v49  ;;  %v9964_v25 = vrot.slane %v9856_v35, %v8769_v49  ;;  %v9981_v35 = vld [vmem:[%s13090_s1 + $0x110] ss:$8 sps:$4 sm:$0xff]  }
 0x1df   :  { %1764 = vmatprep.subr.bf16.mxu0 %v13565_v48  ;;  %v916_v45 = vmax.f32 %v7359_v31, 0.0  ;;  %v9914_v31 = vld [vmem:[%s13090_s1 + $0x104] ss:$8 sps:$4 sm:$0xff]   ;;  %v9924_v6 = vld [vmem:[%s13090_s1 + $0x100] ss:$8 sps:$4 sm:$0xff]  }
 0x1e1   :  { %v6923_v17 = vpack.c.bf16 %v916_v45, %v915_v8  ;;  %1589 = vmatpush1.bf16.msra.mxu1 %v9592_v33  ;;  %v9931_v8 = vld [vmem:[%s13090_s1 + $0x114] ss:$8 sps:$4 sm:$0xff]  }
 0x1e2   :  { %1765 = vmatpush1.bf16.msra.mxu0 %v9474_v52  ;;  %1590 = vmatprep.subr.bf16.mxu1 %v9599_v46 }
 0x1e3   :  { %1766 = vmatprep.subr.bf16.mxu0 %v13566_v34  ;;  %v928_v27 = vrot.slane %v6923_v17, %v8769_v49  ;;  %v1554_v17 = vcombine.high %v9819_v15, %v9819_v15 }
 0x1e5   :  { %6924 = vst.sshfl [vmem:[#allocation2 + $0x2] sm:$0x5 pattern:$0x73625140] %v928_v27  ;;  %1591 = vmatpush1.bf16.msra.mxu1 %v9610_v58  ;;  %v10002_v27 = vld [vmem:[%s13090_s1 + $0x134] ss:$8 sps:$4 sm:$0xff]  }
 0x1e6   :  { %1767 = vmatpush1.bf16.msra.mxu0 %v9491_v43  ;;  %1601 = vmatprep.subr.bf16.mxu1 %v9914_v31 }
 0x1e7   :  { %1768 = vmatprep.subr.bf16.mxu0 %v9497_v63 }
 0x1e8   :  { %1593 = vmatmul.mubr.bf16.vlgmr.msra.gmra.mrb[12].mxu1 %v9907_v9 }
 0x1e9   :  { %1602 = vmatpush1.bf16.msra.mxu1 %v9924_v6  ;;  %1633 = vmatprep.mubr.bf16.mxu1 %v1554_v17  ;;  %v10009_v17 = vld [vmem:[%s13090_s1 + $0x130] ss:$8 sps:$4 sm:$0xff]  }
 0x1ea   :  { %1769 = vmatpush1.bf16.msra.mxu0 %v9507_v1  ;;  %1603 = vmatprep.subr.bf16.mxu1 %v9931_v8 }
 0x1eb   :  { %1770 = vmatprep.subr.bf16.mxu0 %v9514_v51 }
 0x1ed   :  { %1604 = vmatpush1.bf16.msra.mxu1 %v9082_v10 }
 0x1ee   :  { %1771 = vmatpush1.bf16.msra.mxu0 %v13567_v60  ;;  %1605 = vmatprep.subr.bf16.mxu1 %v9089_v12 }
 0x1ef   :  { %1772 = vmatprep.subr.bf16.mxu0 %v13568_v37 }
 0x1f1   :  { %1606 = vmatpush1.bf16.msra.mxu1 %v9096_v14 }
 0x1f2   :  { %1773 = vmatpush1.bf16.msra.mxu0 %v13569_v44  ;;  %1607 = vmatprep.subr.bf16.mxu1 %v9103_v16 }
 0x1f3   :  { %1774 = vmatprep.subr.bf16.mxu0 %v13570_v23 }
 0x1f5   :  { %1608 = vmatpush1.bf16.msra.mxu1 %v9110_v18 }
 0x1f6   :  { %1775 = vmatpush1.bf16.msra.mxu0 %v13571_v42  ;;  %1609 = vmatprep.subr.bf16.mxu1 %v9117_v20 }
 0x1f7   :  { %1776 = vmatprep.subr.bf16.mxu0 %v9557_v36 }
 0x1f9   :  { %1610 = vmatpush1.bf16.msra.mxu1 %v9124_v22 }
 0x1fa   :  { %1777 = vmatpush1.bf16.msra.mxu0 %v9564_v38  ;;  %1611 = vmatprep.subr.bf16.mxu1 %v9131_v24 }
 0x1fb   :  { %1778 = vmatprep.subr.bf16.mxu0 %v9571_v40 }
 0x1fc   :  { %v1100_v10 = vpop.f32.mrb[4].mxu0 }
 0x1fd   :  { %v7360_v12 = vadd.f32 %v1100_v10, %v13572_v4  ;;  %v1102_v14 = vpop.f32.mrb[5].mxu0  ;;  %1612 = vmatpush1.bf16.msra.mxu1 %v9138_v26  ;;  %v10016_v10 = vld [vmem:[%s13090_s1 + $0x144] ss:$8 sps:$4 sm:$0xff]  }
 0x1fe   :  { %v7361_v16 = vadd.f32 %v1102_v14, %v13573_v2  ;;  %v1104_v18 = vpop.f32.mrb[6].mxu0  ;;  %1779 = vmatpush1.bf16.msra.mxu0 %v9578_v13  ;;  %1613 = vmatprep.subr.bf16.mxu1 %v9145_v28  ;;  %v13574_v14 = vld [vmem:[#allocation14_spill] sm:$0xff] }
 0x1ff   :  { %v1107_v20 = vmax.f32 %v7360_v12, 0.0  ;;  %v1105_v15 = vpop.f32.mrb[7].mxu0  ;;  %1780 = vmatprep.subr.bf16.mxu0 %v9585_v29  ;;  %v10023_v12 = vld [vmem:[%s13090_s1 + $0x140] ss:$8 sps:$4 sm:$0xff]   ;;  %v13575_v18 = vld [vmem:[#allocation15_spill] sm:$0xff] }
 0x200   :  { %v1108_v22 = vmax.f32 %v7361_v16, 0.0  ;;  %v10030_v16 = vld [vmem:[%s13090_s1 + $0x154] ss:$8 sps:$4 sm:$0xff]   ;;  %v13577_v15 = vld [vmem:[#allocation17_spill] sm:$0xff] }
 0x201   :  { %1614 = vmatpush1.bf16.msra.mxu1 %v9152_v30 }
 0x202   :  { %v6925_v24 = vpack.c.bf16 %v1108_v22, %v1107_v20  ;;  %1781 = vmatpush1.bf16.msra.mxu0 %v9592_v33  ;;  %1615 = vmatprep.subr.bf16.mxu1 %v9159_v32  ;;  %v13576_v20 = vld [vmem:[#allocation16_spill] sm:$0xff]  ;;  %v13578_v22 = vld [vmem:[#allocation18_spill] sm:$0xff] }
 0x203   :  { %1782 = vmatprep.subr.bf16.mxu0 %v9599_v46 }
 0x204   :  { %v1120_v45 = vrot.slane %v6925_v24, %v8769_v49  ;;  %v1553_v24 = vcombine.high %v9907_v9, %v9907_v9  ;;  %v13585_v9 = vld [vmem:[#allocation46_spill] sm:$0xff] }
 0x205   :  { %1616 = vmatpush1.bf16.msra.mxu1 %v9170_v39 }
 0x206   :  { %6926 = vst.sshfl [vmem:[#allocation2 + $0x4] sm:$0x5 pattern:$0x73625140] %v1120_v45  ;;  %1783 = vmatpush1.bf16.msra.mxu0 %v9610_v58  ;;  %1617 = vmatprep.subr.bf16.mxu1 %v9177_v41 }
 0x207   :  { %1793 = vmatprep.subr.bf16.mxu0 %v9914_v31 }
 0x209   :  { %1785 = vmatmul.mubr.bf16.vlgmr.msra.gmra.mrb[12].mxu0 %v9964_v25  ;;  %1618 = vmatpush1.bf16.msra.mxu1 %v9187_v47 }
 0x20a   :  { %1794 = vmatpush1.bf16.msra.mxu0 %v9924_v6  ;;  %1619 = vmatprep.subr.bf16.mxu1 %v9194_v50 }
 0x20b   :  { %1795 = vmatprep.subr.bf16.mxu0 %v9931_v8  ;;  %1825 = vmatprep.mubr.bf16.mxu0 %v1746_v21 }
 0x20d   :  { %1620 = vmatpush1.bf16.msra.mxu1 %v9201_v53 }
 0x20e   :  { %1796 = vmatpush1.bf16.msra.mxu0 %v9981_v35  ;;  %1621 = vmatprep.subr.bf16.mxu1 %v9208_v56 }
 0x20f   :  { %1797 = vmatprep.subr.bf16.mxu0 %v9988_v19 }
 0x211   :  { %1622 = vmatpush1.bf16.msra.mxu1 %v9215_v59 }
 0x212   :  { %1798 = vmatpush1.bf16.msra.mxu0 %v9995_v55  ;;  %1623 = vmatprep.subr.bf16.mxu1 %v9222_v62 }
 0x213   :  { %1799 = vmatprep.subr.bf16.mxu0 %v10002_v27 }
 0x215   :  { %1624 = vmatpush1.bf16.msra.mxu1 %v9229_v3 }
 0x216   :  { %1800 = vmatpush1.bf16.msra.mxu0 %v10009_v17  ;;  %1625 = vmatprep.subr.bf16.mxu1 %v9236_v7 }
 0x217   :  { %1801 = vmatprep.subr.bf16.mxu0 %v10016_v10 }
 0x219   :  { %1626 = vmatpush1.bf16.msra.mxu1 %v9243_v11 }
 0x21a   :  { %1802 = vmatpush1.bf16.msra.mxu0 %v10023_v12  ;;  %1627 = vmatprep.subr.bf16.mxu1 %v13574_v14 }
 0x21b   :  { %1803 = vmatprep.subr.bf16.mxu0 %v10030_v16 }
 0x21d   :  { %1628 = vmatpush1.bf16.msra.mxu1 %v13575_v18 }
 0x21e   :  { %1804 = vmatpush1.bf16.msra.mxu0 %v9138_v26  ;;  %1629 = vmatprep.subr.bf16.mxu1 %v13576_v20  ;;  %v13579_v26 = vld [vmem:[#allocation20_spill] sm:$0xff] }
 0x21f   :  { %1805 = vmatprep.subr.bf16.mxu0 %v9145_v28  ;;  %v13580_v28 = vld [vmem:[#allocation23_spill] sm:$0xff] }
 0x221   :  { %1630 = vmatpush1.bf16.msra.mxu1 %v13577_v15 }
 0x222   :  { %1806 = vmatpush1.bf16.msra.mxu0 %v9152_v30  ;;  %1631 = vmatprep.subr.bf16.mxu1 %v13578_v22  ;;  %v13581_v30 = vmov 0  }
 0x223   :  { %1807 = vmatprep.subr.bf16.mxu0 %v9159_v32  ;;  %v13582_v32 = vld [vmem:[#allocation25_spill] sm:$0xff] }
 0x225   :  { %1632 = vmatpush1.bf16.msra.mxu1 %v9339_v5 }
 0x226   :  { %1808 = vmatpush1.bf16.msra.mxu0 %v9170_v39  ;;  %1642 = vmatprep.subr.bf16.mxu1 %v13579_v26  ;;  %v13583_v39 = vld [vmem:[#allocation44_spill] sm:$0xff] }
 0x227   :  { %1809 = vmatprep.subr.bf16.mxu0 %v9177_v41  ;;  %v13584_v41 = vld [vmem:[#allocation45_spill] sm:$0xff] }
 0x228   :  { %1634 = vmatmul.mubr.bf16.vlgmr.msra.gmra.mrb[12].mxu1 %v1553_v24 }
 0x229   :  { %1643 = vmatpush1.bf16.msra.mxu1 %v9360_v0  ;;  %1674 = vmatprep.mubr.bf16.mxu1 %v13581_v30 }
 0x22a   :  { %1810 = vmatpush1.bf16.msra.mxu0 %v9187_v47  ;;  %1644 = vmatprep.subr.bf16.mxu1 %v13580_v28  ;;  %v13586_v47 = vld [vmem:[#allocation47_spill] sm:$0xff] }
 0x22b   :  { %1811 = vmatprep.subr.bf16.mxu0 %v9194_v50  ;;  %v13587_v50 = vld [vmem:[#allocation48_spill] sm:$0xff] }
 0x22d   :  { %1645 = vmatpush1.bf16.msra.mxu1 %v13582_v32 }
 0x22e   :  { %1812 = vmatpush1.bf16.msra.mxu0 %v9201_v53  ;;  %1646 = vmatprep.subr.bf16.mxu1 %v13583_v39  ;;  %v13588_v53 = vld [vmem:[#allocation49_spill] sm:$0xff] }
 0x22f   :  { %1813 = vmatprep.subr.bf16.mxu0 %v9208_v56  ;;  %v13589_v56 = vld [vmem:[#allocation50_spill] sm:$0xff] }
 0x231   :  { %1647 = vmatpush1.bf16.msra.mxu1 %v13584_v41 }
 0x232   :  { %1814 = vmatpush1.bf16.msra.mxu0 %v9215_v59  ;;  %1648 = vmatprep.subr.bf16.mxu1 %v13585_v9  ;;  %v13590_v59 = vld [vmem:[#allocation19_spill] sm:$0xff] }
 0x233   :  { %1815 = vmatprep.subr.bf16.mxu0 %v9222_v62  ;;  %v1516_v45 = vcombine.high %v13590_v59, %v13590_v59  ;;  %v10073_v62 = vld [vmem:[%s13089_s0 + $0xe] sm:$0x1f] }
 0x234   :  { %13591 = vst [vmem:[#allocation34_spill] sm:$0xff] %v10073_v62  ;;  %v13595_v59 = vld [vmem:[#allocation54_spill] sm:$0xff] }
 0x235   :  { %1649 = vmatpush1.bf16.msra.mxu1 %v13586_v47  ;;  %v1530_v21 = vrot.slane %v1516_v45, %v8769_v49  ;;  %v13596_v45 = vld [vmem:[#allocation21_spill] sm:$0xff] }
 0x236   :  { %1816 = vmatpush1.bf16.msra.mxu0 %v9229_v3  ;;  %1650 = vmatprep.subr.bf16.mxu1 %v13587_v50  ;;  %v13592_v3 = vld [vmem:[#allocation51_spill] sm:$0xff] }
 0x237   :  { %1817 = vmatprep.subr.bf16.mxu0 %v9236_v7  ;;  %v13593_v7 = vld [vmem:[#allocation52_spill] sm:$0xff]  ;;  %v1545_v24 = vrot.slane %v1530_v21, %v8769_v49  ;;  %v13603_v21 = vld [vmem:[#allocation30_spill] sm:$0xff] }
 0x239   :  { %1651 = vmatpush1.bf16.msra.mxu1 %v13588_v53 }
 0x23a   :  { %1818 = vmatpush1.bf16.msra.mxu0 %v9243_v11  ;;  %1652 = vmatprep.subr.bf16.mxu1 %v13589_v56  ;;  %v10081_v11 = vrot.slane %v10073_v62, %v8769_v49  ;;  %v10127_v62 = vld [vmem:[%s13089_s0 + $0x10] sm:$0x1f] }
 0x23b   :  { %1819 = vmatprep.subr.bf16.mxu0 %v13574_v14  ;;  %v13594_v14 = vld [vmem:[#allocation53_spill] sm:$0xff] }
 0x23d   :  { %1653 = vmatpush1.bf16.msra.mxu1 %v13592_v3 }
 0x23e   :  { %1820 = vmatpush1.bf16.msra.mxu0 %v13575_v18  ;;  %1654 = vmatprep.subr.bf16.mxu1 %v13593_v7  ;;  %v1915_v18 = vcombine.high %v10081_v11, %v10081_v11 }
 0x23f   :  { %1821 = vmatprep.subr.bf16.mxu0 %v13576_v20  ;;  %v1745_v20 = vcombine.high %v9964_v25, %v9964_v25  ;;  %v13598_v25 = vld [vmem:[#allocation24_spill] sm:$0xff] }
 0x241   :  { %1655 = vmatpush1.bf16.msra.mxu1 %v9793_v57 }
 0x242   :  { %1822 = vmatpush1.bf16.msra.mxu0 %v13577_v15  ;;  %1656 = vmatprep.subr.bf16.mxu1 %v13594_v14  ;;  %v10098_v15 = vrot.slane %v1915_v18, %v8769_v49  ;;  %v13605_v18 = vld [vmem:[#allocation32_spill] sm:$0xff] }
 0x243   :  { %1823 = vmatprep.subr.bf16.mxu0 %v13578_v22  ;;  %v13597_v22 = vld [vmem:[#allocation22_spill] sm:$0xff] }
 0x245   :  { %1657 = vmatpush1.bf16.msra.mxu1 %v13595_v59 }
 0x246   :  { %1824 = vmatpush1.bf16.msra.mxu0 %v9339_v5  ;;  %1944 = vmatprep.subr.bf16.mxu1 %v13596_v45  ;;  %v13599_v5 = vld [vmem:[#allocation26_spill] sm:$0xff] }
 0x247   :  { %1834 = vmatprep.subr.bf16.mxu0 %v13579_v26  ;;  %v13600_v26 = vld [vmem:[#allocation27_spill] sm:$0xff] }
 0x248   :  { %1675 = vmatmul.mubr.bf16.vlgmr.msra.gmra.mrb[12].mxu1 %v1545_v24  ;;  %v13606_v24 = vld [vmem:[#allocation33_spill] sm:$0xff] }
 0x249   :  { %1826 = vmatmul.mubr.bf16.vlgmr.msra.gmra.mrb[12].mxu0 %v1745_v20  ;;  %1945 = vmatpush1.bf16.msra.mxu1 %v13597_v22  ;;  %v1708_v20 = vcombine.high %v13606_v24, %v13606_v24 }
 0x24a   :  { %1835 = vmatpush1.bf16.msra.mxu0 %v9360_v0  ;;  %1946 = vmatprep.subr.bf16.mxu1 %v13598_v25  ;;  %v13601_v0 = vld [vmem:[#allocation28_spill] sm:$0xff] }
 0x24b   :  { %1836 = vmatprep.subr.bf16.mxu0 %v13580_v28  ;;  %1866 = vmatprep.mubr.bf16.mxu0 %v13581_v30  ;;  %v13602_v28 = vld [vmem:[#allocation29_spill] sm:$0xff] }
 0x24c   :  { %1976 = vmatprep.mubr.bf16.mxu1 %v10098_v15 }
 0x24d   :  { %1947 = vmatpush1.bf16.msra.mxu1 %v13599_v5 }
 0x24e   :  { %1837 = vmatpush1.bf16.msra.mxu0 %v13582_v32  ;;  %1948 = vmatprep.subr.bf16.mxu1 %v13600_v26  ;;  %v13604_v32 = vld [vmem:[#allocation31_spill] sm:$0xff] }
 0x24f   :  { %1838 = vmatprep.subr.bf16.mxu0 %v13583_v39 }
 0x251   :  { %1949 = vmatpush1.bf16.msra.mxu1 %v13601_v0 }
 0x252   :  { %1839 = vmatpush1.bf16.msra.mxu0 %v13584_v41  ;;  %1950 = vmatprep.subr.bf16.mxu1 %v13602_v28 }
 0x253   :  { %1840 = vmatprep.subr.bf16.mxu0 %v13585_v9 }
 0x255   :  { %1951 = vmatpush1.bf16.msra.mxu1 %v13603_v21 }
 0x256   :  { %1841 = vmatpush1.bf16.msra.mxu0 %v13586_v47  ;;  %1952 = vmatprep.subr.bf16.mxu1 %v13604_v32 }
 0x257   :  { %1842 = vmatprep.subr.bf16.mxu0 %v13587_v50 }
 0x259   :  { %1953 = vmatpush1.bf16.msra.mxu1 %v13605_v18 }
 0x25a   :  { %1843 = vmatpush1.bf16.msra.mxu0 %v13588_v53  ;;  %1954 = vmatprep.subr.bf16.mxu1 %v13562_v61  ;;  %v1722_v53 = vrot.slane %v1708_v20, %v8769_v49 }
 0x25b   :  { %1844 = vmatprep.subr.bf16.mxu0 %v13589_v56  ;;  %v10135_v56 = vrot.slane %v10127_v62, %v8769_v49 }
 0x25d   :  { %1955 = vmatpush1.bf16.msra.mxu1 %v9455_v54  ;;  %v2107_v24 = vcombine.high %v10135_v56, %v10135_v56 }
 0x25e   :  { %1845 = vmatpush1.bf16.msra.mxu0 %v13592_v3  ;;  %1956 = vmatprep.subr.bf16.mxu1 %v13565_v48 }
 0x25f   :  { %1846 = vmatprep.subr.bf16.mxu0 %v13593_v7  ;;  %v1737_v7 = vrot.slane %v1722_v53, %v8769_v49  ;;  %v10150_v20 = vrot.slane %v2107_v24, %v8769_v49  ;;  %v10319_v24 = vld [vmem:[%s13090_s1 + $0x1c4] ss:$8 sps:$4 sm:$0xff]  }
 0x261   :  { %1957 = vmatpush1.bf16.msra.mxu1 %v9474_v52 }
 0x262   :  { %1847 = vmatpush1.bf16.msra.mxu0 %v9793_v57  ;;  %1958 = vmatprep.subr.bf16.mxu1 %v13566_v34 }
 0x263   :  { %1848 = vmatprep.subr.bf16.mxu0 %v13594_v14 }
 0x265   :  { %1959 = vmatpush1.bf16.msra.mxu1 %v9491_v43 }
 0x266   :  { %1849 = vmatpush1.bf16.msra.mxu0 %v13595_v59  ;;  %1960 = vmatprep.subr.bf16.mxu1 %v9497_v63 }
 0x267   :  { %2136 = vmatprep.subr.bf16.mxu0 %v13596_v45 }
 0x269   :  { %1867 = vmatmul.mubr.bf16.vlgmr.msra.gmra.mrb[12].mxu0 %v1737_v7  ;;  %1961 = vmatpush1.bf16.msra.mxu1 %v9507_v1 }
 0x26a   :  { %2137 = vmatpush1.bf16.msra.mxu0 %v13597_v22  ;;  %1962 = vmatprep.subr.bf16.mxu1 %v9514_v51 }
 0x26b   :  { %2138 = vmatprep.subr.bf16.mxu0 %v13598_v25  ;;  %2168 = vmatprep.mubr.bf16.mxu0 %v10150_v20 }
 0x26d   :  { %1963 = vmatpush1.bf16.msra.mxu1 %v13567_v60 }
 0x26e   :  { %2139 = vmatpush1.bf16.msra.mxu0 %v13599_v5  ;;  %1964 = vmatprep.subr.bf16.mxu1 %v13568_v37 }
 0x26f   :  { %2140 = vmatprep.subr.bf16.mxu0 %v13600_v26 }
 0x271   :  { %1965 = vmatpush1.bf16.msra.mxu1 %v13569_v44 }
 0x272   :  { %2141 = vmatpush1.bf16.msra.mxu0 %v13601_v0  ;;  %1966 = vmatprep.subr.bf16.mxu1 %v13570_v23 }
 0x273   :  { %2142 = vmatprep.subr.bf16.mxu0 %v13602_v28 }
 0x275   :  { %1967 = vmatpush1.bf16.msra.mxu1 %v13571_v42 }
 0x276   :  { %2143 = vmatpush1.bf16.msra.mxu0 %v13603_v21  ;;  %1968 = vmatprep.subr.bf16.mxu1 %v9557_v36  ;;  %v10298_v21 = vld [vmem:[%s13090_s1 + $0x1a0] ss:$8 sps:$4 sm:$0xff]  }
 0x277   :  { %2144 = vmatprep.subr.bf16.mxu0 %v13604_v32  ;;  %v10305_v32 = vld [vmem:[%s13090_s1 + $0x1b4] ss:$8 sps:$4 sm:$0xff]  }
 0x279   :  { %1969 = vmatpush1.bf16.msra.mxu1 %v9564_v38 }
 0x27a   :  { %2145 = vmatpush1.bf16.msra.mxu0 %v13605_v18  ;;  %1970 = vmatprep.subr.bf16.mxu1 %v9571_v40  ;;  %v10312_v18 = vld [vmem:[%s13090_s1 + $0x1b0] ss:$8 sps:$4 sm:$0xff]  }
 0x27b   :  { %2146 = vmatprep.subr.bf16.mxu0 %v13562_v61  ;;  %v1292_v53 = vpop.f32.mrb[8].mxu1 }
 0x27c   :  { %v7362_v7 = vadd.f32 %v1292_v53, %v13572_v4  ;;  %v1294_v45 = vpop.f32.mrb[9].mxu1  ;;  %v10333_v53 = vld [vmem:[%s13090_s1 + $0x1d4] ss:$8 sps:$4 sm:$0xff]  }
 0x27d   :  { %v7363_v22 = vadd.f32 %v1294_v45, %v13573_v2  ;;  %v1296_v25 = vpop.f32.mrb[10].mxu1  ;;  %1971 = vmatpush1.bf16.msra.mxu1 %v9578_v13  ;;  %v10347_v45 = vld [vmem:[%s13090_s1 + $0x1e4] ss:$8 sps:$4 sm:$0xff]  }
 0x27e   :  { %2147 = vmatpush1.bf16.msra.mxu0 %v9455_v54  ;;  %v1299_v5 = vmax.f32 %v7362_v7, 0.0  ;;  %v1297_v26 = vpop.f32.mrb[11].mxu1  ;;  %1972 = vmatprep.subr.bf16.mxu1 %v9585_v29  ;;  %v10186_v54 = vrot.slane %v10081_v11, %v8769_v49  ;;  %v10284_v11 = vld [vmem:[%s13090_s1 + $0x190] ss:$8 sps:$4 sm:$0xff]   ;;  %v10361_v25 = vld [vmem:[%s13090_s1 + $0x1f4] ss:$8 sps:$4 sm:$0xff]  }
 0x27f   :  { %2148 = vmatprep.subr.bf16.mxu0 %v13565_v48  ;;  %v1300_v0 = vmax.f32 %v7363_v22, 0.0  ;;  %v10220_v48 = vld [vmem:[%s13090_s1 + $0x150] ss:$8 sps:$4 sm:$0xff]   ;;  %v10354_v22 = vld [vmem:[%s13090_s1 + $0x1e0] ss:$8 sps:$4 sm:$0xff]   ;;  %13608 = vst [vmem:[#allocation36_spill] sm:$0xff] %v10361_v25 }
 0x280   :  { %v10340_v7 = vld [vmem:[%s13090_s1 + $0x1d0] ss:$8 sps:$4 sm:$0xff]   ;;  %13607 = vst [vmem:[#allocation35_spill] sm:$0xff] %v10354_v22 }
 0x281   :  { %v6927_v28 = vpack.c.bf16 %v1300_v0, %v1299_v5  ;;  %1973 = vmatpush1.bf16.msra.mxu1 %v9592_v33  ;;  %v1937_v5 = vcombine.high %v10186_v54, %v10186_v54  ;;  %v10370_v26 = vld [vmem:[%s13090_s1 + $0x1f0] ss:$8 sps:$4 sm:$0xff]   ;;  %v10377_v0 = vld [vmem:[%s13090_s1 + $0x204] ss:$8 sps:$4 sm:$0xff]  }
 0x282   :  { %2149 = vmatpush1.bf16.msra.mxu0 %v9474_v52  ;;  %1974 = vmatprep.subr.bf16.mxu1 %v9599_v46  ;;  %v1938_v52 = vcombine.high %v10098_v15, %v10098_v15  ;;  %v10291_v15 = vld [vmem:[%s13090_s1 + $0x1a4] ss:$8 sps:$4 sm:$0xff]   ;;  %13609 = vst [vmem:[#allocation37_spill] sm:$0xff] %v10377_v0 }
 0x283   :  { %2150 = vmatprep.subr.bf16.mxu0 %v13566_v34  ;;  %v1312_v61 = vrot.slane %v6927_v28, %v8769_v49  ;;  %v10384_v28 = vld [vmem:[%s13090_s1 + $0x200] ss:$8 sps:$4 sm:$0xff]  }
 0x284   :  { %13610 = vst [vmem:[#allocation38_spill] sm:$0xff] %v10384_v28 }
 0x285   :  { %6928 = vst.sshfl [vmem:[#allocation2 + $0x6] sm:$0x5 pattern:$0x73625140] %v1312_v61  ;;  %1975 = vmatpush1.bf16.msra.mxu1 %v9610_v58  ;;  %v10391_v61 = vld [vmem:[%s13090_s1 + $0x214] ss:$8 sps:$4 sm:$0xff]  }
 0x286   :  { %2151 = vmatpush1.bf16.msra.mxu0 %v9491_v43  ;;  %1985 = vmatprep.subr.bf16.mxu1 %v9914_v31  ;;  %13611 = vst [vmem:[#allocation39_spill] sm:$0xff] %v10391_v61 }
 0x287   :  { %2152 = vmatprep.subr.bf16.mxu0 %v9497_v63 }
 0x288   :  { %1977 = vmatmul.mubr.bf16.vlgmr.msra.gmra.mrb[16].mxu1 %v10186_v54  ;;  %v10399_v54 = vld [vmem:[%s13090_s1 + $0x210] ss:$8 sps:$4 sm:$0xff]  }
 0x289   :  { %1986 = vmatpush1.bf16.msra.mxu1 %v9924_v6  ;;  %2017 = vmatprep.mubr.bf16.mxu1 %v1938_v52  ;;  %13612 = vst [vmem:[#allocation40_spill] sm:$0xff] %v10399_v54  ;;  %v13613_v52 = vld [vmem:[#allocation49_spill] sm:$0xff] }
 0x28a   :  { %2153 = vmatpush1.bf16.msra.mxu0 %v9507_v1  ;;  %1987 = vmatprep.subr.bf16.mxu1 %v9931_v8 }
 0x28b   :  { %2154 = vmatprep.subr.bf16.mxu0 %v9514_v51 }
 0x28d   :  { %1988 = vmatpush1.bf16.msra.mxu1 %v9981_v35 }
 0x28e   :  { %2155 = vmatpush1.bf16.msra.mxu0 %v13567_v60  ;;  %1989 = vmatprep.subr.bf16.mxu1 %v9988_v19  ;;  %v10234_v60 = vld [vmem:[%s13090_s1 + $0x160] ss:$8 sps:$4 sm:$0xff]  }
 0x28f   :  { %2156 = vmatprep.subr.bf16.mxu0 %v13568_v37 }
 0x291   :  { %1990 = vmatpush1.bf16.msra.mxu1 %v9995_v55 }
 0x292   :  { %2157 = vmatpush1.bf16.msra.mxu0 %v13569_v44  ;;  %1991 = vmatprep.subr.bf16.mxu1 %v10002_v27  ;;  %v10248_v44 = vrot.slane %v10135_v56, %v8769_v49  ;;  %v10270_v56 = vld [vmem:[%s13090_s1 + $0x180] ss:$8 sps:$4 sm:$0xff]  }
 0x293   :  { %2158 = vmatprep.subr.bf16.mxu0 %v13570_v23  ;;  %v2130_v23 = vcombine.high %v10150_v20, %v10150_v20  ;;  %v10326_v20 = vld [vmem:[%s13090_s1 + $0x1c0] ss:$8 sps:$4 sm:$0xff]  }
 0x295   :  { %1992 = vmatpush1.bf16.msra.mxu1 %v10009_v17 }
 0x296   :  { %2159 = vmatpush1.bf16.msra.mxu0 %v13571_v42  ;;  %1993 = vmatprep.subr.bf16.mxu1 %v10016_v10 }
 0x297   :  { %2160 = vmatprep.subr.bf16.mxu0 %v9557_v36 }
 0x299   :  { %1994 = vmatpush1.bf16.msra.mxu1 %v10023_v12 }
 0x29a   :  { %2161 = vmatpush1.bf16.msra.mxu0 %v9564_v38  ;;  %1995 = vmatprep.subr.bf16.mxu1 %v10030_v16 }
 0x29b   :  { %2162 = vmatprep.subr.bf16.mxu0 %v9571_v40  ;;  %v10227_v40 = vld [vmem:[%s13090_s1 + $0x164] ss:$8 sps:$4 sm:$0xff]  }
 0x29c   :  { %v1484_v43 = vpop.f32.mrb[8].mxu0 }
 0x29d   :  { %v7364_v51 = vadd.f32 %v1484_v43, %v13572_v4  ;;  %v1486_v63 = vpop.f32.mrb[9].mxu0  ;;  %1996 = vmatpush1.bf16.msra.mxu1 %v10220_v48  ;;  %v13614_v43 = vld [vmem:[#allocation50_spill] sm:$0xff] }
 0x29e   :  { %v7365_v1 = vadd.f32 %v1486_v63, %v13573_v2  ;;  %v1488_v37 = vpop.f32.mrb[10].mxu0  ;;  %2163 = vmatpush1.bf16.msra.mxu0 %v9578_v13  ;;  %1997 = vmatprep.subr.bf16.mxu1 %v10227_v40  ;;  %v10241_v13 = vld [vmem:[%s13090_s1 + $0x174] ss:$8 sps:$4 sm:$0xff]  }
 0x29f   :  { %v1491_v36 = vmax.f32 %v7364_v51, 0.0  ;;  %v1489_v38 = vpop.f32.mrb[11].mxu0  ;;  %2164 = vmatprep.subr.bf16.mxu0 %v9585_v29  ;;  %v13615_v51 = vld [vmem:[#allocation34_spill] sm:$0xff]  ;;  %v13617_v37 = vld [vmem:[#allocation52_spill] sm:$0xff] }
 0x2a0   :  { %v1492_v42 = vmax.f32 %v7365_v1, 0.0  ;;  %v1900_v63 = vcombine.high %v13615_v51, %v13615_v51  ;;  %v10422_v1 = vld [vmem:[%s13089_s0 + $0x12] sm:$0x1f] }
 0x2a1   :  { %1998 = vmatpush1.bf16.msra.mxu1 %v10234_v60  ;;  %13616 = vst [vmem:[#allocation41_spill] sm:$0xff] %v10422_v1  ;;  %v10465_v51 = vld [vmem:[%s13090_s1 + $0x14] ss:$8 sps:$4 sm:$0xff]  }
 0x2a2   :  { %v6929_v34 = vpack.c.bf16 %v1492_v42, %v1491_v36  ;;  %2165 = vmatpush1.bf16.msra.mxu0 %v9592_v33  ;;  %1999 = vmatprep.subr.bf16.mxu1 %v10241_v13  ;;  %v10253_v33 = vld [vmem:[%s13090_s1 + $0x170] ss:$8 sps:$4 sm:$0xff]   ;;  %v10430_v36 = vrot.slane %v10422_v1, %v8769_v49  ;;  %v1914_v38 = vrot.slane %v1900_v63, %v8769_v49  ;;  %v10556_v1 = vld [vmem:[%s13090_s1 + $0x60] ss:$8 sps:$4 sm:$0xff]  }
 0x2a3   :  { %2166 = vmatprep.subr.bf16.mxu0 %v9599_v46  ;;  %v10260_v46 = vld [vmem:[%s13090_s1 + $0x184] ss:$8 sps:$4 sm:$0xff]   ;;  %13620 = vst [vmem:[#allocation14_spill] sm:$0xff] %v10465_v51  ;;  %v10474_v63 = vld [vmem:[%s13090_s1 + $0x10] ss:$8 sps:$4 sm:$0xff]  }
 0x2a4   :  { %v1504_v29 = vrot.slane %v6929_v34, %v8769_v49  ;;  %v2299_v42 = vcombine.high %v10430_v36, %v10430_v36  ;;  %v1929_v34 = vrot.slane %v1914_v38, %v8769_v49  ;;  %13621 = vst [vmem:[#allocation15_spill] sm:$0xff] %v10474_v63  ;;  %v10481_v38 = vld [vmem:[%s13090_s1 + $0x24] ss:$8 sps:$4 sm:$0xff]  }
 0x2a5   :  { %2000 = vmatpush1.bf16.msra.mxu1 %v10253_v33  ;;  %13622 = vst [vmem:[#allocation16_spill] sm:$0xff] %v10481_v38 }
 0x2a6   :  { %6930 = vst.sshfl [vmem:[#allocation2 + $0x8] sm:$0x5 pattern:$0x73625140] %v1504_v29  ;;  %2167 = vmatpush1.bf16.msra.mxu0 %v9610_v58  ;;  %2001 = vmatprep.subr.bf16.mxu1 %v10260_v46  ;;  %v10277_v58 = vld [vmem:[%s13090_s1 + $0x194] ss:$8 sps:$4 sm:$0xff]   ;;  %v2129_v29 = vcombine.high %v10248_v44, %v10248_v44 }
 0x2a7   :  { %2177 = vmatprep.subr.bf16.mxu0 %v9914_v31 }
 0x2a9   :  { %2169 = vmatmul.mubr.bf16.vlgmr.msra.gmra.mrb[16].mxu0 %v10248_v44  ;;  %2002 = vmatpush1.bf16.msra.mxu1 %v10270_v56  ;;  %v10458_v44 = vld [vmem:[%s13090_s1] ss:$8 sps:$4 sm:$0xff]  }
 0x2aa   :  { %2178 = vmatpush1.bf16.msra.mxu0 %v9924_v6  ;;  %2003 = vmatprep.subr.bf16.mxu1 %v10277_v58  ;;  %13619 = vst [vmem:[#allocation43_spill] sm:$0xff] %v10458_v44 }
 0x2ab   :  { %2179 = vmatprep.subr.bf16.mxu0 %v9931_v8  ;;  %2209 = vmatprep.mubr.bf16.mxu0 %v2130_v23  ;;  %v10448_v23 = vld [vmem:[%s13090_s1 + $0x4] ss:$8 sps:$4 sm:$0xff]  }
 0x2ac   :  { %13618 = vst [vmem:[#allocation42_spill] sm:$0xff] %v10448_v23 }
 0x2ad   :  { %2004 = vmatpush1.bf16.msra.mxu1 %v10284_v11 }
 0x2ae   :  { %2180 = vmatpush1.bf16.msra.mxu0 %v9981_v35  ;;  %2005 = vmatprep.subr.bf16.mxu1 %v10291_v15 }
 0x2af   :  { %2181 = vmatprep.subr.bf16.mxu0 %v9988_v19 }
 0x2b1   :  { %2006 = vmatpush1.bf16.msra.mxu1 %v10298_v21 }
 0x2b2   :  { %2182 = vmatpush1.bf16.msra.mxu0 %v9995_v55  ;;  %2007 = vmatprep.subr.bf16.mxu1 %v10305_v32 }
 0x2b3   :  { %2183 = vmatprep.subr.bf16.mxu0 %v10002_v27 }
 0x2b5   :  { %2008 = vmatpush1.bf16.msra.mxu1 %v10312_v18 }
 0x2b6   :  { %2184 = vmatpush1.bf16.msra.mxu0 %v10009_v17  ;;  %2009 = vmatprep.subr.bf16.mxu1 %v10319_v24 }
 0x2b7   :  { %2185 = vmatprep.subr.bf16.mxu0 %v10016_v10 }
 0x2b9   :  { %2010 = vmatpush1.bf16.msra.mxu1 %v10326_v20 }
 0x2ba   :  { %2186 = vmatpush1.bf16.msra.mxu0 %v10023_v12  ;;  %2011 = vmatprep.subr.bf16.mxu1 %v10333_v53 }
 0x2bb   :  { %2187 = vmatprep.subr.bf16.mxu0 %v10030_v16 }
 0x2bd   :  { %2012 = vmatpush1.bf16.msra.mxu1 %v10340_v7 }
 0x2be   :  { %2188 = vmatpush1.bf16.msra.mxu0 %v10220_v48  ;;  %2013 = vmatprep.subr.bf16.mxu1 %v10347_v45 }
 0x2bf   :  { %2189 = vmatprep.subr.bf16.mxu0 %v10227_v40 }
 0x2c1   :  { %2014 = vmatpush1.bf16.msra.mxu1 %v10354_v22 }
 0x2c2   :  { %2190 = vmatpush1.bf16.msra.mxu0 %v10234_v60  ;;  %2015 = vmatprep.subr.bf16.mxu1 %v10361_v25 }
 0x2c3   :  { %2191 = vmatprep.subr.bf16.mxu0 %v10241_v13 }
 0x2c5   :  { %2016 = vmatpush1.bf16.msra.mxu1 %v10370_v26 }
 0x2c6   :  { %2192 = vmatpush1.bf16.msra.mxu0 %v10253_v33  ;;  %2026 = vmatprep.subr.bf16.mxu1 %v10377_v0 }
 0x2c7   :  { %2193 = vmatprep.subr.bf16.mxu0 %v10260_v46 }
 0x2c8   :  { %2018 = vmatmul.mubr.bf16.vlgmr.msra.gmra.mrb[16].mxu1 %v1937_v5  ;;  %v10452_v5 = vrot.slane %v2299_v42, %v8769_v49  ;;  %v10488_v42 = vld [vmem:[%s13090_s1 + $0x20] ss:$8 sps:$4 sm:$0xff]  }
 0x2c9   :  { %2027 = vmatpush1.bf16.msra.mxu1 %v10384_v28  ;;  %2058 = vmatprep.mubr.bf16.mxu1 %v13581_v30  ;;  %13623 = vst [vmem:[#allocation17_spill] sm:$0xff] %v10488_v42 }
 0x2ca   :  { %2194 = vmatpush1.bf16.msra.mxu0 %v10270_v56  ;;  %2028 = vmatprep.subr.bf16.mxu1 %v10391_v61 }
 0x2cb   :  { %2195 = vmatprep.subr.bf16.mxu0 %v10277_v58 }
 0x2cd   :  { %2029 = vmatpush1.bf16.msra.mxu1 %v10399_v54 }
 0x2ce   :  { %2196 = vmatpush1.bf16.msra.mxu0 %v10284_v11  ;;  %2030 = vmatprep.subr.bf16.mxu1 %v13583_v39 }
 0x2cf   :  { %2197 = vmatprep.subr.bf16.mxu0 %v10291_v15 }
 0x2d1   :  { %2031 = vmatpush1.bf16.msra.mxu1 %v13584_v41 }
 0x2d2   :  { %2198 = vmatpush1.bf16.msra.mxu0 %v10298_v21  ;;  %2032 = vmatprep.subr.bf16.mxu1 %v13585_v9 }
 0x2d3   :  { %2199 = vmatprep.subr.bf16.mxu0 %v10305_v32 }
 0x2d5   :  { %2033 = vmatpush1.bf16.msra.mxu1 %v13586_v47 }
 0x2d6   :  { %2200 = vmatpush1.bf16.msra.mxu0 %v10312_v18  ;;  %2034 = vmatprep.subr.bf16.mxu1 %v13587_v50 }
 0x2d7   :  { %2201 = vmatprep.subr.bf16.mxu0 %v10319_v24 }
 0x2d9   :  { %2035 = vmatpush1.bf16.msra.mxu1 %v13613_v52 }
 0x2da   :  { %2202 = vmatpush1.bf16.msra.mxu0 %v10326_v20  ;;  %2036 = vmatprep.subr.bf16.mxu1 %v13614_v43 }
 0x2db   :  { %2203 = vmatprep.subr.bf16.mxu0 %v10333_v53 }
 0x2dd   :  { %2037 = vmatpush1.bf16.msra.mxu1 %v13592_v3 }
 0x2de   :  { %2204 = vmatpush1.bf16.msra.mxu0 %v10340_v7  ;;  %2038 = vmatprep.subr.bf16.mxu1 %v13617_v37 }
 0x2df   :  { %2205 = vmatprep.subr.bf16.mxu0 %v10347_v45 }
 0x2e1   :  { %2039 = vmatpush1.bf16.msra.mxu1 %v9793_v57 }
 0x2e2   :  { %2206 = vmatpush1.bf16.msra.mxu0 %v10354_v22  ;;  %2040 = vmatprep.subr.bf16.mxu1 %v13594_v14 }
 0x2e3   :  { %2207 = vmatprep.subr.bf16.mxu0 %v10361_v25 }
 0x2e5   :  { %2041 = vmatpush1.bf16.msra.mxu1 %v13595_v59 }
 0x2e6   :  { %2208 = vmatpush1.bf16.msra.mxu0 %v10370_v26  ;;  %2328 = vmatprep.subr.bf16.mxu1 %v10448_v23 }
 0x2e7   :  { %2218 = vmatprep.subr.bf16.mxu0 %v10377_v0 }
 0x2e8   :  { %2059 = vmatmul.mubr.bf16.vlgmr.msra.gmra.mrb[16].mxu1 %v1929_v34  ;;  %v2092_v34 = vcombine.high %v10127_v62, %v10127_v62  ;;  %v10544_v62 = vld [vmem:[%s13090_s1 + $0x64] ss:$8 sps:$4 sm:$0xff]  }
 0x2e9   :  { %2210 = vmatmul.mubr.bf16.vlgmr.msra.gmra.mrb[16].mxu0 %v2129_v29  ;;  %2329 = vmatpush1.bf16.msra.mxu1 %v10458_v44 }
 0x2ea   :  { %2219 = vmatpush1.bf16.msra.mxu0 %v10384_v28  ;;  %2330 = vmatprep.subr.bf16.mxu1 %v10465_v51 }
 0x2eb   :  { %2220 = vmatprep.subr.bf16.mxu0 %v10391_v61  ;;  %2250 = vmatprep.mubr.bf16.mxu0 %v13581_v30 }
 0x2ec   :  { %2360 = vmatprep.mubr.bf16.mxu1 %v10452_v5 }
 0x2ed   :  { %2331 = vmatpush1.bf16.msra.mxu1 %v10474_v63 }
 0x2ee   :  { %2221 = vmatpush1.bf16.msra.mxu0 %v10399_v54  ;;  %2332 = vmatprep.subr.bf16.mxu1 %v10481_v38  ;;  %v10596_v54 = vld [vmem:[%s13090_s1 + $0x94] ss:$8 sps:$4 sm:$0xff]  }
 0x2ef   :  { %2222 = vmatprep.subr.bf16.mxu0 %v13583_v39  ;;  %v10495_v39 = vld [vmem:[%s13090_s1 + $0x34] ss:$8 sps:$4 sm:$0xff]   ;;  %13632 = vst [vmem:[#allocation48_spill] sm:$0xff] %v10596_v54 }
 0x2f0   :  { %13624 = vst [vmem:[#allocation18_spill] sm:$0xff] %v10495_v39 }
 0x2f1   :  { %2333 = vmatpush1.bf16.msra.mxu1 %v10488_v42 }
 0x2f2   :  { %2223 = vmatpush1.bf16.msra.mxu0 %v13584_v41  ;;  %2334 = vmatprep.subr.bf16.mxu1 %v10495_v39  ;;  %v10502_v41 = vld [vmem:[%s13090_s1 + $0x30] ss:$8 sps:$4 sm:$0xff]  }
 0x2f3   :  { %2224 = vmatprep.subr.bf16.mxu0 %v13585_v9  ;;  %13625 = vst [vmem:[#allocation20_spill] sm:$0xff] %v10502_v41  ;;  %v10509_v9 = vld [vmem:[%s13090_s1 + $0x44] ss:$8 sps:$4 sm:$0xff]  }
 0x2f4   :  { %13626 = vst [vmem:[#allocation23_spill] sm:$0xff] %v10509_v9 }
 0x2f5   :  { %2335 = vmatpush1.bf16.msra.mxu1 %v10502_v41 }
 0x2f6   :  { %2225 = vmatpush1.bf16.msra.mxu0 %v13586_v47  ;;  %2336 = vmatprep.subr.bf16.mxu1 %v10509_v9  ;;  %v10516_v47 = vld [vmem:[%s13090_s1 + $0x40] ss:$8 sps:$4 sm:$0xff]  }
 0x2f7   :  { %2226 = vmatprep.subr.bf16.mxu0 %v13587_v50  ;;  %13627 = vst [vmem:[#allocation25_spill] sm:$0xff] %v10516_v47  ;;  %v10523_v50 = vld [vmem:[%s13090_s1 + $0x54] ss:$8 sps:$4 sm:$0xff]  }
 0x2f8   :  { %13628 = vst [vmem:[#allocation44_spill] sm:$0xff] %v10523_v50 }
 0x2f9   :  { %2337 = vmatpush1.bf16.msra.mxu1 %v10516_v47 }
 0x2fa   :  { %2227 = vmatpush1.bf16.msra.mxu0 %v13613_v52  ;;  %2338 = vmatprep.subr.bf16.mxu1 %v10523_v50  ;;  %v10531_v52 = vld [vmem:[%s13089_s0 + $0x14] sm:$0x1f] }
 0x2fb   :  { %2228 = vmatprep.subr.bf16.mxu0 %v13614_v43  ;;  %13629 = vst [vmem:[#allocation45_spill] sm:$0xff] %v10531_v52  ;;  %v10537_v43 = vld [vmem:[%s13090_s1 + $0x50] ss:$8 sps:$4 sm:$0xff]   ;;  %v10549_v29 = vrot.slane %v10531_v52, %v8769_v49 }
 0x2fc   :  { %v10573_v52 = vld [vmem:[%s13090_s1 + $0x70] ss:$8 sps:$4 sm:$0xff]  }
 0x2fd   :  { %2339 = vmatpush1.bf16.msra.mxu1 %v10537_v43 }
 0x2fe   :  { %2229 = vmatpush1.bf16.msra.mxu0 %v13592_v3  ;;  %2340 = vmatprep.subr.bf16.mxu1 %v10544_v62  ;;  %v2106_v3 = vrot.slane %v2092_v34, %v8769_v49  ;;  %v2491_v34 = vcombine.high %v10549_v29, %v10549_v29 }
 0x2ff   :  { %2230 = vmatprep.subr.bf16.mxu0 %v13617_v37  ;;  %v10563_v37 = vld [vmem:[%s13090_s1 + $0x74] ss:$8 sps:$4 sm:$0xff]  }
 0x301   :  { %2341 = vmatpush1.bf16.msra.mxu1 %v10556_v1 }
 0x302   :  { %2231 = vmatpush1.bf16.msra.mxu0 %v9793_v57  ;;  %2342 = vmatprep.subr.bf16.mxu1 %v10563_v37  ;;  %v2121_v57 = vrot.slane %v2106_v3, %v8769_v49  ;;  %v10584_v3 = vrot.slane %v2491_v34, %v8769_v49  ;;  %v10604_v34 = vld [vmem:[%s13090_s1 + $0x90] ss:$8 sps:$4 sm:$0xff]  }
 0x303   :  { %2232 = vmatprep.subr.bf16.mxu0 %v13594_v14  ;;  %v10579_v14 = vld [vmem:[%s13090_s1 + $0x84] ss:$8 sps:$4 sm:$0xff]   ;;  %13633 = vst [vmem:[#allocation19_spill] sm:$0xff] %v10604_v34 }
 0x304   :  { %13630 = vst [vmem:[#allocation46_spill] sm:$0xff] %v10579_v14 }
 0x305   :  { %2343 = vmatpush1.bf16.msra.mxu1 %v10573_v52 }
 0x306   :  { %2233 = vmatpush1.bf16.msra.mxu0 %v13595_v59  ;;  %2344 = vmatprep.subr.bf16.mxu1 %v10579_v14  ;;  %v10589_v59 = vld [vmem:[%s13090_s1 + $0x80] ss:$8 sps:$4 sm:$0xff]  }
 0x307   :  { %2520 = vmatprep.subr.bf16.mxu0 %v10448_v23  ;;  %13631 = vst [vmem:[#allocation47_spill] sm:$0xff] %v10589_v59 }
 0x309   :  { %2251 = vmatmul.mubr.bf16.vlgmr.msra.gmra.mrb[16].mxu0 %v2121_v57  ;;  %2345 = vmatpush1.bf16.msra.mxu1 %v10589_v59  ;;  %v10611_v57 = vld [vmem:[%s13090_s1 + $0xa4] ss:$8 sps:$4 sm:$0xff]  }
 0x30a   :  { %2521 = vmatpush1.bf16.msra.mxu0 %v10458_v44  ;;  %2346 = vmatprep.subr.bf16.mxu1 %v10596_v54  ;;  %13634 = vst [vmem:[#allocation51_spill] sm:$0xff] %v10611_v57 }
 0x30b   :  { %2522 = vmatprep.subr.bf16.mxu0 %v10465_v51  ;;  %2552 = vmatprep.mubr.bf16.mxu0 %v10584_v3  ;;  %v10618_v51 = vld [vmem:[%s13090_s1 + $0xa0] ss:$8 sps:$4 sm:$0xff]  }
 0x30c   :  { %13635 = vst [vmem:[#allocation53_spill] sm:$0xff] %v10618_v51 }
 0x30d   :  { %2347 = vmatpush1.bf16.msra.mxu1 %v10604_v34 }
 0x30e   :  { %2523 = vmatpush1.bf16.msra.mxu0 %v10474_v63  ;;  %2348 = vmatprep.subr.bf16.mxu1 %v10611_v57  ;;  %v10625_v63 = vld [vmem:[%s13090_s1 + $0xb4] ss:$8 sps:$4 sm:$0xff]  }
 0x30f   :  { %2524 = vmatprep.subr.bf16.mxu0 %v10481_v38  ;;  %13636 = vst [vmem:[#allocation54_spill] sm:$0xff] %v10625_v63  ;;  %v10632_v38 = vld [vmem:[%s13090_s1 + $0xb0] ss:$8 sps:$4 sm:$0xff]  }
 0x310   :  { %13637 = vst [vmem:[#allocation21_spill] sm:$0xff] %v10632_v38 }
 0x311   :  { %2349 = vmatpush1.bf16.msra.mxu1 %v10618_v51 }
 0x312   :  { %2525 = vmatpush1.bf16.msra.mxu0 %v10488_v42  ;;  %2350 = vmatprep.subr.bf16.mxu1 %v10625_v63  ;;  %v10639_v42 = vld [vmem:[%s13090_s1 + $0xc4] ss:$8 sps:$4 sm:$0xff]  }
 0x313   :  { %2526 = vmatprep.subr.bf16.mxu0 %v10495_v39  ;;  %13638 = vst [vmem:[#allocation22_spill] sm:$0xff] %v10639_v42  ;;  %v10646_v39 = vld [vmem:[%s13090_s1 + $0xc0] ss:$8 sps:$4 sm:$0xff]  }
 0x314   :  { %13639 = vst [vmem:[#allocation24_spill] sm:$0xff] %v10646_v39 }
 0x315   :  { %2351 = vmatpush1.bf16.msra.mxu1 %v10632_v38 }
 0x316   :  { %2527 = vmatpush1.bf16.msra.mxu0 %v10502_v41  ;;  %2352 = vmatprep.subr.bf16.mxu1 %v10639_v42  ;;  %v10653_v41 = vld [vmem:[%s13090_s1 + $0xd4] ss:$8 sps:$4 sm:$0xff]  }
 0x317   :  { %2528 = vmatprep.subr.bf16.mxu0 %v10509_v9 }
 0x319   :  { %2353 = vmatpush1.bf16.msra.mxu1 %v10646_v39 }
 0x31a   :  { %2529 = vmatpush1.bf16.msra.mxu0 %v10516_v47  ;;  %2354 = vmatprep.subr.bf16.mxu1 %v10653_v41  ;;  %v10662_v47 = vld [vmem:[%s13090_s1 + $0xd0] ss:$8 sps:$4 sm:$0xff]  }
 0x31b   :  { %2530 = vmatprep.subr.bf16.mxu0 %v10523_v50  ;;  %v1676_v44 = vpop.f32.mrb[12].mxu1  ;;  %v10669_v50 = vld [vmem:[%s13090_s1 + $0xe4] ss:$8 sps:$4 sm:$0xff]  }
 0x31c   :  { %v7366_v9 = vadd.f32 %v1676_v44, %v13572_v4  ;;  %v1678_v23 = vpop.f32.mrb[13].mxu1  ;;  %v10676_v44 = vld [vmem:[%s13090_s1 + $0xe0] ss:$8 sps:$4 sm:$0xff]  }
 0x31d   :  { %v7367_v30 = vadd.f32 %v1678_v23, %v13573_v2  ;;  %v1680_v61 = vpop.f32.mrb[14].mxu1  ;;  %2355 = vmatpush1.bf16.msra.mxu1 %v10662_v47 }
 0x31e   :  { %2531 = vmatpush1.bf16.msra.mxu0 %v10537_v43  ;;  %v1683_v28 = vmax.f32 %v7366_v9, 0.0  ;;  %v1681_v0 = vpop.f32.mrb[15].mxu1  ;;  %2356 = vmatprep.subr.bf16.mxu1 %v10669_v50  ;;  %v10695_v9 = vld [vmem:[%s13090_s1 + $0xf0] ss:$8 sps:$4 sm:$0xff]  }
 0x31f   :  { %2532 = vmatprep.subr.bf16.mxu0 %v10544_v62  ;;  %v1684_v61 = vmax.f32 %v7367_v30, 0.0  ;;  %v10683_v0 = vld [vmem:[%s13090_s1 + $0xf4] ss:$8 sps:$4 sm:$0xff]  }
 0x321   :  { %v6931_v23 = vpack.c.bf16 %v1684_v61, %v1683_v28  ;;  %2357 = vmatpush1.bf16.msra.mxu1 %v10676_v44  ;;  %v10690_v28 = vrot.slane %v10430_v36, %v8769_v49  ;;  %v2322_v61 = vcombine.high %v10452_v5, %v10452_v5 }
 0x322   :  { %2533 = vmatpush1.bf16.msra.mxu0 %v10556_v1  ;;  %2358 = vmatprep.subr.bf16.mxu1 %v10683_v0 }
 0x323   :  { %2534 = vmatprep.subr.bf16.mxu0 %v10563_v37  ;;  %v1696_v30 = vrot.slane %v6931_v23, %v8769_v49 }
 0x325   :  { %6932 = vst.sshfl [vmem:[#allocation2 + $0xa] sm:$0x5 pattern:$0x73625140] %v1696_v30  ;;  %2359 = vmatpush1.bf16.msra.mxu1 %v10695_v9 }
 0x326   :  { %2535 = vmatpush1.bf16.msra.mxu0 %v10573_v52  ;;  %2369 = vmatprep.subr.bf16.mxu1 %v9914_v31 }
 0x327   :  { %2536 = vmatprep.subr.bf16.mxu0 %v10579_v14 }
 0x328   :  { %2361 = vmatmul.mubr.bf16.vlgmr.msra.gmra.mrb[20].mxu1 %v10690_v28 }
 0x329   :  { %2370 = vmatpush1.bf16.msra.mxu1 %v9924_v6  ;;  %2401 = vmatprep.mubr.bf16.mxu1 %v2322_v61 }
 0x32a   :  { %2537 = vmatpush1.bf16.msra.mxu0 %v10589_v59  ;;  %2371 = vmatprep.subr.bf16.mxu1 %v9931_v8 }
 0x32b   :  { %2538 = vmatprep.subr.bf16.mxu0 %v10596_v54 }
 0x32d   :  { %2372 = vmatpush1.bf16.msra.mxu1 %v9981_v35 }
 0x32e   :  { %2539 = vmatpush1.bf16.msra.mxu0 %v10604_v34  ;;  %2373 = vmatprep.subr.bf16.mxu1 %v9988_v19 }
 0x32f   :  { %2540 = vmatprep.subr.bf16.mxu0 %v10611_v57 }
 0x331   :  { %2374 = vmatpush1.bf16.msra.mxu1 %v9995_v55 }
 0x332   :  { %2541 = vmatpush1.bf16.msra.mxu0 %v10618_v51  ;;  %2375 = vmatprep.subr.bf16.mxu1 %v10002_v27 }
 0x333   :  { %2542 = vmatprep.subr.bf16.mxu0 %v10625_v63 }
 0x335   :  { %2376 = vmatpush1.bf16.msra.mxu1 %v10009_v17 }
 0x336   :  { %2543 = vmatpush1.bf16.msra.mxu0 %v10632_v38  ;;  %2377 = vmatprep.subr.bf16.mxu1 %v10016_v10 }
 0x337   :  { %2544 = vmatprep.subr.bf16.mxu0 %v10639_v42 }
 0x339   :  { %2378 = vmatpush1.bf16.msra.mxu1 %v10023_v12 }
 0x33a   :  { %2545 = vmatpush1.bf16.msra.mxu0 %v10646_v39  ;;  %2379 = vmatprep.subr.bf16.mxu1 %v10030_v16 }
 0x33b   :  { %2546 = vmatprep.subr.bf16.mxu0 %v10653_v41 }
 0x33c   :  { %v1868_v36 = vpop.f32.mrb[12].mxu0 }
 0x33d   :  { %v7368_v5 = vadd.f32 %v1868_v36, %v13572_v4  ;;  %v1870_v23 = vpop.f32.mrb[13].mxu0  ;;  %2380 = vmatpush1.bf16.msra.mxu1 %v10220_v48 }
 0x33e   :  { %v7369_v30 = vadd.f32 %v1870_v23, %v13573_v2  ;;  %v1872_v61 = vpop.f32.mrb[14].mxu0  ;;  %2547 = vmatpush1.bf16.msra.mxu0 %v10662_v47  ;;  %2381 = vmatprep.subr.bf16.mxu1 %v10227_v40  ;;  %v10853_v23 = vld [vmem:[%s13090_s1 + $0x264] ss:$8 sps:$4 sm:$0xff]  }
 0x33f   :  { %v1875_v42 = vmax.f32 %v7368_v5, 0.0  ;;  %v1873_v38 = vpop.f32.mrb[15].mxu0  ;;  %2548 = vmatprep.subr.bf16.mxu0 %v10669_v50  ;;  %v10737_v5 = vrot.slane %v10549_v29, %v8769_v49  ;;  %13653 = vst [vmem:[#allocation33_spill] sm:$0xff] %v10853_v23 }
 0x340   :  { %v1876_v39 = vmax.f32 %v7369_v30, 0.0  ;;  %v2514_v38 = vcombine.high %v10584_v3, %v10584_v3  ;;  %v10841_v3 = vld [vmem:[%s13089_s0 + $0x16] sm:$0x1f] }
 0x341   :  { %2382 = vmatpush1.bf16.msra.mxu1 %v10234_v60  ;;  %13652 = vst [vmem:[#allocation32_spill] sm:$0xff] %v10841_v3  ;;  %v10859_v30 = vrot.slane %v10841_v3, %v8769_v49  ;;  %v10884_v3 = vld [vmem:[%s13090_s1 + $0x270] ss:$8 sps:$4 sm:$0xff]  }
 0x342   :  { %v6933_v63 = vpack.c.bf16 %v1876_v39, %v1875_v42  ;;  %2549 = vmatpush1.bf16.msra.mxu0 %v10676_v44  ;;  %2383 = vmatprep.subr.bf16.mxu1 %v10241_v13  ;;  %v10832_v42 = vld [vmem:[%s13090_s1 + $0x254] ss:$8 sps:$4 sm:$0xff]   ;;  %v13651_v39 = vld [vmem:[#allocation41_spill] sm:$0xff] }
 0x343   :  { %2550 = vmatprep.subr.bf16.mxu0 %v10683_v0  ;;  %13650 = vst [vmem:[#allocation31_spill] sm:$0xff] %v10832_v42  ;;  %v2284_v29 = vcombine.high %v13651_v39, %v13651_v39 }
 0x344   :  { %v1888_v36 = vrot.slane %v6933_v63, %v8769_v49  ;;  %v10825_v63 = vld [vmem:[%s13090_s1 + $0x240] ss:$8 sps:$4 sm:$0xff]  }
 0x345   :  { %2384 = vmatpush1.bf16.msra.mxu1 %v10253_v33  ;;  %13649 = vst [vmem:[#allocation30_spill] sm:$0xff] %v10825_v63  ;;  %v2298_v61 = vrot.slane %v2284_v29, %v8769_v49  ;;  %v2513_v29 = vcombine.high %v10737_v5, %v10737_v5 }
 0x346   :  { %6934 = vst.sshfl [vmem:[#allocation2 + $0xc] sm:$0x5 pattern:$0x73625140] %v1888_v36  ;;  %2551 = vmatpush1.bf16.msra.mxu0 %v10695_v9  ;;  %2385 = vmatprep.subr.bf16.mxu1 %v10260_v46  ;;  %v10865_v36 = vld [vmem:[%s13090_s1 + $0x260] ss:$8 sps:$4 sm:$0xff]  }
 0x347   :  { %2561 = vmatprep.subr.bf16.mxu0 %v9914_v31  ;;  %v2321_v31 = vcombine.high %v10690_v28, %v10690_v28  ;;  %v10846_v28 = vld [vmem:[%s13090_s1 + $0x250] ss:$8 sps:$4 sm:$0xff]   ;;  %v2313_v39 = vrot.slane %v2298_v61, %v8769_v49 }
 0x348   :  { %v13656_v61 = vld [vmem:[#allocation14_spill] sm:$0xff] }
 0x349   :  { %2553 = vmatmul.mubr.bf16.vlgmr.msra.gmra.mrb[20].mxu0 %v10737_v5  ;;  %2386 = vmatpush1.bf16.msra.mxu1 %v10270_v56  ;;  %v13655_v5 = vld [vmem:[#allocation43_spill] sm:$0xff] }
 0x34a   :  { %2562 = vmatpush1.bf16.msra.mxu0 %v9924_v6  ;;  %2387 = vmatprep.subr.bf16.mxu1 %v10277_v58  ;;  %v13640_v6 = vld [vmem:[#allocation37_spill] sm:$0xff] }
 0x34b   :  { %2563 = vmatprep.subr.bf16.mxu0 %v9931_v8  ;;  %2593 = vmatprep.mubr.bf16.mxu0 %v2514_v38  ;;  %v13641_v8 = vld [vmem:[#allocation38_spill] sm:$0xff] }
 0x34c   :  { %v10872_v38 = vld [vmem:[%s13090_s1 + $0x274] ss:$8 sps:$4 sm:$0xff]  }
 0x34d   :  { %2388 = vmatpush1.bf16.msra.mxu1 %v10284_v11 }
 0x34e   :  { %2564 = vmatpush1.bf16.msra.mxu0 %v9981_v35  ;;  %2389 = vmatprep.subr.bf16.mxu1 %v10291_v15  ;;  %v13642_v35 = vld [vmem:[#allocation39_spill] sm:$0xff] }
 0x34f   :  { %2565 = vmatprep.subr.bf16.mxu0 %v9988_v19  ;;  %v13643_v19 = vmov 0  }
 0x351   :  { %2390 = vmatpush1.bf16.msra.mxu1 %v10298_v21 }
 0x352   :  { %2566 = vmatpush1.bf16.msra.mxu0 %v9995_v55  ;;  %2391 = vmatprep.subr.bf16.mxu1 %v10305_v32  ;;  %v13644_v55 = vld [vmem:[#allocation40_spill] sm:$0xff] }
 0x353   :  { %2567 = vmatprep.subr.bf16.mxu0 %v10002_v27  ;;  %v10790_v27 = vld [vmem:[%s13090_s1 + $0x224] ss:$8 sps:$4 sm:$0xff]  }
 0x354   :  { %13645 = vst [vmem:[#allocation26_spill] sm:$0xff] %v10790_v27 }
 0x355   :  { %2392 = vmatpush1.bf16.msra.mxu1 %v10312_v18 }
 0x356   :  { %2568 = vmatpush1.bf16.msra.mxu0 %v10009_v17  ;;  %2393 = vmatprep.subr.bf16.mxu1 %v10319_v24  ;;  %v10797_v17 = vld [vmem:[%s13090_s1 + $0x220] ss:$8 sps:$4 sm:$0xff]  }
 0x357   :  { %2569 = vmatprep.subr.bf16.mxu0 %v10016_v10  ;;  %13646 = vst [vmem:[#allocation27_spill] sm:$0xff] %v10797_v17  ;;  %v10804_v10 = vld [vmem:[%s13090_s1 + $0x234] ss:$8 sps:$4 sm:$0xff]  }
 0x358   :  { %13647 = vst [vmem:[#allocation28_spill] sm:$0xff] %v10804_v10 }
 0x359   :  { %2394 = vmatpush1.bf16.msra.mxu1 %v10326_v20 }
 0x35a   :  { %2570 = vmatpush1.bf16.msra.mxu0 %v10023_v12  ;;  %2395 = vmatprep.subr.bf16.mxu1 %v10333_v53  ;;  %v10811_v12 = vld [vmem:[%s13090_s1 + $0x230] ss:$8 sps:$4 sm:$0xff]  }
 0x35b   :  { %2571 = vmatprep.subr.bf16.mxu0 %v10030_v16  ;;  %13648 = vst [vmem:[#allocation29_spill] sm:$0xff] %v10811_v12  ;;  %v10818_v16 = vld [vmem:[%s13090_s1 + $0x244] ss:$8 sps:$4 sm:$0xff]  }
 0x35d   :  { %2396 = vmatpush1.bf16.msra.mxu1 %v10340_v7 }
 0x35e   :  { %2572 = vmatpush1.bf16.msra.mxu0 %v10220_v48  ;;  %2397 = vmatprep.subr.bf16.mxu1 %v10347_v45 }
 0x35f   :  { %2573 = vmatprep.subr.bf16.mxu0 %v10227_v40 }
 0x361   :  { %2398 = vmatpush1.bf16.msra.mxu1 %v10354_v22 }
 0x362   :  { %2574 = vmatpush1.bf16.msra.mxu0 %v10234_v60  ;;  %2399 = vmatprep.subr.bf16.mxu1 %v10361_v25 }
 0x363   :  { %2575 = vmatprep.subr.bf16.mxu0 %v10241_v13 }
 0x365   :  { %2400 = vmatpush1.bf16.msra.mxu1 %v10370_v26 }
 0x366   :  { %2576 = vmatpush1.bf16.msra.mxu0 %v10253_v33  ;;  %2410 = vmatprep.subr.bf16.mxu1 %v13640_v6 }
 0x367   :  { %2577 = vmatprep.subr.bf16.mxu0 %v10260_v46 }
 0x368   :  { %2402 = vmatmul.mubr.bf16.vlgmr.msra.gmra.mrb[20].mxu1 %v2321_v31  ;;  %v2683_v31 = vcombine.high %v10859_v30, %v10859_v30 }
 0x369   :  { %2411 = vmatpush1.bf16.msra.mxu1 %v13641_v8  ;;  %2442 = vmatprep.mubr.bf16.mxu1 %v13643_v19 }
 0x36a   :  { %2578 = vmatpush1.bf16.msra.mxu0 %v10270_v56  ;;  %2412 = vmatprep.subr.bf16.mxu1 %v13642_v35 }
 0x36b   :  { %2579 = vmatprep.subr.bf16.mxu0 %v10277_v58 }
 0x36d   :  { %2413 = vmatpush1.bf16.msra.mxu1 %v13644_v55 }
 0x36e   :  { %2580 = vmatpush1.bf16.msra.mxu0 %v10284_v11  ;;  %2414 = vmatprep.subr.bf16.mxu1 %v10790_v27 }
 0x36f   :  { %2581 = vmatprep.subr.bf16.mxu0 %v10291_v15 }
 0x371   :  { %2415 = vmatpush1.bf16.msra.mxu1 %v10797_v17 }
 0x372   :  { %2582 = vmatpush1.bf16.msra.mxu0 %v10298_v21  ;;  %2416 = vmatprep.subr.bf16.mxu1 %v10804_v10 }
 0x373   :  { %2583 = vmatprep.subr.bf16.mxu0 %v10305_v32 }
 0x375   :  { %2417 = vmatpush1.bf16.msra.mxu1 %v10811_v12 }
 0x376   :  { %2584 = vmatpush1.bf16.msra.mxu0 %v10312_v18  ;;  %2418 = vmatprep.subr.bf16.mxu1 %v10818_v16 }
 0x377   :  { %2585 = vmatprep.subr.bf16.mxu0 %v10319_v24 }
 0x379   :  { %2419 = vmatpush1.bf16.msra.mxu1 %v10825_v63 }
 0x37a   :  { %2586 = vmatpush1.bf16.msra.mxu0 %v10326_v20  ;;  %2420 = vmatprep.subr.bf16.mxu1 %v10832_v42 }
 0x37b   :  { %2587 = vmatprep.subr.bf16.mxu0 %v10333_v53 }
 0x37d   :  { %2421 = vmatpush1.bf16.msra.mxu1 %v10846_v28 }
 0x37e   :  { %2588 = vmatpush1.bf16.msra.mxu0 %v10340_v7  ;;  %2422 = vmatprep.subr.bf16.mxu1 %v10853_v23 }
 0x37f   :  { %2589 = vmatprep.subr.bf16.mxu0 %v10347_v45 }
 0x381   :  { %2423 = vmatpush1.bf16.msra.mxu1 %v10865_v36 }
 0x382   :  { %2590 = vmatpush1.bf16.msra.mxu0 %v10354_v22  ;;  %2424 = vmatprep.subr.bf16.mxu1 %v10872_v38  ;;  %v10891_v22 = vrot.slane %v2683_v31, %v8769_v49  ;;  %v13658_v31 = vld [vmem:[#allocation16_spill] sm:$0xff] }
 0x383   :  { %2591 = vmatprep.subr.bf16.mxu0 %v10361_v25  ;;  %v13654_v25 = vld [vmem:[#allocation42_spill] sm:$0xff] }
 0x385   :  { %2425 = vmatpush1.bf16.msra.mxu1 %v10884_v3 }
 0x386   :  { %2592 = vmatpush1.bf16.msra.mxu0 %v10370_v26  ;;  %2712 = vmatprep.subr.bf16.mxu1 %v13654_v25 }
 0x387   :  { %2602 = vmatprep.subr.bf16.mxu0 %v13640_v6  ;;  %v13657_v6 = vld [vmem:[#allocation15_spill] sm:$0xff] }
 0x388   :  { %2443 = vmatmul.mubr.bf16.vlgmr.msra.gmra.mrb[20].mxu1 %v2313_v39  ;;  %v13659_v39 = vld [vmem:[#allocation17_spill] sm:$0xff] }
 0x389   :  { %2594 = vmatmul.mubr.bf16.vlgmr.msra.gmra.mrb[20].mxu0 %v2513_v29  ;;  %2713 = vmatpush1.bf16.msra.mxu1 %v13655_v5  ;;  %v13660_v29 = vld [vmem:[#allocation18_spill] sm:$0xff] }
 0x38a   :  { %2603 = vmatpush1.bf16.msra.mxu0 %v13641_v8  ;;  %2714 = vmatprep.subr.bf16.mxu1 %v13656_v61 }
 0x38b   :  { %2604 = vmatprep.subr.bf16.mxu0 %v13642_v35  ;;  %2634 = vmatprep.mubr.bf16.mxu0 %v13643_v19  ;;  %v13661_v19 = vld [vmem:[#allocation20_spill] sm:$0xff]  ;;  %v13665_v35 = vld [vmem:[#allocation45_spill] sm:$0xff] }
 0x38c   :  { %2744 = vmatprep.mubr.bf16.mxu1 %v10891_v22 }
 0x38d   :  { %2715 = vmatpush1.bf16.msra.mxu1 %v13657_v6 }
 0x38e   :  { %2605 = vmatpush1.bf16.msra.mxu0 %v13644_v55  ;;  %2716 = vmatprep.subr.bf16.mxu1 %v13658_v31  ;;  %v13662_v55 = vld [vmem:[#allocation23_spill] sm:$0xff] }
 0x38f   :  { %2606 = vmatprep.subr.bf16.mxu0 %v10790_v27  ;;  %v13663_v27 = vld [vmem:[#allocation25_spill] sm:$0xff] }
 0x391   :  { %2717 = vmatpush1.bf16.msra.mxu1 %v13659_v39 }
 0x392   :  { %2607 = vmatpush1.bf16.msra.mxu0 %v10797_v17  ;;  %2718 = vmatprep.subr.bf16.mxu1 %v13660_v29  ;;  %v13664_v17 = vld [vmem:[#allocation44_spill] sm:$0xff] }
 0x393   :  { %2608 = vmatprep.subr.bf16.mxu0 %v10804_v10  ;;  %v2476_v10 = vcombine.high %v13665_v35, %v13665_v35 }
 0x395   :  { %2719 = vmatpush1.bf16.msra.mxu1 %v13661_v19 }
 0x396   :  { %2609 = vmatpush1.bf16.msra.mxu0 %v10811_v12  ;;  %2720 = vmatprep.subr.bf16.mxu1 %v13662_v55  ;;  %v10920_v12 = vld [vmem:[%s13089_s0 + $0x18] sm:$0x1f] }
 0x397   :  { %2610 = vmatprep.subr.bf16.mxu0 %v10818_v16  ;;  %13666 = vst [vmem:[#allocation49_spill] sm:$0xff] %v10920_v12 }
 0x399   :  { %2721 = vmatpush1.bf16.msra.mxu1 %v13663_v27 }
 0x39a   :  { %2611 = vmatpush1.bf16.msra.mxu0 %v10825_v63  ;;  %2722 = vmatprep.subr.bf16.mxu1 %v13664_v17  ;;  %v2490_v63 = vrot.slane %v2476_v10, %v8769_v49 }
 0x39b   :  { %2612 = vmatprep.subr.bf16.mxu0 %v10832_v42  ;;  %v10928_v42 = vrot.slane %v10920_v12, %v8769_v49  ;;  %v13670_v12 = vld [vmem:[#allocation24_spill] sm:$0xff] }
 0x39d   :  { %2723 = vmatpush1.bf16.msra.mxu1 %v10537_v43  ;;  %v2875_v35 = vcombine.high %v10928_v42, %v10928_v42 }
 0x39e   :  { %2613 = vmatpush1.bf16.msra.mxu0 %v10846_v28  ;;  %2724 = vmatprep.subr.bf16.mxu1 %v10544_v62 }
 0x39f   :  { %2614 = vmatprep.subr.bf16.mxu0 %v10853_v23  ;;  %v2505_v23 = vrot.slane %v2490_v63, %v8769_v49  ;;  %v10943_v10 = vrot.slane %v2875_v35, %v8769_v49  ;;  %v13667_v63 = vld [vmem:[#allocation54_spill] sm:$0xff] }
 0x3a0   :  { %v13669_v35 = vld [vmem:[#allocation22_spill] sm:$0xff] }
 0x3a1   :  { %2725 = vmatpush1.bf16.msra.mxu1 %v10556_v1 }
 0x3a2   :  { %2615 = vmatpush1.bf16.msra.mxu0 %v10865_v36  ;;  %2726 = vmatprep.subr.bf16.mxu1 %v10563_v37 }
 0x3a3   :  { %2616 = vmatprep.subr.bf16.mxu0 %v10872_v38 }
 0x3a5   :  { %2727 = vmatpush1.bf16.msra.mxu1 %v10573_v52 }
 0x3a6   :  { %2617 = vmatpush1.bf16.msra.mxu0 %v10884_v3  ;;  %2728 = vmatprep.subr.bf16.mxu1 %v10579_v14 }
 0x3a7   :  { %2904 = vmatprep.subr.bf16.mxu0 %v13654_v25 }
 0x3a9   :  { %2635 = vmatmul.mubr.bf16.vlgmr.msra.gmra.mrb[20].mxu0 %v2505_v23  ;;  %2729 = vmatpush1.bf16.msra.mxu1 %v10589_v59  ;;  %v13668_v23 = vld [vmem:[#allocation21_spill] sm:$0xff] }
 0x3aa   :  { %2905 = vmatpush1.bf16.msra.mxu0 %v13655_v5  ;;  %2730 = vmatprep.subr.bf16.mxu1 %v10596_v54 }
 0x3ab   :  { %2906 = vmatprep.subr.bf16.mxu0 %v13656_v61  ;;  %2936 = vmatprep.mubr.bf16.mxu0 %v10943_v10 }
 0x3ad   :  { %2731 = vmatpush1.bf16.msra.mxu1 %v10604_v34 }
 0x3ae   :  { %2907 = vmatpush1.bf16.msra.mxu0 %v13657_v6  ;;  %2732 = vmatprep.subr.bf16.mxu1 %v10611_v57 }
 0x3af   :  { %2908 = vmatprep.subr.bf16.mxu0 %v13658_v31 }
 0x3b1   :  { %2733 = vmatpush1.bf16.msra.mxu1 %v10618_v51 }
 0x3b2   :  { %2909 = vmatpush1.bf16.msra.mxu0 %v13659_v39  ;;  %2734 = vmatprep.subr.bf16.mxu1 %v13667_v63 }
 0x3b3   :  { %2910 = vmatprep.subr.bf16.mxu0 %v13660_v29 }
 0x3b5   :  { %2735 = vmatpush1.bf16.msra.mxu1 %v13668_v23 }
 0x3b6   :  { %2911 = vmatpush1.bf16.msra.mxu0 %v13661_v19  ;;  %2736 = vmatprep.subr.bf16.mxu1 %v13669_v35 }
 0x3b7   :  { %2912 = vmatprep.subr.bf16.mxu0 %v13662_v55 }
 0x3b9   :  { %2737 = vmatpush1.bf16.msra.mxu1 %v13670_v12 }
 0x3ba   :  { %2913 = vmatpush1.bf16.msra.mxu0 %v13663_v27  ;;  %2738 = vmatprep.subr.bf16.mxu1 %v10653_v41 }
 0x3bb   :  { %2914 = vmatprep.subr.bf16.mxu0 %v13664_v17  ;;  %v2060_v39 = vpop.f32.mrb[16].mxu1 }
 0x3bc   :  { %v7370_v31 = vadd.f32 %v2060_v39, %v13572_v4  ;;  %v2062_v29 = vpop.f32.mrb[17].mxu1  ;;  %v11031_v39 = vld [vmem:[%s13090_s1 + $0x134] ss:$8 sps:$4 sm:$0xff]  }
 0x3bd   :  { %v7371_v6 = vadd.f32 %v2062_v29, %v13573_v2  ;;  %v2064_v61 = vpop.f32.mrb[18].mxu1  ;;  %2739 = vmatpush1.bf16.msra.mxu1 %v10662_v47  ;;  %v11038_v29 = vld [vmem:[%s13090_s1 + $0x130] ss:$8 sps:$4 sm:$0xff]  }
 0x3be   :  { %2915 = vmatpush1.bf16.msra.mxu0 %v10537_v43  ;;  %v2067_v55 = vmax.f32 %v7370_v31, 0.0  ;;  %v2065_v19 = vpop.f32.mrb[19].mxu1  ;;  %2740 = vmatprep.subr.bf16.mxu1 %v10669_v50  ;;  %v10979_v31 = vrot.slane %v10859_v30, %v8769_v49  ;;  %v11017_v30 = vld [vmem:[%s13090_s1 + $0x124] ss:$8 sps:$4 sm:$0xff]  }
 0x3bf   :  { %2916 = vmatprep.subr.bf16.mxu0 %v10544_v62  ;;  %v2068_v27 = vmax.f32 %v7371_v6, 0.0  ;;  %v10986_v6 = vld [vmem:[%s13090_s1 + $0x104] ss:$8 sps:$4 sm:$0xff]   ;;  %v2706_v19 = vcombine.high %v10891_v22, %v10891_v22  ;;  %v11010_v22 = vld [vmem:[%s13090_s1 + $0x110] ss:$8 sps:$4 sm:$0xff]  }
 0x3c1   :  { %v6935_v5 = vpack.c.bf16 %v2068_v27, %v2067_v55  ;;  %2741 = vmatpush1.bf16.msra.mxu1 %v10676_v44  ;;  %v10996_v55 = vld [vmem:[%s13090_s1 + $0x100] ss:$8 sps:$4 sm:$0xff]   ;;  %v11003_v27 = vld [vmem:[%s13090_s1 + $0x114] ss:$8 sps:$4 sm:$0xff]  }
 0x3c2   :  { %2917 = vmatpush1.bf16.msra.mxu0 %v10556_v1  ;;  %2742 = vmatprep.subr.bf16.mxu1 %v10683_v0 }
 0x3c3   :  { %2918 = vmatprep.subr.bf16.mxu0 %v10563_v37  ;;  %v2080_v61 = vrot.slane %v6935_v5, %v8769_v49  ;;  %v11024_v5 = vld [vmem:[%s13090_s1 + $0x120] ss:$8 sps:$4 sm:$0xff]  }
 0x3c5   :  { %6936 = vst.sshfl [vmem:[#allocation2 + $0xe] sm:$0x5 pattern:$0x73625140] %v2080_v61  ;;  %2743 = vmatpush1.bf16.msra.mxu1 %v10695_v9  ;;  %v11045_v61 = vld [vmem:[%s13090_s1 + $0x144] ss:$8 sps:$4 sm:$0xff]  }
 0x3c6   :  { %2919 = vmatpush1.bf16.msra.mxu0 %v10573_v52  ;;  %2753 = vmatprep.subr.bf16.mxu1 %v10986_v6 }
 0x3c7   :  { %2920 = vmatprep.subr.bf16.mxu0 %v10579_v14 }
 0x3c8   :  { %2745 = vmatmul.mubr.bf16.vlgmr.msra.gmra.mrb[24].mxu1 %v10979_v31 }
 0x3c9   :  { %2754 = vmatpush1.bf16.msra.mxu1 %v10996_v55  ;;  %2785 = vmatprep.mubr.bf16.mxu1 %v2706_v19  ;;  %v11052_v19 = vld [vmem:[%s13090_s1 + $0x140] ss:$8 sps:$4 sm:$0xff]  }
 0x3ca   :  { %2921 = vmatpush1.bf16.msra.mxu0 %v10589_v59  ;;  %2755 = vmatprep.subr.bf16.mxu1 %v11003_v27 }
 0x3cb   :  { %2922 = vmatprep.subr.bf16.mxu0 %v10596_v54 }
 0x3cd   :  { %2756 = vmatpush1.bf16.msra.mxu1 %v11010_v22 }
 0x3ce   :  { %2923 = vmatpush1.bf16.msra.mxu0 %v10604_v34  ;;  %2757 = vmatprep.subr.bf16.mxu1 %v11017_v30 }
 0x3cf   :  { %2924 = vmatprep.subr.bf16.mxu0 %v10611_v57 }
 0x3d1   :  { %2758 = vmatpush1.bf16.msra.mxu1 %v11024_v5 }
 0x3d2   :  { %2925 = vmatpush1.bf16.msra.mxu0 %v10618_v51  ;;  %2759 = vmatprep.subr.bf16.mxu1 %v11031_v39 }
 0x3d3   :  { %2926 = vmatprep.subr.bf16.mxu0 %v13667_v63 }
 0x3d5   :  { %2760 = vmatpush1.bf16.msra.mxu1 %v11038_v29 }
 0x3d6   :  { %2927 = vmatpush1.bf16.msra.mxu0 %v13668_v23  ;;  %2761 = vmatprep.subr.bf16.mxu1 %v11045_v61  ;;  %v11059_v23 = vld [vmem:[%s13090_s1 + $0x154] ss:$8 sps:$4 sm:$0xff]  }
 0x3d7   :  { %2928 = vmatprep.subr.bf16.mxu0 %v13669_v35 }
 0x3d9   :  { %2762 = vmatpush1.bf16.msra.mxu1 %v11052_v19 }
 0x3da   :  { %2929 = vmatpush1.bf16.msra.mxu0 %v13670_v12  ;;  %2763 = vmatprep.subr.bf16.mxu1 %v11059_v23 }
 0x3db   :  { %2930 = vmatprep.subr.bf16.mxu0 %v10653_v41 }
 0x3dc   :  { %v2252_v63 = vpop.f32.mrb[16].mxu0 }
 0x3dd   :  { %v7372_v35 = vadd.f32 %v2252_v63, %v13572_v4  ;;  %v2254_v51 = vpop.f32.mrb[17].mxu0  ;;  %2764 = vmatpush1.bf16.msra.mxu1 %v10220_v48  ;;  %v13686_v63 = vld [vmem:[#allocation14_spill] sm:$0xff] }
 0x3de   :  { %v7373_v57 = vadd.f32 %v2254_v51, %v13573_v2  ;;  %v2256_v34 = vpop.f32.mrb[18].mxu0  ;;  %2931 = vmatpush1.bf16.msra.mxu0 %v10662_v47  ;;  %2765 = vmatprep.subr.bf16.mxu1 %v10227_v40 }
 0x3df   :  { %v2259_v12 = vmax.f32 %v7372_v35, 0.0  ;;  %v2257_v54 = vpop.f32.mrb[19].mxu0  ;;  %2932 = vmatprep.subr.bf16.mxu0 %v10669_v50  ;;  %v11076_v34 = vrot.slane %v10928_v42, %v8769_v49  ;;  %v13690_v35 = vld [vmem:[#allocation18_spill] sm:$0xff] }
 0x3e0   :  { %v2260_v59 = vmax.f32 %v7373_v57, 0.0  ;;  %v2898_v54 = vcombine.high %v10943_v10, %v10943_v10  ;;  %v2705_v57 = vcombine.high %v10979_v31, %v10979_v31  ;;  %v13685_v10 = vld [vmem:[#allocation43_spill] sm:$0xff]  ;;  %v13691_v31 = vld [vmem:[#allocation20_spill] sm:$0xff] }
 0x3e1   :  { %2766 = vmatpush1.bf16.msra.mxu1 %v10234_v60 }
 0x3e2   :  { %v6937_v14 = vpack.c.bf16 %v2260_v59, %v2259_v12  ;;  %2933 = vmatpush1.bf16.msra.mxu0 %v10676_v44  ;;  %2767 = vmatprep.subr.bf16.mxu1 %v10241_v13  ;;  %v13672_v59 = vld [vmem:[#allocation36_spill] sm:$0xff] }
 0x3e3   :  { %2934 = vmatprep.subr.bf16.mxu0 %v10683_v0  ;;  %v13679_v12 = vld [vmem:[#allocation28_spill] sm:$0xff] }
 0x3e4   :  { %v2272_v51 = vrot.slane %v6937_v14, %v8769_v49  ;;  %v13671_v14 = vld [vmem:[#allocation35_spill] sm:$0xff] }
 0x3e5   :  { %2768 = vmatpush1.bf16.msra.mxu1 %v10253_v33 }
 0x3e6   :  { %6938 = vst.sshfl [vmem:[#allocation2 + $0x10] sm:$0x5 pattern:$0x73625140] %v2272_v51  ;;  %2935 = vmatpush1.bf16.msra.mxu0 %v10695_v9  ;;  %2769 = vmatprep.subr.bf16.mxu1 %v10260_v46  ;;  %v13692_v51 = vld [vmem:[#allocation23_spill] sm:$0xff] }
 0x3e7   :  { %2945 = vmatprep.subr.bf16.mxu0 %v10986_v6 }
 0x3e9   :  { %2937 = vmatmul.mubr.bf16.vlgmr.msra.gmra.mrb[24].mxu0 %v11076_v34  ;;  %2770 = vmatpush1.bf16.msra.mxu1 %v10270_v56 }
 0x3ea   :  { %2946 = vmatpush1.bf16.msra.mxu0 %v10996_v55  ;;  %2771 = vmatprep.subr.bf16.mxu1 %v10277_v58 }
 0x3eb   :  { %2947 = vmatprep.subr.bf16.mxu0 %v11003_v27  ;;  %2977 = vmatprep.mubr.bf16.mxu0 %v2898_v54  ;;  %v13694_v54 = vld [vmem:[#allocation49_spill] sm:$0xff] }
 0x3ed   :  { %2772 = vmatpush1.bf16.msra.mxu1 %v10284_v11 }
 0x3ee   :  { %2948 = vmatpush1.bf16.msra.mxu0 %v11010_v22  ;;  %2773 = vmatprep.subr.bf16.mxu1 %v10291_v15 }
 0x3ef   :  { %2949 = vmatprep.subr.bf16.mxu0 %v11017_v30 }
 0x3f1   :  { %2774 = vmatpush1.bf16.msra.mxu1 %v10298_v21 }
 0x3f2   :  { %2950 = vmatpush1.bf16.msra.mxu0 %v11024_v5  ;;  %2775 = vmatprep.subr.bf16.mxu1 %v10305_v32 }
 0x3f3   :  { %2951 = vmatprep.subr.bf16.mxu0 %v11031_v39 }
 0x3f5   :  { %2776 = vmatpush1.bf16.msra.mxu1 %v10312_v18 }
 0x3f6   :  { %2952 = vmatpush1.bf16.msra.mxu0 %v11038_v29  ;;  %2777 = vmatprep.subr.bf16.mxu1 %v10319_v24 }
 0x3f7   :  { %2953 = vmatprep.subr.bf16.mxu0 %v11045_v61 }
 0x3f9   :  { %2778 = vmatpush1.bf16.msra.mxu1 %v10326_v20 }
 0x3fa   :  { %2954 = vmatpush1.bf16.msra.mxu0 %v11052_v19  ;;  %2779 = vmatprep.subr.bf16.mxu1 %v10333_v53 }
 0x3fb   :  { %2955 = vmatprep.subr.bf16.mxu0 %v11059_v23 }
 0x3fd   :  { %2780 = vmatpush1.bf16.msra.mxu1 %v10340_v7 }
 0x3fe   :  { %2956 = vmatpush1.bf16.msra.mxu0 %v10220_v48  ;;  %2781 = vmatprep.subr.bf16.mxu1 %v10347_v45  ;;  %v13673_v48 = vld [vmem:[#allocation37_spill] sm:$0xff] }
 0x3ff   :  { %2957 = vmatprep.subr.bf16.mxu0 %v10227_v40  ;;  %v13674_v40 = vld [vmem:[#allocation39_spill] sm:$0xff] }
 0x401   :  { %2782 = vmatpush1.bf16.msra.mxu1 %v13671_v14 }
 0x402   :  { %2958 = vmatpush1.bf16.msra.mxu0 %v10234_v60  ;;  %2783 = vmatprep.subr.bf16.mxu1 %v13672_v59  ;;  %v13675_v60 = vmov 0  }
 0x403   :  { %2959 = vmatprep.subr.bf16.mxu0 %v10241_v13  ;;  %v13676_v13 = vld [vmem:[#allocation40_spill] sm:$0xff] }
 0x405   :  { %2784 = vmatpush1.bf16.msra.mxu1 %v10370_v26 }
 0x406   :  { %2960 = vmatpush1.bf16.msra.mxu0 %v10253_v33  ;;  %2794 = vmatprep.subr.bf16.mxu1 %v13673_v48  ;;  %v13677_v33 = vld [vmem:[#allocation26_spill] sm:$0xff] }
 0x407   :  { %2961 = vmatprep.subr.bf16.mxu0 %v10260_v46  ;;  %v13678_v46 = vld [vmem:[#allocation27_spill] sm:$0xff] }
 0x408   :  { %2786 = vmatmul.mubr.bf16.vlgmr.msra.gmra.mrb[24].mxu1 %v2705_v57 }
 0x409   :  { %2795 = vmatpush1.bf16.msra.mxu1 %v13641_v8  ;;  %2826 = vmatprep.mubr.bf16.mxu1 %v13675_v60 }
 0x40a   :  { %2962 = vmatpush1.bf16.msra.mxu0 %v10270_v56  ;;  %2796 = vmatprep.subr.bf16.mxu1 %v13674_v40  ;;  %v13680_v56 = vld [vmem:[#allocation29_spill] sm:$0xff] }
 0x40b   :  { %2963 = vmatprep.subr.bf16.mxu0 %v10277_v58  ;;  %v13681_v58 = vld [vmem:[#allocation30_spill] sm:$0xff] }
 0x40d   :  { %2797 = vmatpush1.bf16.msra.mxu1 %v13676_v13 }
 0x40e   :  { %2964 = vmatpush1.bf16.msra.mxu0 %v10284_v11  ;;  %2798 = vmatprep.subr.bf16.mxu1 %v13677_v33  ;;  %v13682_v11 = vld [vmem:[#allocation31_spill] sm:$0xff] }
 0x40f   :  { %2965 = vmatprep.subr.bf16.mxu0 %v10291_v15  ;;  %v13683_v15 = vld [vmem:[#allocation32_spill] sm:$0xff] }
 0x411   :  { %2799 = vmatpush1.bf16.msra.mxu1 %v13678_v46 }
 0x412   :  { %2966 = vmatpush1.bf16.msra.mxu0 %v10298_v21  ;;  %2800 = vmatprep.subr.bf16.mxu1 %v13679_v12  ;;  %v2668_v21 = vcombine.high %v13683_v15, %v13683_v15  ;;  %v13696_v15 = vld [vmem:[#allocation47_spill] sm:$0xff] }
 0x413   :  { %2967 = vmatprep.subr.bf16.mxu0 %v10305_v32  ;;  %v11145_v32 = vld [vmem:[%s13089_s0 + $0x1a] sm:$0x1f] }
 0x415   :  { %2801 = vmatpush1.bf16.msra.mxu1 %v13680_v56 }
 0x416   :  { %2968 = vmatpush1.bf16.msra.mxu0 %v10312_v18  ;;  %2802 = vmatprep.subr.bf16.mxu1 %v10818_v16  ;;  %v13684_v18 = vld [vmem:[#allocation33_spill] sm:$0xff] }
 0x417   :  { %2969 = vmatprep.subr.bf16.mxu0 %v10319_v24  ;;  %v11153_v24 = vrot.slane %v11145_v32, %v8769_v49 }
 0x419   :  { %2803 = vmatpush1.bf16.msra.mxu1 %v13681_v58 }
 0x41a   :  { %2970 = vmatpush1.bf16.msra.mxu0 %v10326_v20  ;;  %2804 = vmatprep.subr.bf16.mxu1 %v13682_v11  ;;  %v2682_v20 = vrot.slane %v2668_v21, %v8769_v49  ;;  %v11229_v21 = vld [vmem:[#allocation4 + $0x10] ss:$8 sps:$4 sm:$0xff]  }
 0x41b   :  { %2971 = vmatprep.subr.bf16.mxu0 %v10333_v53  ;;  %v3067_v53 = vcombine.high %v11153_v24, %v11153_v24 }
 0x41d   :  { %2805 = vmatpush1.bf16.msra.mxu1 %v10846_v28  ;;  %v11170_v42 = vrot.slane %v3067_v53, %v8769_v49  ;;  %v13698_v53 = vld [vmem:[#allocation19_spill] sm:$0xff] }
 0x41e   :  { %2972 = vmatpush1.bf16.msra.mxu0 %v10340_v7  ;;  %2806 = vmatprep.subr.bf16.mxu1 %v13684_v18  ;;  %v2697_v7 = vrot.slane %v2682_v20, %v8769_v49  ;;  %v11233_v20 = vld [vmem:[#allocation4 + $0x24] ss:$8 sps:$4 sm:$0xff]  }
 0x41f   :  { %2973 = vmatprep.subr.bf16.mxu0 %v10347_v45  ;;  %v2897_v45 = vcombine.high %v11076_v34, %v11076_v34  ;;  %v13693_v34 = vld [vmem:[#allocation25_spill] sm:$0xff] }
 0x421   :  { %2807 = vmatpush1.bf16.msra.mxu1 %v10865_v36 }
 0x422   :  { %2974 = vmatpush1.bf16.msra.mxu0 %v13671_v14  ;;  %2808 = vmatprep.subr.bf16.mxu1 %v10872_v38  ;;  %v2860_v14 = vcombine.high %v13694_v54, %v13694_v54  ;;  %v13704_v54 = vld [vmem:[#allocation24_spill] sm:$0xff] }
 0x423   :  { %2975 = vmatprep.subr.bf16.mxu0 %v13672_v59  ;;  %v11198_v59 = vld [vmem:[#allocation2] sm:$0xff] }
 0x424   :  { %v2874_v57 = vrot.slane %v2860_v14, %v8769_v49  ;;  %v11262_v14 = vld [vmem:[#allocation4 + $0x50] ss:$8 sps:$4 sm:$0xff]  }
 0x425   :  { %2809 = vmatpush1.bf16.msra.mxu1 %v10884_v3 }
 0x426   :  { %2976 = vmatpush1.bf16.msra.mxu0 %v10370_v26  ;;  %3096 = vmatprep.subr.bf16.mxu1 %v13654_v25  ;;  %v13687_v25 = vld [vmem:[#allocation15_spill] sm:$0xff]  ;;  %v13688_v26 = vld [vmem:[#allocation16_spill] sm:$0xff] }
 0x427   :  { %2986 = vmatprep.subr.bf16.mxu0 %v13673_v48  ;;  %v11205_v48 = vrot.slane %v11198_v59, %v8769_v49 }
 0x428   :  { %2827 = vmatmul.mubr.bf16.vlgmr.msra.gmra.mrb[24].mxu1 %v2697_v7  ;;  %v11238_v7 = vld [vmem:[#allocation4 + $0x20] ss:$8 sps:$4 sm:$0xff]  }
 0x429   :  { %2978 = vmatmul.mubr.bf16.vlgmr.msra.gmra.mrb[24].mxu0 %v2897_v45  ;;  %3097 = vmatpush1.bf16.msra.mxu1 %v13685_v10  ;;  %v13699_v45 = vld [vmem:[#allocation51_spill] sm:$0xff] }
 0x42a   :  { %2987 = vmatpush1.bf16.msra.mxu0 %v13641_v8  ;;  %3098 = vmatprep.subr.bf16.mxu1 %v13686_v63  ;;  %v13689_v8 = vld [vmem:[#allocation17_spill] sm:$0xff]  ;;  %v11242_v10 = vld [vmem:[#allocation4 + $0x34] ss:$8 sps:$4 sm:$0xff]  }
 0x42b   :  { %2988 = vmatprep.subr.bf16.mxu0 %v13674_v40  ;;  %3018 = vmatprep.mubr.bf16.mxu0 %v13675_v60  ;;  %v11218_v40 = vld [vmem:[#allocation4] ss:$8 sps:$4 sm:$0xff]  }
 0x42c   :  { %3128 = vmatprep.mubr.bf16.mxu1 %v11170_v42  ;;  %v13700_v63 = vld [vmem:[#allocation53_spill] sm:$0xff] }
 0x42d   :  { %3099 = vmatpush1.bf16.msra.mxu1 %v13687_v25  ;;  %v11246_v25 = vld [vmem:[#allocation4 + $0x30] ss:$8 sps:$4 sm:$0xff]  }
 0x42e   :  { %2989 = vmatpush1.bf16.msra.mxu0 %v13676_v13  ;;  %3100 = vmatprep.subr.bf16.mxu1 %v13688_v26  ;;  %v13695_v13 = vld [vmem:[#allocation46_spill] sm:$0xff] }
 0x42f   :  { %2990 = vmatprep.subr.bf16.mxu0 %v13677_v33  ;;  %v13701_v26 = vld [vmem:[#allocation54_spill] sm:$0xff] }
 0x431   :  { %3101 = vmatpush1.bf16.msra.mxu1 %v13689_v8  ;;  %v11250_v8 = vld [vmem:[#allocation4 + $0x44] ss:$8 sps:$4 sm:$0xff]  }
 0x432   :  { %2991 = vmatpush1.bf16.msra.mxu0 %v13678_v46  ;;  %3102 = vmatprep.subr.bf16.mxu1 %v13690_v35  ;;  %v13702_v35 = vld [vmem:[#allocation21_spill] sm:$0xff] }
 0x433   :  { %2992 = vmatprep.subr.bf16.mxu0 %v13679_v12 }
 0x435   :  { %3103 = vmatpush1.bf16.msra.mxu1 %v13691_v31  ;;  %v11254_v31 = vld [vmem:[#allocation4 + $0x40] ss:$8 sps:$4 sm:$0xff]  }
 0x436   :  { %2993 = vmatpush1.bf16.msra.mxu0 %v13680_v56  ;;  %3104 = vmatprep.subr.bf16.mxu1 %v13692_v51  ;;  %v13703_v51 = vld [vmem:[#allocation22_spill] sm:$0xff] }
 0x437   :  { %2994 = vmatprep.subr.bf16.mxu0 %v10818_v16 }
 0x439   :  { %3105 = vmatpush1.bf16.msra.mxu1 %v13693_v34  ;;  %v11258_v34 = vld [vmem:[#allocation4 + $0x54] ss:$8 sps:$4 sm:$0xff]  }
 0x43a   :  { %2995 = vmatpush1.bf16.msra.mxu0 %v13681_v58  ;;  %3106 = vmatprep.subr.bf16.mxu1 %v13664_v17  ;;  %v2889_v17 = vrot.slane %v2874_v57, %v8769_v49  ;;  %v11266_v57 = vld [vmem:[#allocation4 + $0x64] ss:$8 sps:$4 sm:$0xff]  }
 0x43b   :  { %2996 = vmatprep.subr.bf16.mxu0 %v13682_v11 }
 0x43d   :  { %3107 = vmatpush1.bf16.msra.mxu1 %v10537_v43  ;;  %v11211_v43 = vld [vmem:[#allocation4 + $0x4] ss:$8 sps:$4 sm:$0xff]  }
 0x43e   :  { %2997 = vmatpush1.bf16.msra.mxu0 %v10846_v28  ;;  %3108 = vmatprep.subr.bf16.mxu1 %v10544_v62  ;;  %v3433_v62 = vcombine.high %v11205_v48, %v11205_v48 }
 0x43f   :  { %2998 = vmatprep.subr.bf16.mxu0 %v13684_v18 }
 0x441   :  { %3109 = vmatpush1.bf16.msra.mxu1 %v10556_v1  ;;  %v11222_v1 = vld [vmem:[#allocation4 + $0x14] ss:$8 sps:$4 sm:$0xff]  }
 0x442   :  { %2999 = vmatpush1.bf16.msra.mxu0 %v10865_v36  ;;  %3110 = vmatprep.subr.bf16.mxu1 %v10563_v37  ;;  %v11225_v37 = vrot.slane %v3433_v62, %v8769_v49 }
 0x443   :  { %3000 = vmatprep.subr.bf16.mxu0 %v10872_v38 }
 0x445   :  { %3111 = vmatpush1.bf16.msra.mxu1 %v10573_v52  ;;  %v13697_v52 = vld [vmem:[#allocation48_spill] sm:$0xff] }
 0x446   :  { %3001 = vmatpush1.bf16.msra.mxu0 %v10884_v3  ;;  %3112 = vmatprep.subr.bf16.mxu1 %v13695_v13 }
 0x447   :  { %4299 = vmatprep.subr.bf16.mxu0 %v11211_v43 }
 0x449   :  { %3019 = vmatmul.mubr.bf16.vlgmr.msra.gmra.mrb[24].mxu0 %v2889_v17  ;;  %3113 = vmatpush1.bf16.msra.mxu1 %v13696_v15 }
 0x44a   :  { %4300 = vmatpush1.bf16.msra.mxu0 %v11218_v40  ;;  %4331 = vmatprep.mubr.bf16.mxu0 %v11225_v37 }
 0x44b   :  { %3114 = vmatprep.subr.bf16.mxu1 %v13697_v52  ;;  %4301 = vmatprep.subr.bf16.mxu0 %v11222_v1 }
 0x44d   :  { %3115 = vmatpush1.bf16.msra.mxu1 %v13698_v53  ;;  %v11272_v53 = vld [vmem:[#allocation4 + $0x60] ss:$8 sps:$4 sm:$0xff]  }
 0x44e   :  { %4302 = vmatpush1.bf16.msra.mxu0 %v11229_v21  ;;  %3116 = vmatprep.subr.bf16.mxu1 %v13699_v45 }
 0x44f   :  { %4303 = vmatprep.subr.bf16.mxu0 %v11233_v20 }
 0x451   :  { %3117 = vmatpush1.bf16.msra.mxu1 %v13700_v63 }
 0x452   :  { %4304 = vmatpush1.bf16.msra.mxu0 %v11238_v7  ;;  %3118 = vmatprep.subr.bf16.mxu1 %v13701_v26 }
 0x453   :  { %4305 = vmatprep.subr.bf16.mxu0 %v11242_v10 }
 0x455   :  { %3119 = vmatpush1.bf16.msra.mxu1 %v13702_v35 }
 0x456   :  { %4306 = vmatpush1.bf16.msra.mxu0 %v11246_v25  ;;  %3120 = vmatprep.subr.bf16.mxu1 %v13703_v51  ;;  %v11280_v51 = vld [vmem:[#allocation4 + $0x70] ss:$8 sps:$4 sm:$0xff]  }
 0x457   :  { %4307 = vmatprep.subr.bf16.mxu0 %v11250_v8 }
 0x459   :  { %3121 = vmatpush1.bf16.msra.mxu1 %v13704_v54  ;;  %v11289_v54 = vrot.slane %v11153_v24, %v8769_v49  ;;  %v11312_v24 = vld [vmem:[#allocation4 + $0xa0] ss:$8 sps:$4 sm:$0xff]  }
 0x45a   :  { %4308 = vmatpush1.bf16.msra.mxu0 %v11254_v31  ;;  %3122 = vmatprep.subr.bf16.mxu1 %v10653_v41  ;;  %v11276_v41 = vld [vmem:[#allocation4 + $0x74] ss:$8 sps:$4 sm:$0xff]  }
 0x45b   :  { %4309 = vmatprep.subr.bf16.mxu0 %v11258_v34  ;;  %v2444_v17 = vpop.f32.mrb[20].mxu1 }
 0x45c   :  { %v7374_v62 = vadd.f32 %v2444_v17, %v13572_v4  ;;  %v2446_v13 = vpop.f32.mrb[21].mxu1  ;;  %v3090_v17 = vcombine.high %v11170_v42, %v11170_v42 }
 0x45d   :  { %v7375_v15 = vadd.f32 %v2446_v13, %v13573_v2  ;;  %v2448_v52 = vpop.f32.mrb[22].mxu1  ;;  %3123 = vmatpush1.bf16.msra.mxu1 %v10662_v47  ;;  %v11284_v47 = vld [vmem:[#allocation4 + $0x84] ss:$8 sps:$4 sm:$0xff]  }
 0x45e   :  { %4310 = vmatpush1.bf16.msra.mxu0 %v11262_v14  ;;  %v2451_v45 = vmax.f32 %v7374_v62, 0.0  ;;  %v2449_v63 = vpop.f32.mrb[23].mxu1  ;;  %3124 = vmatprep.subr.bf16.mxu1 %v10669_v50  ;;  %v11348_v52 = vld [vmem:[#allocation4 + $0xe0] ss:$8 sps:$4 sm:$0xff]  }
 0x45f   :  { %4311 = vmatprep.subr.bf16.mxu0 %v11266_v57  ;;  %v2452_v26 = vmax.f32 %v7375_v15, 0.0  ;;  %v8229_v63 = vld [vmem:[%s13090_s1 + $0x164] ss:$8 sps:$4 sm:$0xff]  }
 0x461   :  { %v6939_v35 = vpack.c.bf16 %v2452_v26, %v2451_v45  ;;  %3125 = vmatpush1.bf16.msra.mxu1 %v10676_v44  ;;  %v11293_v44 = vld [vmem:[#allocation4 + $0x80] ss:$8 sps:$4 sm:$0xff]   ;;  %v11354_v26 = vld [vmem:[#allocation4 + $0xf4] ss:$8 sps:$4 sm:$0xff]  }
 0x462   :  { %4312 = vmatpush1.bf16.msra.mxu0 %v11272_v53  ;;  %3126 = vmatprep.subr.bf16.mxu1 %v10683_v0  ;;  %v11297_v0 = vld [vmem:[#allocation4 + $0x94] ss:$8 sps:$4 sm:$0xff]  }
 0x463   :  { %4313 = vmatprep.subr.bf16.mxu0 %v11276_v41  ;;  %v2464_v50 = vrot.slane %v6939_v35, %v8769_v49 }
 0x465   :  { %6940 = vst.sshfl [vmem:[#allocation2 + $0x12] sm:$0x5 pattern:$0x73625140] %v2464_v50  ;;  %3127 = vmatpush1.bf16.msra.mxu1 %v10695_v9  ;;  %v11304_v9 = vld [vmem:[#allocation4 + $0x90] ss:$8 sps:$4 sm:$0xff]  }
 0x466   :  { %4314 = vmatpush1.bf16.msra.mxu0 %v11280_v51  ;;  %3137 = vmatprep.subr.bf16.mxu1 %v10986_v6  ;;  %v11308_v6 = vld [vmem:[#allocation4 + $0xa4] ss:$8 sps:$4 sm:$0xff]  }
 0x467   :  { %4315 = vmatprep.subr.bf16.mxu0 %v11284_v47 }
 0x468   :  { %3129 = vmatmul.mubr.bf16.vlgmr.msra.gmra.mrb[28].mxu1 %v11289_v54 }
 0x469   :  { %3138 = vmatpush1.bf16.msra.mxu1 %v10996_v55  ;;  %3169 = vmatprep.mubr.bf16.mxu1 %v3090_v17  ;;  %v11316_v55 = vld [vmem:[#allocation4 + $0xb4] ss:$8 sps:$4 sm:$0xff]  }
 0x46a   :  { %4316 = vmatpush1.bf16.msra.mxu0 %v11293_v44  ;;  %3139 = vmatprep.subr.bf16.mxu1 %v11003_v27  ;;  %v11320_v27 = vld [vmem:[#allocation4 + $0xb0] ss:$8 sps:$4 sm:$0xff]  }
 0x46b   :  { %4317 = vmatprep.subr.bf16.mxu0 %v11297_v0  ;;  %v8230_v17 = vld [vmem:[%s13090_s1 + $0x160] ss:$8 sps:$4 sm:$0xff]  }
 0x46d   :  { %3140 = vmatpush1.bf16.msra.mxu1 %v11010_v22  ;;  %v11324_v22 = vld [vmem:[#allocation4 + $0xc4] ss:$8 sps:$4 sm:$0xff]  }
 0x46e   :  { %4318 = vmatpush1.bf16.msra.mxu0 %v11304_v9  ;;  %3141 = vmatprep.subr.bf16.mxu1 %v11017_v30  ;;  %v11328_v30 = vld [vmem:[#allocation4 + $0xc0] ss:$8 sps:$4 sm:$0xff]  }
 0x46f   :  { %4319 = vmatprep.subr.bf16.mxu0 %v11308_v6 }
 0x471   :  { %3142 = vmatpush1.bf16.msra.mxu1 %v11024_v5  ;;  %v11332_v5 = vld [vmem:[#allocation4 + $0xd4] ss:$8 sps:$4 sm:$0xff]  }
 0x472   :  { %4320 = vmatpush1.bf16.msra.mxu0 %v11312_v24  ;;  %3143 = vmatprep.subr.bf16.mxu1 %v11031_v39  ;;  %v11336_v39 = vld [vmem:[#allocation4 + $0xd0] ss:$8 sps:$4 sm:$0xff]  }
 0x473   :  { %4321 = vmatprep.subr.bf16.mxu0 %v11316_v55 }
 0x475   :  { %3144 = vmatpush1.bf16.msra.mxu1 %v11038_v29  ;;  %v11340_v29 = vld [vmem:[#allocation4 + $0xe4] ss:$8 sps:$4 sm:$0xff]  }
 0x476   :  { %4322 = vmatpush1.bf16.msra.mxu0 %v11320_v27  ;;  %3145 = vmatprep.subr.bf16.mxu1 %v11045_v61 }
 0x477   :  { %4323 = vmatprep.subr.bf16.mxu0 %v11324_v22 }
 0x479   :  { %3146 = vmatpush1.bf16.msra.mxu1 %v11052_v19  ;;  %v8228_v19 = vld [vmem:[%s13090_s1 + $0x150] ss:$8 sps:$4 sm:$0xff]  }
 0x47a   :  { %4324 = vmatpush1.bf16.msra.mxu0 %v11328_v30  ;;  %3147 = vmatprep.subr.bf16.mxu1 %v11059_v23 }
 0x47b   :  { %4325 = vmatprep.subr.bf16.mxu0 %v11332_v5 }
 0x47c   :  { %v2636_v42 = vpop.f32.mrb[20].mxu0 }
 0x47d   :  { %v7376_v62 = vadd.f32 %v2636_v42, %v13572_v4  ;;  %v2638_v61 = vpop.f32.mrb[21].mxu0  ;;  %3148 = vmatpush1.bf16.msra.mxu1 %v8228_v19  ;;  %v11360_v42 = vld [vmem:[#allocation4 + $0xf0] ss:$8 sps:$4 sm:$0xff]   ;;  %v11373_v19 = vld [vmem:[#allocation4 + $0x100] ss:$8 sps:$4 sm:$0xff]  }
 0x47e   :  { %v7377_v13 = vadd.f32 %v2638_v61, %v13573_v2  ;;  %v2640_v15 = vpop.f32.mrb[22].mxu0  ;;  %4326 = vmatpush1.bf16.msra.mxu0 %v11336_v39  ;;  %3149 = vmatprep.subr.bf16.mxu1 %v8229_v63  ;;  %v11366_v61 = vld [vmem:[#allocation4 + $0x104] ss:$8 sps:$4 sm:$0xff]   ;;  %v11383_v63 = vld [vmem:[#allocation4 + $0x114] ss:$8 sps:$4 sm:$0xff]  }
 0x47f   :  { %v2643_v23 = vmax.f32 %v7376_v62, 0.0  ;;  %v2641_v45 = vpop.f32.mrb[23].mxu0  ;;  %4327 = vmatprep.subr.bf16.mxu0 %v11340_v29  ;;  %v8231_v62 = vld [vmem:[%s13090_s1 + $0x174] ss:$8 sps:$4 sm:$0xff]   ;;  %v8232_v15 = vld [vmem:[%s13090_s1 + $0x170] ss:$8 sps:$4 sm:$0xff]  }
 0x480   :  { %v2644_v35 = vmax.f32 %v7377_v13, 0.0  ;;  %v11380_v45 = vrot.slane %v11205_v48, %v8769_v49  ;;  %v8235_v48 = vld [vmem:[%s13090_s1 + $0x194] ss:$8 sps:$4 sm:$0xff]  }
 0x481   :  { %3150 = vmatpush1.bf16.msra.mxu1 %v8230_v17  ;;  %v11392_v17 = vld [vmem:[#allocation4 + $0x110] ss:$8 sps:$4 sm:$0xff]  }
 0x482   :  { %v6941_v50 = vpack.c.bf16 %v2644_v35, %v2643_v23  ;;  %4328 = vmatpush1.bf16.msra.mxu0 %v11348_v52  ;;  %3151 = vmatprep.subr.bf16.mxu1 %v8231_v62  ;;  %v8233_v23 = vld [vmem:[%s13090_s1 + $0x184] ss:$8 sps:$4 sm:$0xff]   ;;  %v3465_v35 = vcombine.high %v11225_v37, %v11225_v37  ;;  %v8236_v37 = vld [vmem:[%s13090_s1 + $0x190] ss:$8 sps:$4 sm:$0xff]  }
 0x483   :  { %4329 = vmatprep.subr.bf16.mxu0 %v11354_v26  ;;  %v11397_v62 = vld [vmem:[#allocation4 + $0x124] ss:$8 sps:$4 sm:$0xff]  }
 0x484   :  { %v2656_v13 = vrot.slane %v6941_v50, %v8769_v49  ;;  %v8234_v50 = vld [vmem:[%s13090_s1 + $0x180] ss:$8 sps:$4 sm:$0xff]  }
 0x485   :  { %3152 = vmatpush1.bf16.msra.mxu1 %v8232_v15  ;;  %v8237_v15 = vld [vmem:[%s13090_s1 + $0x1a4] ss:$8 sps:$4 sm:$0xff]  }
 0x486   :  { %6942 = vst.sshfl [vmem:[#allocation2 + $0x14] sm:$0x5 pattern:$0x73625140] %v2656_v13  ;;  %4330 = vmatpush1.bf16.msra.mxu0 %v11360_v42  ;;  %3153 = vmatprep.subr.bf16.mxu1 %v8233_v23  ;;  %v11404_v13 = vld [vmem:[#allocation4 + $0x120] ss:$8 sps:$4 sm:$0xff]  }
 0x487   :  { %4340 = vmatprep.subr.bf16.mxu0 %v11366_v61  ;;  %13705 = vst [vmem:[#allocation50_spill] sm:$0xff] %v11404_v13  ;;  %v11410_v23 = vld [vmem:[#allocation4 + $0x134] ss:$8 sps:$4 sm:$0xff]  }
 0x488   :  { %13706 = vst [vmem:[#allocation34_spill] sm:$0xff] %v11410_v23 }
 0x489   :  { %4332 = vmatmul.mubr.bf16.vlgmr.msra.gmra.mrb[28].mxu0 %v11380_v45  ;;  %3154 = vmatpush1.bf16.msra.mxu1 %v8234_v50  ;;  %v11416_v50 = vld [vmem:[#allocation4 + $0x130] ss:$8 sps:$4 sm:$0xff]  }
 0x48a   :  { %4341 = vmatpush1.bf16.msra.mxu0 %v11373_v19  ;;  %4372 = vmatprep.mubr.bf16.mxu0 %v3465_v35  ;;  %v8238_v35 = vld [vmem:[%s13090_s1 + $0x1a0] ss:$8 sps:$4 sm:$0xff]   ;;  %13707 = vst [vmem:[#allocation52_spill] sm:$0xff] %v11416_v50 }
 0x48b   :  { %3155 = vmatprep.subr.bf16.mxu1 %v8235_v48  ;;  %4342 = vmatprep.subr.bf16.mxu0 %v11383_v63  ;;  %v8239_v48 = vld [vmem:[%s13090_s1 + $0x1b4] ss:$8 sps:$4 sm:$0xff]  }
 0x48d   :  { %3156 = vmatpush1.bf16.msra.mxu1 %v8236_v37  ;;  %v11422_v37 = vld [vmem:[#allocation4 + $0x144] ss:$8 sps:$4 sm:$0xff]  }
 0x48e   :  { %4343 = vmatpush1.bf16.msra.mxu0 %v11392_v17  ;;  %3157 = vmatprep.subr.bf16.mxu1 %v8237_v15  ;;  %13708 = vst [vmem:[#allocation38_spill] sm:$0xff] %v11422_v37  ;;  %v8240_v15 = vld [vmem:[%s13090_s1 + $0x1b0] ss:$8 sps:$4 sm:$0xff]  }
 0x48f   :  { %4344 = vmatprep.subr.bf16.mxu0 %v11397_v62 }
 0x491   :  { %3158 = vmatpush1.bf16.msra.mxu1 %v8238_v35  ;;  %v11428_v35 = vld [vmem:[#allocation4 + $0x140] ss:$8 sps:$4 sm:$0xff]  }
 0x492   :  { %4345 = vmatpush1.bf16.msra.mxu0 %v11404_v13  ;;  %3159 = vmatprep.subr.bf16.mxu1 %v8239_v48  ;;  %13709 = vst [vmem:[#allocation41_spill] sm:$0xff] %v11428_v35  ;;  %v8241_v13 = vld [vmem:[%s13090_s1 + $0x1c4] ss:$8 sps:$4 sm:$0xff]  }
 0x493   :  { %4346 = vmatprep.subr.bf16.mxu0 %v11410_v23  ;;  %v11434_v48 = vld [vmem:[#allocation4 + $0x154] ss:$8 sps:$4 sm:$0xff]  }
 0x494   :  { %13710 = vst [vmem:[#allocation42_spill] sm:$0xff] %v11434_v48  ;;  %v8242_v23 = vld [vmem:[%s13090_s1 + $0x1c0] ss:$8 sps:$4 sm:$0xff]  }
 0x495   :  { %3160 = vmatpush1.bf16.msra.mxu1 %v8240_v15  ;;  %v11440_v15 = vld [vmem:[#allocation4 + $0x150] ss:$8 sps:$4 sm:$0xff]  }
 0x496   :  { %4347 = vmatpush1.bf16.msra.mxu0 %v11416_v50  ;;  %3161 = vmatprep.subr.bf16.mxu1 %v8241_v13  ;;  %13711 = vst [vmem:[#allocation44_spill] sm:$0xff] %v11440_v15  ;;  %v8243_v50 = vld [vmem:[%s13090_s1 + $0x1d4] ss:$8 sps:$4 sm:$0xff]  }
 0x497   :  { %4348 = vmatprep.subr.bf16.mxu0 %v11422_v37  ;;  %v11446_v13 = vld [vmem:[#allocation4 + $0x164] ss:$8 sps:$4 sm:$0xff]  }
 0x498   :  { %13712 = vst [vmem:[#allocation45_spill] sm:$0xff] %v11446_v13  ;;  %v8244_v37 = vld [vmem:[%s13090_s1 + $0x1d0] ss:$8 sps:$4 sm:$0xff]  }
 0x499   :  { %3162 = vmatpush1.bf16.msra.mxu1 %v8242_v23  ;;  %v11452_v23 = vld [vmem:[#allocation4 + $0x160] ss:$8 sps:$4 sm:$0xff]  }
 0x49a   :  { %4349 = vmatpush1.bf16.msra.mxu0 %v11428_v35  ;;  %3163 = vmatprep.subr.bf16.mxu1 %v8243_v50  ;;  %13713 = vst [vmem:[#allocation35_spill] sm:$0xff] %v11452_v23  ;;  %v8245_v35 = vld [vmem:[%s13090_s1 + $0x1e4] ss:$8 sps:$4 sm:$0xff]  }
 0x49b   :  { %4350 = vmatprep.subr.bf16.mxu0 %v11434_v48  ;;  %v11458_v50 = vld [vmem:[#allocation4 + $0x174] ss:$8 sps:$4 sm:$0xff]  }
 0x49c   :  { %13714 = vst [vmem:[#allocation36_spill] sm:$0xff] %v11458_v50  ;;  %v8246_v48 = vld [vmem:[%s13090_s1 + $0x1e0] ss:$8 sps:$4 sm:$0xff]  }
 0x49d   :  { %3164 = vmatpush1.bf16.msra.mxu1 %v8244_v37  ;;  %v11464_v37 = vld [vmem:[#allocation4 + $0x170] ss:$8 sps:$4 sm:$0xff]  }
 0x49e   :  { %4351 = vmatpush1.bf16.msra.mxu0 %v11440_v15  ;;  %3165 = vmatprep.subr.bf16.mxu1 %v8245_v35  ;;  %13715 = vst [vmem:[#allocation37_spill] sm:$0xff] %v11464_v37  ;;  %v8247_v15 = vld [vmem:[%s13090_s1 + $0x1f4] ss:$8 sps:$4 sm:$0xff]  }
 0x49f   :  { %4352 = vmatprep.subr.bf16.mxu0 %v11446_v13  ;;  %v11470_v35 = vld [vmem:[#allocation4 + $0x184] ss:$8 sps:$4 sm:$0xff]   ;;  %v3089_v13 = vcombine.high %v11289_v54, %v11289_v54 }
 0x4a0   :  { %v8250_v54 = vld [vmem:[%s13090_s1 + $0x200] ss:$8 sps:$4 sm:$0xff]  }
 0x4a1   :  { %3166 = vmatpush1.bf16.msra.mxu1 %v8246_v48  ;;  %v8248_v48 = vld [vmem:[%s13090_s1 + $0x1f0] ss:$8 sps:$4 sm:$0xff]  }
 0x4a2   :  { %4353 = vmatpush1.bf16.msra.mxu0 %v11452_v23  ;;  %3167 = vmatprep.subr.bf16.mxu1 %v8247_v15  ;;  %v11478_v23 = vld [vmem:[#allocation4 + $0x180] ss:$8 sps:$4 sm:$0xff]  }
 0x4a3   :  { %4354 = vmatprep.subr.bf16.mxu0 %v11458_v50  ;;  %v8249_v15 = vld [vmem:[%s13090_s1 + $0x204] ss:$8 sps:$4 sm:$0xff]  }
 0x4a4   :  { %v11484_v50 = vld [vmem:[#allocation4 + $0x194] ss:$8 sps:$4 sm:$0xff]  }
 0x4a5   :  { %3168 = vmatpush1.bf16.msra.mxu1 %v8248_v48  ;;  %v11490_v48 = vld [vmem:[#allocation4 + $0x190] ss:$8 sps:$4 sm:$0xff]  }
 0x4a6   :  { %4355 = vmatpush1.bf16.msra.mxu0 %v11464_v37  ;;  %3178 = vmatprep.subr.bf16.mxu1 %v8249_v15  ;;  %v8251_v37 = vld [vmem:[%s13090_s1 + $0x214] ss:$8 sps:$4 sm:$0xff]  }
 0x4a7   :  { %4356 = vmatprep.subr.bf16.mxu0 %v11470_v35  ;;  %v11496_v15 = vld [vmem:[#allocation4 + $0x1a4] ss:$8 sps:$4 sm:$0xff]  }
 0x4a8   :  { %3170 = vmatmul.mubr.bf16.vlgmr.msra.gmra.mrb[28].mxu1 %v3089_v13  ;;  %v8252_v13 = vld [vmem:[%s13090_s1 + $0x210] ss:$8 sps:$4 sm:$0xff]  }
 0x4a9   :  { %3179 = vmatpush1.bf16.msra.mxu1 %v8250_v54  ;;  %3210 = vmatprep.mubr.bf16.mxu1 %v13675_v60  ;;  %v11503_v54 = vld [vmem:[#allocation4 + $0x1a0] ss:$8 sps:$4 sm:$0xff]   ;;  %v11511_v60 = vld [vmem:[#allocation4 + $0x1b0] ss:$8 sps:$4 sm:$0xff]  }
 0x4aa   :  { %4357 = vmatpush1.bf16.msra.mxu0 %v11478_v23  ;;  %3180 = vmatprep.subr.bf16.mxu1 %v8251_v37  ;;  %v11507_v37 = vld [vmem:[#allocation4 + $0x1b4] ss:$8 sps:$4 sm:$0xff]   ;;  %13716 = vst [vmem:[#allocation39_spill] sm:$0xff] %v11511_v60 }
 0x4ab   :  { %4358 = vmatprep.subr.bf16.mxu0 %v11484_v50 }
 0x4ad   :  { %3181 = vmatpush1.bf16.msra.mxu1 %v8252_v13  ;;  %v11515_v13 = vld [vmem:[#allocation4 + $0x1c4] ss:$8 sps:$4 sm:$0xff]  }
 0x4ae   :  { %4359 = vmatpush1.bf16.msra.mxu0 %v11490_v48  ;;  %3182 = vmatprep.subr.bf16.mxu1 %v13677_v33  ;;  %v11519_v33 = vld [vmem:[#allocation4 + $0x1c0] ss:$8 sps:$4 sm:$0xff]  }
 0x4af   :  { %4360 = vmatprep.subr.bf16.mxu0 %v11496_v15  ;;  %13717 = vst [vmem:[#allocation40_spill] sm:$0xff] %v11519_v33 }
 0x4b1   :  { %3183 = vmatpush1.bf16.msra.mxu1 %v13678_v46  ;;  %v11523_v46 = vld [vmem:[#allocation4 + $0x1d4] ss:$8 sps:$4 sm:$0xff]  }
 0x4b2   :  { %4361 = vmatpush1.bf16.msra.mxu0 %v11503_v54  ;;  %3184 = vmatprep.subr.bf16.mxu1 %v13679_v12  ;;  %13718 = vst [vmem:[#allocation26_spill] sm:$0xff] %v11523_v46  ;;  %v11527_v12 = vld [vmem:[#allocation4 + $0x1d0] ss:$8 sps:$4 sm:$0xff]  }
 0x4b3   :  { %4362 = vmatprep.subr.bf16.mxu0 %v11507_v37 }
 0x4b5   :  { %3185 = vmatpush1.bf16.msra.mxu1 %v13680_v56  ;;  %v11531_v56 = vld [vmem:[#allocation4 + $0x1e4] ss:$8 sps:$4 sm:$0xff]  }
 0x4b6   :  { %4363 = vmatpush1.bf16.msra.mxu0 %v11511_v60  ;;  %3186 = vmatprep.subr.bf16.mxu1 %v10818_v16  ;;  %13719 = vst [vmem:[#allocation27_spill] sm:$0xff] %v11531_v56  ;;  %v3418_v60 = vcombine.high %v11198_v59, %v11198_v59  ;;  %v3052_v16 = vcombine.high %v11145_v32, %v11145_v32  ;;  %v11557_v32 = vld [vmem:[#allocation4 + $0x1f0] ss:$8 sps:$4 sm:$0xff]  }
 0x4b7   :  { %4364 = vmatprep.subr.bf16.mxu0 %v11515_v13  ;;  %13721 = vst [vmem:[#allocation29_spill] sm:$0xff] %v11557_v32 }
 0x4b8   :  { %v3066_v59 = vrot.slane %v3052_v16, %v8769_v49 }
 0x4b9   :  { %3187 = vmatpush1.bf16.msra.mxu1 %v13681_v58  ;;  %v11539_v58 = vld [vmem:[#allocation4 + $0x1e0] ss:$8 sps:$4 sm:$0xff]  }
 0x4ba   :  { %4365 = vmatpush1.bf16.msra.mxu0 %v11519_v33  ;;  %3188 = vmatprep.subr.bf16.mxu1 %v13682_v11  ;;  %v11541_v33 = vld [vmem:[#allocation2 + $0x4] sm:$0xff]  ;;  %v3081_v16 = vrot.slane %v3066_v59, %v8769_v49 }
 0x4bb   :  { %4366 = vmatprep.subr.bf16.mxu0 %v11523_v46  ;;  %v11545_v11 = vld [vmem:[#allocation4 + $0x1f4] ss:$8 sps:$4 sm:$0xff]   ;;  %v11548_v46 = vrot.slane %v3418_v60, %v8769_v49 }
 0x4bc   :  { %13720 = vst [vmem:[#allocation28_spill] sm:$0xff] %v11545_v11  ;;  %v11579_v59 = vld [vmem:[#allocation4 + $0x214] ss:$8 sps:$4 sm:$0xff]  }
 0x4bd   :  { %3189 = vmatpush1.bf16.msra.mxu1 %v10846_v28  ;;  %v11553_v28 = vrot.slane %v11541_v33, %v8769_v49  ;;  %v3434_v60 = vcombine.high %v11548_v46, %v11548_v46  ;;  %13724 = vst [vmem:[#allocation32_spill] sm:$0xff] %v11579_v59 }
 0x4be   :  { %4367 = vmatpush1.bf16.msra.mxu0 %v11527_v12  ;;  %3190 = vmatprep.subr.bf16.mxu1 %v13684_v18  ;;  %v11561_v18 = vld [vmem:[#allocation4 + $0x204] ss:$8 sps:$4 sm:$0xff]  }
 0x4bf   :  { %4368 = vmatprep.subr.bf16.mxu0 %v11531_v56  ;;  %13722 = vst [vmem:[#allocation30_spill] sm:$0xff] %v11561_v18  ;;  %v4546_v56 = vcombine.high %v11553_v28, %v11553_v28 }
 0x4c1   :  { %3191 = vmatpush1.bf16.msra.mxu1 %v10865_v36  ;;  %v11570_v36 = vld [vmem:[#allocation4 + $0x200] ss:$8 sps:$4 sm:$0xff]  }
 0x4c2   :  { %4369 = vmatpush1.bf16.msra.mxu0 %v11539_v58  ;;  %3192 = vmatprep.subr.bf16.mxu1 %v10872_v38  ;;  %13723 = vst [vmem:[#allocation31_spill] sm:$0xff] %v11570_v36  ;;  %v3463_v38 = vcombine.high %v11380_v45, %v11380_v45  ;;  %v11595_v45 = vld [vmem:[#allocation4 + $0x220] ss:$8 sps:$4 sm:$0xff]  }
 0x4c3   :  { %4370 = vmatprep.subr.bf16.mxu0 %v11545_v11  ;;  %v11577_v11 = vrot.slane %v3434_v60, %v8769_v49  ;;  %13727 = vst [vmem:[#allocation14_spill] sm:$0xff] %v11595_v45 }
 0x4c5   :  { %3193 = vmatpush1.bf16.msra.mxu1 %v10884_v3  ;;  %v11582_v3 = vrot.slane %v4546_v56, %v8769_v49  ;;  %v11599_v56 = vld [vmem:[#allocation4 + $0x234] ss:$8 sps:$4 sm:$0xff]  }
 0x4c6   :  { %4371 = vmatpush1.bf16.msra.mxu0 %v11557_v32  ;;  %4612 = vmatprep.subr.bf16.mxu1 %v11211_v43  ;;  %v11586_v32 = vld [vmem:[#allocation4 + $0x210] ss:$8 sps:$4 sm:$0xff]   ;;  %v11590_v43 = vld [vmem:[#allocation4 + $0x224] ss:$8 sps:$4 sm:$0xff]   ;;  %13728 = vst [vmem:[#allocation15_spill] sm:$0xff] %v11599_v56 }
 0x4c7   :  { %4381 = vmatprep.subr.bf16.mxu0 %v11561_v18  ;;  %13725 = vst [vmem:[#allocation33_spill] sm:$0xff] %v11586_v32  ;;  %13726 = vst [vmem:[#allocation43_spill] sm:$0xff] %v11590_v43 }
 0x4c8   :  { %3211 = vmatmul.mubr.bf16.vlgmr.msra.gmra.mrb[28].mxu1 %v3081_v16 }
 0x4c9   :  { %4373 = vmatmul.mubr.bf16.vlgmr.msra.gmra.mrb[28].mxu0 %v3463_v38  ;;  %4613 = vmatpush1.bf16.msra.mxu1 %v11218_v40  ;;  %v11603_v40 = vld [vmem:[#allocation4 + $0x230] ss:$8 sps:$4 sm:$0xff]  }
 0x4ca   :  { %4382 = vmatpush1.bf16.msra.mxu0 %v11570_v36  ;;  %4413 = vmatprep.mubr.bf16.mxu0 %v11577_v11  ;;  %13729 = vst [vmem:[#allocation16_spill] sm:$0xff] %v11603_v40 }
 0x4cb   :  { %4644 = vmatprep.mubr.bf16.mxu1 %v11582_v3  ;;  %4383 = vmatprep.subr.bf16.mxu0 %v11579_v59 }
 0x4cc   :  { %4614 = vmatprep.subr.bf16.mxu1 %v11222_v1  ;;  %v11607_v1 = vld [vmem:[#allocation4 + $0x244] ss:$8 sps:$4 sm:$0xff]  }
 0x4cd   :  { %4615 = vmatpush1.bf16.msra.mxu1 %v11229_v21  ;;  %13730 = vst [vmem:[#allocation17_spill] sm:$0xff] %v11607_v1  ;;  %v11611_v21 = vld [vmem:[#allocation4 + $0x240] ss:$8 sps:$4 sm:$0xff]  }
 0x4ce   :  { %4384 = vmatpush1.bf16.msra.mxu0 %v11586_v32  ;;  %4616 = vmatprep.subr.bf16.mxu1 %v11233_v20  ;;  %13731 = vst [vmem:[#allocation18_spill] sm:$0xff] %v11611_v21  ;;  %v11615_v20 = vld [vmem:[#allocation4 + $0x254] ss:$8 sps:$4 sm:$0xff]  }
 0x4cf   :  { %4385 = vmatprep.subr.bf16.mxu0 %v11590_v43  ;;  %13732 = vst [vmem:[#allocation20_spill] sm:$0xff] %v11615_v20 }
 0x4d1   :  { %4617 = vmatpush1.bf16.msra.mxu1 %v11238_v7  ;;  %v11619_v7 = vld [vmem:[#allocation4 + $0x250] ss:$8 sps:$4 sm:$0xff]  }
 0x4d2   :  { %4386 = vmatpush1.bf16.msra.mxu0 %v11595_v45  ;;  %4618 = vmatprep.subr.bf16.mxu1 %v11242_v10  ;;  %13733 = vst [vmem:[#allocation23_spill] sm:$0xff] %v11619_v7  ;;  %v11623_v10 = vld [vmem:[#allocation4 + $0x264] ss:$8 sps:$4 sm:$0xff]  }
 0x4d3   :  { %4387 = vmatprep.subr.bf16.mxu0 %v11599_v56  ;;  %13734 = vst [vmem:[#allocation25_spill] sm:$0xff] %v11623_v10 }
 0x4d5   :  { %4619 = vmatpush1.bf16.msra.mxu1 %v11246_v25  ;;  %v11627_v25 = vld [vmem:[#allocation4 + $0x260] ss:$8 sps:$4 sm:$0xff]  }
 0x4d6   :  { %4388 = vmatpush1.bf16.msra.mxu0 %v11603_v40  ;;  %4620 = vmatprep.subr.bf16.mxu1 %v11250_v8  ;;  %13735 = vst [vmem:[#allocation49_spill] sm:$0xff] %v11627_v25  ;;  %v11631_v8 = vld [vmem:[#allocation4 + $0x274] ss:$8 sps:$4 sm:$0xff]  }
 0x4d7   :  { %4389 = vmatprep.subr.bf16.mxu0 %v11607_v1  ;;  %13736 = vst [vmem:[#allocation46_spill] sm:$0xff] %v11631_v8 }
 0x4d9   :  { %4621 = vmatpush1.bf16.msra.mxu1 %v11254_v31  ;;  %v11635_v31 = vld [vmem:[#allocation4 + $0x270] ss:$8 sps:$4 sm:$0xff]  }
 0x4da   :  { %4390 = vmatpush1.bf16.msra.mxu0 %v11611_v21  ;;  %4622 = vmatprep.subr.bf16.mxu1 %v11258_v34  ;;  %13737 = vst [vmem:[#allocation47_spill] sm:$0xff] %v11635_v31  ;;  %v11639_v34 = vld [vmem:[#allocation4 + $0x284] ss:$8 sps:$4 sm:$0xff]  }
 0x4db   :  { %4391 = vmatprep.subr.bf16.mxu0 %v11615_v20  ;;  %13738 = vst [vmem:[#allocation48_spill] sm:$0xff] %v11639_v34 }
 0x4dd   :  { %4623 = vmatpush1.bf16.msra.mxu1 %v11262_v14  ;;  %v11643_v14 = vld [vmem:[#allocation4 + $0x280] ss:$8 sps:$4 sm:$0xff]  }
 0x4de   :  { %4392 = vmatpush1.bf16.msra.mxu0 %v11619_v7  ;;  %4624 = vmatprep.subr.bf16.mxu1 %v11266_v57  ;;  %13739 = vst [vmem:[#allocation19_spill] sm:$0xff] %v11643_v14  ;;  %v11647_v57 = vld [vmem:[#allocation4 + $0x294] ss:$8 sps:$4 sm:$0xff]  }
 0x4df   :  { %4393 = vmatprep.subr.bf16.mxu0 %v11623_v10  ;;  %13740 = vst [vmem:[#allocation51_spill] sm:$0xff] %v11647_v57 }
 0x4e1   :  { %4625 = vmatpush1.bf16.msra.mxu1 %v11272_v53  ;;  %v11651_v53 = vld [vmem:[#allocation4 + $0x290] ss:$8 sps:$4 sm:$0xff]  }
 0x4e2   :  { %4394 = vmatpush1.bf16.msra.mxu0 %v11627_v25  ;;  %4626 = vmatprep.subr.bf16.mxu1 %v11276_v41  ;;  %13741 = vst [vmem:[#allocation53_spill] sm:$0xff] %v11651_v53  ;;  %v11655_v41 = vld [vmem:[#allocation4 + $0x2a4] ss:$8 sps:$4 sm:$0xff]  }
 0x4e3   :  { %4395 = vmatprep.subr.bf16.mxu0 %v11631_v8  ;;  %13742 = vst [vmem:[#allocation54_spill] sm:$0xff] %v11655_v41 }
 0x4e5   :  { %4627 = vmatpush1.bf16.msra.mxu1 %v11280_v51  ;;  %v11659_v51 = vld [vmem:[#allocation4 + $0x2a0] ss:$8 sps:$4 sm:$0xff]  }
 0x4e6   :  { %4396 = vmatpush1.bf16.msra.mxu0 %v11635_v31  ;;  %4628 = vmatprep.subr.bf16.mxu1 %v11284_v47  ;;  %13743 = vst [vmem:[#allocation21_spill] sm:$0xff] %v11659_v51  ;;  %v11663_v47 = vld [vmem:[#allocation4 + $0x2b4] ss:$8 sps:$4 sm:$0xff]  }
 0x4e7   :  { %4397 = vmatprep.subr.bf16.mxu0 %v11639_v34  ;;  %13744 = vst [vmem:[#allocation22_spill] sm:$0xff] %v11663_v47 }
 0x4e9   :  { %4629 = vmatpush1.bf16.msra.mxu1 %v11293_v44  ;;  %v11667_v44 = vld [vmem:[#allocation4 + $0x2b0] ss:$8 sps:$4 sm:$0xff]  }
 0x4ea   :  { %4398 = vmatpush1.bf16.msra.mxu0 %v11643_v14  ;;  %4630 = vmatprep.subr.bf16.mxu1 %v11297_v0  ;;  %13745 = vst [vmem:[#allocation24_spill] sm:$0xff] %v11667_v44  ;;  %v11671_v0 = vld [vmem:[#allocation4 + $0x2c4] ss:$8 sps:$4 sm:$0xff]  }
 0x4eb   :  { %4399 = vmatprep.subr.bf16.mxu0 %v11647_v57  ;;  %13746 = vst [vmem:[#allocation55_spill] sm:$0xff] %v11671_v0 }
 0x4ed   :  { %4631 = vmatpush1.bf16.msra.mxu1 %v11304_v9  ;;  %v11675_v9 = vld [vmem:[#allocation4 + $0x2c0] ss:$8 sps:$4 sm:$0xff]  }
 0x4ee   :  { %4400 = vmatpush1.bf16.msra.mxu0 %v11651_v53  ;;  %4632 = vmatprep.subr.bf16.mxu1 %v11308_v6  ;;  %13747 = vst [vmem:[#allocation56_spill] sm:$0xff] %v11675_v9  ;;  %v11679_v6 = vld [vmem:[#allocation4 + $0x2d4] ss:$8 sps:$4 sm:$0xff]  }
 0x4ef   :  { %4401 = vmatprep.subr.bf16.mxu0 %v11655_v41  ;;  %13748 = vst [vmem:[#allocation57_spill] sm:$0xff] %v11679_v6 }
 0x4f1   :  { %4633 = vmatpush1.bf16.msra.mxu1 %v11312_v24  ;;  %v11683_v24 = vld [vmem:[#allocation4 + $0x2d0] ss:$8 sps:$4 sm:$0xff]  }
 0x4f2   :  { %4402 = vmatpush1.bf16.msra.mxu0 %v11659_v51  ;;  %4634 = vmatprep.subr.bf16.mxu1 %v11316_v55  ;;  %13749 = vst [vmem:[#allocation58_spill] sm:$0xff] %v11683_v24  ;;  %v11687_v55 = vld [vmem:[#allocation4 + $0x2e4] ss:$8 sps:$4 sm:$0xff]  }
 0x4f3   :  { %4403 = vmatprep.subr.bf16.mxu0 %v11663_v47  ;;  %13750 = vst [vmem:[#allocation59_spill] sm:$0xff] %v11687_v55 }
 0x4f5   :  { %4635 = vmatpush1.bf16.msra.mxu1 %v11320_v27 }
 0x4f6   :  { %4404 = vmatpush1.bf16.msra.mxu0 %v11667_v44  ;;  %4636 = vmatprep.subr.bf16.mxu1 %v11324_v22  ;;  %v11693_v22 = vld [vmem:[#allocation4 + $0x2e0] ss:$8 sps:$4 sm:$0xff]  }
 0x4f7   :  { %4405 = vmatprep.subr.bf16.mxu0 %v11671_v0  ;;  %13751 = vst [vmem:[#allocation60_spill] sm:$0xff] %v11693_v22 }
 0x4f9   :  { %4637 = vmatpush1.bf16.msra.mxu1 %v11328_v30 }
 0x4fa   :  { %4406 = vmatpush1.bf16.msra.mxu0 %v11675_v9  ;;  %4638 = vmatprep.subr.bf16.mxu1 %v11332_v5 }
 0x4fb   :  { %4407 = vmatprep.subr.bf16.mxu0 %v11679_v6  ;;  %v2828_v60 = vpop.f32.mrb[24].mxu1  ;;  %v11697_v6 = vld [vmem:[#allocation4 + $0x2f4] ss:$8 sps:$4 sm:$0xff]  }
 0x4fc   :  { %v7378_v27 = vadd.f32 %v2828_v60, %v13572_v4  ;;  %v2830_v16 = vpop.f32.mrb[25].mxu1  ;;  %13752 = vst [vmem:[#allocation61_spill] sm:$0xff] %v11697_v6  ;;  %v11701_v60 = vld [vmem:[#allocation4 + $0x2f0] ss:$8 sps:$4 sm:$0xff]  }
 0x4fd   :  { %v7379_v38 = vadd.f32 %v2830_v16, %v13573_v2  ;;  %v2832_v0 = vpop.f32.mrb[26].mxu1  ;;  %4639 = vmatpush1.bf16.msra.mxu1 %v11336_v39  ;;  %13753 = vst [vmem:[#allocation62_spill] sm:$0xff] %v11701_v60  ;;  %v13766_v16 = vld [vmem:[#allocation52_spill] sm:$0xff] }
 0x4fe   :  { %4408 = vmatpush1.bf16.msra.mxu0 %v11683_v24  ;;  %v2835_v9 = vmax.f32 %v7378_v27, 0.0  ;;  %v2833_v30 = vpop.f32.mrb[27].mxu1  ;;  %4640 = vmatprep.subr.bf16.mxu1 %v11340_v29  ;;  %v11705_v0 = vld [vmem:[#allocation4 + $0x304] ss:$8 sps:$4 sm:$0xff]   ;;  %v11710_v27 = vld [vmem:[#allocation4 + $0x300] ss:$8 sps:$4 sm:$0xff]   ;;  %v11715_v29 = vrot.slane %v11548_v46, %v8769_v49 }
 0x4ff   :  { %4409 = vmatprep.subr.bf16.mxu0 %v11687_v55  ;;  %v2836_v44 = vmax.f32 %v7379_v38, 0.0  ;;  %13754 = vst [vmem:[#allocation63_spill] sm:$0xff] %v11705_v0  ;;  %13755 = vst [vmem:[#allocation64_spill] sm:$0xff] %v11710_v27  ;;  %v11732_v46 = vld [vmem:[#allocation4 + $0x310] ss:$8 sps:$4 sm:$0xff]  }
 0x500   :  { %13757 = vst [vmem:[#allocation66_spill] sm:$0xff] %v11732_v46  ;;  %v13768_v38 = vld [vmem:[#allocation38_spill] sm:$0xff] }
 0x501   :  { %v6943_v5 = vpack.c.bf16 %v2836_v44, %v2835_v9  ;;  %4641 = vmatpush1.bf16.msra.mxu1 %v11348_v52  ;;  %v11720_v52 = vrot.slane %v11553_v28, %v8769_v49  ;;  %v3466_v44 = vcombine.high %v11577_v11, %v11577_v11  ;;  %v11740_v11 = vld [vmem:[#allocation4 + $0x320] ss:$8 sps:$4 sm:$0xff]   ;;  %v11744_v28 = vld [vmem:[#allocation4 + $0x334] ss:$8 sps:$4 sm:$0xff]   ;;  %v11764_v30 = vld [vmem:[#allocation4 + $0x350] ss:$8 sps:$4 sm:$0xff]  }
 0x502   :  { %4410 = vmatpush1.bf16.msra.mxu0 %v11693_v22  ;;  %4642 = vmatprep.subr.bf16.mxu1 %v11354_v26  ;;  %v11723_v26 = vld [vmem:[#allocation4 + $0x314] ss:$8 sps:$4 sm:$0xff]   ;;  %13759 = vst [vmem:[#allocation68_spill] sm:$0xff] %v11740_v11  ;;  %13760 = vst [vmem:[#allocation69_spill] sm:$0xff] %v11744_v28  ;;  %v13764_v9 = vld [vmem:[#allocation34_spill] sm:$0xff] }
 0x503   :  { %4411 = vmatprep.subr.bf16.mxu0 %v11697_v6  ;;  %v2848_v39 = vrot.slane %v6943_v5, %v8769_v49  ;;  %13756 = vst [vmem:[#allocation65_spill] sm:$0xff] %v11723_v26  ;;  %13769 = vst [vmem:[#allocation38_spill] sm:$0xff] %v11764_v30  ;;  %v13770_v5 = vld [vmem:[#allocation41_spill] sm:$0xff] }
 0x505   :  { %6944 = vst.sshfl [vmem:[#allocation2 + $0x16] sm:$0x5 pattern:$0x73625140] %v2848_v39  ;;  %4643 = vmatpush1.bf16.msra.mxu1 %v11360_v42  ;;  %v4578_v42 = vcombine.high %v11582_v3, %v11582_v3  ;;  %v13762_v3 = vld [vmem:[#allocation50_spill] sm:$0xff] }
 0x506   :  { %4412 = vmatpush1.bf16.msra.mxu0 %v11701_v60  ;;  %4653 = vmatprep.subr.bf16.mxu1 %v11366_v61  ;;  %v11735_v61 = vld [vmem:[#allocation4 + $0x324] ss:$8 sps:$4 sm:$0xff]  }
 0x507   :  { %4422 = vmatprep.subr.bf16.mxu0 %v11705_v0  ;;  %13758 = vst [vmem:[#allocation67_spill] sm:$0xff] %v11735_v61  ;;  %v11768_v39 = vld [vmem:[#allocation4 + $0x364] ss:$8 sps:$4 sm:$0xff]  }
 0x508   :  { %4645 = vmatmul.mubr.bf16.vlgmr.msra.gmra.mrb[32].mxu1 %v11720_v52  ;;  %13771 = vst [vmem:[#allocation41_spill] sm:$0xff] %v11768_v39 }
 0x509   :  { %4414 = vmatmul.mubr.bf16.vlgmr.msra.gmra.mrb[28].mxu0 %v11715_v29  ;;  %4654 = vmatpush1.bf16.msra.mxu1 %v11373_v19  ;;  %v11748_v19 = vld [vmem:[#allocation4 + $0x330] ss:$8 sps:$4 sm:$0xff]  }
 0x50a   :  { %4423 = vmatpush1.bf16.msra.mxu0 %v11710_v27  ;;  %4454 = vmatprep.mubr.bf16.mxu0 %v3466_v44  ;;  %13761 = vst [vmem:[#allocation70_spill] sm:$0xff] %v11748_v19 }
 0x50b   :  { %4685 = vmatprep.mubr.bf16.mxu1 %v4578_v42  ;;  %4424 = vmatprep.subr.bf16.mxu0 %v11723_v26  ;;  %v13772_v42 = vld [vmem:[#allocation42_spill] sm:$0xff] }
 0x50c   :  { %4655 = vmatprep.subr.bf16.mxu1 %v11383_v63  ;;  %v11752_v63 = vld [vmem:[#allocation4 + $0x344] ss:$8 sps:$4 sm:$0xff]  }
 0x50d   :  { %4656 = vmatpush1.bf16.msra.mxu1 %v11392_v17  ;;  %13763 = vst [vmem:[#allocation50_spill] sm:$0xff] %v11752_v63  ;;  %v11756_v17 = vld [vmem:[#allocation4 + $0x340] ss:$8 sps:$4 sm:$0xff]  }
 0x50e   :  { %4425 = vmatpush1.bf16.msra.mxu0 %v11732_v46  ;;  %4657 = vmatprep.subr.bf16.mxu1 %v11397_v62  ;;  %13765 = vst [vmem:[#allocation34_spill] sm:$0xff] %v11756_v17  ;;  %v11760_v62 = vld [vmem:[#allocation4 + $0x354] ss:$8 sps:$4 sm:$0xff]  }
 0x50f   :  { %4426 = vmatprep.subr.bf16.mxu0 %v11735_v61  ;;  %13767 = vst [vmem:[#allocation52_spill] sm:$0xff] %v11760_v62 }
 0x511   :  { %4658 = vmatpush1.bf16.msra.mxu1 %v13762_v3 }
 0x512   :  { %4427 = vmatpush1.bf16.msra.mxu0 %v11740_v11  ;;  %4659 = vmatprep.subr.bf16.mxu1 %v13764_v9 }
 0x513   :  { %4428 = vmatprep.subr.bf16.mxu0 %v11744_v28 }
 0x515   :  { %4660 = vmatpush1.bf16.msra.mxu1 %v13766_v16 }
 0x516   :  { %4429 = vmatpush1.bf16.msra.mxu0 %v11748_v19  ;;  %4661 = vmatprep.subr.bf16.mxu1 %v13768_v38  ;;  %v11774_v38 = vld [vmem:[#allocation4 + $0x360] ss:$8 sps:$4 sm:$0xff]  }
 0x517   :  { %4430 = vmatprep.subr.bf16.mxu0 %v11752_v63  ;;  %13773 = vst [vmem:[#allocation42_spill] sm:$0xff] %v11774_v38  ;;  %v13774_v19 = vld [vmem:[#allocation44_spill] sm:$0xff] }
 0x519   :  { %4662 = vmatpush1.bf16.msra.mxu1 %v13770_v5 }
 0x51a   :  { %4431 = vmatpush1.bf16.msra.mxu0 %v11756_v17  ;;  %4663 = vmatprep.subr.bf16.mxu1 %v13772_v42  ;;  %v13776_v42 = vld [vmem:[#allocation45_spill] sm:$0xff] }
 0x51b   :  { %4432 = vmatprep.subr.bf16.mxu0 %v11760_v62  ;;  %v11778_v62 = vld [vmem:[#allocation4 + $0x374] ss:$8 sps:$4 sm:$0xff]  }
 0x51c   :  { %v3020_v44 = vpop.f32.mrb[24].mxu0  ;;  %13775 = vst [vmem:[#allocation44_spill] sm:$0xff] %v11778_v62 }
 0x51d   :  { %v7380_v3 = vadd.f32 %v3020_v44, %v13572_v4  ;;  %v3022_v9 = vpop.f32.mrb[25].mxu0  ;;  %4664 = vmatpush1.bf16.msra.mxu1 %v13774_v19  ;;  %v11786_v44 = vld [vmem:[#allocation4 + $0x384] ss:$8 sps:$4 sm:$0xff]  }
 0x51e   :  { %v7381_v16 = vadd.f32 %v3022_v9, %v13573_v2  ;;  %v3024_v63 = vpop.f32.mrb[26].mxu0  ;;  %4433 = vmatpush1.bf16.msra.mxu0 %v11764_v30  ;;  %4665 = vmatprep.subr.bf16.mxu1 %v13776_v42  ;;  %v11782_v2 = vld [vmem:[#allocation4 + $0x370] ss:$8 sps:$4 sm:$0xff]   ;;  %v11791_v9 = vld [vmem:[#allocation4 + $0x380] ss:$8 sps:$4 sm:$0xff]  }
 0x51f   :  { %v3027_v17 = vmax.f32 %v7380_v3, 0.0  ;;  %v3025_v5 = vpop.f32.mrb[27].mxu0  ;;  %4434 = vmatprep.subr.bf16.mxu0 %v11768_v39  ;;  %13777 = vst [vmem:[#allocation45_spill] sm:$0xff] %v11782_v2  ;;  %v13778_v63 = vld [vmem:[#allocation35_spill] sm:$0xff]  ;;  %v13780_v3 = vld [vmem:[#allocation36_spill] sm:$0xff] }
 0x520   :  { %v3028_v28 = vmax.f32 %v7381_v16, 0.0  ;;  %13779 = vst [vmem:[#allocation35_spill] sm:$0xff] %v11786_v44  ;;  %13781 = vst [vmem:[#allocation36_spill] sm:$0xff] %v11791_v9  ;;  %v11799_v16 = vld [vmem:[#allocation4 + $0x390] ss:$8 sps:$4 sm:$0xff]  }
 0x521   :  { %4666 = vmatpush1.bf16.msra.mxu1 %v13778_v63  ;;  %13784 = vst [vmem:[#allocation71_spill] sm:$0xff] %v11799_v16  ;;  %v11803_v5 = vld [vmem:[#allocation4 + $0x3a4] ss:$8 sps:$4 sm:$0xff]   ;;  %v11807_v42 = vld [vmem:[#allocation4 + $0x3a0] ss:$8 sps:$4 sm:$0xff]  }
 0x522   :  { %v6945_v4 = vpack.c.bf16 %v3028_v28, %v3027_v17  ;;  %4435 = vmatpush1.bf16.msra.mxu0 %v11774_v38  ;;  %4667 = vmatprep.subr.bf16.mxu1 %v13780_v3  ;;  %v13782_v28 = vld [vmem:[#allocation37_spill] sm:$0xff]  ;;  %v11795_v17 = vld [vmem:[#allocation4 + $0x394] ss:$8 sps:$4 sm:$0xff]   ;;  %13785 = vst [vmem:[#allocation72_spill] sm:$0xff] %v11803_v5  ;;  %13786 = vst [vmem:[#allocation73_spill] sm:$0xff] %v11807_v42 }
 0x523   :  { %4436 = vmatprep.subr.bf16.mxu0 %v11778_v62  ;;  %13783 = vst [vmem:[#allocation37_spill] sm:$0xff] %v11795_v17  ;;  %v13794_v63 = vld [vmem:[#allocation40_spill] sm:$0xff] }
 0x524   :  { %v3040_v19 = vrot.slane %v6945_v4, %v8769_v49  ;;  %v13791_v4 = vld [vmem:[#allocation39_spill] sm:$0xff]  ;;  %v11839_v3 = vld [vmem:[#allocation4 + $0x3e0] ss:$8 sps:$4 sm:$0xff]  }
 0x525   :  { %4668 = vmatpush1.bf16.msra.mxu1 %v13782_v28  ;;  %v4531_v28 = vcombine.high %v11541_v33, %v11541_v33  ;;  %v11858_v33 = vld [vmem:[#allocation4 + $0x404] ss:$8 sps:$4 sm:$0xff]  }
 0x526   :  { %6946 = vst.sshfl [vmem:[#allocation2 + $0x18] sm:$0x5 pattern:$0x73625140] %v3040_v19  ;;  %4437 = vmatpush1.bf16.msra.mxu0 %v11782_v2  ;;  %4669 = vmatprep.subr.bf16.mxu1 %v11470_v35  ;;  %v11811_v35 = vld [vmem:[#allocation4 + $0x3b4] ss:$8 sps:$4 sm:$0xff]  }
 0x527   :  { %4438 = vmatprep.subr.bf16.mxu0 %v11786_v44  ;;  %13787 = vst [vmem:[#allocation74_spill] sm:$0xff] %v11811_v35  ;;  %v13796_v19 = vld [vmem:[#allocation26_spill] sm:$0xff]  ;;  %13801 = vst [vmem:[#allocation80_spill] sm:$0xff] %v11858_v33 }
 0x528   :  { %13797 = vst [vmem:[#allocation26_spill] sm:$0xff] %v11839_v3 }
 0x529   :  { %4670 = vmatpush1.bf16.msra.mxu1 %v11478_v23  ;;  %v11815_v23 = vld [vmem:[#allocation4 + $0x3b0] ss:$8 sps:$4 sm:$0xff]  }
 0x52a   :  { %4439 = vmatpush1.bf16.msra.mxu0 %v11791_v9  ;;  %4671 = vmatprep.subr.bf16.mxu1 %v11484_v50  ;;  %13788 = vst [vmem:[#allocation75_spill] sm:$0xff] %v11815_v23  ;;  %v11819_v50 = vld [vmem:[#allocation4 + $0x3c4] ss:$8 sps:$4 sm:$0xff]  }
 0x52b   :  { %4440 = vmatprep.subr.bf16.mxu0 %v11795_v17  ;;  %13789 = vst [vmem:[#allocation76_spill] sm:$0xff] %v11819_v50 }
 0x52d   :  { %4672 = vmatpush1.bf16.msra.mxu1 %v11490_v48  ;;  %v11823_v48 = vld [vmem:[#allocation4 + $0x3c0] ss:$8 sps:$4 sm:$0xff]  }
 0x52e   :  { %4441 = vmatpush1.bf16.msra.mxu0 %v11799_v16  ;;  %4673 = vmatprep.subr.bf16.mxu1 %v11496_v15  ;;  %13790 = vst [vmem:[#allocation77_spill] sm:$0xff] %v11823_v48  ;;  %v11827_v15 = vld [vmem:[#allocation4 + $0x3d4] ss:$8 sps:$4 sm:$0xff]  }
 0x52f   :  { %4442 = vmatprep.subr.bf16.mxu0 %v11803_v5  ;;  %13792 = vst [vmem:[#allocation39_spill] sm:$0xff] %v11827_v15 }
 0x531   :  { %4674 = vmatpush1.bf16.msra.mxu1 %v11503_v54  ;;  %v11831_v54 = vld [vmem:[#allocation4 + $0x3d0] ss:$8 sps:$4 sm:$0xff]  }
 0x532   :  { %4443 = vmatpush1.bf16.msra.mxu0 %v11807_v42  ;;  %4675 = vmatprep.subr.bf16.mxu1 %v11507_v37  ;;  %13793 = vst [vmem:[#allocation78_spill] sm:$0xff] %v11831_v54  ;;  %v11835_v37 = vld [vmem:[#allocation4 + $0x3e4] ss:$8 sps:$4 sm:$0xff]  }
 0x533   :  { %4444 = vmatprep.subr.bf16.mxu0 %v11811_v35  ;;  %13795 = vst [vmem:[#allocation40_spill] sm:$0xff] %v11835_v37 }
 0x535   :  { %4676 = vmatpush1.bf16.msra.mxu1 %v13791_v4  ;;  %v13799_v4 = vld [vmem:[#allocation27_spill] sm:$0xff] }
 0x536   :  { %4445 = vmatpush1.bf16.msra.mxu0 %v11815_v23  ;;  %4677 = vmatprep.subr.bf16.mxu1 %v11515_v13  ;;  %v11845_v13 = vld [vmem:[#allocation4 + $0x3f4] ss:$8 sps:$4 sm:$0xff]  }
 0x537   :  { %4446 = vmatprep.subr.bf16.mxu0 %v11819_v50  ;;  %13798 = vst [vmem:[#allocation79_spill] sm:$0xff] %v11845_v13 }
 0x539   :  { %4678 = vmatpush1.bf16.msra.mxu1 %v13794_v63  ;;  %v11849_v63 = vld [vmem:[#allocation4 + $0x3f0] ss:$8 sps:$4 sm:$0xff]  }
 0x53a   :  { %4447 = vmatpush1.bf16.msra.mxu0 %v11823_v48  ;;  %4679 = vmatprep.subr.bf16.mxu1 %v13796_v19  ;;  %13800 = vst [vmem:[#allocation27_spill] sm:$0xff] %v11849_v63  ;;  %v11851_v19 = vld.sshfl [vmem:[#allocation2 + $0x8] sm:$0x11 pattern:$0x75316420] }
 0x53b   :  { %4448 = vmatprep.subr.bf16.mxu0 %v11827_v15  ;;  %v11882_v15 = vld [vmem:[#allocation4 + $0x410] ss:$8 sps:$4 sm:$0xff]  }
 0x53c   :  { %13806 = vst [vmem:[#allocation82_spill] sm:$0xff] %v11882_v15 }
 0x53d   :  { %4680 = vmatpush1.bf16.msra.mxu1 %v11527_v12  ;;  %v13802_v12 = vld [vmem:[#allocation28_spill] sm:$0xff] }
 0x53e   :  { %4449 = vmatpush1.bf16.msra.mxu0 %v11831_v54  ;;  %4681 = vmatprep.subr.bf16.mxu1 %v13799_v4  ;;  %v11854_v54 = vrot.slane %v4531_v28, %v8769_v49  ;;  %v3474_v4 = vcombine.high %v11851_v19, %v11851_v19  ;;  %v13804_v28 = vld [vmem:[#allocation29_spill] sm:$0xff] }
 0x53f   :  { %4450 = vmatprep.subr.bf16.mxu0 %v11835_v37 }
 0x540   :  { %v4547_v37 = vcombine.high %v11854_v54, %v11854_v54 }
 0x541   :  { %4682 = vmatpush1.bf16.msra.mxu1 %v11539_v58  ;;  %v3464_v58 = vcombine.high %v11715_v29, %v11715_v29  ;;  %v11885_v29 = vld [vmem:[#allocation4 + $0x424] ss:$8 sps:$4 sm:$0xff]  }
 0x542   :  { %4451 = vmatpush1.bf16.msra.mxu0 %v11839_v3  ;;  %4683 = vmatprep.subr.bf16.mxu1 %v13802_v12  ;;  %v11864_v3 = vld [vmem:[#allocation4 + $0x400] ss:$8 sps:$4 sm:$0xff]   ;;  %v4576_v12 = vcombine.high %v11720_v52, %v11720_v52  ;;  %13807 = vst [vmem:[#allocation83_spill] sm:$0xff] %v11885_v29 }
 0x543   :  { %4452 = vmatprep.subr.bf16.mxu0 %v11845_v13  ;;  %13803 = vst [vmem:[#allocation28_spill] sm:$0xff] %v11864_v3  ;;  %v11875_v13 = vld [vmem:[#allocation4 + $0x414] ss:$8 sps:$4 sm:$0xff]   ;;  %v11891_v52 = vld [vmem:[#allocation4 + $0x420] ss:$8 sps:$4 sm:$0xff]  }
 0x544   :  { %13805 = vst [vmem:[#allocation81_spill] sm:$0xff] %v11875_v13  ;;  %13808 = vst [vmem:[#allocation84_spill] sm:$0xff] %v11891_v52 }
 0x545   :  { %4684 = vmatpush1.bf16.msra.mxu1 %v13804_v28  ;;  %v11880_v28 = vrot.slane %v4547_v37, %v8769_v49  ;;  %v11895_v37 = vld [vmem:[#allocation4 + $0x434] ss:$8 sps:$4 sm:$0xff]  }
 0x546   :  { %4453 = vmatpush1.bf16.msra.mxu0 %v11849_v63  ;;  %4694 = vmatprep.subr.bf16.mxu1 %v11561_v18  ;;  %v3488_v63 = vrot.slane %v3474_v4, %v8769_v49  ;;  %13809 = vst [vmem:[#allocation85_spill] sm:$0xff] %v11895_v37  ;;  %v11903_v4 = vld [vmem:[#allocation4 + $0x444] ss:$8 sps:$4 sm:$0xff]  }
 0x547   :  { %4463 = vmatprep.subr.bf16.mxu0 %v11858_v33  ;;  %13811 = vst [vmem:[#allocation87_spill] sm:$0xff] %v11903_v4  ;;  %v11993_v18 = vld [vmem:[#allocation2 + $0x8] sm:$0xff] }
 0x548   :  { %4686 = vmatmul.mubr.bf16.vlgmr.msra.gmra.mrb[32].mxu1 %v4576_v12  ;;  %v11911_v12 = vld [vmem:[#allocation4 + $0x454] ss:$8 sps:$4 sm:$0xff]  }
 0x549   :  { %4455 = vmatmul.mubr.bf16.vlgmr.msra.gmra.mrb[28].mxu0 %v3464_v58  ;;  %4695 = vmatpush1.bf16.msra.mxu1 %v11570_v36  ;;  %v11907_v58 = vld [vmem:[#allocation4 + $0x440] ss:$8 sps:$4 sm:$0xff]   ;;  %13813 = vst [vmem:[#allocation89_spill] sm:$0xff] %v11911_v12 }
 0x54a   :  { %4464 = vmatpush1.bf16.msra.mxu0 %v11864_v3  ;;  %4495 = vmatprep.mubr.bf16.mxu0 %v3488_v63  ;;  %v11899_v63 = vld [vmem:[#allocation4 + $0x430] ss:$8 sps:$4 sm:$0xff]   ;;  %13812 = vst [vmem:[#allocation88_spill] sm:$0xff] %v11907_v58  ;;  %v13835_v36 = vld [vmem:[#allocation57_spill] sm:$0xff] }
 0x54b   :  { %4726 = vmatprep.mubr.bf16.mxu1 %v11880_v28  ;;  %4465 = vmatprep.subr.bf16.mxu0 %v11875_v13  ;;  %13810 = vst [vmem:[#allocation86_spill] sm:$0xff] %v11899_v63 }
 0x54c   :  { %4696 = vmatprep.subr.bf16.mxu1 %v11579_v59  ;;  %v13833_v59 = vld [vmem:[#allocation56_spill] sm:$0xff] }
 0x54d   :  { %4697 = vmatpush1.bf16.msra.mxu1 %v11586_v32  ;;  %v13831_v32 = vld [vmem:[#allocation55_spill] sm:$0xff] }
 0x54e   :  { %4466 = vmatpush1.bf16.msra.mxu0 %v11882_v15  ;;  %4698 = vmatprep.subr.bf16.mxu1 %v11590_v43  ;;  %v13829_v43 = vld [vmem:[#allocation24_spill] sm:$0xff] }
 0x54f   :  { %4467 = vmatprep.subr.bf16.mxu0 %v11885_v29 }
 0x551   :  { %4699 = vmatpush1.bf16.msra.mxu1 %v11595_v45  ;;  %v11915_v45 = vld [vmem:[#allocation4 + $0x450] ss:$8 sps:$4 sm:$0xff]  }
 0x552   :  { %4468 = vmatpush1.bf16.msra.mxu0 %v11891_v52  ;;  %4700 = vmatprep.subr.bf16.mxu1 %v11599_v56  ;;  %13814 = vst [vmem:[#allocation90_spill] sm:$0xff] %v11915_v45  ;;  %v11919_v56 = vld [vmem:[#allocation4 + $0x464] ss:$8 sps:$4 sm:$0xff]  }
 0x553   :  { %4469 = vmatprep.subr.bf16.mxu0 %v11895_v37  ;;  %13815 = vst [vmem:[#allocation91_spill] sm:$0xff] %v11919_v56 }
 0x555   :  { %4701 = vmatpush1.bf16.msra.mxu1 %v11603_v40  ;;  %v11923_v40 = vld [vmem:[#allocation4 + $0x460] ss:$8 sps:$4 sm:$0xff]  }
 0x556   :  { %4470 = vmatpush1.bf16.msra.mxu0 %v11899_v63  ;;  %4702 = vmatprep.subr.bf16.mxu1 %v11607_v1  ;;  %13816 = vst [vmem:[#allocation92_spill] sm:$0xff] %v11923_v40  ;;  %v11927_v1 = vld [vmem:[#allocation4 + $0x474] ss:$8 sps:$4 sm:$0xff]  }
 0x557   :  { %4471 = vmatprep.subr.bf16.mxu0 %v11903_v4  ;;  %13817 = vst [vmem:[#allocation93_spill] sm:$0xff] %v11927_v1 }
 0x559   :  { %4703 = vmatpush1.bf16.msra.mxu1 %v11611_v21  ;;  %v11931_v21 = vld [vmem:[#allocation4 + $0x470] ss:$8 sps:$4 sm:$0xff]  }
 0x55a   :  { %4472 = vmatpush1.bf16.msra.mxu0 %v11907_v58  ;;  %4704 = vmatprep.subr.bf16.mxu1 %v11615_v20  ;;  %13818 = vst [vmem:[#allocation94_spill] sm:$0xff] %v11931_v21  ;;  %v11935_v20 = vld [vmem:[#allocation4 + $0x484] ss:$8 sps:$4 sm:$0xff]  }
 0x55b   :  { %4473 = vmatprep.subr.bf16.mxu0 %v11911_v12  ;;  %13819 = vst [vmem:[#allocation95_spill] sm:$0xff] %v11935_v20 }
 0x55d   :  { %4705 = vmatpush1.bf16.msra.mxu1 %v11619_v7  ;;  %v11939_v7 = vld [vmem:[#allocation4 + $0x480] ss:$8 sps:$4 sm:$0xff]  }
 0x55e   :  { %4474 = vmatpush1.bf16.msra.mxu0 %v11915_v45  ;;  %4706 = vmatprep.subr.bf16.mxu1 %v11623_v10  ;;  %13820 = vst [vmem:[#allocation96_spill] sm:$0xff] %v11939_v7  ;;  %v11943_v10 = vld [vmem:[#allocation4 + $0x494] ss:$8 sps:$4 sm:$0xff]  }
 0x55f   :  { %4475 = vmatprep.subr.bf16.mxu0 %v11919_v56  ;;  %13821 = vst [vmem:[#allocation97_spill] sm:$0xff] %v11943_v10 }
 0x561   :  { %4707 = vmatpush1.bf16.msra.mxu1 %v11627_v25  ;;  %v11947_v25 = vld [vmem:[#allocation4 + $0x490] ss:$8 sps:$4 sm:$0xff]  }
 0x562   :  { %4476 = vmatpush1.bf16.msra.mxu0 %v11923_v40  ;;  %4708 = vmatprep.subr.bf16.mxu1 %v11631_v8  ;;  %13822 = vst [vmem:[#allocation98_spill] sm:$0xff] %v11947_v25  ;;  %v11951_v8 = vld [vmem:[#allocation4 + $0x4a4] ss:$8 sps:$4 sm:$0xff]  }
 0x563   :  { %4477 = vmatprep.subr.bf16.mxu0 %v11927_v1  ;;  %13823 = vst [vmem:[#allocation99_spill] sm:$0xff] %v11951_v8 }
 0x565   :  { %4709 = vmatpush1.bf16.msra.mxu1 %v11635_v31  ;;  %v11955_v31 = vld [vmem:[#allocation4 + $0x4a0] ss:$8 sps:$4 sm:$0xff]  }
 0x566   :  { %4478 = vmatpush1.bf16.msra.mxu0 %v11931_v21  ;;  %4710 = vmatprep.subr.bf16.mxu1 %v11639_v34  ;;  %13824 = vst [vmem:[#allocation100_spill] sm:$0xff] %v11955_v31  ;;  %v11959_v34 = vld [vmem:[#allocation4 + $0x4b4] ss:$8 sps:$4 sm:$0xff]  }
 0x567   :  { %4479 = vmatprep.subr.bf16.mxu0 %v11935_v20  ;;  %13825 = vst [vmem:[#allocation101_spill] sm:$0xff] %v11959_v34 }
 0x569   :  { %4711 = vmatpush1.bf16.msra.mxu1 %v11643_v14  ;;  %v11963_v14 = vld [vmem:[#allocation4 + $0x4b0] ss:$8 sps:$4 sm:$0xff]  }
 0x56a   :  { %4480 = vmatpush1.bf16.msra.mxu0 %v11939_v7  ;;  %4712 = vmatprep.subr.bf16.mxu1 %v11647_v57  ;;  %13826 = vst [vmem:[#allocation102_spill] sm:$0xff] %v11963_v14  ;;  %v11967_v57 = vld [vmem:[#allocation4 + $0x4c4] ss:$8 sps:$4 sm:$0xff]  }
 0x56b   :  { %4481 = vmatprep.subr.bf16.mxu0 %v11943_v10  ;;  %13827 = vst [vmem:[#allocation103_spill] sm:$0xff] %v11967_v57 }
 0x56d   :  { %4713 = vmatpush1.bf16.msra.mxu1 %v11651_v53  ;;  %v11971_v53 = vld [vmem:[#allocation4 + $0x4c0] ss:$8 sps:$4 sm:$0xff]  }
 0x56e   :  { %4482 = vmatpush1.bf16.msra.mxu0 %v11947_v25  ;;  %4714 = vmatprep.subr.bf16.mxu1 %v11655_v41  ;;  %13828 = vst [vmem:[#allocation104_spill] sm:$0xff] %v11971_v53  ;;  %v11975_v41 = vld [vmem:[#allocation4 + $0x4d4] ss:$8 sps:$4 sm:$0xff]  }
 0x56f   :  { %4483 = vmatprep.subr.bf16.mxu0 %v11951_v8  ;;  %13830 = vst [vmem:[#allocation105_spill] sm:$0xff] %v11975_v41 }
 0x571   :  { %4715 = vmatpush1.bf16.msra.mxu1 %v11659_v51  ;;  %v11979_v51 = vld [vmem:[#allocation4 + $0x4d0] ss:$8 sps:$4 sm:$0xff]  }
 0x572   :  { %4484 = vmatpush1.bf16.msra.mxu0 %v11955_v31  ;;  %4716 = vmatprep.subr.bf16.mxu1 %v11663_v47  ;;  %13832 = vst [vmem:[#allocation106_spill] sm:$0xff] %v11979_v51  ;;  %v11983_v47 = vld [vmem:[#allocation4 + $0x4e4] ss:$8 sps:$4 sm:$0xff]  }
 0x573   :  { %4485 = vmatprep.subr.bf16.mxu0 %v11959_v34  ;;  %13834 = vst [vmem:[#allocation107_spill] sm:$0xff] %v11983_v47 }
 0x575   :  { %4717 = vmatpush1.bf16.msra.mxu1 %v13829_v43  ;;  %v11987_v43 = vld [vmem:[#allocation4 + $0x4e0] ss:$8 sps:$4 sm:$0xff]  }
 0x576   :  { %4486 = vmatpush1.bf16.msra.mxu0 %v11963_v14  ;;  %4718 = vmatprep.subr.bf16.mxu1 %v13831_v32  ;;  %13836 = vst [vmem:[#allocation108_spill] sm:$0xff] %v11987_v43  ;;  %v11991_v32 = vld [vmem:[#allocation4 + $0x4f4] ss:$8 sps:$4 sm:$0xff]  }
 0x577   :  { %4487 = vmatprep.subr.bf16.mxu0 %v11967_v57  ;;  %13837 = vst [vmem:[#allocation109_spill] sm:$0xff] %v11991_v32 }
 0x579   :  { %4719 = vmatpush1.bf16.msra.mxu1 %v13833_v59  ;;  %v11997_v59 = vld [vmem:[#allocation4 + $0x4f0] ss:$8 sps:$4 sm:$0xff]  }
 0x57a   :  { %4488 = vmatpush1.bf16.msra.mxu0 %v11971_v53  ;;  %4720 = vmatprep.subr.bf16.mxu1 %v13835_v36  ;;  %v12001_v36 = vrot.slane %v11993_v18, %v8769_v49 }
 0x57b   :  { %4489 = vmatprep.subr.bf16.mxu0 %v11975_v41 }
 0x57d   :  { %4721 = vmatpush1.bf16.msra.mxu1 %v11683_v24  ;;  %v4859_v24 = vcombine.high %v12001_v36, %v12001_v36 }
 0x57e   :  { %4490 = vmatpush1.bf16.msra.mxu0 %v11979_v51  ;;  %4722 = vmatprep.subr.bf16.mxu1 %v11687_v55  ;;  %v3481_v55 = vrot.slane %v11851_v19, %v8769_v49 }
 0x57f   :  { %4491 = vmatprep.subr.bf16.mxu0 %v11983_v47  ;;  %v12027_v19 = vrot.slane %v4859_v24, %v8769_v49  ;;  %v12047_v24 = vld [vmem:[#allocation4 + $0x34] ss:$8 sps:$4 sm:$0xff]  }
 0x580   :  { %13844 = vst [vmem:[#allocation116_spill] sm:$0xff] %v12047_v24 }
 0x581   :  { %4723 = vmatpush1.bf16.msra.mxu1 %v11693_v22  ;;  %v12017_v22 = vrot.slane %v11854_v54, %v8769_v49  ;;  %v12035_v54 = vld [vmem:[#allocation4 + $0x10] ss:$8 sps:$4 sm:$0xff]  }
 0x582   :  { %4492 = vmatpush1.bf16.msra.mxu0 %v11987_v43  ;;  %4724 = vmatprep.subr.bf16.mxu1 %v11697_v6  ;;  %v12012_v43 = vld [vmem:[#allocation4 + $0x4] ss:$8 sps:$4 sm:$0xff]   ;;  %v4579_v6 = vcombine.high %v11880_v28, %v11880_v28  ;;  %13841 = vst [vmem:[#allocation113_spill] sm:$0xff] %v12035_v54 }
 0x583   :  { %4493 = vmatprep.subr.bf16.mxu0 %v11991_v32  ;;  %13838 = vst [vmem:[#allocation110_spill] sm:$0xff] %v12012_v43  ;;  %v12039_v28 = vld [vmem:[#allocation4 + $0x24] ss:$8 sps:$4 sm:$0xff]  }
 0x584   :  { %13842 = vst [vmem:[#allocation114_spill] sm:$0xff] %v12039_v28 }
 0x585   :  { %4725 = vmatpush1.bf16.msra.mxu1 %v11701_v60  ;;  %v12023_v60 = vld [vmem:[#allocation4] ss:$8 sps:$4 sm:$0xff]  }
 0x586   :  { %4494 = vmatpush1.bf16.msra.mxu0 %v11997_v59  ;;  %4735 = vmatprep.subr.bf16.mxu1 %v11705_v0  ;;  %13839 = vst [vmem:[#allocation111_spill] sm:$0xff] %v12023_v60  ;;  %v12055_v0 = vld [vmem:[#allocation4 + $0x44] ss:$8 sps:$4 sm:$0xff]  }
 0x587   :  { %4925 = vmatprep.subr.bf16.mxu0 %v12012_v43  ;;  %13848 = vst [vmem:[#allocation118_spill] sm:$0xff] %v12055_v0 }
 0x588   :  { %4727 = vmatmul.mubr.bf16.vlgmr.msra.gmra.mrb[32].mxu1 %v12017_v22 }
 0x589   :  { %4496 = vmatmul.mubr.bf16.vlgmr.msra.gmra.mrb[28].mxu0 %v3481_v55  ;;  %4736 = vmatpush1.bf16.msra.mxu1 %v11710_v27  ;;  %v12032_v55 = vld [vmem:[#allocation4 + $0x14] ss:$8 sps:$4 sm:$0xff]   ;;  %v12051_v27 = vld [vmem:[#allocation4 + $0x30] ss:$8 sps:$4 sm:$0xff]  }
 0x58a   :  { %4926 = vmatpush1.bf16.msra.mxu0 %v12023_v60  ;;  %4767 = vmatprep.mubr.bf16.mxu1 %v4579_v6  ;;  %13840 = vst [vmem:[#allocation112_spill] sm:$0xff] %v12032_v55  ;;  %v12043_v6 = vld [vmem:[#allocation4 + $0x20] ss:$8 sps:$4 sm:$0xff]   ;;  %13846 = vst [vmem:[#allocation117_spill] sm:$0xff] %v12051_v27 }
 0x58b   :  { %4957 = vmatprep.mubr.bf16.mxu0 %v12027_v19  ;;  %4737 = vmatprep.subr.bf16.mxu1 %v11723_v26  ;;  %13843 = vst [vmem:[#allocation115_spill] sm:$0xff] %v12043_v6  ;;  %v13845_v26 = vld [vmem:[#allocation69_spill] sm:$0xff] }
 0x58c   :  { %4927 = vmatprep.subr.bf16.mxu0 %v12032_v55 }
 0x58d   :  { %4738 = vmatpush1.bf16.msra.mxu1 %v11732_v46  ;;  %v13847_v46 = vld [vmem:[#allocation70_spill] sm:$0xff] }
 0x58e   :  { %4928 = vmatpush1.bf16.msra.mxu0 %v12035_v54  ;;  %4739 = vmatprep.subr.bf16.mxu1 %v11735_v61  ;;  %v13849_v61 = vld [vmem:[#allocation50_spill] sm:$0xff] }
 0x58f   :  { %4929 = vmatprep.subr.bf16.mxu0 %v12039_v28  ;;  %v12067_v54 = vld [vmem:[#allocation4 + $0x50] ss:$8 sps:$4 sm:$0xff]  }
 0x591   :  { %4740 = vmatpush1.bf16.msra.mxu1 %v11740_v11  ;;  %v13850_v11 = vld [vmem:[#allocation34_spill] sm:$0xff] }
 0x592   :  { %4930 = vmatpush1.bf16.msra.mxu0 %v12043_v6  ;;  %4741 = vmatprep.subr.bf16.mxu1 %v13845_v26  ;;  %v12059_v6 = vld [vmem:[#allocation4 + $0x40] ss:$8 sps:$4 sm:$0xff]  }
 0x593   :  { %4931 = vmatprep.subr.bf16.mxu0 %v12047_v24  ;;  %v12063_v24 = vld [vmem:[#allocation4 + $0x54] ss:$8 sps:$4 sm:$0xff]  }
 0x595   :  { %4742 = vmatpush1.bf16.msra.mxu1 %v13847_v46 }
 0x596   :  { %4932 = vmatpush1.bf16.msra.mxu0 %v12051_v27  ;;  %4743 = vmatprep.subr.bf16.mxu1 %v13849_v61  ;;  %v13851_v27 = vld [vmem:[#allocation52_spill] sm:$0xff] }
 0x597   :  { %4933 = vmatprep.subr.bf16.mxu0 %v12055_v0  ;;  %v12071_v0 = vld [vmem:[#allocation4 + $0x64] ss:$8 sps:$4 sm:$0xff]  }
 0x599   :  { %4744 = vmatpush1.bf16.msra.mxu1 %v13850_v11  ;;  %v12075_v11 = vld [vmem:[#allocation4 + $0x60] ss:$8 sps:$4 sm:$0xff]  }
 0x59a   :  { %4934 = vmatpush1.bf16.msra.mxu0 %v12059_v6  ;;  %4745 = vmatprep.subr.bf16.mxu1 %v13851_v27  ;;  %v12139_v27 = vld [vmem:[#allocation4 + $0xe0] ss:$8 sps:$4 sm:$0xff]  }
 0x59b   :  { %4935 = vmatprep.subr.bf16.mxu0 %v12063_v24  ;;  %v3212_v26 = vpop.f32.mrb[28].mxu1  ;;  %13863 = vst [vmem:[#allocation127_spill] sm:$0xff] %v12139_v27 }
 0x59c   :  { %v3214_v46 = vpop.f32.mrb[29].mxu1  ;;  %v12079_v26 = vld [vmem:[#allocation4 + $0x74] ss:$8 sps:$4 sm:$0xff]  }
 0x59d   :  { %v3216_v28 = vpop.f32.mrb[30].mxu1  ;;  %4746 = vmatpush1.bf16.msra.mxu1 %v11764_v30  ;;  %v12083_v46 = vld [vmem:[#allocation4 + $0x70] ss:$8 sps:$4 sm:$0xff]   ;;  %v12135_v30 = vld [vmem:[#allocation4 + $0xe4] ss:$8 sps:$4 sm:$0xff]  }
 0x59e   :  { %4936 = vmatpush1.bf16.msra.mxu0 %v12067_v54  ;;  %v3217_v61 = vpop.f32.mrb[31].mxu1  ;;  %4747 = vmatprep.subr.bf16.mxu1 %v11768_v39  ;;  %v12091_v28 = vld [vmem:[#allocation4 + $0x80] ss:$8 sps:$4 sm:$0xff]   ;;  %v12131_v39 = vld [vmem:[#allocation4 + $0xd0] ss:$8 sps:$4 sm:$0xff]   ;;  %13861 = vst [vmem:[#allocation126_spill] sm:$0xff] %v12135_v30 }
 0x59f   :  { %4937 = vmatprep.subr.bf16.mxu0 %v12071_v0  ;;  %v12087_v61 = vld [vmem:[#allocation4 + $0x84] ss:$8 sps:$4 sm:$0xff]   ;;  %13859 = vst [vmem:[#allocation125_spill] sm:$0xff] %v12131_v39 }
 0x5a1   :  { %4748 = vmatpush1.bf16.msra.mxu1 %v11774_v38  ;;  %v12095_v38 = vld [vmem:[#allocation4 + $0x94] ss:$8 sps:$4 sm:$0xff]  }
 0x5a2   :  { %4938 = vmatpush1.bf16.msra.mxu0 %v12075_v11  ;;  %4749 = vmatprep.subr.bf16.mxu1 %v11778_v62  ;;  %v12099_v62 = vld [vmem:[#allocation4 + $0x90] ss:$8 sps:$4 sm:$0xff]  }
 0x5a3   :  { %4939 = vmatprep.subr.bf16.mxu0 %v12079_v26 }
 0x5a5   :  { %4750 = vmatpush1.bf16.msra.mxu1 %v11782_v2  ;;  %v12103_v2 = vld [vmem:[#allocation4 + $0xa4] ss:$8 sps:$4 sm:$0xff]  }
 0x5a6   :  { %4940 = vmatpush1.bf16.msra.mxu0 %v12083_v46  ;;  %4751 = vmatprep.subr.bf16.mxu1 %v11786_v44  ;;  %v12107_v44 = vld [vmem:[#allocation4 + $0xa0] ss:$8 sps:$4 sm:$0xff]  }
 0x5a7   :  { %4941 = vmatprep.subr.bf16.mxu0 %v12087_v61  ;;  %13852 = vst [vmem:[#allocation119_spill] sm:$0xff] %v12107_v44 }
 0x5a9   :  { %4752 = vmatpush1.bf16.msra.mxu1 %v11791_v9  ;;  %v12111_v9 = vld [vmem:[#allocation4 + $0xb4] ss:$8 sps:$4 sm:$0xff]  }
 0x5aa   :  { %4942 = vmatpush1.bf16.msra.mxu0 %v12091_v28  ;;  %4753 = vmatprep.subr.bf16.mxu1 %v11795_v17  ;;  %13853 = vst [vmem:[#allocation120_spill] sm:$0xff] %v12111_v9  ;;  %v12115_v17 = vld [vmem:[#allocation4 + $0xb0] ss:$8 sps:$4 sm:$0xff]  }
 0x5ab   :  { %4943 = vmatprep.subr.bf16.mxu0 %v12095_v38  ;;  %13854 = vst [vmem:[#allocation121_spill] sm:$0xff] %v12115_v17 }
 0x5ad   :  { %4754 = vmatpush1.bf16.msra.mxu1 %v11799_v16  ;;  %v12119_v16 = vld [vmem:[#allocation4 + $0xc4] ss:$8 sps:$4 sm:$0xff]  }
 0x5ae   :  { %4944 = vmatpush1.bf16.msra.mxu0 %v12099_v62  ;;  %4755 = vmatprep.subr.bf16.mxu1 %v11803_v5  ;;  %13855 = vst [vmem:[#allocation122_spill] sm:$0xff] %v12119_v16  ;;  %v12123_v5 = vld [vmem:[#allocation4 + $0xc0] ss:$8 sps:$4 sm:$0xff]  }
 0x5af   :  { %4945 = vmatprep.subr.bf16.mxu0 %v12103_v2  ;;  %13856 = vst [vmem:[#allocation123_spill] sm:$0xff] %v12123_v5 }
 0x5b1   :  { %4756 = vmatpush1.bf16.msra.mxu1 %v11807_v42  ;;  %v12127_v42 = vld [vmem:[#allocation4 + $0xd4] ss:$8 sps:$4 sm:$0xff]  }
 0x5b2   :  { %4946 = vmatpush1.bf16.msra.mxu0 %v12107_v44  ;;  %4757 = vmatprep.subr.bf16.mxu1 %v11811_v35  ;;  %13857 = vst [vmem:[#allocation124_spill] sm:$0xff] %v12127_v42  ;;  %v13858_v35 = vld [vmem:[#allocation39_spill] sm:$0xff] }
 0x5b3   :  { %4947 = vmatprep.subr.bf16.mxu0 %v12111_v9 }
 0x5b5   :  { %4758 = vmatpush1.bf16.msra.mxu1 %v11815_v23  ;;  %v13860_v23 = vld [vmem:[#allocation78_spill] sm:$0xff] }
 0x5b6   :  { %4948 = vmatpush1.bf16.msra.mxu0 %v12115_v17  ;;  %4759 = vmatprep.subr.bf16.mxu1 %v11819_v50  ;;  %v13862_v50 = vld [vmem:[#allocation40_spill] sm:$0xff] }
 0x5b7   :  { %4949 = vmatprep.subr.bf16.mxu0 %v12119_v16 }
 0x5b9   :  { %4760 = vmatpush1.bf16.msra.mxu1 %v11823_v48  ;;  %v12142_v48 = vld.sshfl [vmem:[#allocation2 + $0xc] sm:$0x11 pattern:$0x75316420] }
 0x5ba   :  { %4950 = vmatpush1.bf16.msra.mxu0 %v12123_v5  ;;  %4761 = vmatprep.subr.bf16.mxu1 %v13858_v35  ;;  %v12145_v35 = vld [vmem:[#allocation4 + $0xf4] ss:$8 sps:$4 sm:$0xff]  }
 0x5bb   :  { %4951 = vmatprep.subr.bf16.mxu0 %v12127_v42  ;;  %v13864_v42 = vld [vmem:[#allocation26_spill] sm:$0xff]  ;;  %13865 = vst [vmem:[#allocation128_spill] sm:$0xff] %v12145_v35 }
 0x5bd   :  { %4762 = vmatpush1.bf16.msra.mxu1 %v13860_v23  ;;  %v4587_v23 = vcombine.high %v12142_v48, %v12142_v48 }
 0x5be   :  { %4952 = vmatpush1.bf16.msra.mxu0 %v12131_v39  ;;  %4763 = vmatprep.subr.bf16.mxu1 %v13862_v50  ;;  %v13866_v39 = vld [vmem:[#allocation79_spill] sm:$0xff] }
 0x5bf   :  { %4953 = vmatprep.subr.bf16.mxu0 %v12135_v30  ;;  %v12151_v30 = vld [vmem:[#allocation4 + $0xf0] ss:$8 sps:$4 sm:$0xff]  }
 0x5c0   :  { %13867 = vst [vmem:[#allocation129_spill] sm:$0xff] %v12151_v30  ;;  %v13868_v50 = vld [vmem:[#allocation27_spill] sm:$0xff] }
 0x5c1   :  { %4764 = vmatpush1.bf16.msra.mxu1 %v13864_v42  ;;  %v12159_v42 = vld [vmem:[#allocation4 + $0x104] ss:$8 sps:$4 sm:$0xff]  }
 0x5c2   :  { %4954 = vmatpush1.bf16.msra.mxu0 %v12139_v27  ;;  %4765 = vmatprep.subr.bf16.mxu1 %v13866_v39  ;;  %v12157_v27 = vrot.slane %v12001_v36, %v8769_v49  ;;  %v4577_v39 = vcombine.high %v12017_v22, %v12017_v22  ;;  %v4891_v36 = vcombine.high %v12027_v19, %v12027_v19  ;;  %v12174_v22 = vld [vmem:[#allocation4 + $0x114] ss:$8 sps:$4 sm:$0xff]   ;;  %v12193_v19 = vld [vmem:[#allocation4 + $0x130] ss:$8 sps:$4 sm:$0xff]  }
 0x5c3   :  { %4955 = vmatprep.subr.bf16.mxu0 %v12145_v35  ;;  %v4601_v35 = vrot.slane %v4587_v23, %v8769_v49  ;;  %v12189_v23 = vld [vmem:[#allocation4 + $0x134] ss:$8 sps:$4 sm:$0xff]   ;;  %13872 = vst [vmem:[#allocation133_spill] sm:$0xff] %v12193_v19 }
 0x5c4   :  { %13871 = vst [vmem:[#allocation132_spill] sm:$0xff] %v12189_v23 }
 0x5c5   :  { %4766 = vmatpush1.bf16.msra.mxu1 %v13868_v50  ;;  %v4889_v50 = vcombine.high %v12157_v27, %v12157_v27 }
 0x5c6   :  { %4956 = vmatpush1.bf16.msra.mxu0 %v12151_v30  ;;  %4776 = vmatprep.subr.bf16.mxu1 %v11858_v33  ;;  %v12167_v30 = vld [vmem:[#allocation4 + $0x100] ss:$8 sps:$4 sm:$0xff]   ;;  %v12177_v33 = vld [vmem:[#allocation4 + $0x110] ss:$8 sps:$4 sm:$0xff]  }
 0x5c7   :  { %4966 = vmatprep.subr.bf16.mxu0 %v12159_v42 }
 0x5c8   :  { %4768 = vmatmul.mubr.bf16.vlgmr.msra.gmra.mrb[32].mxu1 %v4577_v39  ;;  %v12181_v39 = vld [vmem:[#allocation4 + $0x124] ss:$8 sps:$4 sm:$0xff]  }
 0x5c9   :  { %4958 = vmatmul.mubr.bf16.vlgmr.msra.gmra.mrb[32].mxu0 %v12157_v27  ;;  %4777 = vmatpush1.bf16.msra.mxu1 %v11864_v3  ;;  %13869 = vst [vmem:[#allocation130_spill] sm:$0xff] %v12181_v39  ;;  %v13882_v27 = vld [vmem:[#allocation33_spill] sm:$0xff] }
 0x5ca   :  { %4967 = vmatpush1.bf16.msra.mxu0 %v12167_v30  ;;  %4808 = vmatprep.mubr.bf16.mxu1 %v4601_v35  ;;  %v12185_v35 = vld [vmem:[#allocation4 + $0x120] ss:$8 sps:$4 sm:$0xff]  }
 0x5cb   :  { %4998 = vmatprep.mubr.bf16.mxu0 %v4891_v36  ;;  %4778 = vmatprep.subr.bf16.mxu1 %v11875_v13  ;;  %13870 = vst [vmem:[#allocation131_spill] sm:$0xff] %v12185_v35  ;;  %v12197_v36 = vld [vmem:[#allocation4 + $0x144] ss:$8 sps:$4 sm:$0xff]   ;;  %v12296_v13 = vld [vmem:[#allocation4 + $0x1f4] ss:$8 sps:$4 sm:$0xff]  }
 0x5cc   :  { %4968 = vmatprep.subr.bf16.mxu0 %v12174_v22  ;;  %13873 = vst [vmem:[#allocation134_spill] sm:$0xff] %v12197_v36  ;;  %13877 = vst [vmem:[#allocation137_spill] sm:$0xff] %v12296_v13 }
 0x5cd   :  { %4779 = vmatpush1.bf16.msra.mxu1 %v11882_v15 }
 0x5ce   :  { %4969 = vmatpush1.bf16.msra.mxu0 %v12177_v33  ;;  %4780 = vmatprep.subr.bf16.mxu1 %v11885_v29  ;;  %v12201_v29 = vld [vmem:[#allocation4 + $0x140] ss:$8 sps:$4 sm:$0xff]  }
 0x5cf   :  { %4970 = vmatprep.subr.bf16.mxu0 %v12181_v39  ;;  %13874 = vst [vmem:[#allocation135_spill] sm:$0xff] %v12201_v29 }
 0x5d1   :  { %4781 = vmatpush1.bf16.msra.mxu1 %v11891_v52  ;;  %v12205_v52 = vld [vmem:[#allocation4 + $0x154] ss:$8 sps:$4 sm:$0xff]  }
 0x5d2   :  { %4971 = vmatpush1.bf16.msra.mxu0 %v12185_v35  ;;  %4782 = vmatprep.subr.bf16.mxu1 %v11895_v37  ;;  %v12209_v37 = vld [vmem:[#allocation4 + $0x150] ss:$8 sps:$4 sm:$0xff]  }
 0x5d3   :  { %4972 = vmatprep.subr.bf16.mxu0 %v12189_v23 }
 0x5d5   :  { %4783 = vmatpush1.bf16.msra.mxu1 %v11899_v63  ;;  %v12213_v63 = vld [vmem:[#allocation4 + $0x164] ss:$8 sps:$4 sm:$0xff]  }
 0x5d6   :  { %4973 = vmatpush1.bf16.msra.mxu0 %v12193_v19  ;;  %4784 = vmatprep.subr.bf16.mxu1 %v11903_v4  ;;  %v12217_v4 = vld [vmem:[#allocation4 + $0x160] ss:$8 sps:$4 sm:$0xff]  }
 0x5d7   :  { %4974 = vmatprep.subr.bf16.mxu0 %v12197_v36 }
 0x5d9   :  { %4785 = vmatpush1.bf16.msra.mxu1 %v11907_v58  ;;  %v12221_v58 = vld [vmem:[#allocation4 + $0x174] ss:$8 sps:$4 sm:$0xff]  }
 0x5da   :  { %4975 = vmatpush1.bf16.msra.mxu0 %v12201_v29  ;;  %4786 = vmatprep.subr.bf16.mxu1 %v11911_v12  ;;  %v12225_v12 = vld [vmem:[#allocation4 + $0x170] ss:$8 sps:$4 sm:$0xff]  }
 0x5db   :  { %4976 = vmatprep.subr.bf16.mxu0 %v12205_v52 }
 0x5dd   :  { %4787 = vmatpush1.bf16.msra.mxu1 %v11915_v45  ;;  %v12229_v45 = vld [vmem:[#allocation4 + $0x184] ss:$8 sps:$4 sm:$0xff]  }
 0x5de   :  { %4977 = vmatpush1.bf16.msra.mxu0 %v12209_v37  ;;  %4788 = vmatprep.subr.bf16.mxu1 %v11919_v56  ;;  %v12233_v56 = vld [vmem:[#allocation4 + $0x180] ss:$8 sps:$4 sm:$0xff]  }
 0x5df   :  { %4978 = vmatprep.subr.bf16.mxu0 %v12213_v63 }
 0x5e1   :  { %4789 = vmatpush1.bf16.msra.mxu1 %v11923_v40  ;;  %v12237_v40 = vld [vmem:[#allocation4 + $0x194] ss:$8 sps:$4 sm:$0xff]  }
 0x5e2   :  { %4979 = vmatpush1.bf16.msra.mxu0 %v12217_v4  ;;  %4790 = vmatprep.subr.bf16.mxu1 %v11927_v1  ;;  %v12241_v1 = vld [vmem:[#allocation4 + $0x190] ss:$8 sps:$4 sm:$0xff]  }
 0x5e3   :  { %4980 = vmatprep.subr.bf16.mxu0 %v12221_v58 }
 0x5e5   :  { %4791 = vmatpush1.bf16.msra.mxu1 %v11931_v21  ;;  %v12245_v21 = vld [vmem:[#allocation4 + $0x1a4] ss:$8 sps:$4 sm:$0xff]  }
 0x5e6   :  { %4981 = vmatpush1.bf16.msra.mxu0 %v12225_v12  ;;  %4792 = vmatprep.subr.bf16.mxu1 %v11935_v20  ;;  %v12249_v20 = vld [vmem:[#allocation4 + $0x1a0] ss:$8 sps:$4 sm:$0xff]  }
 0x5e7   :  { %4982 = vmatprep.subr.bf16.mxu0 %v12229_v45 }
 0x5e9   :  { %4793 = vmatpush1.bf16.msra.mxu1 %v11939_v7  ;;  %v12253_v7 = vld [vmem:[#allocation4 + $0x1b4] ss:$8 sps:$4 sm:$0xff]  }
 0x5ea   :  { %4983 = vmatpush1.bf16.msra.mxu0 %v12233_v56  ;;  %4794 = vmatprep.subr.bf16.mxu1 %v11943_v10  ;;  %v12257_v10 = vld [vmem:[#allocation4 + $0x1b0] ss:$8 sps:$4 sm:$0xff]  }
 0x5eb   :  { %4984 = vmatprep.subr.bf16.mxu0 %v12237_v40 }
 0x5ed   :  { %4795 = vmatpush1.bf16.msra.mxu1 %v11947_v25  ;;  %v12261_v25 = vld [vmem:[#allocation4 + $0x1c4] ss:$8 sps:$4 sm:$0xff]  }
 0x5ee   :  { %4985 = vmatpush1.bf16.msra.mxu0 %v12241_v1  ;;  %4796 = vmatprep.subr.bf16.mxu1 %v11951_v8  ;;  %v12265_v8 = vld [vmem:[#allocation4 + $0x1c0] ss:$8 sps:$4 sm:$0xff]  }
 0x5ef   :  { %4986 = vmatprep.subr.bf16.mxu0 %v12245_v21 }
 0x5f1   :  { %4797 = vmatpush1.bf16.msra.mxu1 %v11955_v31  ;;  %v12269_v31 = vld [vmem:[#allocation4 + $0x1d4] ss:$8 sps:$4 sm:$0xff]  }
 0x5f2   :  { %4987 = vmatpush1.bf16.msra.mxu0 %v12249_v20  ;;  %4798 = vmatprep.subr.bf16.mxu1 %v11959_v34  ;;  %v12275_v34 = vld [vmem:[#allocation4 + $0x1d0] ss:$8 sps:$4 sm:$0xff]  }
 0x5f3   :  { %4988 = vmatprep.subr.bf16.mxu0 %v12253_v7 }
 0x5f5   :  { %4799 = vmatpush1.bf16.msra.mxu1 %v11963_v14  ;;  %v4844_v14 = vcombine.high %v11993_v18, %v11993_v18 }
 0x5f6   :  { %4989 = vmatpush1.bf16.msra.mxu0 %v12257_v10  ;;  %4800 = vmatprep.subr.bf16.mxu1 %v11967_v57  ;;  %v12279_v57 = vld [vmem:[#allocation4 + $0x1e4] ss:$8 sps:$4 sm:$0xff]  }
 0x5f7   :  { %4990 = vmatprep.subr.bf16.mxu0 %v12261_v25  ;;  %v12286_v15 = vrot.slane %v4844_v14, %v8769_v49 }
 0x5f9   :  { %4801 = vmatpush1.bf16.msra.mxu1 %v11971_v53  ;;  %v12282_v53 = vld [vmem:[#allocation2 + $0xc] sm:$0xff]  ;;  %v4860_v14 = vcombine.high %v12286_v15, %v12286_v15 }
 0x5fa   :  { %4991 = vmatpush1.bf16.msra.mxu0 %v12265_v8  ;;  %4802 = vmatprep.subr.bf16.mxu1 %v11975_v41  ;;  %v12288_v41 = vld [vmem:[#allocation4 + $0x1e0] ss:$8 sps:$4 sm:$0xff]   ;;  %v12293_v18 = vrot.slane %v12282_v53, %v8769_v49 }
 0x5fb   :  { %4992 = vmatprep.subr.bf16.mxu0 %v12269_v31  ;;  %13875 = vst [vmem:[#allocation136_spill] sm:$0xff] %v12288_v41 }
 0x5fc   :  { %v5172_v3 = vcombine.high %v12293_v18, %v12293_v18 }
 0x5fd   :  { %4803 = vmatpush1.bf16.msra.mxu1 %v11979_v51  ;;  %v13876_v51 = vld [vmem:[#allocation108_spill] sm:$0xff] }
 0x5fe   :  { %4993 = vmatpush1.bf16.msra.mxu0 %v12275_v34  ;;  %4804 = vmatprep.subr.bf16.mxu1 %v11983_v47  ;;  %v13878_v47 = vld [vmem:[#allocation29_spill] sm:$0xff] }
 0x5ff   :  { %4994 = vmatprep.subr.bf16.mxu0 %v12279_v57 }
 0x601   :  { %4805 = vmatpush1.bf16.msra.mxu1 %v13876_v51  ;;  %v13879_v51 = vld [vmem:[#allocation30_spill] sm:$0xff] }
 0x602   :  { %4995 = vmatpush1.bf16.msra.mxu0 %v12288_v41  ;;  %4806 = vmatprep.subr.bf16.mxu1 %v11991_v32  ;;  %v12313_v32 = vrot.slane %v4860_v14, %v8769_v49  ;;  %v12317_v41 = vrot.slane %v5172_v3, %v8769_v49  ;;  %v13886_v3 = vld [vmem:[#allocation14_spill] sm:$0xff]  ;;  %v13887_v14 = vld [vmem:[#allocation115_spill] sm:$0xff] }
 0x603   :  { %4996 = vmatprep.subr.bf16.mxu0 %v12296_v13  ;;  %v4594_v13 = vrot.slane %v12142_v48, %v8769_v49  ;;  %v13884_v48 = vld [vmem:[#allocation43_spill] sm:$0xff] }
 0x605   :  { %4807 = vmatpush1.bf16.msra.mxu1 %v11997_v59 }
 0x606   :  { %4997 = vmatpush1.bf16.msra.mxu0 %v13878_v47  ;;  %5238 = vmatprep.subr.bf16.mxu1 %v12012_v43  ;;  %v13880_v47 = vld [vmem:[#allocation31_spill] sm:$0xff]  ;;  %v13890_v43 = vld [vmem:[#allocation16_spill] sm:$0xff] }
 0x607   :  { %5007 = vmatprep.subr.bf16.mxu0 %v13879_v51  ;;  %v13881_v51 = vld [vmem:[#allocation32_spill] sm:$0xff] }
 0x608   :  { %4809 = vmatmul.mubr.bf16.vlgmr.msra.gmra.mrb[32].mxu1 %v4594_v13  ;;  %v13885_v13 = vld [vmem:[#allocation114_spill] sm:$0xff] }
 0x609   :  { %4999 = vmatmul.mubr.bf16.vlgmr.msra.gmra.mrb[32].mxu0 %v4889_v50  ;;  %5239 = vmatpush1.bf16.msra.mxu1 %v12023_v60  ;;  %v13883_v50 = vld [vmem:[#allocation113_spill] sm:$0xff]  ;;  %v13889_v60 = vld [vmem:[#allocation116_spill] sm:$0xff] }
 0x60a   :  { %5008 = vmatpush1.bf16.msra.mxu0 %v13880_v47  ;;  %5039 = vmatprep.mubr.bf16.mxu0 %v12313_v32  ;;  %v13888_v47 = vld [vmem:[#allocation15_spill] sm:$0xff] }
 0x60b   :  { %5270 = vmatprep.mubr.bf16.mxu1 %v12317_v41  ;;  %5009 = vmatprep.subr.bf16.mxu0 %v13881_v51  ;;  %v13891_v51 = vld [vmem:[#allocation117_spill] sm:$0xff] }
 0x60c   :  { %5240 = vmatprep.subr.bf16.mxu1 %v12032_v55  ;;  %v13892_v55 = vld [vmem:[#allocation17_spill] sm:$0xff] }
 0x60d   :  { %5241 = vmatpush1.bf16.msra.mxu1 %v13883_v50  ;;  %v13894_v50 = vld [vmem:[#allocation18_spill] sm:$0xff] }
 0x60e   :  { %5010 = vmatpush1.bf16.msra.mxu0 %v13882_v27  ;;  %5242 = vmatprep.subr.bf16.mxu1 %v13885_v13  ;;  %v13893_v27 = vld [vmem:[#allocation118_spill] sm:$0xff] }
 0x60f   :  { %5011 = vmatprep.subr.bf16.mxu0 %v13884_v48  ;;  %v13895_v48 = vld [vmem:[#allocation20_spill] sm:$0xff] }
 0x611   :  { %5243 = vmatpush1.bf16.msra.mxu1 %v13887_v14 }
 0x612   :  { %5012 = vmatpush1.bf16.msra.mxu0 %v13886_v3  ;;  %5244 = vmatprep.subr.bf16.mxu1 %v13889_v60  ;;  %v13896_v3 = vld [vmem:[#allocation23_spill] sm:$0xff] }
 0x613   :  { %5013 = vmatprep.subr.bf16.mxu0 %v13888_v47  ;;  %v13897_v47 = vld [vmem:[#allocation25_spill] sm:$0xff] }
 0x615   :  { %5245 = vmatpush1.bf16.msra.mxu1 %v13891_v51 }
 0x616   :  { %5014 = vmatpush1.bf16.msra.mxu0 %v13890_v43  ;;  %5246 = vmatprep.subr.bf16.mxu1 %v13893_v27  ;;  %v13898_v43 = vld [vmem:[#allocation49_spill] sm:$0xff] }
 0x617   :  { %5015 = vmatprep.subr.bf16.mxu0 %v13892_v55  ;;  %v13899_v55 = vld [vmem:[#allocation46_spill] sm:$0xff] }
 0x619   :  { %5247 = vmatpush1.bf16.msra.mxu1 %v12059_v6 }
 0x61a   :  { %5016 = vmatpush1.bf16.msra.mxu0 %v13894_v50  ;;  %5248 = vmatprep.subr.bf16.mxu1 %v12063_v24  ;;  %v13900_v50 = vld [vmem:[#allocation47_spill] sm:$0xff] }
 0x61b   :  { %5017 = vmatprep.subr.bf16.mxu0 %v13895_v48  ;;  %v13901_v48 = vld [vmem:[#allocation48_spill] sm:$0xff] }
 0x61d   :  { %5249 = vmatpush1.bf16.msra.mxu1 %v12067_v54 }
 0x61e   :  { %5018 = vmatpush1.bf16.msra.mxu0 %v13896_v3  ;;  %5250 = vmatprep.subr.bf16.mxu1 %v12071_v0  ;;  %v13902_v3 = vld [vmem:[#allocation19_spill] sm:$0xff] }
 0x61f   :  { %5019 = vmatprep.subr.bf16.mxu0 %v13897_v47  ;;  %v13903_v47 = vld [vmem:[#allocation51_spill] sm:$0xff] }
 0x621   :  { %5251 = vmatpush1.bf16.msra.mxu1 %v12075_v11 }
 0x622   :  { %5020 = vmatpush1.bf16.msra.mxu0 %v13898_v43  ;;  %5252 = vmatprep.subr.bf16.mxu1 %v12079_v26  ;;  %v13904_v43 = vld [vmem:[#allocation53_spill] sm:$0xff] }
 0x623   :  { %5021 = vmatprep.subr.bf16.mxu0 %v13899_v55  ;;  %v13905_v55 = vld [vmem:[#allocation54_spill] sm:$0xff] }
 0x625   :  { %5253 = vmatpush1.bf16.msra.mxu1 %v12083_v46 }
 0x626   :  { %5022 = vmatpush1.bf16.msra.mxu0 %v13900_v50  ;;  %5254 = vmatprep.subr.bf16.mxu1 %v12087_v61  ;;  %v13906_v50 = vld [vmem:[#allocation21_spill] sm:$0xff] }
 0x627   :  { %5023 = vmatprep.subr.bf16.mxu0 %v13901_v48  ;;  %v13907_v48 = vld [vmem:[#allocation22_spill] sm:$0xff] }
 0x629   :  { %5255 = vmatpush1.bf16.msra.mxu1 %v12091_v28 }
 0x62a   :  { %5024 = vmatpush1.bf16.msra.mxu0 %v13902_v3  ;;  %5256 = vmatprep.subr.bf16.mxu1 %v12095_v38  ;;  %v13908_v3 = vld [vmem:[#allocation24_spill] sm:$0xff] }
 0x62b   :  { %5025 = vmatprep.subr.bf16.mxu0 %v13903_v47  ;;  %v13909_v47 = vld [vmem:[#allocation55_spill] sm:$0xff] }
 0x62d   :  { %5257 = vmatpush1.bf16.msra.mxu1 %v12099_v62 }
 0x62e   :  { %5026 = vmatpush1.bf16.msra.mxu0 %v13904_v43  ;;  %5258 = vmatprep.subr.bf16.mxu1 %v12103_v2  ;;  %v13910_v43 = vld [vmem:[#allocation56_spill] sm:$0xff] }
 0x62f   :  { %5027 = vmatprep.subr.bf16.mxu0 %v13905_v55  ;;  %v13911_v55 = vld [vmem:[#allocation57_spill] sm:$0xff] }
 0x631   :  { %5259 = vmatpush1.bf16.msra.mxu1 %v12107_v44  ;;  %v13913_v44 = vld [vmem:[#allocation58_spill] sm:$0xff] }
 0x632   :  { %5028 = vmatpush1.bf16.msra.mxu0 %v13906_v50  ;;  %5260 = vmatprep.subr.bf16.mxu1 %v12111_v9  ;;  %v13912_v50 = vld [vmem:[#allocation124_spill] sm:$0xff]  ;;  %v13915_v9 = vld [vmem:[#allocation59_spill] sm:$0xff] }
 0x633   :  { %5029 = vmatprep.subr.bf16.mxu0 %v13907_v48  ;;  %v13914_v48 = vld [vmem:[#allocation125_spill] sm:$0xff] }
 0x635   :  { %5261 = vmatpush1.bf16.msra.mxu1 %v12115_v17  ;;  %v13917_v17 = vld [vmem:[#allocation60_spill] sm:$0xff] }
 0x636   :  { %5030 = vmatpush1.bf16.msra.mxu0 %v13908_v3  ;;  %5262 = vmatprep.subr.bf16.mxu1 %v12119_v16  ;;  %v13916_v3 = vld [vmem:[#allocation126_spill] sm:$0xff]  ;;  %v13919_v16 = vld [vmem:[#allocation61_spill] sm:$0xff] }
 0x637   :  { %5031 = vmatprep.subr.bf16.mxu0 %v13909_v47  ;;  %v13918_v47 = vld [vmem:[#allocation127_spill] sm:$0xff] }
 0x639   :  { %5263 = vmatpush1.bf16.msra.mxu1 %v12123_v5  ;;  %v13921_v5 = vld [vmem:[#allocation62_spill] sm:$0xff] }
 0x63a   :  { %5032 = vmatpush1.bf16.msra.mxu0 %v13910_v43  ;;  %5264 = vmatprep.subr.bf16.mxu1 %v13912_v50  ;;  %v13920_v43 = vld [vmem:[#allocation128_spill] sm:$0xff] }
 0x63b   :  { %5033 = vmatprep.subr.bf16.mxu0 %v13911_v55  ;;  %v13922_v55 = vld [vmem:[#allocation129_spill] sm:$0xff] }
 0x63d   :  { %5265 = vmatpush1.bf16.msra.mxu1 %v13914_v48  ;;  %v13923_v48 = vld [vmem:[#allocation63_spill] sm:$0xff] }
 0x63e   :  { %5034 = vmatpush1.bf16.msra.mxu0 %v13913_v44  ;;  %5266 = vmatprep.subr.bf16.mxu1 %v13916_v3  ;;  %v12384_v44 = vrot.slane %v12286_v15, %v8769_v49  ;;  %v13925_v15 = vld [vmem:[#allocation65_spill] sm:$0xff] }
 0x63f   :  { %5035 = vmatprep.subr.bf16.mxu0 %v13915_v9  ;;  %v12389_v9 = vrot.slane %v12293_v18, %v8769_v49  ;;  %v13926_v18 = vld [vmem:[#allocation66_spill] sm:$0xff] }
 0x641   :  { %5267 = vmatpush1.bf16.msra.mxu1 %v13918_v47 }
 0x642   :  { %5036 = vmatpush1.bf16.msra.mxu0 %v13917_v17  ;;  %5268 = vmatprep.subr.bf16.mxu1 %v13920_v43  ;;  %v4892_v17 = vcombine.high %v12313_v32, %v12313_v32  ;;  %v13927_v32 = vld [vmem:[#allocation67_spill] sm:$0xff] }
 0x643   :  { %5037 = vmatprep.subr.bf16.mxu0 %v13919_v16  ;;  %v13924_v16 = vld [vmem:[#allocation64_spill] sm:$0xff] }
 0x645   :  { %5269 = vmatpush1.bf16.msra.mxu1 %v13922_v55 }
 0x646   :  { %5038 = vmatpush1.bf16.msra.mxu0 %v13921_v5  ;;  %5279 = vmatprep.subr.bf16.mxu1 %v12159_v42  ;;  %v5204_v5 = vcombine.high %v12317_v41, %v12317_v41  ;;  %v13929_v41 = vld [vmem:[#allocation69_spill] sm:$0xff] }
 0x647   :  { %5048 = vmatprep.subr.bf16.mxu0 %v13923_v48  ;;  %v13928_v48 = vld [vmem:[#allocation68_spill] sm:$0xff] }
 0x648   :  { %5271 = vmatmul.mubr.bf16.vlgmr.msra.gmra.mrb[36].mxu1 %v12389_v9 }
 0x649   :  { %5040 = vmatmul.mubr.bf16.vlgmr.msra.gmra.mrb[32].mxu0 %v12384_v44  ;;  %5280 = vmatpush1.bf16.msra.mxu1 %v12167_v30 }
 0x64a   :  { %5049 = vmatpush1.bf16.msra.mxu0 %v13924_v16  ;;  %5080 = vmatprep.mubr.bf16.mxu0 %v4892_v17  ;;  %v13930_v17 = vld [vmem:[#allocation70_spill] sm:$0xff]  ;;  %v3402_v16 = vld [vmem:[%s13093_s4] sm:$0x3] }
 0x64b   :  { %5311 = vmatprep.mubr.bf16.mxu1 %v5204_v5  ;;  %5050 = vmatprep.subr.bf16.mxu0 %v13925_v15  ;;  %v13931_v5 = vld [vmem:[#allocation50_spill] sm:$0xff]  ;;  %v13932_v15 = vld [vmem:[#allocation13_spill] sm:$0xff] }
 0x64c   :  { %5281 = vmatprep.subr.bf16.mxu1 %v12174_v22 }
 0x64d   :  { %5282 = vmatpush1.bf16.msra.mxu1 %v12177_v33 }
 0x64e   :  { %5051 = vmatpush1.bf16.msra.mxu0 %v13926_v18  ;;  %5283 = vmatprep.subr.bf16.mxu1 %v12181_v39  ;;  %v13933_v18 = vsub.s32 0, %v13932_v15  ;;  %v13937_v39 = vld [vmem:[#allocation38_spill] sm:$0xff] }
 0x64f   :  { %5052 = vmatprep.subr.bf16.mxu0 %v13927_v32 }
 0x650   :  { %v12419_v32 = vrot.slane %v3402_v16, %v13933_v18 }
 0x651   :  { %5284 = vmatpush1.bf16.msra.mxu1 %v12185_v35 }
 0x652   :  { %5053 = vmatpush1.bf16.msra.mxu0 %v13928_v48  ;;  %5285 = vmatprep.subr.bf16.mxu1 %v12189_v23  ;;  %v13934_v48 = vld [vmem:[#allocation34_spill] sm:$0xff] }
 0x653   :  { %5054 = vmatprep.subr.bf16.mxu0 %v13929_v41  ;;  %v13935_v41 = vsub.s32 1, %v13932_v15  ;;  %v13938_v15 = vld [vmem:[#allocation41_spill] sm:$0xff] }
 0x655   :  { %5286 = vmatpush1.bf16.msra.mxu1 %v12193_v19  ;;  %v12424_v23 = vrot.slane %v3402_v16, %v13935_v41 }
 0x656   :  { %5055 = vmatpush1.bf16.msra.mxu0 %v13930_v17  ;;  %5287 = vmatprep.subr.bf16.mxu1 %v12197_v36  ;;  %v13936_v17 = vld [vmem:[#allocation52_spill] sm:$0xff] }
 0x657   :  { %5056 = vmatprep.subr.bf16.mxu0 %v13931_v5 }
 0x659   :  { %5288 = vmatpush1.bf16.msra.mxu1 %v12201_v29  ;;  %v13939_v29 = vld [vmem:[#allocation42_spill] sm:$0xff] }
 0x65a   :  { %5057 = vmatpush1.bf16.msra.mxu0 %v13934_v48  ;;  %5289 = vmatprep.subr.bf16.mxu1 %v12205_v52 }
 0x65b   :  { %5058 = vmatprep.subr.bf16.mxu0 %v13936_v17 }
 0x65c   :  { %v4497_v35 = vpop.f32.mrb[28].mxu0 }
 0x65d   :  { %v7384_v5 = vadd.f32 %v4497_v35, %v12419_v32  ;;  %v4499_v36 = vpop.f32.mrb[29].mxu0  ;;  %5290 = vmatpush1.bf16.msra.mxu1 %v12209_v37  ;;  %v13940_v35 = vld [vmem:[#allocation44_spill] sm:$0xff] }
 0x65e   :  { %v7385_v19 = vadd.f32 %v4499_v36, %v12424_v23  ;;  %v4501_v18 = vpop.f32.mrb[30].mxu0  ;;  %5059 = vmatpush1.bf16.msra.mxu0 %v13937_v39  ;;  %5291 = vmatprep.subr.bf16.mxu1 %v12213_v63  ;;  %v13941_v39 = vld [vmem:[#allocation45_spill] sm:$0xff] }
 0x65f   :  { %v4504_v48 = vmax.f32 %v7384_v5, 0.0  ;;  %v4502_v16 = vpop.f32.mrb[31].mxu0  ;;  %5060 = vmatprep.subr.bf16.mxu0 %v13938_v15  ;;  %v13942_v5 = vld [vmem:[#allocation35_spill] sm:$0xff]  ;;  %v13948_v15 = vld [vmem:[#allocation74_spill] sm:$0xff] }
 0x660   :  { %v4505_v41 = vmax.f32 %v7385_v19, 0.0  ;;  %v13943_v19 = vld [vmem:[#allocation36_spill] sm:$0xff]  ;;  %v13945_v18 = vld [vmem:[#allocation71_spill] sm:$0xff]  ;;  %v13947_v16 = vld [vmem:[#allocation73_spill] sm:$0xff] }
 0x661   :  { %5292 = vmatpush1.bf16.msra.mxu1 %v12217_v4 }
 0x662   :  { %v7110_v17 = vpack.c.bf16 %v4505_v41, %v4504_v48  ;;  %5061 = vmatpush1.bf16.msra.mxu0 %v13939_v29  ;;  %5293 = vmatprep.subr.bf16.mxu1 %v12221_v58  ;;  %v13944_v29 = vld [vmem:[#allocation37_spill] sm:$0xff]  ;;  %v13946_v48 = vld [vmem:[#allocation72_spill] sm:$0xff]  ;;  %v13949_v41 = vld [vmem:[#allocation75_spill] sm:$0xff] }
 0x663   :  { %5062 = vmatprep.subr.bf16.mxu0 %v13940_v35  ;;  %v13951_v35 = vld [vmem:[#allocation77_spill] sm:$0xff] }
 0x664   :  { %v4517_v36 = vrot.slane %v7110_v17, %v8769_v49  ;;  %v13950_v17 = vld [vmem:[#allocation76_spill] sm:$0xff] }
 0x665   :  { %5294 = vmatpush1.bf16.msra.mxu1 %v12225_v12 }
 0x666   :  { %7111 = vst.sshfl [vmem:[#allocation3] sm:$0x5 pattern:$0x73625140] %v4517_v36  ;;  %5063 = vmatpush1.bf16.msra.mxu0 %v13941_v39  ;;  %5295 = vmatprep.subr.bf16.mxu1 %v12229_v45  ;;  %v13952_v36 = vld [vmem:[#allocation39_spill] sm:$0xff]  ;;  %v13953_v39 = vld [vmem:[#allocation78_spill] sm:$0xff] }
 0x667   :  { %5064 = vmatprep.subr.bf16.mxu0 %v13942_v5  ;;  %v5157_v5 = vcombine.high %v12282_v53, %v12282_v53 }
 0x669   :  { %5296 = vmatpush1.bf16.msra.mxu1 %v12233_v56 }
 0x66a   :  { %5065 = vmatpush1.bf16.msra.mxu0 %v13943_v19  ;;  %5297 = vmatprep.subr.bf16.mxu1 %v12237_v40  ;;  %v13954_v19 = vld [vmem:[#allocation40_spill] sm:$0xff] }
 0x66b   :  { %5066 = vmatprep.subr.bf16.mxu0 %v13944_v29  ;;  %v13955_v29 = vld [vmem:[#allocation26_spill] sm:$0xff] }
 0x66d   :  { %5298 = vmatpush1.bf16.msra.mxu1 %v12241_v1 }
 0x66e   :  { %5067 = vmatpush1.bf16.msra.mxu0 %v13945_v18  ;;  %5299 = vmatprep.subr.bf16.mxu1 %v12245_v21  ;;  %v12471_v18 = vld.sshfl [vmem:[#allocation2 + $0x10] sm:$0x11 pattern:$0x75316420] }
 0x66f   :  { %5068 = vmatprep.subr.bf16.mxu0 %v13946_v48  ;;  %v12474_v48 = vrot.slane %v5157_v5, %v8769_v49  ;;  %v4900_v53 = vcombine.high %v12471_v18, %v12471_v18  ;;  %v13961_v5 = vld [vmem:[#allocation80_spill] sm:$0xff] }
 0x671   :  { %5300 = vmatpush1.bf16.msra.mxu1 %v12249_v20 }
 0x672   :  { %5069 = vmatpush1.bf16.msra.mxu0 %v13947_v16  ;;  %5301 = vmatprep.subr.bf16.mxu1 %v12253_v7  ;;  %v13956_v16 = vld [vmem:[#allocation136_spill] sm:$0xff] }
 0x673   :  { %5070 = vmatprep.subr.bf16.mxu0 %v13948_v15  ;;  %v13957_v15 = vld [vmem:[#allocation79_spill] sm:$0xff] }
 0x675   :  { %5302 = vmatpush1.bf16.msra.mxu1 %v12257_v10 }
 0x676   :  { %5071 = vmatpush1.bf16.msra.mxu0 %v13949_v41  ;;  %5303 = vmatprep.subr.bf16.mxu1 %v12261_v25  ;;  %v13958_v41 = vld [vmem:[#allocation137_spill] sm:$0xff] }
 0x677   :  { %5072 = vmatprep.subr.bf16.mxu0 %v13950_v17  ;;  %v13959_v17 = vld [vmem:[#allocation27_spill] sm:$0xff] }
 0x679   :  { %5304 = vmatpush1.bf16.msra.mxu1 %v12265_v8 }
 0x67a   :  { %5073 = vmatpush1.bf16.msra.mxu0 %v13951_v35  ;;  %5305 = vmatprep.subr.bf16.mxu1 %v12269_v31  ;;  %v5173_v35 = vcombine.high %v12474_v48, %v12474_v48 }
 0x67b   :  { %5074 = vmatprep.subr.bf16.mxu0 %v13952_v36  ;;  %v12484_v36 = vld [vmem:[#allocation4 + $0x1f0] ss:$8 sps:$4 sm:$0xff]  }
 0x67c   :  { %13960 = vst [vmem:[#allocation29_spill] sm:$0xff] %v12484_v36 }
 0x67d   :  { %5306 = vmatpush1.bf16.msra.mxu1 %v12275_v34 }
 0x67e   :  { %5075 = vmatpush1.bf16.msra.mxu0 %v13953_v39  ;;  %5307 = vmatprep.subr.bf16.mxu1 %v12279_v57  ;;  %v4890_v39 = vcombine.high %v12384_v44, %v12384_v44  ;;  %v12500_v44 = vld [vmem:[#allocation4 + $0x200] ss:$8 sps:$4 sm:$0xff]  }
 0x67f   :  { %5076 = vmatprep.subr.bf16.mxu0 %v13954_v19  ;;  %v5202_v19 = vcombine.high %v12389_v9, %v12389_v9  ;;  %13963 = vst [vmem:[#allocation30_spill] sm:$0xff] %v12500_v44  ;;  %v13964_v9 = vld [vmem:[#allocation81_spill] sm:$0xff] }
 0x681   :  { %5308 = vmatpush1.bf16.msra.mxu1 %v13956_v16 }
 0x682   :  { %5077 = vmatpush1.bf16.msra.mxu0 %v13955_v29  ;;  %5309 = vmatprep.subr.bf16.mxu1 %v13958_v41  ;;  %v12492_v29 = vld [vmem:[#allocation4 + $0x204] ss:$8 sps:$4 sm:$0xff]  }
 0x683   :  { %5078 = vmatprep.subr.bf16.mxu0 %v13957_v15  ;;  %v4914_v15 = vrot.slane %v4900_v53, %v8769_v49  ;;  %v13966_v53 = vld [vmem:[#allocation82_spill] sm:$0xff] }
 0x685   :  { %5310 = vmatpush1.bf16.msra.mxu1 %v12484_v36  ;;  %v12498_v36 = vrot.slane %v5173_v35, %v8769_v49  ;;  %v13968_v35 = vld [vmem:[#allocation83_spill] sm:$0xff] }
 0x686   :  { %5079 = vmatpush1.bf16.msra.mxu0 %v13959_v17  ;;  %5320 = vmatprep.subr.bf16.mxu1 %v12492_v29  ;;  %v13962_v17 = vld [vmem:[#allocation28_spill] sm:$0xff] }
 0x687   :  { %5089 = vmatprep.subr.bf16.mxu0 %v13961_v5  ;;  %v12505_v5 = vld [vmem:[#allocation4 + $0x214] ss:$8 sps:$4 sm:$0xff]  }
 0x688   :  { %5312 = vmatmul.mubr.bf16.vlgmr.msra.gmra.mrb[36].mxu1 %v5202_v19  ;;  %13965 = vst [vmem:[#allocation31_spill] sm:$0xff] %v12505_v5  ;;  %v12513_v19 = vld [vmem:[#allocation4 + $0x224] ss:$8 sps:$4 sm:$0xff]  }
 0x689   :  { %5081 = vmatmul.mubr.bf16.vlgmr.msra.gmra.mrb[32].mxu0 %v4890_v39  ;;  %5321 = vmatpush1.bf16.msra.mxu1 %v12500_v44  ;;  %v12509_v39 = vld [vmem:[#allocation4 + $0x210] ss:$8 sps:$4 sm:$0xff]   ;;  %13969 = vst [vmem:[#allocation33_spill] sm:$0xff] %v12513_v19 }
 0x68a   :  { %5090 = vmatpush1.bf16.msra.mxu0 %v13962_v17  ;;  %5121 = vmatprep.mubr.bf16.mxu0 %v4914_v15  ;;  %13967 = vst [vmem:[#allocation32_spill] sm:$0xff] %v12509_v39  ;;  %v13970_v15 = vld [vmem:[#allocation84_spill] sm:$0xff]  ;;  %v14022_v44 = vld [vmem:[#allocation110_spill] sm:$0xff] }
 0x68b   :  { %5352 = vmatprep.mubr.bf16.mxu1 %v12498_v36  ;;  %5091 = vmatprep.subr.bf16.mxu0 %v13964_v9  ;;  %v12517_v17 = vld [vmem:[#allocation4 + $0x220] ss:$8 sps:$4 sm:$0xff]  }
 0x68c   :  { %5322 = vmatprep.subr.bf16.mxu1 %v12505_v5  ;;  %13971 = vst [vmem:[#allocation43_spill] sm:$0xff] %v12517_v17  ;;  %v13972_v9 = vld [vmem:[#allocation85_spill] sm:$0xff]  ;;  %v12521_v5 = vld [vmem:[#allocation4 + $0x234] ss:$8 sps:$4 sm:$0xff]  }
 0x68d   :  { %5323 = vmatpush1.bf16.msra.mxu1 %v12509_v39  ;;  %13973 = vst [vmem:[#allocation114_spill] sm:$0xff] %v12521_v5  ;;  %v12525_v39 = vld [vmem:[#allocation4 + $0x230] ss:$8 sps:$4 sm:$0xff]  }
 0x68e   :  { %5092 = vmatpush1.bf16.msra.mxu0 %v13966_v53  ;;  %5324 = vmatprep.subr.bf16.mxu1 %v12513_v19  ;;  %v13974_v53 = vld [vmem:[#allocation86_spill] sm:$0xff]  ;;  %13975 = vst [vmem:[#allocation14_spill] sm:$0xff] %v12525_v39 }
 0x68f   :  { %5093 = vmatprep.subr.bf16.mxu0 %v13968_v35  ;;  %v13976_v35 = vld [vmem:[#allocation87_spill] sm:$0xff]  ;;  %v12529_v19 = vld [vmem:[#allocation4 + $0x244] ss:$8 sps:$4 sm:$0xff]  }
 0x690   :  { %13977 = vst [vmem:[#allocation115_spill] sm:$0xff] %v12529_v19 }
 0x691   :  { %5325 = vmatpush1.bf16.msra.mxu1 %v12517_v17  ;;  %v12533_v17 = vld [vmem:[#allocation4 + $0x240] ss:$8 sps:$4 sm:$0xff]  }
 0x692   :  { %5094 = vmatpush1.bf16.msra.mxu0 %v13970_v15  ;;  %5326 = vmatprep.subr.bf16.mxu1 %v12521_v5  ;;  %v13978_v15 = vld [vmem:[#allocation88_spill] sm:$0xff]  ;;  %13979 = vst [vmem:[#allocation15_spill] sm:$0xff] %v12533_v17 }
 0x693   :  { %5095 = vmatprep.subr.bf16.mxu0 %v13972_v9  ;;  %v13980_v9 = vld [vmem:[#allocation89_spill] sm:$0xff]  ;;  %v12537_v5 = vld [vmem:[#allocation4 + $0x254] ss:$8 sps:$4 sm:$0xff]  }
 0x694   :  { %13981 = vst [vmem:[#allocation116_spill] sm:$0xff] %v12537_v5 }
 0x695   :  { %5327 = vmatpush1.bf16.msra.mxu1 %v12525_v39  ;;  %v12541_v39 = vld [vmem:[#allocation4 + $0x250] ss:$8 sps:$4 sm:$0xff]  }
 0x696   :  { %5096 = vmatpush1.bf16.msra.mxu0 %v13974_v53  ;;  %5328 = vmatprep.subr.bf16.mxu1 %v12529_v19  ;;  %v13982_v53 = vld [vmem:[#allocation90_spill] sm:$0xff]  ;;  %13983 = vst [vmem:[#allocation16_spill] sm:$0xff] %v12541_v39 }
 0x697   :  { %5097 = vmatprep.subr.bf16.mxu0 %v13976_v35  ;;  %v13984_v35 = vld [vmem:[#allocation91_spill] sm:$0xff]  ;;  %v12545_v19 = vld [vmem:[#allocation4 + $0x264] ss:$8 sps:$4 sm:$0xff]  }
 0x698   :  { %13985 = vst [vmem:[#allocation117_spill] sm:$0xff] %v12545_v19 }
 0x699   :  { %5329 = vmatpush1.bf16.msra.mxu1 %v12533_v17  ;;  %v12549_v17 = vld [vmem:[#allocation4 + $0x260] ss:$8 sps:$4 sm:$0xff]  }
 0x69a   :  { %5098 = vmatpush1.bf16.msra.mxu0 %v13978_v15  ;;  %5330 = vmatprep.subr.bf16.mxu1 %v12537_v5  ;;  %v13986_v15 = vld [vmem:[#allocation92_spill] sm:$0xff]  ;;  %13987 = vst [vmem:[#allocation17_spill] sm:$0xff] %v12549_v17 }
 0x69b   :  { %5099 = vmatprep.subr.bf16.mxu0 %v13980_v9  ;;  %v13988_v9 = vld [vmem:[#allocation93_spill] sm:$0xff]  ;;  %v12553_v5 = vld [vmem:[#allocation4 + $0x274] ss:$8 sps:$4 sm:$0xff]  }
 0x69c   :  { %13989 = vst [vmem:[#allocation118_spill] sm:$0xff] %v12553_v5 }
 0x69d   :  { %5331 = vmatpush1.bf16.msra.mxu1 %v12541_v39  ;;  %v12557_v39 = vld [vmem:[#allocation4 + $0x270] ss:$8 sps:$4 sm:$0xff]  }
 0x69e   :  { %5100 = vmatpush1.bf16.msra.mxu0 %v13982_v53  ;;  %5332 = vmatprep.subr.bf16.mxu1 %v12545_v19  ;;  %v13990_v53 = vld [vmem:[#allocation94_spill] sm:$0xff]  ;;  %13991 = vst [vmem:[#allocation18_spill] sm:$0xff] %v12557_v39 }
 0x69f   :  { %5101 = vmatprep.subr.bf16.mxu0 %v13984_v35  ;;  %v13992_v35 = vld [vmem:[#allocation95_spill] sm:$0xff]  ;;  %v12561_v19 = vld [vmem:[#allocation4 + $0x284] ss:$8 sps:$4 sm:$0xff]  }
 0x6a0   :  { %13993 = vst [vmem:[#allocation20_spill] sm:$0xff] %v12561_v19 }
 0x6a1   :  { %5333 = vmatpush1.bf16.msra.mxu1 %v12549_v17  ;;  %v12565_v17 = vld [vmem:[#allocation4 + $0x280] ss:$8 sps:$4 sm:$0xff]  }
 0x6a2   :  { %5102 = vmatpush1.bf16.msra.mxu0 %v13986_v15  ;;  %5334 = vmatprep.subr.bf16.mxu1 %v12553_v5  ;;  %v13994_v15 = vld [vmem:[#allocation96_spill] sm:$0xff]  ;;  %13995 = vst [vmem:[#allocation23_spill] sm:$0xff] %v12565_v17 }
 0x6a3   :  { %5103 = vmatprep.subr.bf16.mxu0 %v13988_v9  ;;  %v13996_v9 = vld [vmem:[#allocation97_spill] sm:$0xff]  ;;  %v12569_v5 = vld [vmem:[#allocation4 + $0x294] ss:$8 sps:$4 sm:$0xff]  }
 0x6a4   :  { %13997 = vst [vmem:[#allocation25_spill] sm:$0xff] %v12569_v5 }
 0x6a5   :  { %5335 = vmatpush1.bf16.msra.mxu1 %v12557_v39  ;;  %v12573_v39 = vld [vmem:[#allocation4 + $0x290] ss:$8 sps:$4 sm:$0xff]  }
 0x6a6   :  { %5104 = vmatpush1.bf16.msra.mxu0 %v13990_v53  ;;  %5336 = vmatprep.subr.bf16.mxu1 %v12561_v19  ;;  %v13998_v53 = vld [vmem:[#allocation98_spill] sm:$0xff]  ;;  %13999 = vst [vmem:[#allocation49_spill] sm:$0xff] %v12573_v39 }
 0x6a7   :  { %5105 = vmatprep.subr.bf16.mxu0 %v13992_v35  ;;  %v14000_v35 = vld [vmem:[#allocation99_spill] sm:$0xff]  ;;  %v12577_v19 = vld [vmem:[#allocation4 + $0x2a4] ss:$8 sps:$4 sm:$0xff]  }
 0x6a8   :  { %14001 = vst [vmem:[#allocation46_spill] sm:$0xff] %v12577_v19 }
 0x6a9   :  { %5337 = vmatpush1.bf16.msra.mxu1 %v12565_v17  ;;  %v12581_v17 = vld [vmem:[#allocation4 + $0x2a0] ss:$8 sps:$4 sm:$0xff]  }
 0x6aa   :  { %5106 = vmatpush1.bf16.msra.mxu0 %v13994_v15  ;;  %5338 = vmatprep.subr.bf16.mxu1 %v12569_v5  ;;  %v14002_v15 = vld [vmem:[#allocation100_spill] sm:$0xff]  ;;  %14003 = vst [vmem:[#allocation47_spill] sm:$0xff] %v12581_v17 }
 0x6ab   :  { %5107 = vmatprep.subr.bf16.mxu0 %v13996_v9  ;;  %v14004_v9 = vld [vmem:[#allocation101_spill] sm:$0xff]  ;;  %v12585_v5 = vld [vmem:[#allocation4 + $0x2b4] ss:$8 sps:$4 sm:$0xff]  }
 0x6ac   :  { %14005 = vst [vmem:[#allocation48_spill] sm:$0xff] %v12585_v5 }
 0x6ad   :  { %5339 = vmatpush1.bf16.msra.mxu1 %v12573_v39  ;;  %v12589_v39 = vld [vmem:[#allocation4 + $0x2b0] ss:$8 sps:$4 sm:$0xff]  }
 0x6ae   :  { %5108 = vmatpush1.bf16.msra.mxu0 %v13998_v53  ;;  %5340 = vmatprep.subr.bf16.mxu1 %v12577_v19  ;;  %v14006_v53 = vld [vmem:[#allocation102_spill] sm:$0xff]  ;;  %14007 = vst [vmem:[#allocation19_spill] sm:$0xff] %v12589_v39 }
 0x6af   :  { %5109 = vmatprep.subr.bf16.mxu0 %v14000_v35  ;;  %v14008_v35 = vld [vmem:[#allocation103_spill] sm:$0xff]  ;;  %v12593_v19 = vld [vmem:[#allocation4 + $0x2c4] ss:$8 sps:$4 sm:$0xff]  }
 0x6b0   :  { %14009 = vst [vmem:[#allocation51_spill] sm:$0xff] %v12593_v19 }
 0x6b1   :  { %5341 = vmatpush1.bf16.msra.mxu1 %v12581_v17  ;;  %v12597_v17 = vld [vmem:[#allocation4 + $0x2c0] ss:$8 sps:$4 sm:$0xff]  }
 0x6b2   :  { %5110 = vmatpush1.bf16.msra.mxu0 %v14002_v15  ;;  %5342 = vmatprep.subr.bf16.mxu1 %v12585_v5  ;;  %v14010_v15 = vld [vmem:[#allocation104_spill] sm:$0xff]  ;;  %14011 = vst [vmem:[#allocation53_spill] sm:$0xff] %v12597_v17 }
 0x6b3   :  { %5111 = vmatprep.subr.bf16.mxu0 %v14004_v9  ;;  %v14012_v9 = vld [vmem:[#allocation105_spill] sm:$0xff]  ;;  %v12601_v5 = vld [vmem:[#allocation4 + $0x2d4] ss:$8 sps:$4 sm:$0xff]  }
 0x6b4   :  { %14013 = vst [vmem:[#allocation54_spill] sm:$0xff] %v12601_v5 }
 0x6b5   :  { %5343 = vmatpush1.bf16.msra.mxu1 %v12589_v39  ;;  %v12605_v39 = vld [vmem:[#allocation4 + $0x2d0] ss:$8 sps:$4 sm:$0xff]  }
 0x6b6   :  { %5112 = vmatpush1.bf16.msra.mxu0 %v14006_v53  ;;  %5344 = vmatprep.subr.bf16.mxu1 %v12593_v19  ;;  %v14014_v53 = vld [vmem:[#allocation106_spill] sm:$0xff]  ;;  %14015 = vst [vmem:[#allocation21_spill] sm:$0xff] %v12605_v39 }
 0x6b7   :  { %5113 = vmatprep.subr.bf16.mxu0 %v14008_v35  ;;  %v14016_v35 = vld [vmem:[#allocation107_spill] sm:$0xff]  ;;  %v12609_v19 = vld [vmem:[#allocation2 + $0x10] sm:$0xff] }
 0x6b9   :  { %5345 = vmatpush1.bf16.msra.mxu1 %v12597_v17  ;;  %v14018_v17 = vld [vmem:[#allocation108_spill] sm:$0xff] }
 0x6ba   :  { %5114 = vmatpush1.bf16.msra.mxu0 %v14010_v15  ;;  %5346 = vmatprep.subr.bf16.mxu1 %v12601_v5  ;;  %v12611_v15 = vld [vmem:[#allocation4 + $0x2e4] ss:$8 sps:$4 sm:$0xff]   ;;  %v12619_v5 = vld [vmem:[#allocation4 + $0x2e0] ss:$8 sps:$4 sm:$0xff]  }
 0x6bb   :  { %5115 = vmatprep.subr.bf16.mxu0 %v14012_v9  ;;  %14017 = vst [vmem:[#allocation22_spill] sm:$0xff] %v12611_v15  ;;  %v12617_v9 = vrot.slane %v12609_v19, %v8769_v49  ;;  %14019 = vst [vmem:[#allocation24_spill] sm:$0xff] %v12619_v5 }
 0x6bd   :  { %5347 = vmatpush1.bf16.msra.mxu1 %v12605_v39  ;;  %v12623_v39 = vld [vmem:[#allocation4 + $0x2f4] ss:$8 sps:$4 sm:$0xff]  }
 0x6be   :  { %5116 = vmatpush1.bf16.msra.mxu0 %v14014_v53  ;;  %5348 = vmatprep.subr.bf16.mxu1 %v12611_v15  ;;  %v14020_v53 = vld [vmem:[#allocation109_spill] sm:$0xff]  ;;  %v4907_v15 = vrot.slane %v12471_v18, %v8769_v49 }
 0x6bf   :  { %5117 = vmatprep.subr.bf16.mxu0 %v14016_v35  ;;  %v5485_v35 = vcombine.high %v12617_v9, %v12617_v9 }
 0x6c1   :  { %5349 = vmatpush1.bf16.msra.mxu1 %v12619_v5  ;;  %v12639_v5 = vld [vmem:[#allocation4 + $0x304] ss:$8 sps:$4 sm:$0xff]   ;;  %v12647_v18 = vrot.slane %v5485_v35, %v8769_v49 }
 0x6c2   :  { %5118 = vmatpush1.bf16.msra.mxu0 %v14018_v17  ;;  %5350 = vmatprep.subr.bf16.mxu1 %v12623_v39  ;;  %v12629_v17 = vld [vmem:[#allocation4 + $0x2f0] ss:$8 sps:$4 sm:$0xff]   ;;  %14023 = vst [vmem:[#allocation56_spill] sm:$0xff] %v12639_v5  ;;  %v12662_v35 = vld [vmem:[#allocation4 + $0x324] ss:$8 sps:$4 sm:$0xff]  }
 0x6c3   :  { %5119 = vmatprep.subr.bf16.mxu0 %v14020_v53  ;;  %14021 = vst [vmem:[#allocation55_spill] sm:$0xff] %v12629_v17  ;;  %v12637_v53 = vrot.slane %v12474_v48, %v8769_v49  ;;  %v12653_v48 = vld [vmem:[#allocation4 + $0x314] ss:$8 sps:$4 sm:$0xff]  }
 0x6c5   :  { %5351 = vmatpush1.bf16.msra.mxu1 %v12629_v17  ;;  %v14024_v17 = vld [vmem:[#allocation111_spill] sm:$0xff] }
 0x6c6   :  { %5120 = vmatpush1.bf16.msra.mxu0 %v11997_v59  ;;  %5361 = vmatprep.subr.bf16.mxu1 %v12639_v5  ;;  %v5205_v59 = vcombine.high %v12498_v36, %v12498_v36  ;;  %v14026_v36 = vld [vmem:[#allocation113_spill] sm:$0xff]  ;;  %v12658_v5 = vld [vmem:[#allocation4 + $0x310] ss:$8 sps:$4 sm:$0xff]  }
 0x6c7   :  { %5551 = vmatprep.subr.bf16.mxu0 %v14022_v44  ;;  %v12649_v44 = vld [vmem:[#allocation4 + $0x300] ss:$8 sps:$4 sm:$0xff]  }
 0x6c8   :  { %5353 = vmatmul.mubr.bf16.vlgmr.msra.gmra.mrb[36].mxu1 %v12637_v53 }
 0x6c9   :  { %5122 = vmatmul.mubr.bf16.vlgmr.msra.gmra.mrb[32].mxu0 %v4907_v15  ;;  %5362 = vmatpush1.bf16.msra.mxu1 %v12649_v44  ;;  %v14025_v15 = vld [vmem:[#allocation112_spill] sm:$0xff] }
 0x6ca   :  { %5552 = vmatpush1.bf16.msra.mxu0 %v14024_v17  ;;  %5393 = vmatprep.mubr.bf16.mxu1 %v5205_v59  ;;  %v12666_v17 = vld [vmem:[#allocation4 + $0x320] ss:$8 sps:$4 sm:$0xff]   ;;  %v12670_v59 = vld [vmem:[#allocation4 + $0x334] ss:$8 sps:$4 sm:$0xff]  }
 0x6cb   :  { %5583 = vmatprep.mubr.bf16.mxu0 %v12647_v18  ;;  %5363 = vmatprep.subr.bf16.mxu1 %v12653_v48  ;;  %14027 = vst [vmem:[#allocation57_spill] sm:$0xff] %v12670_v59 }
 0x6cc   :  { %5553 = vmatprep.subr.bf16.mxu0 %v14025_v15  ;;  %v12674_v15 = vld [vmem:[#allocation4 + $0x330] ss:$8 sps:$4 sm:$0xff]  }
 0x6cd   :  { %5364 = vmatpush1.bf16.msra.mxu1 %v12658_v5  ;;  %14028 = vst [vmem:[#allocation124_spill] sm:$0xff] %v12674_v15 }
 0x6ce   :  { %5554 = vmatpush1.bf16.msra.mxu0 %v14026_v36  ;;  %5365 = vmatprep.subr.bf16.mxu1 %v12662_v35 }
 0x6cf   :  { %5555 = vmatprep.subr.bf16.mxu0 %v13885_v13  ;;  %v12678_v13 = vld [vmem:[#allocation4 + $0x344] ss:$8 sps:$4 sm:$0xff]  }
 0x6d0   :  { %14029 = vst [vmem:[#allocation58_spill] sm:$0xff] %v12678_v13 }
 0x6d1   :  { %5366 = vmatpush1.bf16.msra.mxu1 %v12666_v17 }
 0x6d2   :  { %5556 = vmatpush1.bf16.msra.mxu0 %v13887_v14  ;;  %5367 = vmatprep.subr.bf16.mxu1 %v12670_v59  ;;  %v12682_v14 = vld [vmem:[#allocation4 + $0x340] ss:$8 sps:$4 sm:$0xff]   ;;  %v12696_v59 = vld [vmem:[#allocation4 + $0x364] ss:$8 sps:$4 sm:$0xff]  }
 0x6d3   :  { %5557 = vmatprep.subr.bf16.mxu0 %v13889_v60  ;;  %14030 = vst [vmem:[#allocation59_spill] sm:$0xff] %v12682_v14  ;;  %v12686_v60 = vld [vmem:[#allocation4 + $0x354] ss:$8 sps:$4 sm:$0xff]  }
 0x6d4   :  { %14031 = vst [vmem:[#allocation126_spill] sm:$0xff] %v12686_v60 }
 0x6d5   :  { %5368 = vmatpush1.bf16.msra.mxu1 %v12674_v15 }
 0x6d6   :  { %5558 = vmatpush1.bf16.msra.mxu0 %v13891_v51  ;;  %5369 = vmatprep.subr.bf16.mxu1 %v12678_v13 }
 0x6d7   :  { %5559 = vmatprep.subr.bf16.mxu0 %v13893_v27 }
 0x6d9   :  { %5370 = vmatpush1.bf16.msra.mxu1 %v12682_v14 }
 0x6da   :  { %5560 = vmatpush1.bf16.msra.mxu0 %v12059_v6  ;;  %5371 = vmatprep.subr.bf16.mxu1 %v12686_v60  ;;  %v12692_v6 = vld [vmem:[#allocation4 + $0x350] ss:$8 sps:$4 sm:$0xff]  }
 0x6db   :  { %5561 = vmatprep.subr.bf16.mxu0 %v12063_v24  ;;  %v4810_v51 = vpop.f32.mrb[32].mxu1 }
 0x6dc   :  { %v7386_v36 = vadd.f32 %v4810_v51, %v12419_v32  ;;  %v4812_v27 = vpop.f32.mrb[33].mxu1 }
 0x6dd   :  { %v7387_v13 = vadd.f32 %v4812_v27, %v12424_v23  ;;  %v4814_v15 = vpop.f32.mrb[34].mxu1  ;;  %5372 = vmatpush1.bf16.msra.mxu1 %v12692_v6  ;;  %v12741_v27 = vld [vmem:[#allocation4 + $0x3b0] ss:$8 sps:$4 sm:$0xff]  }
 0x6de   :  { %5562 = vmatpush1.bf16.msra.mxu0 %v12067_v54  ;;  %v4817_v24 = vmax.f32 %v7386_v36, 0.0  ;;  %v4815_v14 = vpop.f32.mrb[35].mxu1  ;;  %5373 = vmatprep.subr.bf16.mxu1 %v12696_v59  ;;  %v12700_v54 = vld [vmem:[#allocation4 + $0x360] ss:$8 sps:$4 sm:$0xff]   ;;  %v12704_v15 = vld [vmem:[#allocation4 + $0x374] ss:$8 sps:$4 sm:$0xff]  }
 0x6df   :  { %5563 = vmatprep.subr.bf16.mxu0 %v12071_v0  ;;  %v4818_v60 = vmax.f32 %v7387_v13, 0.0  ;;  %v12709_v14 = vld [vmem:[#allocation4 + $0x370] ss:$8 sps:$4 sm:$0xff]   ;;  %v12737_v36 = vld [vmem:[#allocation4 + $0x3b4] ss:$8 sps:$4 sm:$0xff]  }
 0x6e0   :  { %v12725_v13 = vld [vmem:[#allocation4 + $0x390] ss:$8 sps:$4 sm:$0xff]  }
 0x6e1   :  { %v7113_v51 = vpack.c.bf16 %v4818_v60, %v4817_v24  ;;  %5374 = vmatpush1.bf16.msra.mxu1 %v12700_v54  ;;  %v12733_v60 = vld [vmem:[#allocation4 + $0x3a0] ss:$8 sps:$4 sm:$0xff]   ;;  %v12745_v24 = vld [vmem:[#allocation4 + $0x3c4] ss:$8 sps:$4 sm:$0xff]  }
 0x6e2   :  { %5564 = vmatpush1.bf16.msra.mxu0 %v12075_v11  ;;  %5375 = vmatprep.subr.bf16.mxu1 %v12704_v15  ;;  %v12713_v11 = vld [vmem:[#allocation4 + $0x384] ss:$8 sps:$4 sm:$0xff]  }
 0x6e3   :  { %5565 = vmatprep.subr.bf16.mxu0 %v12079_v26  ;;  %v4830_v0 = vrot.slane %v7113_v51, %v8769_v49  ;;  %v12717_v26 = vld [vmem:[#allocation4 + $0x380] ss:$8 sps:$4 sm:$0xff]   ;;  %v14036_v51 = vld [vmem:[#allocation123_spill] sm:$0xff] }
 0x6e5   :  { %7114 = vst.sshfl [vmem:[#allocation3 + $0x2] sm:$0x5 pattern:$0x73625140] %v4830_v0  ;;  %5376 = vmatpush1.bf16.msra.mxu1 %v12709_v14  ;;  %v12749_v0 = vld [vmem:[#allocation4 + $0x3c0] ss:$8 sps:$4 sm:$0xff]  }
 0x6e6   :  { %5566 = vmatpush1.bf16.msra.mxu0 %v12083_v46  ;;  %5377 = vmatprep.subr.bf16.mxu1 %v12713_v11  ;;  %v12721_v46 = vld [vmem:[#allocation4 + $0x394] ss:$8 sps:$4 sm:$0xff]  }
 0x6e7   :  { %5567 = vmatprep.subr.bf16.mxu0 %v12087_v61  ;;  %v12729_v61 = vld [vmem:[#allocation4 + $0x3a4] ss:$8 sps:$4 sm:$0xff]  }
 0x6e9   :  { %5378 = vmatpush1.bf16.msra.mxu1 %v12717_v26 }
 0x6ea   :  { %5568 = vmatpush1.bf16.msra.mxu0 %v12091_v28  ;;  %5379 = vmatprep.subr.bf16.mxu1 %v12721_v46  ;;  %v14032_v28 = vld [vmem:[#allocation119_spill] sm:$0xff] }
 0x6eb   :  { %5569 = vmatprep.subr.bf16.mxu0 %v12095_v38  ;;  %v14033_v38 = vld [vmem:[#allocation120_spill] sm:$0xff] }
 0x6ed   :  { %5380 = vmatpush1.bf16.msra.mxu1 %v12725_v13 }
 0x6ee   :  { %5570 = vmatpush1.bf16.msra.mxu0 %v12099_v62  ;;  %5381 = vmatprep.subr.bf16.mxu1 %v12729_v61  ;;  %v14034_v62 = vld [vmem:[#allocation121_spill] sm:$0xff] }
 0x6ef   :  { %5571 = vmatprep.subr.bf16.mxu0 %v12103_v2  ;;  %v14035_v2 = vld [vmem:[#allocation122_spill] sm:$0xff] }
 0x6f1   :  { %5382 = vmatpush1.bf16.msra.mxu1 %v12733_v60 }
 0x6f2   :  { %5572 = vmatpush1.bf16.msra.mxu0 %v14032_v28  ;;  %5383 = vmatprep.subr.bf16.mxu1 %v12737_v36  ;;  %v12753_v28 = vld [vmem:[#allocation4 + $0x3d4] ss:$8 sps:$4 sm:$0xff]  }
 0x6f3   :  { %5573 = vmatprep.subr.bf16.mxu0 %v14033_v38  ;;  %v14037_v38 = vld [vmem:[#allocation125_spill] sm:$0xff] }
 0x6f5   :  { %5384 = vmatpush1.bf16.msra.mxu1 %v12741_v27 }
 0x6f6   :  { %5574 = vmatpush1.bf16.msra.mxu0 %v14034_v62  ;;  %5385 = vmatprep.subr.bf16.mxu1 %v12745_v24  ;;  %v12757_v62 = vld [vmem:[#allocation4 + $0x3d0] ss:$8 sps:$4 sm:$0xff]  }
 0x6f7   :  { %5575 = vmatprep.subr.bf16.mxu0 %v14035_v2  ;;  %v12761_v2 = vld [vmem:[#allocation4 + $0x3e4] ss:$8 sps:$4 sm:$0xff]  }
 0x6f8   :  { %14038 = vst [vmem:[#allocation60_spill] sm:$0xff] %v12761_v2 }
 0x6f9   :  { %5386 = vmatpush1.bf16.msra.mxu1 %v12749_v0 }
 0x6fa   :  { %5576 = vmatpush1.bf16.msra.mxu0 %v14036_v51  ;;  %5387 = vmatprep.subr.bf16.mxu1 %v12753_v28  ;;  %v12765_v51 = vld.sshfl [vmem:[#allocation2 + $0x14] sm:$0x11 pattern:$0x75316420] }
 0x6fb   :  { %5577 = vmatprep.subr.bf16.mxu0 %v13912_v50  ;;  %v12767_v50 = vld [vmem:[#allocation4 + $0x3e0] ss:$8 sps:$4 sm:$0xff]  }
 0x6fc   :  { %14039 = vst [vmem:[#allocation127_spill] sm:$0xff] %v12767_v50 }
 0x6fd   :  { %5388 = vmatpush1.bf16.msra.mxu1 %v12757_v62 }
 0x6fe   :  { %5578 = vmatpush1.bf16.msra.mxu0 %v14037_v38  ;;  %5389 = vmatprep.subr.bf16.mxu1 %v12761_v2  ;;  %v12771_v38 = vld [vmem:[#allocation4 + $0x3f4] ss:$8 sps:$4 sm:$0xff]   ;;  %v12777_v2 = vld [vmem:[#allocation4 + $0x3f0] ss:$8 sps:$4 sm:$0xff]  }
 0x6ff   :  { %5579 = vmatprep.subr.bf16.mxu0 %v13916_v3  ;;  %v5213_v3 = vcombine.high %v12765_v51, %v12765_v51  ;;  %14040 = vst [vmem:[#allocation61_spill] sm:$0xff] %v12777_v2 }
 0x701   :  { %5390 = vmatpush1.bf16.msra.mxu1 %v12767_v50  ;;  %v12787_v50 = vld [vmem:[#allocation4 + $0x404] ss:$8 sps:$4 sm:$0xff]  }
 0x702   :  { %5580 = vmatpush1.bf16.msra.mxu0 %v13918_v47  ;;  %5391 = vmatprep.subr.bf16.mxu1 %v12771_v38  ;;  %v12782_v47 = vrot.slane %v12617_v9, %v8769_v49  ;;  %v5517_v9 = vcombine.high %v12647_v18, %v12647_v18  ;;  %v12807_v18 = vld [vmem:[#allocation4 + $0x424] ss:$8 sps:$4 sm:$0xff]  }
 0x703   :  { %5581 = vmatprep.subr.bf16.mxu0 %v13920_v43  ;;  %v5203_v43 = vcombine.high %v12637_v53, %v12637_v53  ;;  %v12803_v53 = vld [vmem:[#allocation4 + $0x410] ss:$8 sps:$4 sm:$0xff]   ;;  %14042 = vst [vmem:[#allocation128_spill] sm:$0xff] %v12807_v18 }
 0x705   :  { %5392 = vmatpush1.bf16.msra.mxu1 %v12777_v2  ;;  %v12795_v2 = vld [vmem:[#allocation4 + $0x400] ss:$8 sps:$4 sm:$0xff]  }
 0x706   :  { %5582 = vmatpush1.bf16.msra.mxu0 %v13922_v55  ;;  %5402 = vmatprep.subr.bf16.mxu1 %v12787_v50  ;;  %v5227_v55 = vrot.slane %v5213_v3, %v8769_v49  ;;  %v14043_v3 = vld [vmem:[#allocation131_spill] sm:$0xff] }
 0x707   :  { %5592 = vmatprep.subr.bf16.mxu0 %v12159_v42  ;;  %v12798_v42 = vld [vmem:[#allocation4 + $0x414] ss:$8 sps:$4 sm:$0xff]  }
 0x708   :  { %5394 = vmatmul.mubr.bf16.vlgmr.msra.gmra.mrb[36].mxu1 %v5203_v43  ;;  %v12811_v43 = vld [vmem:[#allocation4 + $0x420] ss:$8 sps:$4 sm:$0xff]  }
 0x709   :  { %5584 = vmatmul.mubr.bf16.vlgmr.msra.gmra.mrb[36].mxu0 %v12782_v47  ;;  %5403 = vmatpush1.bf16.msra.mxu1 %v12795_v2  ;;  %14044 = vst [vmem:[#allocation62_spill] sm:$0xff] %v12811_v43 }
 0x70a   :  { %5593 = vmatpush1.bf16.msra.mxu0 %v12167_v30  ;;  %5434 = vmatprep.mubr.bf16.mxu1 %v5227_v55  ;;  %v14041_v30 = vld [vmem:[#allocation130_spill] sm:$0xff]  ;;  %v14045_v55 = vld [vmem:[#allocation132_spill] sm:$0xff] }
 0x70b   :  { %5624 = vmatprep.mubr.bf16.mxu0 %v5517_v9  ;;  %5404 = vmatprep.subr.bf16.mxu1 %v12798_v42  ;;  %v12819_v9 = vld [vmem:[#allocation4 + $0x430] ss:$8 sps:$4 sm:$0xff]  }
 0x70c   :  { %5594 = vmatprep.subr.bf16.mxu0 %v12174_v22  ;;  %v12815_v22 = vld [vmem:[#allocation4 + $0x434] ss:$8 sps:$4 sm:$0xff]  }
 0x70d   :  { %5405 = vmatpush1.bf16.msra.mxu1 %v12803_v53 }
 0x70e   :  { %5595 = vmatpush1.bf16.msra.mxu0 %v12177_v33  ;;  %5406 = vmatprep.subr.bf16.mxu1 %v12807_v18  ;;  %v14046_v33 = vld [vmem:[#allocation133_spill] sm:$0xff] }
 0x70f   :  { %5596 = vmatprep.subr.bf16.mxu0 %v14041_v30  ;;  %v14047_v30 = vld [vmem:[#allocation134_spill] sm:$0xff] }
 0x710   :  { %v12823_v18 = vld [vmem:[#allocation4 + $0x444] ss:$8 sps:$4 sm:$0xff]  }
 0x711   :  { %5407 = vmatpush1.bf16.msra.mxu1 %v12811_v43  ;;  %v12827_v43 = vld [vmem:[#allocation4 + $0x440] ss:$8 sps:$4 sm:$0xff]  }
 0x712   :  { %5597 = vmatpush1.bf16.msra.mxu0 %v14043_v3  ;;  %5408 = vmatprep.subr.bf16.mxu1 %v12815_v22  ;;  %v14048_v3 = vld [vmem:[#allocation135_spill] sm:$0xff] }
 0x713   :  { %5598 = vmatprep.subr.bf16.mxu0 %v14045_v55  ;;  %v12831_v55 = vld [vmem:[#allocation4 + $0x454] ss:$8 sps:$4 sm:$0xff]  }
 0x715   :  { %5409 = vmatpush1.bf16.msra.mxu1 %v12819_v9 }
 0x716   :  { %5599 = vmatpush1.bf16.msra.mxu0 %v14046_v33  ;;  %5410 = vmatprep.subr.bf16.mxu1 %v12823_v18  ;;  %v12835_v33 = vld [vmem:[#allocation4 + $0x450] ss:$8 sps:$4 sm:$0xff]  }
 0x717   :  { %5600 = vmatprep.subr.bf16.mxu0 %v14047_v30  ;;  %v12839_v30 = vld [vmem:[#allocation4 + $0x464] ss:$8 sps:$4 sm:$0xff]  }
 0x719   :  { %5411 = vmatpush1.bf16.msra.mxu1 %v12827_v43 }
 0x71a   :  { %5601 = vmatpush1.bf16.msra.mxu0 %v14048_v3  ;;  %5412 = vmatprep.subr.bf16.mxu1 %v12831_v55  ;;  %v12843_v3 = vld [vmem:[#allocation4 + $0x460] ss:$8 sps:$4 sm:$0xff]  }
 0x71b   :  { %5602 = vmatprep.subr.bf16.mxu0 %v12205_v52  ;;  %v12847_v52 = vld [vmem:[#allocation4 + $0x474] ss:$8 sps:$4 sm:$0xff]  }
 0x71d   :  { %5413 = vmatpush1.bf16.msra.mxu1 %v12835_v33 }
 0x71e   :  { %5603 = vmatpush1.bf16.msra.mxu0 %v12209_v37  ;;  %5414 = vmatprep.subr.bf16.mxu1 %v12839_v30  ;;  %v12851_v37 = vld [vmem:[#allocation4 + $0x470] ss:$8 sps:$4 sm:$0xff]  }
 0x71f   :  { %5604 = vmatprep.subr.bf16.mxu0 %v12213_v63  ;;  %v12855_v63 = vld [vmem:[#allocation4 + $0x484] ss:$8 sps:$4 sm:$0xff]  }
 0x721   :  { %5415 = vmatpush1.bf16.msra.mxu1 %v12843_v3 }
 0x722   :  { %5605 = vmatpush1.bf16.msra.mxu0 %v12217_v4  ;;  %5416 = vmatprep.subr.bf16.mxu1 %v12847_v52  ;;  %v12859_v4 = vld [vmem:[#allocation4 + $0x480] ss:$8 sps:$4 sm:$0xff]  }
 0x723   :  { %5606 = vmatprep.subr.bf16.mxu0 %v12221_v58  ;;  %v12863_v58 = vld [vmem:[#allocation4 + $0x494] ss:$8 sps:$4 sm:$0xff]  }
 0x725   :  { %5417 = vmatpush1.bf16.msra.mxu1 %v12851_v37 }
 0x726   :  { %5607 = vmatpush1.bf16.msra.mxu0 %v12225_v12  ;;  %5418 = vmatprep.subr.bf16.mxu1 %v12855_v63  ;;  %v12867_v12 = vld [vmem:[#allocation4 + $0x490] ss:$8 sps:$4 sm:$0xff]  }
 0x727   :  { %5608 = vmatprep.subr.bf16.mxu0 %v12229_v45  ;;  %v12871_v45 = vld [vmem:[#allocation4 + $0x4a4] ss:$8 sps:$4 sm:$0xff]  }
 0x729   :  { %5419 = vmatpush1.bf16.msra.mxu1 %v12859_v4 }
 0x72a   :  { %5609 = vmatpush1.bf16.msra.mxu0 %v12233_v56  ;;  %5420 = vmatprep.subr.bf16.mxu1 %v12863_v58  ;;  %v12875_v56 = vld [vmem:[#allocation4 + $0x4a0] ss:$8 sps:$4 sm:$0xff]  }
 0x72b   :  { %5610 = vmatprep.subr.bf16.mxu0 %v12237_v40  ;;  %v12879_v40 = vld [vmem:[#allocation4 + $0x4b4] ss:$8 sps:$4 sm:$0xff]  }
 0x72d   :  { %5421 = vmatpush1.bf16.msra.mxu1 %v12867_v12 }
 0x72e   :  { %5611 = vmatpush1.bf16.msra.mxu0 %v12241_v1  ;;  %5422 = vmatprep.subr.bf16.mxu1 %v12871_v45  ;;  %v12883_v1 = vld [vmem:[#allocation4 + $0x4b0] ss:$8 sps:$4 sm:$0xff]  }
 0x72f   :  { %5612 = vmatprep.subr.bf16.mxu0 %v12245_v21  ;;  %v12887_v21 = vld [vmem:[#allocation4 + $0x4c4] ss:$8 sps:$4 sm:$0xff]  }
 0x731   :  { %5423 = vmatpush1.bf16.msra.mxu1 %v12875_v56 }
 0x732   :  { %5613 = vmatpush1.bf16.msra.mxu0 %v12249_v20  ;;  %5424 = vmatprep.subr.bf16.mxu1 %v12879_v40  ;;  %v12891_v20 = vld [vmem:[#allocation4 + $0x4c0] ss:$8 sps:$4 sm:$0xff]  }
 0x733   :  { %5614 = vmatprep.subr.bf16.mxu0 %v12253_v7  ;;  %v12895_v7 = vld [vmem:[#allocation4 + $0x4d4] ss:$8 sps:$4 sm:$0xff]  }
 0x734   :  { %14049 = vst [vmem:[#allocation129_spill] sm:$0xff] %v12895_v7 }
 0x735   :  { %5425 = vmatpush1.bf16.msra.mxu1 %v12883_v1 }
 0x736   :  { %5615 = vmatpush1.bf16.msra.mxu0 %v12257_v10  ;;  %5426 = vmatprep.subr.bf16.mxu1 %v12887_v21  ;;  %v5470_v10 = vcombine.high %v12609_v19, %v12609_v19 }
 0x737   :  { %5616 = vmatprep.subr.bf16.mxu0 %v12261_v25  ;;  %v12901_v25 = vld [vmem:[#allocation4 + $0x4d0] ss:$8 sps:$4 sm:$0xff]  }
 0x738   :  { %14050 = vst [vmem:[#allocation63_spill] sm:$0xff] %v12901_v25 }
 0x739   :  { %5427 = vmatpush1.bf16.msra.mxu1 %v12891_v20 }
 0x73a   :  { %5617 = vmatpush1.bf16.msra.mxu0 %v12265_v8  ;;  %5428 = vmatprep.subr.bf16.mxu1 %v12895_v7  ;;  %v12905_v8 = vld [vmem:[#allocation4 + $0x4e4] ss:$8 sps:$4 sm:$0xff]   ;;  %v12910_v7 = vld [vmem:[#allocation4 + $0x4e0] ss:$8 sps:$4 sm:$0xff]  }
 0x73b   :  { %5618 = vmatprep.subr.bf16.mxu0 %v12269_v31  ;;  %14051 = vst [vmem:[#allocation64_spill] sm:$0xff] %v12905_v8  ;;  %v5484_v31 = vrot.slane %v5470_v10, %v8769_v49  ;;  %14052 = vst [vmem:[#allocation65_spill] sm:$0xff] %v12910_v7  ;;  %v5220_v10 = vrot.slane %v12765_v51, %v8769_v49  ;;  %v14063_v51 = vld [vmem:[#allocation115_spill] sm:$0xff] }
 0x73d   :  { %5429 = vmatpush1.bf16.msra.mxu1 %v12901_v25  ;;  %v5486_v19 = vcombine.high %v5484_v31, %v5484_v31  ;;  %v12918_v25 = vld [vmem:[#allocation4 + $0x4f0] ss:$8 sps:$4 sm:$0xff]  }
 0x73e   :  { %5619 = vmatpush1.bf16.msra.mxu0 %v12275_v34  ;;  %5430 = vmatprep.subr.bf16.mxu1 %v12905_v8  ;;  %v12914_v34 = vld [vmem:[#allocation4 + $0x4f4] ss:$8 sps:$4 sm:$0xff]   ;;  %14055 = vst [vmem:[#allocation67_spill] sm:$0xff] %v12918_v25 }
 0x73f   :  { %5620 = vmatprep.subr.bf16.mxu0 %v12279_v57  ;;  %14053 = vst [vmem:[#allocation66_spill] sm:$0xff] %v12914_v34  ;;  %v14054_v57 = vld [vmem:[#allocation29_spill] sm:$0xff]  ;;  %v14060_v8 = vld [vmem:[#allocation43_spill] sm:$0xff] }
 0x741   :  { %5431 = vmatpush1.bf16.msra.mxu1 %v12910_v7  ;;  %v14058_v7 = vld [vmem:[#allocation32_spill] sm:$0xff] }
 0x742   :  { %5621 = vmatpush1.bf16.msra.mxu0 %v13956_v16  ;;  %5432 = vmatprep.subr.bf16.mxu1 %v12914_v34  ;;  %v5515_v16 = vcombine.high %v12782_v47, %v12782_v47  ;;  %v14056_v34 = vld [vmem:[#allocation30_spill] sm:$0xff] }
 0x743   :  { %5622 = vmatprep.subr.bf16.mxu0 %v13958_v41  ;;  %v5514_v41 = vrot.slane %v5486_v19, %v8769_v49  ;;  %v14061_v47 = vld [vmem:[#allocation114_spill] sm:$0xff]  ;;  %v14065_v19 = vld [vmem:[#allocation116_spill] sm:$0xff] }
 0x745   :  { %5433 = vmatpush1.bf16.msra.mxu1 %v12918_v25  ;;  %v14059_v25 = vld [vmem:[#allocation33_spill] sm:$0xff] }
 0x746   :  { %5623 = vmatpush1.bf16.msra.mxu0 %v14054_v57  ;;  %v14057_v57 = vld [vmem:[#allocation31_spill] sm:$0xff] }
 0x747   :  { %5633 = vmatprep.subr.bf16.mxu0 %v12492_v29  ;;  %v14062_v29 = vld [vmem:[#allocation14_spill] sm:$0xff] }
 0x748   :  { %5435 = vmatmul.mubr.bf16.vlgmr.msra.gmra.mrb[36].mxu1 %v5220_v10  ;;  %v14067_v10 = vld [vmem:[#allocation117_spill] sm:$0xff] }
 0x749   :  { %5625 = vmatmul.mubr.bf16.vlgmr.msra.gmra.mrb[36].mxu0 %v5515_v16  ;;  %v14064_v16 = vld [vmem:[#allocation15_spill] sm:$0xff] }
 0x74a   :  { %5634 = vmatpush1.bf16.msra.mxu0 %v14056_v34  ;;  %5665 = vmatprep.mubr.bf16.mxu0 %v5514_v41  ;;  %v14066_v34 = vld [vmem:[#allocation16_spill] sm:$0xff] }
 0x74b   :  { %5635 = vmatprep.subr.bf16.mxu0 %v14057_v57  ;;  %v14068_v57 = vld [vmem:[#allocation17_spill] sm:$0xff] }
 0x74e   :  { %5636 = vmatpush1.bf16.msra.mxu0 %v14058_v7  ;;  %v14069_v7 = vld [vmem:[#allocation118_spill] sm:$0xff] }
 0x74f   :  { %5637 = vmatprep.subr.bf16.mxu0 %v14059_v25  ;;  %v14070_v25 = vld [vmem:[#allocation18_spill] sm:$0xff] }
 0x752   :  { %5638 = vmatpush1.bf16.msra.mxu0 %v14060_v8  ;;  %v14071_v8 = vld [vmem:[#allocation20_spill] sm:$0xff] }
 0x753   :  { %5639 = vmatprep.subr.bf16.mxu0 %v14061_v47  ;;  %v14072_v47 = vld [vmem:[#allocation23_spill] sm:$0xff] }
 0x756   :  { %5640 = vmatpush1.bf16.msra.mxu0 %v14062_v29  ;;  %v14073_v29 = vld [vmem:[#allocation25_spill] sm:$0xff] }
 0x757   :  { %5641 = vmatprep.subr.bf16.mxu0 %v14063_v51  ;;  %v14074_v51 = vld [vmem:[#allocation49_spill] sm:$0xff] }
 0x75a   :  { %5642 = vmatpush1.bf16.msra.mxu0 %v14064_v16  ;;  %v14075_v16 = vld [vmem:[#allocation46_spill] sm:$0xff] }
 0x75b   :  { %5643 = vmatprep.subr.bf16.mxu0 %v14065_v19  ;;  %v14076_v19 = vld [vmem:[#allocation47_spill] sm:$0xff] }
 0x75e   :  { %5644 = vmatpush1.bf16.msra.mxu0 %v14066_v34  ;;  %v14077_v34 = vld [vmem:[#allocation48_spill] sm:$0xff] }
 0x75f   :  { %5645 = vmatprep.subr.bf16.mxu0 %v14067_v10  ;;  %v14078_v10 = vld [vmem:[#allocation19_spill] sm:$0xff] }
 0x762   :  { %5646 = vmatpush1.bf16.msra.mxu0 %v14068_v57  ;;  %v14079_v57 = vld [vmem:[#allocation51_spill] sm:$0xff] }
 0x763   :  { %5647 = vmatprep.subr.bf16.mxu0 %v14069_v7  ;;  %v14080_v7 = vld [vmem:[#allocation53_spill] sm:$0xff] }
 0x766   :  { %5648 = vmatpush1.bf16.msra.mxu0 %v14070_v25  ;;  %v14081_v25 = vld [vmem:[#allocation54_spill] sm:$0xff] }
 0x767   :  { %5649 = vmatprep.subr.bf16.mxu0 %v14071_v8  ;;  %v14082_v8 = vld [vmem:[#allocation21_spill] sm:$0xff] }
 0x76a   :  { %5650 = vmatpush1.bf16.msra.mxu0 %v14072_v47  ;;  %v14083_v47 = vld [vmem:[#allocation22_spill] sm:$0xff] }
 0x76b   :  { %5651 = vmatprep.subr.bf16.mxu0 %v14073_v29  ;;  %v14084_v29 = vld [vmem:[#allocation24_spill] sm:$0xff] }
 0x76e   :  { %5652 = vmatpush1.bf16.msra.mxu0 %v14074_v51  ;;  %v14085_v51 = vld [vmem:[#allocation55_spill] sm:$0xff] }
 0x76f   :  { %5653 = vmatprep.subr.bf16.mxu0 %v14075_v16  ;;  %v12959_v16 = vrot.slane %v5484_v31, %v8769_v49  ;;  %v14087_v31 = vld [vmem:[#allocation57_spill] sm:$0xff] }
 0x772   :  { %5654 = vmatpush1.bf16.msra.mxu0 %v14076_v19  ;;  %v14086_v19 = vld [vmem:[#allocation56_spill] sm:$0xff] }
 0x773   :  { %5655 = vmatprep.subr.bf16.mxu0 %v14077_v34  ;;  %v5518_v34 = vcombine.high %v5514_v41, %v5514_v41  ;;  %v14088_v41 = vld [vmem:[#allocation124_spill] sm:$0xff] }
 0x776   :  { %5656 = vmatpush1.bf16.msra.mxu0 %v14078_v10  ;;  %v7967_v10 = vld [vmem:[#allocation7 + $0x40] sm:$0xff]  }
 0x777   :  { %5657 = vmatprep.subr.bf16.mxu0 %v14079_v57  ;;  %v7968_v57 = vld [vmem:[#allocation7] sm:$0xff]   ;;  %7215 = vmatprep.subr.bf16.mxu1 %v7967_v10 }
 0x778   :  { %7216 = vmatpush3.bf16.msra.mxu1 %v7968_v57  ;;  %v7973_v57 = vld [vmem:[#allocation7 + $0x58] sm:$0xff]  }
 0x77a   :  { %5658 = vmatpush1.bf16.msra.mxu0 %v14080_v7  ;;  %v7969_v7 = vld [vmem:[#allocation7 + $0x48] sm:$0xff]  }
 0x77b   :  { %5659 = vmatprep.subr.bf16.mxu0 %v14081_v25  ;;  %7217 = vmatprep.subr.bf16.mxu1 %v7969_v7  ;;  %v14089_v25 = vld [vmem:[#allocation58_spill] sm:$0xff]  ;;  %v7974_v7 = vld [vmem:[#allocation7 + $0x18] sm:$0xff]  }
 0x77e   :  { %5660 = vmatpush1.bf16.msra.mxu0 %v14082_v8 }
 0x77f   :  { %5661 = vmatprep.subr.bf16.mxu0 %v14083_v47  ;;  %v7971_v47 = vld [vmem:[#allocation7 + $0x50] sm:$0xff]  }
 0x782   :  { %5662 = vmatpush1.bf16.msra.mxu0 %v14084_v29 }
 0x783   :  { %5663 = vmatprep.subr.bf16.mxu0 %v12623_v39  ;;  %v7970_v39 = vld [vmem:[#allocation7 + $0x8] sm:$0xff]  }
 0x784   :  { %7218 = vmatpush3.bf16.msra.mxu1 %v7970_v39 }
 0x785   :  { %7219 = vmatprep.subr.bf16.mxu1 %v7971_v47  ;;  %v7991_v47 = vld [vmem:[#allocation7 + $0xe0] sm:$0xff]  }
 0x786   :  { %5664 = vmatpush1.bf16.msra.mxu0 %v14085_v51  ;;  %v7972_v51 = vld [vmem:[#allocation7 + $0x10] sm:$0xff]  }
 0x787   :  { %5674 = vmatprep.subr.bf16.mxu0 %v14086_v19 }
 0x788   :  { %7220 = vmatpush3.bf16.msra.mxu1 %v7972_v51  ;;  %v7994_v51 = vld [vmem:[#allocation7 + $0xa8] sm:$0xff]  }
 0x789   :  { %5666 = vmatmul.mubr.bf16.vlgmr.msra.gmra.mrb[36].mxu0 %v12959_v16  ;;  %7221 = vmatprep.subr.bf16.mxu1 %v7973_v57  ;;  %v7998_v57 = vld [vmem:[#allocation7 + $0xb8] sm:$0xff]  }
 0x78a   :  { %5675 = vmatpush1.bf16.msra.mxu0 %v12649_v44  ;;  %5706 = vmatprep.mubr.bf16.mxu0 %v5518_v34  ;;  %v14090_v44 = vld [vmem:[#allocation59_spill] sm:$0xff] }
 0x78b   :  { %5676 = vmatprep.subr.bf16.mxu0 %v12653_v48  ;;  %v14091_v48 = vld [vmem:[#allocation126_spill] sm:$0xff] }
 0x78c   :  { %7222 = vmatpush3.bf16.msra.mxu1 %v7974_v7  ;;  %v7999_v7 = vld [vmem:[#allocation7 + $0x140] sm:$0xff]  }
 0x78e   :  { %5677 = vmatpush1.bf16.msra.mxu0 %v12658_v5 }
 0x78f   :  { %5678 = vmatprep.subr.bf16.mxu0 %v12662_v35 }
 0x792   :  { %5679 = vmatpush1.bf16.msra.mxu0 %v12666_v17 }
 0x793   :  { %5680 = vmatprep.subr.bf16.mxu0 %v14087_v31 }
 0x796   :  { %5681 = vmatpush1.bf16.msra.mxu0 %v14088_v41  ;;  %v7975_v41 = vld [vmem:[#allocation7 + $0x60] sm:$0xff]  }
 0x797   :  { %5682 = vmatprep.subr.bf16.mxu0 %v14089_v25  ;;  %7223 = vmatprep.subr.bf16.mxu1 %v7975_v41  ;;  %v7978_v25 = vld [vmem:[#allocation7 + $0x28] sm:$0xff]  }
 0x79a   :  { %5683 = vmatpush1.bf16.msra.mxu0 %v14090_v44  ;;  %v7979_v44 = vld [vmem:[#allocation7 + $0x70] sm:$0xff]  }
 0x79b   :  { %5684 = vmatprep.subr.bf16.mxu0 %v14091_v48  ;;  %v7989_v48 = vld [vmem:[#allocation7 + $0xd8] sm:$0xff]  }
 0x79c   :  { %v5123_v8 = vpop.f32.mrb[32].mxu0 }
 0x79d   :  { %v7388_v29 = vadd.f32 %v5123_v8, %v12419_v32  ;;  %v5125_v5 = vpop.f32.mrb[33].mxu0  ;;  %v7990_v8 = vld [vmem:[#allocation7 + $0x98] sm:$0xff]  }
 0x79e   :  { %v7389_v35 = vadd.f32 %v5125_v5, %v12424_v23  ;;  %v5127_v19 = vpop.f32.mrb[34].mxu0  ;;  %5685 = vmatpush1.bf16.msra.mxu0 %v12692_v6  ;;  %v7976_v6 = vld [vmem:[#allocation7 + $0x20] sm:$0xff]   ;;  %v7993_v5 = vld [vmem:[#allocation7 + $0xe8] sm:$0xff]  }
 0x79f   :  { %v5130_v17 = vmax.f32 %v7388_v29, 0.0  ;;  %v5128_v34 = vpop.f32.mrb[35].mxu0  ;;  %5686 = vmatprep.subr.bf16.mxu0 %v12696_v59  ;;  %7224 = vmatpush3.bf16.msra.mxu1 %v7976_v6  ;;  %v7977_v59 = vld [vmem:[#allocation7 + $0x68] sm:$0xff]   ;;  %v7992_v29 = vld [vmem:[#allocation7 + $0xa0] sm:$0xff]  }
 0x7a0   :  { %v5131_v10 = vmax.f32 %v7389_v35, 0.0  ;;  %7225 = vmatprep.subr.bf16.mxu1 %v7977_v59  ;;  %v7995_v35 = vld [vmem:[#allocation7 + $0xf0] sm:$0xff]   ;;  %v7997_v34 = vld [vmem:[#allocation7 + $0xf8] sm:$0xff]   ;;  %v8002_v6 = vld [vmem:[#allocation7 + $0x148] sm:$0xff]  }
 0x7a2   :  { %v7116_v39 = vpack.c.bf16 %v5131_v10, %v5130_v17  ;;  %5687 = vmatpush1.bf16.msra.mxu0 %v12700_v54  ;;  %v7980_v54 = vld [vmem:[#allocation7 + $0x30] sm:$0xff]  }
 0x7a3   :  { %5688 = vmatprep.subr.bf16.mxu0 %v12704_v15  ;;  %7226 = vmatpush3.bf16.msra.mxu1 %v7978_v25  ;;  %v7981_v15 = vld [vmem:[#allocation7 + $0x78] sm:$0xff]   ;;  %v7996_v17 = vld [vmem:[#allocation7 + $0xb0] sm:$0xff]   ;;  %v8003_v25 = vld [vmem:[#allocation7 + $0x108] sm:$0xff]  }
 0x7a4   :  { %v5143_v31 = vrot.slane %v7116_v39, %v8769_v49  ;;  %7227 = vmatprep.subr.bf16.mxu1 %v7979_v44  ;;  %v8004_v44 = vld [vmem:[#allocation7 + $0x150] sm:$0xff]  }
 0x7a6   :  { %7117 = vst.sshfl [vmem:[#allocation3 + $0x4] sm:$0x5 pattern:$0x73625140] %v5143_v31  ;;  %5689 = vmatpush1.bf16.msra.mxu0 %v12709_v14  ;;  %v7982_v14 = vld [vmem:[#allocation7 + $0x38] sm:$0xff]   ;;  %v8000_v31 = vld [vmem:[#allocation7 + $0x100] sm:$0xff]  }
 0x7a7   :  { %5690 = vmatprep.subr.bf16.mxu0 %v12713_v11  ;;  %7228 = vmatpush3.bf16.msra.mxu1 %v7980_v54  ;;  %v7983_v11 = vld [vmem:[#allocation7 + $0xc0] sm:$0xff]   ;;  %v8005_v54 = vld [vmem:[#allocation7 + $0x110] sm:$0xff]  }
 0x7a8   :  { %7229 = vmatprep.subr.bf16.mxu1 %v7981_v15  ;;  %v8006_v15 = vld [vmem:[#allocation7 + $0x158] sm:$0xff]  }
 0x7aa   :  { %5691 = vmatpush1.bf16.msra.mxu0 %v12717_v26  ;;  %v14092_v26 = vld [vmem:[#allocation60_spill] sm:$0xff] }
 0x7ab   :  { %5692 = vmatprep.subr.bf16.mxu0 %v12721_v46  ;;  %7230 = vmatpush3.bf16.msra.mxu1 %v7982_v14  ;;  %v7121_v46 = vld.sshfl [vmem:[#allocation2 + $0x18] sm:$0x11 pattern:$0x75316420]  ;;  %v8007_v14 = vld [vmem:[#allocation7 + $0x118] sm:$0xff]  }
 0x7ac   :  { %7237 = vmatprep.subr.bf16.mxu1 %v7983_v11  ;;  %v8008_v11 = vld [vmem:[#allocation7 + $0x160] sm:$0xff]  }
 0x7ae   :  { %5693 = vmatpush1.bf16.msra.mxu0 %v12725_v13  ;;  %v14093_v13 = vld [vmem:[#allocation127_spill] sm:$0xff] }
 0x7af   :  { %5694 = vmatprep.subr.bf16.mxu0 %v12729_v61  ;;  %v5526_v61 = vcombine.high %v7121_v46, %v7121_v46 }
 0x7b2   :  { %5695 = vmatpush1.bf16.msra.mxu0 %v12733_v60  ;;  %v14094_v60 = vld [vmem:[#allocation61_spill] sm:$0xff] }
 0x7b3   :  { %5696 = vmatprep.subr.bf16.mxu0 %v12737_v36  ;;  %v5516_v36 = vcombine.high %v12959_v16, %v12959_v16  ;;  %v7988_v16 = vld [vmem:[#allocation7 + $0x90] sm:$0xff]  }
 0x7b6   :  { %5697 = vmatpush1.bf16.msra.mxu0 %v12741_v27  ;;  %v5540_v27 = vrot.slane %v5526_v61, %v8769_v49  ;;  %v8012_v61 = vld [vmem:[#allocation7 + $0x170] sm:$0xff]  }
 0x7b7   :  { %5698 = vmatprep.subr.bf16.mxu0 %v12745_v24  ;;  %v14095_v24 = vld [vmem:[#allocation128_spill] sm:$0xff] }
 0x7ba   :  { %5699 = vmatpush1.bf16.msra.mxu0 %v12749_v0  ;;  %v14096_v0 = vld [vmem:[#allocation62_spill] sm:$0xff] }
 0x7bb   :  { %5700 = vmatprep.subr.bf16.mxu0 %v12753_v28  ;;  %v14097_v28 = vld [vmem:[#allocation129_spill] sm:$0xff] }
 0x7be   :  { %5701 = vmatpush1.bf16.msra.mxu0 %v12757_v62  ;;  %v14098_v62 = vld [vmem:[#allocation63_spill] sm:$0xff] }
 0x7bf   :  { %5702 = vmatprep.subr.bf16.mxu0 %v14092_v26  ;;  %v8009_v26 = vld [vmem:[#allocation7 + $0x120] sm:$0xff]  }
 0x7c2   :  { %5703 = vmatpush1.bf16.msra.mxu0 %v14093_v13  ;;  %v8011_v13 = vld [vmem:[#allocation7 + $0x128] sm:$0xff]  }
 0x7c3   :  { %5704 = vmatprep.subr.bf16.mxu0 %v12771_v38  ;;  %v14101_v38 = vld [vmem:[#allocation66_spill] sm:$0xff] }
 0x7c6   :  { %5705 = vmatpush1.bf16.msra.mxu0 %v14094_v60  ;;  %v8013_v60 = vld [vmem:[#allocation7 + $0x130] sm:$0xff]  }
 0x7c7   :  { %5715 = vmatprep.subr.bf16.mxu0 %v12787_v50  ;;  %v14100_v50 = vld [vmem:[#allocation65_spill] sm:$0xff] }
 0x7c9   :  { %5707 = vmatmul.mubr.bf16.vlgmr.msra.gmra.mrb[36].mxu0 %v5516_v36  ;;  %v8014_v36 = vld [vmem:[#allocation7 + $0x178] sm:$0xff]  }
 0x7ca   :  { %5716 = vmatpush1.bf16.msra.mxu0 %v12795_v2  ;;  %5747 = vmatprep.mubr.bf16.mxu0 %v5540_v27  ;;  %v14099_v2 = vld [vmem:[#allocation64_spill] sm:$0xff] }
 0x7cb   :  { %5717 = vmatprep.subr.bf16.mxu0 %v12798_v42  ;;  %v14102_v42 = vld [vmem:[#allocation67_spill] sm:$0xff] }
 0x7cc   :  { %v8015_v27 = vld [vmem:[#allocation7 + $0x138] sm:$0xff]  }
 0x7ce   :  { %5718 = vmatpush1.bf16.msra.mxu0 %v12803_v53  ;;  %v5533_v53 = vrot.slane %v7121_v46, %v8769_v49  ;;  %v8010_v46 = vld [vmem:[#allocation7 + $0x168] sm:$0xff]  }
 0x7cf   :  { %5719 = vmatprep.subr.bf16.mxu0 %v14095_v24  ;;  %v8016_v24 = vld [vmem:[#allocation7 + $0x1c0] sm:$0xff]  }
 0x7d2   :  { %5720 = vmatpush1.bf16.msra.mxu0 %v14096_v0  ;;  %v8017_v0 = vld [vmem:[#allocation7 + $0x180] sm:$0xff]  }
 0x7d3   :  { %5721 = vmatprep.subr.bf16.mxu0 %v12815_v22 }
 0x7d6   :  { %5722 = vmatpush1.bf16.msra.mxu0 %v12819_v9 }
 0x7d7   :  { %5723 = vmatprep.subr.bf16.mxu0 %v12823_v18 }
 0x7da   :  { %5724 = vmatpush1.bf16.msra.mxu0 %v12827_v43 }
 0x7db   :  { %5725 = vmatprep.subr.bf16.mxu0 %v12831_v55 }
 0x7de   :  { %5726 = vmatpush1.bf16.msra.mxu0 %v12835_v33 }
 0x7df   :  { %5727 = vmatprep.subr.bf16.mxu0 %v12839_v30 }
 0x7e2   :  { %5728 = vmatpush1.bf16.msra.mxu0 %v12843_v3 }
 0x7e3   :  { %5729 = vmatprep.subr.bf16.mxu0 %v12847_v52 }
 0x7e6   :  { %5730 = vmatpush1.bf16.msra.mxu0 %v12851_v37 }
 0x7e7   :  { %5731 = vmatprep.subr.bf16.mxu0 %v12855_v63 }
 0x7ea   :  { %5732 = vmatpush1.bf16.msra.mxu0 %v12859_v4 }
 0x7eb   :  { %5733 = vmatprep.subr.bf16.mxu0 %v12863_v58 }
 0x7ee   :  { %5734 = vmatpush1.bf16.msra.mxu0 %v12867_v12 }
 0x7ef   :  { %5735 = vmatprep.subr.bf16.mxu0 %v12871_v45  ;;  %v7984_v45 = vld [vmem:[#allocation7 + $0x80] sm:$0xff]  }
 0x7f2   :  { %5736 = vmatpush1.bf16.msra.mxu0 %v12875_v56 }
 0x7f3   :  { %5737 = vmatprep.subr.bf16.mxu0 %v12879_v40  ;;  %v7985_v40 = vld [vmem:[#allocation7 + $0xc8] sm:$0xff]  }
 0x7f6   :  { %5738 = vmatpush1.bf16.msra.mxu0 %v12883_v1 }
 0x7f7   :  { %5739 = vmatprep.subr.bf16.mxu0 %v12887_v21  ;;  %v7986_v21 = vld [vmem:[#allocation7 + $0x88] sm:$0xff]  }
 0x7fa   :  { %5740 = vmatpush1.bf16.msra.mxu0 %v12891_v20  ;;  %v7987_v20 = vld [vmem:[#allocation7 + $0xd0] sm:$0xff]  }
 0x7fb   :  { %5741 = vmatprep.subr.bf16.mxu0 %v14097_v28 }
 0x7fe   :  { %5742 = vmatpush1.bf16.msra.mxu0 %v14098_v62  ;;  %v8018_v62 = vld [vmem:[#allocation7 + $0x1c8] sm:$0xff]  }
 0x7ff   :  { %5743 = vmatprep.subr.bf16.mxu0 %v14099_v2 }
 0x802   :  { %5744 = vmatpush1.bf16.msra.mxu0 %v14100_v50  ;;  %v8019_v50 = vld [vmem:[#allocation7 + $0x188] sm:$0xff]  }
 0x803   :  { %5745 = vmatprep.subr.bf16.mxu0 %v14101_v38  ;;  %v8020_v38 = vld [vmem:[#allocation7 + $0x1d0] sm:$0xff]  }
 0x806   :  { %5746 = vmatpush1.bf16.msra.mxu0 %v14102_v42  ;;  %v8021_v42 = vld [vmem:[#allocation7 + $0x190] sm:$0xff]  }
 0x809   :  { %5748 = vmatmul.mubr.bf16.vlgmr.msra.gmra.mrb[36].mxu0 %v5533_v53  ;;  %v8022_v53 = vld [vmem:[#allocation7 + $0x1d8] sm:$0xff]  }
 0x81b   :  { %v5436_v18 = vpop.f32.mrb[36].mxu1 }
 0x81c   :  { %v7390_v43 = vadd.f32 %v5436_v18, %v12419_v32  ;;  %v5438_v22 = vpop.f32.mrb[37].mxu1  ;;  %v8023_v18 = vld [vmem:[#allocation7 + $0x198] sm:$0xff]  }
 0x81d   :  { %v7391_v9 = vadd.f32 %v5438_v22, %v12424_v23  ;;  %v5440_v55 = vpop.f32.mrb[38].mxu1  ;;  %v8025_v22 = vld [vmem:[#allocation7 + $0x1a0] sm:$0xff]  }
 0x81e   :  { %v5443_v33 = vmax.f32 %v7390_v43, 0.0  ;;  %v5441_v30 = vpop.f32.mrb[39].mxu1  ;;  %v8024_v43 = vld [vmem:[#allocation7 + $0x1e0] sm:$0xff]   ;;  %v8027_v55 = vld [vmem:[#allocation7 + $0x1a8] sm:$0xff]  }
 0x81f   :  { %v5444_v3 = vmax.f32 %v7391_v9, 0.0  ;;  %v8026_v9 = vld [vmem:[#allocation7 + $0x1e8] sm:$0xff]   ;;  %v8029_v30 = vld [vmem:[#allocation7 + $0x1b0] sm:$0xff]  }
 0x821   :  { %v7119_v52 = vpack.c.bf16 %v5444_v3, %v5443_v33  ;;  %v8028_v33 = vld [vmem:[#allocation7 + $0x1f0] sm:$0xff]   ;;  %v8030_v3 = vld [vmem:[#allocation7 + $0x1f8] sm:$0xff]  }
 0x823   :  { %v5456_v37 = vrot.slane %v7119_v52, %v8769_v49  ;;  %v8031_v52 = vld [vmem:[#allocation7 + $0x1b8] sm:$0xff]  }
 0x825   :  { %7120 = vst.sshfl [vmem:[#allocation3 + $0x6] sm:$0x5 pattern:$0x73625140] %v5456_v37  ;;  %v8032_v37 = vld [vmem:[#allocation7 + $0x240] sm:$0xff]  }
 0x82c   :  { %v5946_v63 = vld [vmem:[#allocation3] sm:$0xff] }
 0x82d   :  { %v5957_v4 = vrot.slane %v5946_v63, %v8769_v49  ;;  %v5950_v19 = vcombine.high %v5946_v63, %v5946_v63  ;;  %v8033_v63 = vld [vmem:[#allocation7 + $0x200] sm:$0xff]  }
 0x82f   :  { %v5965_v58 = vcombine.high %v5957_v4, %v5957_v4  ;;  %v5973_v56 = vrot.slane %v5957_v4, %v8769_v49  ;;  %v5964_v10 = vrot.slane %v5950_v19, %v8769_v49 }
 0x831   :  { %v5987_v12 = vrot.slane %v5965_v58, %v8769_v49  ;;  %v5966_v39 = vcombine.high %v5964_v10, %v5964_v10  ;;  %v5995_v41 = vcombine.high %v5973_v56, %v5973_v56  ;;  %v5980_v28 = vrot.slane %v5964_v10, %v8769_v49  ;;  %v8034_v58 = vld [vmem:[#allocation7 + $0x248] sm:$0xff]  }
 0x833   :  { %6543 = vmatprep.mubr.bf16.mxu1 %v5987_v12  ;;  %v5997_v1 = vcombine.high %v5987_v12, %v5987_v12  ;;  %v5994_v59 = vrot.slane %v5966_v39, %v8769_v49  ;;  %v5996_v4 = vcombine.high %v5980_v28, %v5980_v28  ;;  %v8035_v12 = vld [vmem:[#allocation7 + $0x208] sm:$0xff]  }
 0x834   :  { %6544 = vmatmul.mubr.bf16.vlgmr.msra.gmra.mrb[40].mxu1 %v5973_v56  ;;  %v8037_v56 = vld [vmem:[#allocation7 + $0x210] sm:$0xff]  }
 0x835   :  { %7238 = vmatpush3.bf16.msra.mxu1 %v7984_v45  ;;  %6583 = vmatprep.mubr.bf16.mxu1 %v5997_v1  ;;  %v5998_v2 = vcombine.high %v5994_v59, %v5994_v59  ;;  %v8036_v45 = vld [vmem:[#allocation7 + $0x250] sm:$0xff]   ;;  %v8039_v1 = vld [vmem:[#allocation7 + $0x218] sm:$0xff]  }
 0x836   :  { %7239 = vmatprep.subr.bf16.mxu1 %v7985_v40  ;;  %v8038_v40 = vld [vmem:[#allocation7 + $0x258] sm:$0xff]  }
 0x839   :  { %7240 = vmatpush3.bf16.msra.mxu1 %v7986_v21  ;;  %v8040_v21 = vld [vmem:[#allocation7 + $0x260] sm:$0xff]  }
 0x83a   :  { %7241 = vmatprep.subr.bf16.mxu1 %v7987_v20  ;;  %v8041_v20 = vld [vmem:[#allocation7 + $0x220] sm:$0xff]  }
 0x83d   :  { %7242 = vmatpush3.bf16.msra.mxu1 %v7988_v16  ;;  %v8042_v16 = vld [vmem:[#allocation7 + $0x268] sm:$0xff]  }
 0x83e   :  { %7243 = vmatprep.subr.bf16.mxu1 %v7989_v48  ;;  %v8043_v48 = vld [vmem:[#allocation7 + $0x228] sm:$0xff]  }
 0x841   :  { %7244 = vmatpush3.bf16.msra.mxu1 %v7990_v8  ;;  %v8044_v8 = vld [vmem:[#allocation7 + $0x270] sm:$0xff]  }
 0x842   :  { %7245 = vmatprep.subr.bf16.mxu1 %v7991_v47  ;;  %v8045_v47 = vld [vmem:[#allocation7 + $0x230] sm:$0xff]  }
 0x845   :  { %7246 = vmatpush3.bf16.msra.mxu1 %v7992_v29  ;;  %v8046_v29 = vld [vmem:[#allocation7 + $0x278] sm:$0xff]  }
 0x846   :  { %7247 = vmatprep.subr.bf16.mxu1 %v7993_v5  ;;  %v8047_v5 = vld [vmem:[#allocation7 + $0x238] sm:$0xff]  }
 0x849   :  { %7248 = vmatpush3.bf16.msra.mxu1 %v7994_v51 }
 0x84a   :  { %7249 = vmatprep.subr.bf16.mxu1 %v7995_v35 }
 0x84d   :  { %7250 = vmatpush3.bf16.msra.mxu1 %v7996_v17 }
 0x84e   :  { %7251 = vmatprep.subr.bf16.mxu1 %v7997_v34 }
 0x851   :  { %7252 = vmatpush3.bf16.msra.mxu1 %v7998_v57 }
 0x852   :  { %7259 = vmatprep.subr.bf16.mxu1 %v7999_v7 }
 0x854   :  { %6584 = vmatmul.mubr.bf16.vlgmr.msra.gmra.mrb[44].mxu1 %v5995_v41 }
 0x855   :  { %7260 = vmatpush3.bf16.msra.mxu1 %v8000_v31  ;;  %6623 = vmatprep.mubr.bf16.mxu1 %v5994_v59  ;;  %v8494_v59 = vmov 0.0  }
 0x856   :  { %7261 = vmatprep.subr.bf16.mxu1 %v8002_v6 }
 0x859   :  { %7262 = vmatpush3.bf16.msra.mxu1 %v8003_v25 }
 0x85a   :  { %7263 = vmatprep.subr.bf16.mxu1 %v8004_v44  ;;  %v8049_v44 = vld [vmem:[%s13096_s7 + $0x8] sm:$0xff]  }
 0x85d   :  { %7264 = vmatpush3.bf16.msra.mxu1 %v8005_v54  ;;  %v8050_v54 = vld [vmem:[%s13096_s7 + $0x10] sm:$0xff]  }
 0x85e   :  { %7265 = vmatprep.subr.bf16.mxu1 %v8006_v15  ;;  %v8051_v15 = vld [vmem:[%s13096_s7 + $0x18] sm:$0xff]  }
 0x861   :  { %7266 = vmatpush3.bf16.msra.mxu1 %v8007_v14  ;;  %v8053_v14 = vld [vmem:[%s13096_s7 + $0x28] sm:$0xff]  }
 0x862   :  { %7267 = vmatprep.subr.bf16.mxu1 %v8008_v11 }
 0x865   :  { %7268 = vmatpush3.bf16.msra.mxu1 %v8009_v26 }
 0x866   :  { %7269 = vmatprep.subr.bf16.mxu1 %v8010_v46 }
 0x869   :  { %7270 = vmatpush3.bf16.msra.mxu1 %v8011_v13 }
 0x86a   :  { %7271 = vmatprep.subr.bf16.mxu1 %v8012_v61 }
 0x86d   :  { %7272 = vmatpush3.bf16.msra.mxu1 %v8013_v60  ;;  %v7124_v60 = vld [vmem:[%s13095_s6] ss:$0 sm:$0xff] }
 0x86e   :  { %7273 = vmatprep.subr.bf16.mxu1 %v8014_v36 }
 0x871   :  { %7274 = vmatpush3.bf16.msra.mxu1 %v8015_v27 }
 0x872   :  { %7281 = vmatprep.subr.bf16.mxu1 %v8016_v24 }
 0x874   :  { %6624 = vmatmul.mubr.bf16.vlgmr.msra.gmra.mrb[48].mxu1 %v5980_v28 }
 0x875   :  { %7282 = vmatpush3.bf16.msra.mxu1 %v8017_v0  ;;  %6663 = vmatprep.mubr.bf16.mxu1 %v5998_v2 }
 0x876   :  { %7283 = vmatprep.subr.bf16.mxu1 %v8018_v62 }
 0x879   :  { %7284 = vmatpush3.bf16.msra.mxu1 %v8019_v50 }
 0x87a   :  { %7285 = vmatprep.subr.bf16.mxu1 %v8020_v38  ;;  %v8054_v38 = vld [vmem:[%s13096_s7 + $0x30] sm:$0xff]  }
 0x87d   :  { %7286 = vmatpush3.bf16.msra.mxu1 %v8021_v42 }
 0x87e   :  { %7287 = vmatprep.subr.bf16.mxu1 %v8022_v53 }
 0x881   :  { %7288 = vmatpush3.bf16.msra.mxu1 %v8023_v18 }
 0x882   :  { %7289 = vmatprep.subr.bf16.mxu1 %v8024_v43 }
 0x885   :  { %7290 = vmatpush3.bf16.msra.mxu1 %v8025_v22 }
 0x886   :  { %7291 = vmatprep.subr.bf16.mxu1 %v8026_v9  ;;  %v8055_v9 = vld [vmem:[%s13096_s7 + $0x38] sm:$0xff]  }
 0x889   :  { %7292 = vmatpush3.bf16.msra.mxu1 %v8027_v55 }
 0x88a   :  { %7293 = vmatprep.subr.bf16.mxu1 %v8028_v33 }
 0x88d   :  { %7294 = vmatpush3.bf16.msra.mxu1 %v8029_v30 }
 0x88e   :  { %7295 = vmatprep.subr.bf16.mxu1 %v8030_v3 }
 0x891   :  { %7296 = vmatpush3.bf16.msra.mxu1 %v8031_v52 }
 0x892   :  { %7303 = vmatprep.subr.bf16.mxu1 %v8032_v37 }
 0x894   :  { %6664 = vmatmul.mubr.bf16.vlgmr.msra.gmra.mrb[52].mxu1 %v5996_v4 }
 0x895   :  { %7304 = vmatpush3.bf16.msra.mxu1 %v8033_v63 }
 0x896   :  { %7305 = vmatprep.subr.bf16.mxu1 %v8034_v58 }
 0x899   :  { %7306 = vmatpush3.bf16.msra.mxu1 %v8035_v12 }
 0x89a   :  { %7307 = vmatprep.subr.bf16.mxu1 %v8036_v45 }
 0x89d   :  { %7308 = vmatpush3.bf16.msra.mxu1 %v8037_v56 }
 0x89e   :  { %7309 = vmatprep.subr.bf16.mxu1 %v8038_v40 }
 0x8a1   :  { %7310 = vmatpush3.bf16.msra.mxu1 %v8039_v1 }
 0x8a2   :  { %7311 = vmatprep.subr.bf16.mxu1 %v8040_v21  ;;  %v7206_v21 = vld [vmem:[%s13097_s8] ss:$0 sm:$0xff] }
 0x8a5   :  { %7312 = vmatpush3.bf16.msra.mxu1 %v8041_v20 }
 0x8a6   :  { %7313 = vmatprep.subr.bf16.mxu1 %v8042_v16 }
 0x8a9   :  { %7314 = vmatpush3.bf16.msra.mxu1 %v8043_v48 }
 0x8aa   :  { %7315 = vmatprep.subr.bf16.mxu1 %v8044_v8 }
 0x8ad   :  { %7316 = vmatpush3.bf16.msra.mxu1 %v8045_v47 }
 0x8ae   :  { %7317 = vmatprep.subr.bf16.mxu1 %v8046_v29 }
 0x8b1   :  { %7318 = vmatpush3.bf16.msra.mxu1 %v8047_v5 }
 0x8b2   :  { %7334 = vmatprep.subr.bf16.mxu1 %v8494_v59 }
 0x8dc   :  { %v5749_v51 = vpop.f32.mrb[36].mxu0 }
 0x8dd   :  { %v7392_v35 = vadd.f32 %v5749_v51, %v12419_v32  ;;  %v5751_v19 = vpop.f32.mrb[37].mxu0  ;;  %v8048_v32 = vld [vmem:[%s13096_s7] sm:$0xff]  }
 0x8de   :  { %v7393_v17 = vadd.f32 %v5751_v19, %v12424_v23  ;;  %v5753_v34 = vpop.f32.mrb[38].mxu0 }
 0x8df   :  { %v5756_v10 = vmax.f32 %v7392_v35, 0.0  ;;  %v5754_v57 = vpop.f32.mrb[39].mxu0 }
 0x8e0   :  { %v5757_v7 = vmax.f32 %v7393_v17, 0.0 }
 0x8e2   :  { %v7122_v39 = vpack.c.bf16 %v5757_v7, %v5756_v10 }
 0x8e4   :  { %v5769_v31 = vrot.slane %v7122_v39, %v8769_v49 }
 0x8e6   :  { %7123 = vst.sshfl [vmem:[#allocation3 + $0x8] sm:$0x5 pattern:$0x73625140] %v5769_v31 }
 0x8ed   :  { %v7125_v41 = vld.sshfl [vmem:[#allocation3 + $0x8] sm:$0x11 pattern:$0x75316420] }
 0x8ee   :  { %v6006_v6 = vcombine.high %v7125_v41, %v7125_v41  ;;  %v6013_v23 = vrot.slane %v7125_v41, %v8769_v49 }
 0x8f0   :  { %v6020_v25 = vrot.slane %v6006_v6, %v8769_v49  ;;  %v8052_v49 = vld [vmem:[%s13096_s7 + $0x20] sm:$0xff]  }
 0x8f2   :  { %6703 = vmatprep.mubr.bf16.mxu1 %v6020_v25 }
 0x8f3   :  { %6704 = vmatmul.mubr.bf16.vlgmr.msra.gmra.mrb[56].mxu1 %v6013_v23 }
 0x8f4   :  { %7335 = vmatpush3.bf16.msra.mxu1 %v8048_v32  ;;  %7350 = vmatprep.mubr.msk.bf16.mxu1 %vm8495_vm0, %v8494_v59 }
 0x8f5   :  { %7336 = vmatprep.subr.bf16.mxu1 %v8494_v59 }
 0x8f8   :  { %7337 = vmatpush3.bf16.msra.mxu1 %v8049_v44 }
 0x8f9   :  { %7338 = vmatprep.subr.bf16.mxu1 %v8494_v59 }
 0x8fc   :  { %7339 = vmatpush3.bf16.msra.mxu1 %v8050_v54 }
 0x8fd   :  { %7340 = vmatprep.subr.bf16.mxu1 %v8494_v59 }
 0x900   :  { %7341 = vmatpush3.bf16.msra.mxu1 %v8051_v15 }
 0x901   :  { %7342 = vmatprep.subr.bf16.mxu1 %v8494_v59 }
 0x904   :  { %7343 = vmatpush3.bf16.msra.mxu1 %v8052_v49 }
 0x905   :  { %7344 = vmatprep.subr.bf16.mxu1 %v8494_v59 }
 0x907   :  { %v7231_v11 = vpop.f32.mrb[40].mxu1 }
 0x908   :  { %7345 = vmatpush3.bf16.msra.mxu1 %v8053_v14  ;;  %v7232_v26 = vpop.f32.mrb[41].mxu1 }
 0x909   :  { %7346 = vmatprep.subr.bf16.mxu1 %v8494_v59  ;;  %v7233_v46 = vadd.f32 %v7232_v26, %v7231_v11  ;;  %v7234_v13 = vpop.f32.mrb[42].mxu1 }
 0x90a   :  { %v7235_v61 = vpop.f32.mrb[43].mxu1 }
 0x90b   :  { %v6546_v24 = vadd.f32 %v7233_v46, %v7124_v60 }
 0x90c   :  { %7347 = vmatpush3.bf16.msra.mxu1 %v8054_v38 }
 0x90d   :  { %7348 = vmatprep.subr.bf16.mxu1 %v8494_v59 }
 0x910   :  { %7349 = vmatpush3.bf16.msra.mxu1 %v8055_v9 }
 0x927   :  { %v7253_v36 = vpop.f32.mrb[44].mxu1 }
 0x928   :  { %v7254_v27 = vpop.f32.mrb[45].mxu1 }
 0x929   :  { %v7255_v0 = vadd.f32 %v7254_v27, %v7253_v36  ;;  %v7256_v28 = vpop.f32.mrb[46].mxu1 }
 0x92a   :  { %v7257_v62 = vpop.f32.mrb[47].mxu1 }
 0x92b   :  { %v6586_v2 = vadd.f32 %v7255_v0, %v6546_v24 }
 0x947   :  { %v7275_v50 = vpop.f32.mrb[48].mxu1 }
 0x948   :  { %v7276_v42 = vpop.f32.mrb[49].mxu1 }
 0x949   :  { %v7277_v53 = vadd.f32 %v7276_v42, %v7275_v50  ;;  %v7278_v18 = vpop.f32.mrb[50].mxu1 }
 0x94a   :  { %v7279_v43 = vpop.f32.mrb[51].mxu1 }
 0x94b   :  { %v6626_v22 = vadd.f32 %v7277_v53, %v6586_v2 }
 0x967   :  { %v7297_v55 = vpop.f32.mrb[52].mxu1 }
 0x968   :  { %v7298_v33 = vpop.f32.mrb[53].mxu1 }
 0x969   :  { %v7299_v30 = vadd.f32 %v7298_v33, %v7297_v55  ;;  %v7300_v3 = vpop.f32.mrb[54].mxu1 }
 0x96a   :  { %v7301_v52 = vpop.f32.mrb[55].mxu1 }
 0x96b   :  { %v6666_v37 = vadd.f32 %v7299_v30, %v6626_v22 }
 0x9c6   :  { %v7319_v63 = vpop.f32.mrb[56].mxu1 }
 0x9c7   :  { %v7320_v4 = vpop.f32.mrb[57].mxu1 }
 0x9c8   :  { %v7321_v58 = vadd.f32 %v7320_v4, %v7319_v63  ;;  %v7322_v12 = vpop.f32.mrb[58].mxu1 }
 0x9c9   :  { %v7323_v45 = vpop.f32.mrb[59].mxu1 }
 0x9ca   :  { %v6706_v56 = vadd.f32 %v7321_v58, %v6666_v37 }
 0x9cc   :  { %v6711_v40 = vmax.f32 %v6706_v56, 0.0 }
 0x9ce   :  { %v6712_v1 = vpack.c.bf16 %v6711_v40, %v6711_v40 }
 0x9d0   :  { %7351 = vmatmul.mubr.bf16.vlgmr.msra.gmra.mrb[60].mxu1 %v6712_v1 }
 0xaa3   :  { %v6818_v20 = vpop.f32.mrb[60].mxu1 }
 0xaa4   :  { %v6819_v16 = vadd.f32 %v7206_v21, %v6818_v20  ;;  %v7352_v48 = vpop.f32.mrb[61].mxu1 }
 0xaa5   :  { %v6821_v8 = vpop.f32.mrb[62].mxu1 }
 0xaa6   :  { %6824 = vst [vmem:[#allocation9] sm:$0x3] %v6819_v16  ;;  %v7353_v47 = vpop.f32.mrb[63].mxu1 }
 0xaa7   :  { %8469 = shalt.err (!%p8466_p6)
}
 0xaa8   :  { %s8470_s8 = scalar_lea.hbm %s13098_s9, 32 }
 0xaa9   :  { %p8471_p7 = scmp.ne.s32.totalorder %s13098_s9, %s8470_s8  ;;  %p8474_p8 = scmp.lt.u32.totalorder %s8470_s8, %s13098_s9 }
 0xaab   :  { %p8476_p9 = pnand %p8474_p8, %p8471_p7 }
 0xaad   :  { %8479 = shalt.err (!%p8476_p9)
}
 0xaae   :  { %6834 = dma.vmem_to_hbm [thread:$0]  %s6832_s26, 32, %s13098_s9, [#allocation6]  }
 0xaaf   :  { %8484 = dma.done.wait [#allocation6], 32  }
 0xab0   :  { %8485 = vsyncadd [#allocation6], 4294967264 }
 0xab1   :  { %6838 = vsyncpa [#allocation5], 1 }
 0xab2   :  { %6839 = vsyncpa [#allocation8], 1 }
 0xab3   :  { %6840 = vsyncpa [#allocation6], 1 }

</bundles_post_ra>
